<compile_context>
chip_gen: v7x
topology: tpu7x:2x2x1
jax: 0.10.0
libtpu: 0.0.40
codegen_flags: <defaults>
</compile_context>

<pallas_src>
import functools

import jax
import jax.numpy as jnp
from jax import lax
from jax.experimental import pallas as pl
from jax.experimental.pallas import tpu as pltpu

_LANE = 128
_EPS = 1e-5
_HIGH = jax.lax.Precision.HIGHEST   # reference only


def _rup(x, m):
    return (x + m - 1) // m * m


def _pick_m_tile(m, target=1024):
    """Largest multiple-of-8 divisor of m that is <= target; else one full tile."""
    if m % 8 != 0:
        # TODO(synk): pad the flattened row axis (with zero rows) when N*H*W is
        # not a multiple of 8 instead of falling back to a single tile.
        return m
    cap = min(target, m)
    cap -= cap % 8
    for cand in range(cap, 7, -8):
        if m % cand == 0:
            return cand
    return m


def _vmem_limit_bytes():
    cap = 64 * 1024 * 1024
    try:
        info = pltpu.get_tpu_info()
        cap = int(getattr(info, "vmem_capacity_bytes", cap))
    except Exception:
        pass
    # v5e/v6e (128 MiB physical) -> 96 MiB; v7x (64 MiB) -> 48 MiB.
    return int(min(cap * 3 // 4, 96 * 1024 * 1024))


def _ce(flops, bytes_accessed):
    return pl.CostEstimate(flops=int(flops), transcendentals=0,
                           bytes_accessed=int(bytes_accessed))


# ---------------------------------------------------------------------------
# Pass 1: fused 1x1 stem conv (+ 1x1 downsample conv when cin != cout), on row
# tiles of the flattened (M, Cin) input; one read of x.  Also emits per-tile
# (sum, sumsq) partials for the BatchNorms.
# ---------------------------------------------------------------------------
def _stem_kernel(x_ref, w_ref, h1_ref, idn_ref, s1_ref, sd_ref, *, cmid_p):
    x = x_ref[...].astype(jnp.bfloat16)                                # (Mt, Cin)
    y = jnp.dot(x, w_ref[...], preferred_element_type=jnp.float32)     # (Mt, CmP+CoP)
    h1 = y[:, :cmid_p].astype(jnp.bfloat16)
    idn = y[:, cmid_p:].astype(jnp.bfloat16)
    h1_ref[...] = h1
    idn_ref[...] = idn
    h1f = h1.astype(jnp.float32)
    idf = idn.astype(jnp.float32)
    s1_ref[0] = jnp.concatenate(
        [jnp.sum(h1f, axis=0, keepdims=True),
         jnp.sum(h1f * h1f, axis=0, keepdims=True)], axis=0)
    sd_ref[0] = jnp.concatenate(
        [jnp.sum(idf, axis=0, keepdims=True),
         jnp.sum(idf * idf, axis=0, keepdims=True)], axis=0)


def _stem_kernel_id(x_ref, w_ref, h1_ref, s1_ref):
    """cin == cout: no downsample branch, only the stem 1x1 conv."""
    x = x_ref[...].astype(jnp.bfloat16)
    h1 = jnp.dot(x, w_ref[...], preferred_element_type=jnp.float32).astype(jnp.bfloat16)
    h1_ref[...] = h1
    h1f = h1.astype(jnp.float32)
    s1_ref[0] = jnp.concatenate(
        [jnp.sum(h1f, axis=0, keepdims=True),
         jnp.sum(h1f * h1f, axis=0, keepdims=True)], axis=0)


# ---------------------------------------------------------------------------
# Pass 2: BN1 (precomputed per-channel affine) + 3x3 conv (stride 1, pad 1).
# One image per grid step.  BN affine + bf16 cast happen once; three
# dx-shifted, x-boundary-masked taps are lane-stacked into a persistent bf16
# VMEM slab with a W-row zero halo; the conv is 3 accumulating MXU matmuls
# with K = 3*cmid_p (one per dy), each a static row slice of the slab.
# ---------------------------------------------------------------------------
def _conv3x3_kernel(h1_ref, sc_ref, sh_ref, w2_ref, h2_ref, s2_ref, slab_ref,
                    *, h, w, cmid_p):
    hw = h * w
    c3 = 3 * cmid_p
    f32 = jnp.float32

    # BN1 affine applied once, cast to bf16 once.
    h1a = (h1_ref[0].astype(f32) * sc_ref[...] + sh_ref[...]).astype(jnp.bfloat16)

    # dx = -1 / +1 taps: shift the flattened rows by one and zero the columns
    # that would wrap across image rows.
    xx = lax.broadcasted_iota(jnp.int32, (hw, 1), 0) % w
    zrow1 = jnp.zeros((1, cmid_p), jnp.bfloat16)
    shifted = jnp.concatenate([zrow1, h1a, zrow1], axis=0)            # (hw+2, C)
    left = jnp.where(xx > 0, shifted[0:hw], 0.0)                      # input[i-1]
    right = jnp.where(xx < w - 1, shifted[2:2 + hw], 0.0)             # input[i+1]

    # Persistent bf16 slab: rows [0,w) and [w+hw, w+hw+w) are the zero y-halo;
    # rows [w, w+hw) hold [left | center | right] lane-stacked (K = 3*C).
    zhalo = jnp.zeros((w, c3), jnp.bfloat16)
    slab_ref[0:w, :] = zhalo
    slab_ref[w + hw:w + hw + w, :] = zhalo
    slab_ref[w:w + hw, 0:cmid_p] = left
    slab_ref[w:w + hw, cmid_p:2 * cmid_p] = h1a
    slab_ref[w:w + hw, 2 * cmid_p:c3] = right

    # dy = -1, 0, +1 -> static row slices; 3 accumulating matmuls, K = 3*cmid_p.
    acc = jnp.dot(slab_ref[0:hw, :], w2_ref[0], preferred_element_type=f32)
    acc = acc + jnp.dot(slab_ref[w:w + hw, :], w2_ref[1], preferred_element_type=f32)
    acc = acc + jnp.dot(slab_ref[2 * w:2 * w + hw, :], w2_ref[2],
                        preferred_element_type=f32)

    h2 = acc.astype(jnp.bfloat16)
    h2_ref[0] = h2
    h2f = h2.astype(f32)
    s2_ref[0] = jnp.concatenate(
        [jnp.sum(h2f, axis=0, keepdims=True),
         jnp.sum(h2f * h2f, axis=0, keepdims=True)], axis=0)


# ---------------------------------------------------------------------------
# Pass 3: BN2 affine + 1x1 projection conv (w3), on flattened row tiles.
# ---------------------------------------------------------------------------
def _proj_kernel(h2_ref, sc_ref, sh_ref, w3_ref, h3_ref, s3_ref):
    h2 = h2_ref[...].astype(jnp.float32) * sc_ref[...] + sh_ref[...]
    h3 = jnp.dot(h2.astype(jnp.bfloat16), w3_ref[...],
                 preferred_element_type=jnp.float32).astype(jnp.bfloat16)
    h3_ref[...] = h3
    h3f = h3.astype(jnp.float32)
    s3_ref[0] = jnp.concatenate(
        [jnp.sum(h3f, axis=0, keepdims=True),
         jnp.sum(h3f * h3f, axis=0, keepdims=True)], axis=0)


# ---------------------------------------------------------------------------
# Pass 4: BN3 + BNd affines, residual add, ReLU, on flattened row tiles.
# (In the cin == cout case idn is x itself in f32 with scale 1 / shift 0.)
# ---------------------------------------------------------------------------
def _fuse_kernel(h3_ref, idn_ref, sc3_ref, sh3_ref, scd_ref, shd_ref, o_ref):
    h3 = h3_ref[...].astype(jnp.float32) * sc3_ref[...] + sh3_ref[...]
    idn = idn_ref[...].astype(jnp.float32) * scd_ref[...] + shd_ref[...]
    o_ref[...] = jnp.maximum(h3 + idn, 0.0).astype(o_ref.dtype)


def _bn_affine(stats, gamma, beta, count):
    """Per-tile (sum, sumsq) partials -> training-mode BN scale/shift, f32."""
    s = jnp.sum(stats[:, 0:1, :], axis=0)          # (1, C)
    ss = jnp.sum(stats[:, 1:2, :], axis=0)         # (1, C)
    mean = s / count
    # Single-pass var = E[x^2] - mean^2 (f32); fine at these scales.
    var = jnp.maximum(ss / count - mean * mean, 0.0)
    scale = gamma * lax.rsqrt(var + _EPS)
    shift = beta - mean * scale
    return scale, shift


def residual_block_pallas(x_nhwc, p, out_dtype=jnp.float32):
    """Forward pass.  x is NHWC; returns NHWC (no layout transposes on the kernel path)."""
    n, h, w, cin = x_nhwc.shape
    cmid = cin // 2
    cout = p["w3_t"].shape[0]
    hw = h * w
    m = n * hw
    cmid_p = _rup(cmid, _LANE)
    cout_p = _rup(cout, _LANE)
    has_ds = (cin != cout)
    # TODO(synk): for very large H*W additionally tile the spatial axis of the
    # 3x3-conv pass (1-row halo); here one image per grid step fits VMEM.

    m_tile = _pick_m_tile(m)
    gm = m // m_tile

    x2 = x_nhwc.reshape(m, cin)

    # --- weights: Torch OIHW -> matmul layout, zero-padded to 128 lanes, bf16.
    # Conv biases dropped: they cancel in training-mode BN mean subtraction.
    w1 = jnp.zeros((cin, cmid_p), jnp.float32).at[:, :cmid].set(p["w1_t"][:, :, 0, 0].T)
    if has_ds:
        wd = jnp.zeros((cin, cout_p), jnp.float32).at[:, :cout].set(p["wd_t"][:, :, 0, 0].T)
        w1wd = jnp.concatenate([w1, wd], axis=1).astype(jnp.bfloat16)   # (Cin, CmP+CoP)
    else:
        w1wd = w1.astype(jnp.bfloat16)                                   # (Cin, CmP)

    # 3x3 conv weights packed for K-stacking: (ky, kx*CmP + cin, cout).
    w2_hwio = jnp.transpose(p["w2_t"], (2, 3, 1, 0))                     # (3,3,Cm,Cm)
    w2 = (jnp.zeros((3, 3, cmid_p, cmid_p), jnp.float32)
          .at[:, :, :cmid, :cmid].set(w2_hwio)
          .reshape(3, 3 * cmid_p, cmid_p).astype(jnp.bfloat16))
    w3 = (jnp.zeros((cmid_p, cout_p), jnp.float32)
          .at[:cmid, :cout].set(p["w3_t"][:, :, 0, 0].T).astype(jnp.bfloat16))

    def padv(v, cp):   # gamma/beta zero-padded -> padded channels stay exactly 0
        return jnp.zeros((1, cp), jnp.float32).at[0, :v.shape[0]].set(v)

    g1, be1 = padv(p["g1"], cmid_p), padv(p["be1"], cmid_p)
    g2, be2 = padv(p["g2"], cmid_p), padv(p["be2"], cmid_p)
    g3, be3 = padv(p["g3"], cout_p), padv(p["be3"], cout_p)
    gd, bed = padv(p["gd"], cout_p), padv(p["bed"], cout_p)

    cparams = pltpu.CompilerParams(dimension_semantics=("parallel",),
                                   vmem_limit_bytes=_vmem_limit_bytes())

    row = lambda c: pl.BlockSpec((m_tile, c), lambda i: (i, 0))          # flattened row tile
    img = lambda c: pl.BlockSpec((1, hw, c), lambda i: (i, 0, 0))        # per-image tile
    st = lambda c: pl.BlockSpec((1, 2, c), lambda i: (i, 0, 0))          # per-tile stats
    vec = lambda c: pl.BlockSpec((1, c), lambda i: (0, 0))               # broadcast (1, C)
    full = lambda *s: pl.BlockSpec(s, lambda i: (0,) * len(s))           # whole weight

    # ---- pass 1: x @ [w1 | wd] (single read of x) ---------------------------
    if has_ds:
        h1_pre, idn_pre, st1, st_d = pl.pallas_call(
            functools.partial(_stem_kernel, cmid_p=cmid_p),
            grid=(gm,),
            in_specs=[row(cin), full(cin, cmid_p + cout_p)],
            out_specs=(row(cmid_p), row(cout_p), st(cmid_p), st(cout_p)),
            out_shape=(jax.ShapeDtypeStruct((m, cmid_p), jnp.bfloat16),
                       jax.ShapeDtypeStruct((m, cout_p), jnp.bfloat16),
                       jax.ShapeDtypeStruct((gm, 2, cmid_p), jnp.float32),
                       jax.ShapeDtypeStruct((gm, 2, cout_p), jnp.float32)),
            compiler_params=cparams,
            cost_estimate=_ce(2 * m * cin * (cmid_p + cout_p),
                              m * (cin * 4 + (cmid_p + cout_p) * 2)),
        )(x2, w1wd)
    else:
        h1_pre, st1 = pl.pallas_call(
            _stem_kernel_id,
            grid=(gm,),
            in_specs=[row(cin), full(cin, cmid_p)],
            out_specs=(row(cmid_p), st(cmid_p)),
            out_shape=(jax.ShapeDtypeStruct((m, cmid_p), jnp.bfloat16),
                       jax.ShapeDtypeStruct((gm, 2, cmid_p), jnp.float32)),
            compiler_params=cparams,
            cost_estimate=_ce(2 * m * cin * cmid_p, m * (cin * 4 + cmid_p * 2)),
        )(x2, w1wd)
        # Identity shortcut: use x directly (f32), lane-padded only if needed.
        idn_pre = x2 if cin == cout_p else jnp.pad(x2, ((0, 0), (0, cout_p - cin)))
        st_d = None

    sc1, sh1 = _bn_affine(st1, g1, be1, m)

    # ---- pass 2: BN1 + 3x3 conv (per image, K-stacked taps) ------------------
    h2_pre, st2 = pl.pallas_call(
        functools.partial(_conv3x3_kernel, h=h, w=w, cmid_p=cmid_p),
        grid=(n,),
        in_specs=[img(cmid_p), vec(cmid_p), vec(cmid_p), full(3, 3 * cmid_p, cmid_p)],
        out_specs=(img(cmid_p), st(cmid_p)),
        out_shape=(jax.ShapeDtypeStruct((n, hw, cmid_p), jnp.bfloat16),
                   jax.ShapeDtypeStruct((n, 2, cmid_p), jnp.float32)),
        scratch_shapes=[pltpu.VMEM((hw + 2 * w, 3 * cmid_p), jnp.bfloat16)],
        compiler_params=cparams,
        cost_estimate=_ce(2 * m * 9 * cmid_p * cmid_p,
                          m * cmid_p * 4 + 9 * cmid_p * cmid_p * 2),
    )(h1_pre.reshape(n, hw, cmid_p), sc1, sh1, w2)

    sc2, sh2 = _bn_affine(st2, g2, be2, m)

    # ---- pass 3: BN2 + 1x1 conv (w3) ----------------------------------------
    h3_pre, st3 = pl.pallas_call(
        _proj_kernel,
        grid=(gm,),
        in_specs=[row(cmid_p), vec(cmid_p), vec(cmid_p), full(cmid_p, cout_p)],
        out_specs=(row(cout_p), st(cout_p)),
        out_shape=(jax.ShapeDtypeStruct((m, cout_p), jnp.bfloat16),
                   jax.ShapeDtypeStruct((gm, 2, cout_p), jnp.float32)),
        compiler_params=cparams,
        cost_estimate=_ce(2 * m * cmid_p * cout_p, m * (cmid_p + cout_p) * 2),
    )(h2_pre.reshape(m, cmid_p), sc2, sh2, w3)

    sc3, sh3 = _bn_affine(st3, g3, be3, m)
    if has_ds:
        scd, shd = _bn_affine(st_d, gd, bed, m)
    else:
        scd = jnp.ones((1, cout_p), jnp.float32)
        shd = jnp.zeros((1, cout_p), jnp.float32)

    # ---- pass 4: BN3 + BNd + residual add + ReLU -----------------------------
    out_flat = pl.pallas_call(
        _fuse_kernel,
        grid=(gm,),
        in_specs=[row(cout_p), row(cout_p),
                  vec(cout_p), vec(cout_p), vec(cout_p), vec(cout_p)],
        out_specs=row(cout_p),
        out_shape=jax.ShapeDtypeStruct((m, cout_p), out_dtype),
        compiler_params=cparams,
        cost_estimate=_ce(6 * m * cout_p, m * cout_p * 10),
    )(h3_pre, idn_pre, sc3, sh3, scd, shd)

    out = out_flat if cout == cout_p else out_flat[:, :cout]
    return out.reshape(n, h, w, cout)


def residual_block_pallas_nchw(x_nchw, p):
    """Drop-in for the PyTorch NCHW interface (pays two layout transposes)."""
    y = residual_block_pallas(jnp.transpose(x_nchw, (0, 2, 3, 1)), p)
    return jnp.transpose(y, (0, 3, 1, 2))


def init_params(key, indim, outdim):
    """Deterministic synthetic params, stored in PyTorch (OIHW) layout."""
    cmid = indim // 2
    ks = jax.random.split(key, 16)

    def nrm(k, shape, scale=0.1):
        return scale * jax.random.normal(k, shape, jnp.float32)

    p = {}
    p["w1_t"] = nrm(ks[0], (cmid, indim, 1, 1));   p["b1"] = nrm(ks[1], (cmid,))
    p["w2_t"] = nrm(ks[2], (cmid, cmid, 3, 3));    p["b2"] = nrm(ks[3], (cmid,))
    p["w3_t"] = nrm(ks[4], (outdim, cmid, 1, 1));  p["b3"] = nrm(ks[5], (outdim,))
    p["wd_t"] = nrm(ks[6], (outdim, indim, 1, 1)); p["bd"] = nrm(ks[7], (outdim,))
    p["g1"] = 1.0 + nrm(ks[8], (cmid,));    p["be1"] = nrm(ks[9], (cmid,))
    p["g2"] = 1.0 + nrm(ks[10], (cmid,));   p["be2"] = nrm(ks[11], (cmid,))
    p["g3"] = 1.0 + nrm(ks[12], (outdim,)); p["be3"] = nrm(ks[13], (outdim,))
    p["gd"] = 1.0 + nrm(ks[14], (outdim,)); p["bed"] = nrm(ks[15], (outdim,))
    return p


def residual_block_ref(x, p):
    """Pure-JAX NCHW reference mirroring the PyTorch forward (training-mode BN, f32)."""
    def conv(inp, wt, b, pad):
        y = lax.conv_general_dilated(inp, wt, (1, 1), [(pad, pad), (pad, pad)],
                                     dimension_numbers=("NCHW", "OIHW", "NCHW"),
                                     precision=_HIGH)
        return y + b[None, :, None, None]

    def bn(y, g, be, eps=_EPS):
        mean = y.mean(axis=(0, 2, 3), keepdims=True)
        var = ((y - mean) ** 2).mean(axis=(0, 2, 3), keepdims=True)
        return ((y - mean) / jnp.sqrt(var + eps)
                * g[None, :, None, None] + be[None, :, None, None])

    h1 = bn(conv(x, p["w1_t"], p["b1"], 0), p["g1"], p["be1"])
    h2 = bn(conv(h1, p["w2_t"], p["b2"], 1), p["g2"], p["be2"])
    h3 = bn(conv(h2, p["w3_t"], p["b3"], 0), p["g3"], p["be3"])
    if p["wd_t"].shape[0] == p["wd_t"].shape[1]:   # indim == outdim -> nn.Identity()
        idn = x
    else:
        idn = bn(conv(x, p["wd_t"], p["bd"], 0), p["gd"], p["bed"])
    return jnp.maximum(h3 + idn, 0.0)


if __name__ == "__main__":
    # TODO(synk): BatchNorm running-mean/var buffer updates (a training-time side
    # effect that does not change the forward output) are not reproduced.
    key = jax.random.PRNGKey(0)
    kx, kp = jax.random.split(key)

    N, H, W = 2, 16, 16
    Cin, Cout = 8, 16          # indim != outdim -> downsample branch active

    x_nhwc = jax.random.normal(kx, (N, H, W, Cin), jnp.float32)
    params = init_params(kp, Cin, Cout)

    fwd = jax.jit(residual_block_pallas)
    out = jax.block_until_ready(fwd(x_nhwc, params))

    # Reference mirrors the PyTorch module exactly (NCHW, full f32 precision).
    x_nchw = jnp.transpose(x_nhwc, (0, 3, 1, 2))
    ref = jnp.transpose(residual_block_ref(x_nchw, params), (0, 2, 3, 1))

    assert out.shape == (N, H, W, Cout), out.shape
    err_max = float(jnp.max(jnp.abs(out - ref)))
    err_mean = float(jnp.mean(jnp.abs(out - ref)))
    # bf16 MXU matmuls vs an f32 HIGHEST-precision reference: expect O(1e-2)
    # absolute deviation on unit-variance activations; structural bugs are O(0.3+).
    assert err_max < 1e-1, f"max abs error too large: {err_max}"
    assert err_mean < 2e-2, f"mean abs error too large: {err_mean}"

    # Also exercise the cin == cout identity-shortcut path once.
    params_id = init_params(kp, Cin, Cin)
    out_id = jax.block_until_ready(jax.jit(residual_block_pallas)(x_nhwc, params_id))
    ref_id = jnp.transpose(residual_block_ref(x_nchw, params_id), (0, 2, 3, 1))
    assert float(jnp.max(jnp.abs(out_id - ref_id))) < 1e-1

    print("KERNEL_OK")
</pallas_src>

<mosaic_0001>
module attributes {stable_mosaic.version = 11 : i64} {
  func.func @_stem_kernel(%arg0: i32, %arg1: memref<512x8xf32, #tpu.memory_space<vmem>>, %arg2: memref<8x256xbf16, #tpu.memory_space<vmem>>, %arg3: memref<512x128xbf16, #tpu.memory_space<vmem>>, %arg4: memref<512x128xbf16, #tpu.memory_space<vmem>>, %arg5: memref<1x2x128xf32, #tpu.memory_space<vmem>>, %arg6: memref<1x2x128xf32, #tpu.memory_space<vmem>>) attributes {dimension_semantics = [#tpu.dimension_semantics<parallel>], iteration_bounds = array<i64: 1>, scalar_prefetch = 0 : i64, scratch_operands = 0 : i64, tpu.core_type = #tpu.core_type<tc>, window_params = [{transform_indices = @transform_0, window_bounds = array<i64: 512, 8>}, {pipeline_mode = #tpu.pipeline_mode<synchronous>, transform_indices = @transform_1, window_bounds = array<i64: 8, 256>}, {transform_indices = @transform_2, window_bounds = array<i64: 512, 128>}, {transform_indices = @transform_3, window_bounds = array<i64: 512, 128>}, {transform_indices = @transform_4, window_bounds = array<i64: 1, 2, 128>}, {transform_indices = @transform_5, window_bounds = array<i64: 1, 2, 128>}]} {
    %c0 = arith.constant 0 : index
    %c0_0 = arith.constant 0 : index
    %0 = vector.load %arg1[%c0, %c0_0] : memref<512x8xf32, #tpu.memory_space<vmem>>, vector<512x8xf32>
    %1 = arith.truncf %0 : vector<512x8xf32> to vector<512x8xbf16>
    %c0_1 = arith.constant 0 : index
    %c0_2 = arith.constant 0 : index
    %2 = vector.load %arg2[%c0_1, %c0_2] : memref<8x256xbf16, #tpu.memory_space<vmem>>, vector<8x256xbf16>
    %cst = arith.constant dense<0.000000e+00> : vector<512x256xf32>
    %3 = tpu.matmul %1, %2, %cst {dimension_numbers = #tpu.dot_dimension_numbers<[1], [0], [0], [1], [0, 0, 1, 1], [], []>} : vector<512x8xbf16>, vector<8x256xbf16>, vector<512x256xf32> -> vector<512x256xf32>
    %4 = vector.extract_strided_slice %3 {offsets = [0, 0], sizes = [512, 128], strides = [1, 1]} : vector<512x256xf32> to vector<512x128xf32>
    %5 = arith.truncf %4 : vector<512x128xf32> to vector<512x128xbf16>
    %6 = vector.extract_strided_slice %3 {offsets = [0, 128], sizes = [512, 128], strides = [1, 1]} : vector<512x256xf32> to vector<512x128xf32>
    %7 = arith.truncf %6 : vector<512x128xf32> to vector<512x128xbf16>
    %c0_3 = arith.constant 0 : index
    %c0_4 = arith.constant 0 : index
    %8 = vector.load %arg3[%c0_3, %c0_4] : memref<512x128xbf16, #tpu.memory_space<vmem>>, vector<512x128xbf16>
    tpu.vector_store %arg3[%c0_3, %c0_4], %5 {strides = array<i32>} : memref<512x128xbf16, #tpu.memory_space<vmem>>, vector<512x128xbf16>,
    %c0_5 = arith.constant 0 : index
    %c0_6 = arith.constant 0 : index
    %9 = vector.load %arg4[%c0_5, %c0_6] : memref<512x128xbf16, #tpu.memory_space<vmem>>, vector<512x128xbf16>
    tpu.vector_store %arg4[%c0_5, %c0_6], %7 {strides = array<i32>} : memref<512x128xbf16, #tpu.memory_space<vmem>>, vector<512x128xbf16>,
    %10 = arith.extf %5 : vector<512x128xbf16> to vector<512x128xf32>
    %11 = arith.extf %7 : vector<512x128xbf16> to vector<512x128xf32>
    %cst_7 = arith.constant dense<0.000000e+00> : vector<128xf32>
    %12 = vector.multi_reduction <add>, %10, %cst_7 [0] : vector<512x128xf32> to vector<128xf32>
    %13 = vector.shape_cast %12 : vector<128xf32> to vector<1x128xf32>
    %14 = arith.mulf %10, %10 : vector<512x128xf32>
    %cst_8 = arith.constant dense<0.000000e+00> : vector<128xf32>
    %15 = vector.multi_reduction <add>, %14, %cst_8 [0] : vector<512x128xf32> to vector<128xf32>
    %16 = vector.shape_cast %15 : vector<128xf32> to vector<1x128xf32>
    %17 = tpu.concatenate %13, %16 in 0 : vector<1x128xf32>, vector<1x128xf32> -> vector<2x128xf32>
    %c0_9 = arith.constant 0 : index
    %c0_10 = arith.constant 0 : index
    %c0_11 = arith.constant 0 : index
    %18 = vector.load %arg5[%c0_9, %c0_10, %c0_11] : memref<1x2x128xf32, #tpu.memory_space<vmem>>, vector<1x2x128xf32>
    %19 = vector.shape_cast %18 : vector<1x2x128xf32> to vector<2x128xf32>
    %20 = vector.shape_cast %17 : vector<2x128xf32> to vector<1x2x128xf32>
    tpu.vector_store %arg5[%c0_9, %c0_10, %c0_11], %20 {strides = array<i32>} : memref<1x2x128xf32, #tpu.memory_space<vmem>>, vector<1x2x128xf32>,
    %cst_12 = arith.constant dense<0.000000e+00> : vector<128xf32>
    %21 = vector.multi_reduction <add>, %11, %cst_12 [0] : vector<512x128xf32> to vector<128xf32>
    %22 = vector.shape_cast %21 : vector<128xf32> to vector<1x128xf32>
    %23 = arith.mulf %11, %11 : vector<512x128xf32>
    %cst_13 = arith.constant dense<0.000000e+00> : vector<128xf32>
    %24 = vector.multi_reduction <add>, %23, %cst_13 [0] : vector<512x128xf32> to vector<128xf32>
    %25 = vector.shape_cast %24 : vector<128xf32> to vector<1x128xf32>
    %26 = tpu.concatenate %22, %25 in 0 : vector<1x128xf32>, vector<1x128xf32> -> vector<2x128xf32>
    %c0_14 = arith.constant 0 : index
    %c0_15 = arith.constant 0 : index
    %c0_16 = arith.constant 0 : index
    %27 = vector.load %arg6[%c0_14, %c0_15, %c0_16] : memref<1x2x128xf32, #tpu.memory_space<vmem>>, vector<1x2x128xf32>
    %28 = vector.shape_cast %27 : vector<1x2x128xf32> to vector<2x128xf32>
    %29 = vector.shape_cast %26 : vector<2x128xf32> to vector<1x2x128xf32>
    tpu.vector_store %arg6[%c0_14, %c0_15, %c0_16], %29 {strides = array<i32>} : memref<1x2x128xf32, #tpu.memory_space<vmem>>, vector<1x2x128xf32>,
    return
  }
  func.func @transform_0(%arg0: i32) -> (i32, i32) {
    %c0_i32 = arith.constant 0 : i32
    %c0_i32_0 = arith.constant 0 : i32
    return %arg0, %c0_i32 : i32, i32
  }
  func.func @transform_1(%arg0: i32) -> (i32, i32) {
    %c0_i32 = arith.constant 0 : i32
    %c0_i32_0 = arith.constant 0 : i32
    %c0_i32_1 = arith.constant 0 : i32
    return %c0_i32, %c0_i32_0 : i32, i32
  }
  func.func @transform_2(%arg0: i32) -> (i32, i32) {
    %c0_i32 = arith.constant 0 : i32
    %c0_i32_0 = arith.constant 0 : i32
    return %arg0, %c0_i32 : i32, i32
  }
  func.func @transform_3(%arg0: i32) -> (i32, i32) {
    %c0_i32 = arith.constant 0 : i32
    %c0_i32_0 = arith.constant 0 : i32
    return %arg0, %c0_i32 : i32, i32
  }
  func.func @transform_4(%arg0: i32) -> (i32, i32, i32) {
    %c0_i32 = arith.constant 0 : i32
    %c0_i32_0 = arith.constant 0 : i32
    %c0_i32_1 = arith.constant 0 : i32
    return %arg0, %c0_i32, %c0_i32_0 : i32, i32, i32
  }
  func.func @transform_5(%arg0: i32) -> (i32, i32, i32) {
    %c0_i32 = arith.constant 0 : i32
    %c0_i32_0 = arith.constant 0 : i32
    %c0_i32_1 = arith.constant 0 : i32
    return %arg0, %c0_i32, %c0_i32_0 : i32, i32, i32
  }
}

module attributes {stable_mosaic.version = 11 : i64} {
  func.func @_conv3x3_kernel(%arg0: i32, %arg1: memref<1x256x128xbf16, #tpu.memory_space<vmem>>, %arg2: memref<1x128xf32, #tpu.memory_space<vmem>>, %arg3: memref<1x128xf32, #tpu.memory_space<vmem>>, %arg4: memref<3x384x128xbf16, #tpu.memory_space<vmem>>, %arg5: memref<1x256x128xbf16, #tpu.memory_space<vmem>>, %arg6: memref<1x2x128xf32, #tpu.memory_space<vmem>>, %arg7: memref<288x384xbf16, #tpu.memory_space<vmem>>) attributes {dimension_semantics = [#tpu.dimension_semantics<parallel>], iteration_bounds = array<i64: 2>, scalar_prefetch = 0 : i64, scratch_operands = 1 : i64, tpu.core_type = #tpu.core_type<tc>, window_params = [{transform_indices = @transform_0, window_bounds = array<i64: 1, 256, 128>}, {pipeline_mode = #tpu.pipeline_mode<synchronous>, transform_indices = @transform_1, window_bounds = array<i64: 1, 128>}, {pipeline_mode = #tpu.pipeline_mode<synchronous>, transform_indices = @transform_2, window_bounds = array<i64: 1, 128>}, {pipeline_mode = #tpu.pipeline_mode<synchronous>, transform_indices = @transform_3, window_bounds = array<i64: 3, 384, 128>}, {transform_indices = @transform_4, window_bounds = array<i64: 1, 256, 128>}, {transform_indices = @transform_5, window_bounds = array<i64: 1, 2, 128>}]} {
    %c0 = arith.constant 0 : index
    %c0_0 = arith.constant 0 : index
    %c0_1 = arith.constant 0 : index
    %0 = vector.load %arg1[%c0, %c0_0, %c0_1] : memref<1x256x128xbf16, #tpu.memory_space<vmem>>, vector<1x256x128xbf16>
    %1 = vector.shape_cast %0 : vector<1x256x128xbf16> to vector<256x128xbf16>
    %2 = arith.extf %1 : vector<256x128xbf16> to vector<256x128xf32>
    %c0_2 = arith.constant 0 : index
    %c0_3 = arith.constant 0 : index
    %3 = vector.load %arg2[%c0_2, %c0_3] : memref<1x128xf32, #tpu.memory_space<vmem>>, vector<1x128xf32>
    %4 = vector.broadcast %3 : vector<1x128xf32> to vector<256x128xf32>
    %5 = arith.mulf %2, %4 : vector<256x128xf32>
    %c0_4 = arith.constant 0 : index
    %c0_5 = arith.constant 0 : index
    %6 = vector.load %arg3[%c0_4, %c0_5] : memref<1x128xf32, #tpu.memory_space<vmem>>, vector<1x128xf32>
    %7 = vector.broadcast %6 : vector<1x128xf32> to vector<256x128xf32>
    %8 = arith.addf %5, %7 : vector<256x128xf32>
    %9 = arith.truncf %8 : vector<256x128xf32> to vector<256x128xbf16>
    %10 = tpu.iota {dimensions = array<i32: 0>} : vector<256x1xi32>
    %c16_i32 = arith.constant 16 : i32
    %c0_i32 = arith.constant 0 : i32
    %11 = arith.cmpi eq, %c16_i32, %c0_i32 : i32
    %c1_i32 = arith.constant 1 : i32
    %12 = arith.select %11, %c1_i32, %c16_i32 : i32
    %13 = vector.broadcast %12 : i32 to vector<256x1xi32>
    %14 = arith.remsi %10, %13 : vector<256x1xi32>
    %c0_i32_6 = arith.constant 0 : i32
    %15 = vector.broadcast %c0_i32_6 : i32 to vector<256x1xi32>
    %16 = arith.cmpi ne, %14, %15 : vector<256x1xi32>
    %c0_i32_7 = arith.constant 0 : i32
    %17 = vector.broadcast %c0_i32_7 : i32 to vector<256x1xi32>
    %18 = arith.cmpi slt, %14, %17 : vector<256x1xi32>
    %c0_i32_8 = arith.constant 0 : i32
    %19 = arith.cmpi slt, %12, %c0_i32_8 : i32
    %20 = vector.broadcast %19 : i1 to vector<256x1xi1>
    %21 = vector.broadcast %20 : vector<256x1xi1> to vector<256x1xi1>
    %22 = arith.xori %18, %21 : vector<256x1xi1>
    %23 = arith.andi %22, %16 : vector<256x1xi1>
    %24 = vector.broadcast %12 : i32 to vector<256x1xi32>
    %25 = arith.addi %14, %24 : vector<256x1xi32>
    %26 = arith.select %23, %25, %14 : vector<256x1xi1>, vector<256x1xi32>
    %cst = arith.constant 0.000000e+00 : bf16
    %27 = vector.broadcast %cst : bf16 to vector<1x128xbf16>
    %28 = tpu.concatenate %27, %9, %27 in 0 : vector<1x128xbf16>, vector<256x128xbf16>, vector<1x128xbf16> -> vector<258x128xbf16>
    %c0_i32_9 = arith.constant 0 : i32
    %29 = vector.broadcast %c0_i32_9 : i32 to vector<256x1xi32>
    %30 = arith.cmpi sgt, %26, %29 : vector<256x1xi32>
    %31 = vector.extract_strided_slice %28 {offsets = [0, 0], sizes = [256, 128], strides = [1, 1]} : vector<258x128xbf16> to vector<256x128xbf16>
    %cst_10 = arith.constant 0.000000e+00 : f32
    %32 = arith.truncf %cst_10 : f32 to bf16
    %33 = vector.shape_cast %30 : vector<256x1xi1> to vector<256x1xi1>
    %34 = vector.broadcast %33 : vector<256x1xi1> to vector<256x128xi1>
    %35 = vector.broadcast %32 : bf16 to vector<256x128xbf16>
    %36 = arith.select %34, %31, %35 : vector<256x128xi1>, vector<256x128xbf16>
    %c15_i32 = arith.constant 15 : i32
    %37 = vector.broadcast %c15_i32 : i32 to vector<256x1xi32>
    %38 = arith.cmpi slt, %26, %37 : vector<256x1xi32>
    %39 = vector.extract_strided_slice %28 {offsets = [2, 0], sizes = [256, 128], strides = [1, 1]} : vector<258x128xbf16> to vector<256x128xbf16>
    %cst_11 = arith.constant 0.000000e+00 : f32
    %40 = arith.truncf %cst_11 : f32 to bf16
    %41 = vector.shape_cast %38 : vector<256x1xi1> to vector<256x1xi1>
    %42 = vector.broadcast %41 : vector<256x1xi1> to vector<256x128xi1>
    %43 = vector.broadcast %40 : bf16 to vector<256x128xbf16>
    %44 = arith.select %42, %39, %43 : vector<256x128xi1>, vector<256x128xbf16>
    %cst_12 = arith.constant 0.000000e+00 : bf16
    %45 = vector.broadcast %cst_12 : bf16 to vector<16x384xbf16>
    %c0_13 = arith.constant 0 : index
    %c0_14 = arith.constant 0 : index
    %46 = vector.load %arg7[%c0_13, %c0_14] : memref<288x384xbf16, #tpu.memory_space<vmem>>, vector<16x384xbf16>
    tpu.vector_store %arg7[%c0_13, %c0_14], %45 {strides = array<i32>} : memref<288x384xbf16, #tpu.memory_space<vmem>>, vector<16x384xbf16>,
    %c272 = arith.constant 272 : index
    %c0_15 = arith.constant 0 : index
    %47 = vector.load %arg7[%c272, %c0_15] : memref<288x384xbf16, #tpu.memory_space<vmem>>, vector<16x384xbf16>
    tpu.vector_store %arg7[%c272, %c0_15], %45 {strides = array<i32>} : memref<288x384xbf16, #tpu.memory_space<vmem>>, vector<16x384xbf16>,
    %c16 = arith.constant 16 : index
    %c0_16 = arith.constant 0 : index
    %48 = vector.load %arg7[%c16, %c0_16] : memref<288x384xbf16, #tpu.memory_space<vmem>>, vector<256x128xbf16>
    tpu.vector_store %arg7[%c16, %c0_16], %36 {strides = array<i32>} : memref<288x384xbf16, #tpu.memory_space<vmem>>, vector<256x128xbf16>,
    %c16_17 = arith.constant 16 : index
    %c128 = arith.constant 128 : index
    %49 = vector.load %arg7[%c16_17, %c128] : memref<288x384xbf16, #tpu.memory_space<vmem>>, vector<256x128xbf16>
    tpu.vector_store %arg7[%c16_17, %c128], %9 {strides = array<i32>} : memref<288x384xbf16, #tpu.memory_space<vmem>>, vector<256x128xbf16>,
    %c16_18 = arith.constant 16 : index
    %c256 = arith.constant 256 : index
    %50 = vector.load %arg7[%c16_18, %c256] : memref<288x384xbf16, #tpu.memory_space<vmem>>, vector<256x128xbf16>
    tpu.vector_store %arg7[%c16_18, %c256], %44 {strides = array<i32>} : memref<288x384xbf16, #tpu.memory_space<vmem>>, vector<256x128xbf16>,
    %c0_19 = arith.constant 0 : index
    %c0_20 = arith.constant 0 : index
    %51 = vector.load %arg7[%c0_19, %c0_20] : memref<288x384xbf16, #tpu.memory_space<vmem>>, vector<256x384xbf16>
    %c0_21 = arith.constant 0 : index
    %c0_22 = arith.constant 0 : index
    %c0_23 = arith.constant 0 : index
    %52 = vector.load %arg4[%c0_21, %c0_22, %c0_23] : memref<3x384x128xbf16, #tpu.memory_space<vmem>>, vector<1x384x128xbf16>
    %53 = vector.shape_cast %52 : vector<1x384x128xbf16> to vector<384x128xbf16>
    %cst_24 = arith.constant dense<0.000000e+00> : vector<256x128xf32>
    %54 = tpu.matmul %51, %53, %cst_24 {dimension_numbers = #tpu.dot_dimension_numbers<[1], [0], [0], [1], [0, 0, 1, 1], [], []>} : vector<256x384xbf16>, vector<384x128xbf16>, vector<256x128xf32> -> vector<256x128xf32>
    %c16_25 = arith.constant 16 : index
    %c0_26 = arith.constant 0 : index
    %55 = vector.load %arg7[%c16_25, %c0_26] : memref<288x384xbf16, #tpu.memory_space<vmem>>, vector<256x384xbf16>
    %c1 = arith.constant 1 : index
    %c0_27 = arith.constant 0 : index
    %c0_28 = arith.constant 0 : index
    %56 = vector.load %arg4[%c1, %c0_27, %c0_28] : memref<3x384x128xbf16, #tpu.memory_space<vmem>>, vector<1x384x128xbf16>
    %57 = vector.shape_cast %56 : vector<1x384x128xbf16> to vector<384x128xbf16>
    %cst_29 = arith.constant dense<0.000000e+00> : vector<256x128xf32>
    %58 = tpu.matmul %55, %57, %cst_29 {dimension_numbers = #tpu.dot_dimension_numbers<[1], [0], [0], [1], [0, 0, 1, 1], [], []>} : vector<256x384xbf16>, vector<384x128xbf16>, vector<256x128xf32> -> vector<256x128xf32>
    %59 = arith.addf %54, %58 : vector<256x128xf32>
    %c32 = arith.constant 32 : index
    %c0_30 = arith.constant 0 : index
    %60 = vector.load %arg7[%c32, %c0_30] : memref<288x384xbf16, #tpu.memory_space<vmem>>, vector<256x384xbf16>
    %c2 = arith.constant 2 : index
    %c0_31 = arith.constant 0 : index
    %c0_32 = arith.constant 0 : index
    %61 = vector.load %arg4[%c2, %c0_31, %c0_32] : memref<3x384x128xbf16, #tpu.memory_space<vmem>>, vector<1x384x128xbf16>
    %62 = vector.shape_cast %61 : vector<1x384x128xbf16> to vector<384x128xbf16>
    %cst_33 = arith.constant dense<0.000000e+00> : vector<256x128xf32>
    %63 = tpu.matmul %60, %62, %cst_33 {dimension_numbers = #tpu.dot_dimension_numbers<[1], [0], [0], [1], [0, 0, 1, 1], [], []>} : vector<256x384xbf16>, vector<384x128xbf16>, vector<256x128xf32> -> vector<256x128xf32>
    %64 = arith.addf %59, %63 : vector<256x128xf32>
    %65 = arith.truncf %64 : vector<256x128xf32> to vector<256x128xbf16>
    %c0_34 = arith.constant 0 : index
    %c0_35 = arith.constant 0 : index
    %c0_36 = arith.constant 0 : index
    %66 = vector.load %arg5[%c0_34, %c0_35, %c0_36] : memref<1x256x128xbf16, #tpu.memory_space<vmem>>, vector<1x256x128xbf16>
    %67 = vector.shape_cast %66 : vector<1x256x128xbf16> to vector<256x128xbf16>
    %68 = vector.shape_cast %65 : vector<256x128xbf16> to vector<1x256x128xbf16>
    tpu.vector_store %arg5[%c0_34, %c0_35, %c0_36], %68 {strides = array<i32>} : memref<1x256x128xbf16, #tpu.memory_space<vmem>>, vector<1x256x128xbf16>,
    %69 = arith.extf %65 : vector<256x128xbf16> to vector<256x128xf32>
    %cst_37 = arith.constant dense<0.000000e+00> : vector<128xf32>
    %70 = vector.multi_reduction <add>, %69, %cst_37 [0] : vector<256x128xf32> to vector<128xf32>
    %71 = vector.shape_cast %70 : vector<128xf32> to vector<1x128xf32>
    %72 = arith.mulf %69, %69 : vector<256x128xf32>
    %cst_38 = arith.constant dense<0.000000e+00> : vector<128xf32>
    %73 = vector.multi_reduction <add>, %72, %cst_38 [0] : vector<256x128xf32> to vector<128xf32>
    %74 = vector.shape_cast %73 : vector<128xf32> to vector<1x128xf32>
    %75 = tpu.concatenate %71, %74 in 0 : vector<1x128xf32>, vector<1x128xf32> -> vector<2x128xf32>
    %c0_39 = arith.constant 0 : index
    %c0_40 = arith.constant 0 : index
    %c0_41 = arith.constant 0 : index
    %76 = vector.load %arg6[%c0_39, %c0_40, %c0_41] : memref<1x2x128xf32, #tpu.memory_space<vmem>>, vector<1x2x128xf32>
    %77 = vector.shape_cast %76 : vector<1x2x128xf32> to vector<2x128xf32>
    %78 = vector.shape_cast %75 : vector<2x128xf32> to vector<1x2x128xf32>
    tpu.vector_store %arg6[%c0_39, %c0_40, %c0_41], %78 {strides = array<i32>} : memref<1x2x128xf32, #tpu.memory_space<vmem>>, vector<1x2x128xf32>,
    return
  }
  func.func @transform_0(%arg0: i32) -> (i32, i32, i32) {
    %c0_i32 = arith.constant 0 : i32
    %c0_i32_0 = arith.constant 0 : i32
    %c0_i32_1 = arith.constant 0 : i32
    return %arg0, %c0_i32, %c0_i32_0 : i32, i32, i32
  }
  func.func @transform_1(%arg0: i32) -> (i32, i32) {
    %c0_i32 = arith.constant 0 : i32
    %c0_i32_0 = arith.constant 0 : i32
    %c0_i32_1 = arith.constant 0 : i32
    return %c0_i32, %c0_i32_0 : i32, i32
  }
  func.func @transform_2(%arg0: i32) -> (i32, i32) {
    %c0_i32 = arith.constant 0 : i32
    %c0_i32_0 = arith.constant 0 : i32
    %c0_i32_1 = arith.constant 0 : i32
    return %c0_i32, %c0_i32_0 : i32, i32
  }
  func.func @transform_3(%arg0: i32) -> (i32, i32, i32) {
    %c0_i32 = arith.constant 0 : i32
    %c0_i32_0 = arith.constant 0 : i32
    %c0_i32_1 = arith.constant 0 : i32
    %c0_i32_2 = arith.constant 0 : i32
    return %c0_i32, %c0_i32_0, %c0_i32_1 : i32, i32, i32
  }
  func.func @transform_4(%arg0: i32) -> (i32, i32, i32) {
    %c0_i32 = arith.constant 0 : i32
    %c0_i32_0 = arith.constant 0 : i32
    %c0_i32_1 = arith.constant 0 : i32
    return %arg0, %c0_i32, %c0_i32_0 : i32, i32, i32
  }
  func.func @transform_5(%arg0: i32) -> (i32, i32, i32) {
    %c0_i32 = arith.constant 0 : i32
    %c0_i32_0 = arith.constant 0 : i32
    %c0_i32_1 = arith.constant 0 : i32
    return %arg0, %c0_i32, %c0_i32_0 : i32, i32, i32
  }
}

module attributes {stable_mosaic.version = 11 : i64} {
  func.func @_proj_kernel(%arg0: i32, %arg1: memref<512x128xbf16, #tpu.memory_space<vmem>>, %arg2: memref<1x128xf32, #tpu.memory_space<vmem>>, %arg3: memref<1x128xf32, #tpu.memory_space<vmem>>, %arg4: memref<128x128xbf16, #tpu.memory_space<vmem>>, %arg5: memref<512x128xbf16, #tpu.memory_space<vmem>>, %arg6: memref<1x2x128xf32, #tpu.memory_space<vmem>>) attributes {dimension_semantics = [#tpu.dimension_semantics<parallel>], iteration_bounds = array<i64: 1>, scalar_prefetch = 0 : i64, scratch_operands = 0 : i64, tpu.core_type = #tpu.core_type<tc>, window_params = [{transform_indices = @transform_0, window_bounds = array<i64: 512, 128>}, {pipeline_mode = #tpu.pipeline_mode<synchronous>, transform_indices = @transform_1, window_bounds = array<i64: 1, 128>}, {pipeline_mode = #tpu.pipeline_mode<synchronous>, transform_indices = @transform_2, window_bounds = array<i64: 1, 128>}, {pipeline_mode = #tpu.pipeline_mode<synchronous>, transform_indices = @transform_3, window_bounds = array<i64: 128, 128>}, {transform_indices = @transform_4, window_bounds = array<i64: 512, 128>}, {transform_indices = @transform_5, window_bounds = array<i64: 1, 2, 128>}]} {
    %c0 = arith.constant 0 : index
    %c0_0 = arith.constant 0 : index
    %0 = vector.load %arg1[%c0, %c0_0] : memref<512x128xbf16, #tpu.memory_space<vmem>>, vector<512x128xbf16>
    %1 = arith.extf %0 : vector<512x128xbf16> to vector<512x128xf32>
    %c0_1 = arith.constant 0 : index
    %c0_2 = arith.constant 0 : index
    %2 = vector.load %arg2[%c0_1, %c0_2] : memref<1x128xf32, #tpu.memory_space<vmem>>, vector<1x128xf32>
    %3 = vector.broadcast %2 : vector<1x128xf32> to vector<512x128xf32>
    %4 = arith.mulf %1, %3 : vector<512x128xf32>
    %c0_3 = arith.constant 0 : index
    %c0_4 = arith.constant 0 : index
    %5 = vector.load %arg3[%c0_3, %c0_4] : memref<1x128xf32, #tpu.memory_space<vmem>>, vector<1x128xf32>
    %6 = vector.broadcast %5 : vector<1x128xf32> to vector<512x128xf32>
    %7 = arith.addf %4, %6 : vector<512x128xf32>
    %8 = arith.truncf %7 : vector<512x128xf32> to vector<512x128xbf16>
    %c0_5 = arith.constant 0 : index
    %c0_6 = arith.constant 0 : index
    %9 = vector.load %arg4[%c0_5, %c0_6] : memref<128x128xbf16, #tpu.memory_space<vmem>>, vector<128x128xbf16>
    %cst = arith.constant dense<0.000000e+00> : vector<512x128xf32>
    %10 = tpu.matmul %8, %9, %cst {dimension_numbers = #tpu.dot_dimension_numbers<[1], [0], [0], [1], [0, 0, 1, 1], [], []>} : vector<512x128xbf16>, vector<128x128xbf16>, vector<512x128xf32> -> vector<512x128xf32>
    %11 = arith.truncf %10 : vector<512x128xf32> to vector<512x128xbf16>
    %c0_7 = arith.constant 0 : index
    %c0_8 = arith.constant 0 : index
    %12 = vector.load %arg5[%c0_7, %c0_8] : memref<512x128xbf16, #tpu.memory_space<vmem>>, vector<512x128xbf16>
    tpu.vector_store %arg5[%c0_7, %c0_8], %11 {strides = array<i32>} : memref<512x128xbf16, #tpu.memory_space<vmem>>, vector<512x128xbf16>,
    %13 = arith.extf %11 : vector<512x128xbf16> to vector<512x128xf32>
    %cst_9 = arith.constant dense<0.000000e+00> : vector<128xf32>
    %14 = vector.multi_reduction <add>, %13, %cst_9 [0] : vector<512x128xf32> to vector<128xf32>
    %15 = vector.shape_cast %14 : vector<128xf32> to vector<1x128xf32>
    %16 = arith.mulf %13, %13 : vector<512x128xf32>
    %cst_10 = arith.constant dense<0.000000e+00> : vector<128xf32>
    %17 = vector.multi_reduction <add>, %16, %cst_10 [0] : vector<512x128xf32> to vector<128xf32>
    %18 = vector.shape_cast %17 : vector<128xf32> to vector<1x128xf32>
    %19 = tpu.concatenate %15, %18 in 0 : vector<1x128xf32>, vector<1x128xf32> -> vector<2x128xf32>
    %c0_11 = arith.constant 0 : index
    %c0_12 = arith.constant 0 : index
    %c0_13 = arith.constant 0 : index
    %20 = vector.load %arg6[%c0_11, %c0_12, %c0_13] : memref<1x2x128xf32, #tpu.memory_space<vmem>>, vector<1x2x128xf32>
    %21 = vector.shape_cast %20 : vector<1x2x128xf32> to vector<2x128xf32>
    %22 = vector.shape_cast %19 : vector<2x128xf32> to vector<1x2x128xf32>
    tpu.vector_store %arg6[%c0_11, %c0_12, %c0_13], %22 {strides = array<i32>} : memref<1x2x128xf32, #tpu.memory_space<vmem>>, vector<1x2x128xf32>,
    return
  }
  func.func @transform_0(%arg0: i32) -> (i32, i32) {
    %c0_i32 = arith.constant 0 : i32
    %c0_i32_0 = arith.constant 0 : i32
    return %arg0, %c0_i32 : i32, i32
  }
  func.func @transform_1(%arg0: i32) -> (i32, i32) {
    %c0_i32 = arith.constant 0 : i32
    %c0_i32_0 = arith.constant 0 : i32
    %c0_i32_1 = arith.constant 0 : i32
    return %c0_i32, %c0_i32_0 : i32, i32
  }
  func.func @transform_2(%arg0: i32) -> (i32, i32) {
    %c0_i32 = arith.constant 0 : i32
    %c0_i32_0 = arith.constant 0 : i32
    %c0_i32_1 = arith.constant 0 : i32
    return %c0_i32, %c0_i32_0 : i32, i32
  }
  func.func @transform_3(%arg0: i32) -> (i32, i32) {
    %c0_i32 = arith.constant 0 : i32
    %c0_i32_0 = arith.constant 0 : i32
    %c0_i32_1 = arith.constant 0 : i32
    return %c0_i32, %c0_i32_0 : i32, i32
  }
  func.func @transform_4(%arg0: i32) -> (i32, i32) {
    %c0_i32 = arith.constant 0 : i32
    %c0_i32_0 = arith.constant 0 : i32
    return %arg0, %c0_i32 : i32, i32
  }
  func.func @transform_5(%arg0: i32) -> (i32, i32, i32) {
    %c0_i32 = arith.constant 0 : i32
    %c0_i32_0 = arith.constant 0 : i32
    %c0_i32_1 = arith.constant 0 : i32
    return %arg0, %c0_i32, %c0_i32_0 : i32, i32, i32
  }
}

module attributes {stable_mosaic.version = 11 : i64} {
  func.func @_fuse_kernel(%arg0: i32, %arg1: memref<512x128xbf16, #tpu.memory_space<vmem>>, %arg2: memref<512x128xbf16, #tpu.memory_space<vmem>>, %arg3: memref<1x128xf32, #tpu.memory_space<vmem>>, %arg4: memref<1x128xf32, #tpu.memory_space<vmem>>, %arg5: memref<1x128xf32, #tpu.memory_space<vmem>>, %arg6: memref<1x128xf32, #tpu.memory_space<vmem>>, %arg7: memref<512x128xf32, #tpu.memory_space<vmem>>) attributes {dimension_semantics = [#tpu.dimension_semantics<parallel>], iteration_bounds = array<i64: 1>, scalar_prefetch = 0 : i64, scratch_operands = 0 : i64, tpu.core_type = #tpu.core_type<tc>, window_params = [{transform_indices = @transform_0, window_bounds = array<i64: 512, 128>}, {transform_indices = @transform_1, window_bounds = array<i64: 512, 128>}, {pipeline_mode = #tpu.pipeline_mode<synchronous>, transform_indices = @transform_2, window_bounds = array<i64: 1, 128>}, {pipeline_mode = #tpu.pipeline_mode<synchronous>, transform_indices = @transform_3, window_bounds = array<i64: 1, 128>}, {pipeline_mode = #tpu.pipeline_mode<synchronous>, transform_indices = @transform_4, window_bounds = array<i64: 1, 128>}, {pipeline_mode = #tpu.pipeline_mode<synchronous>, transform_indices = @transform_5, window_bounds = array<i64: 1, 128>}, {transform_indices = @transform_6, window_bounds = array<i64: 512, 128>}]} {
    %c0 = arith.constant 0 : index
    %c0_0 = arith.constant 0 : index
    %0 = vector.load %arg1[%c0, %c0_0] : memref<512x128xbf16, #tpu.memory_space<vmem>>, vector<512x128xbf16>
    %1 = arith.extf %0 : vector<512x128xbf16> to vector<512x128xf32>
    %c0_1 = arith.constant 0 : index
    %c0_2 = arith.constant 0 : index
    %2 = vector.load %arg3[%c0_1, %c0_2] : memref<1x128xf32, #tpu.memory_space<vmem>>, vector<1x128xf32>
    %3 = vector.broadcast %2 : vector<1x128xf32> to vector<512x128xf32>
    %4 = arith.mulf %1, %3 : vector<512x128xf32>
    %c0_3 = arith.constant 0 : index
    %c0_4 = arith.constant 0 : index
    %5 = vector.load %arg4[%c0_3, %c0_4] : memref<1x128xf32, #tpu.memory_space<vmem>>, vector<1x128xf32>
    %6 = vector.broadcast %5 : vector<1x128xf32> to vector<512x128xf32>
    %7 = arith.addf %4, %6 : vector<512x128xf32>
    %c0_5 = arith.constant 0 : index
    %c0_6 = arith.constant 0 : index
    %8 = vector.load %arg2[%c0_5, %c0_6] : memref<512x128xbf16, #tpu.memory_space<vmem>>, vector<512x128xbf16>
    %9 = arith.extf %8 : vector<512x128xbf16> to vector<512x128xf32>
    %c0_7 = arith.constant 0 : index
    %c0_8 = arith.constant 0 : index
    %10 = vector.load %arg5[%c0_7, %c0_8] : memref<1x128xf32, #tpu.memory_space<vmem>>, vector<1x128xf32>
    %11 = vector.broadcast %10 : vector<1x128xf32> to vector<512x128xf32>
    %12 = arith.mulf %9, %11 : vector<512x128xf32>
    %c0_9 = arith.constant 0 : index
    %c0_10 = arith.constant 0 : index
    %13 = vector.load %arg6[%c0_9, %c0_10] : memref<1x128xf32, #tpu.memory_space<vmem>>, vector<1x128xf32>
    %14 = vector.broadcast %13 : vector<1x128xf32> to vector<512x128xf32>
    %15 = arith.addf %12, %14 : vector<512x128xf32>
    %16 = arith.addf %7, %15 : vector<512x128xf32>
    %cst = arith.constant 0.000000e+00 : f32
    %17 = vector.broadcast %cst : f32 to vector<512x128xf32>
    %18 = arith.maximumf %16, %17 : vector<512x128xf32>
    %c0_11 = arith.constant 0 : index
    %c0_12 = arith.constant 0 : index
    %19 = vector.load %arg7[%c0_11, %c0_12] : memref<512x128xf32, #tpu.memory_space<vmem>>, vector<512x128xf32>
    tpu.vector_store %arg7[%c0_11, %c0_12], %18 {strides = array<i32>} : memref<512x128xf32, #tpu.memory_space<vmem>>, vector<512x128xf32>,
    return
  }
  func.func @transform_0(%arg0: i32) -> (i32, i32) {
    %c0_i32 = arith.constant 0 : i32
    %c0_i32_0 = arith.constant 0 : i32
    return %arg0, %c0_i32 : i32, i32
  }
  func.func @transform_1(%arg0: i32) -> (i32, i32) {
    %c0_i32 = arith.constant 0 : i32
    %c0_i32_0 = arith.constant 0 : i32
    return %arg0, %c0_i32 : i32, i32
  }
  func.func @transform_2(%arg0: i32) -> (i32, i32) {
    %c0_i32 = arith.constant 0 : i32
    %c0_i32_0 = arith.constant 0 : i32
    %c0_i32_1 = arith.constant 0 : i32
    return %c0_i32, %c0_i32_0 : i32, i32
  }
  func.func @transform_3(%arg0: i32) -> (i32, i32) {
    %c0_i32 = arith.constant 0 : i32
    %c0_i32_0 = arith.constant 0 : i32
    %c0_i32_1 = arith.constant 0 : i32
    return %c0_i32, %c0_i32_0 : i32, i32
  }
  func.func @transform_4(%arg0: i32) -> (i32, i32) {
    %c0_i32 = arith.constant 0 : i32
    %c0_i32_0 = arith.constant 0 : i32
    %c0_i32_1 = arith.constant 0 : i32
    return %c0_i32, %c0_i32_0 : i32, i32
  }
  func.func @transform_5(%arg0: i32) -> (i32, i32) {
    %c0_i32 = arith.constant 0 : i32
    %c0_i32_0 = arith.constant 0 : i32
    %c0_i32_1 = arith.constant 0 : i32
    return %c0_i32, %c0_i32_0 : i32, i32
  }
  func.func @transform_6(%arg0: i32) -> (i32, i32) {
    %c0_i32 = arith.constant 0 : i32
    %c0_i32_0 = arith.constant 0 : i32
    return %arg0, %c0_i32 : i32, i32
  }
}

</mosaic_0001>

<bundles_post_ra>
// kernel: residual_block_pallas.7
= control target key start
LH: loop header
LB: loop body
LE: loop exit
PB: predicated region body
PF: predicated region fallthrough
CT: control target
= control target key end

     0   :  { %s1663_s0 = inlined_call_operand.vmem [shape: bf16[512,128], index: 0, kind: input, shape index: {}]   ;;  %s1664_s1 = inlined_call_operand.vmem [shape: bf16[512,128], index: 1, kind: input, shape index: {}]   ;;  %s1665_s2 = inlined_call_operand.vmem [shape: f32[1,128], index: 2, kind: input, shape index: {}]   ;;  %s1666_s3 = inlined_call_operand.vmem [shape: f32[1,128], index: 3, kind: input, shape index: {}]   ;;  %s1667_s4 = inlined_call_operand.vmem [shape: f32[1,128], index: 4, kind: input, shape index: {}]   ;;  %s1668_s5 = inlined_call_operand.vmem [shape: f32[1,128], index: 5, kind: input, shape index: {}]   ;;  %s1669_s6 = inlined_call_operand.hbm [shape: f32[512,128], index: 6, kind: output, shape index: {}]  }
   0x1   :  { %v777_v0 = vld [vmem:[%s1663_s0] sm:$0xff]   ;;  %v1032_v9 = vld [vmem:[%s1663_s0 + $0x8] sm:$0xff]   ;;  %v1033_v20 = vld [vmem:[%s1663_s0 + $0x10] sm:$0xff]  }
   0x2   :  { %v1169_v1 = vld [vmem:[%s1665_s2] ss:$0 sm:$0xff]  ;;  %v778_v2 = vunpack.c.l.bf16 %v777_v0  ;;  %v779_v5 = vunpack.c.h.bf16 %v777_v0  ;;  %v1063_v10 = vld [vmem:[%s1664_s1 + $0x8] sm:$0xff]   ;;  %v782_v14 = vunpack.c.l.bf16 %v1032_v9  ;;  %v783_v18 = vunpack.c.h.bf16 %v1032_v9  ;;  %v1064_v21 = vld [vmem:[%s1664_s1 + $0x10] sm:$0xff]  }
   0x3   :  { %v905_v3 = vld [vmem:[%s1664_s1] sm:$0xff]   ;;  %v910_v15 = vunpack.c.l.bf16 %v1063_v10  ;;  %v911_v19 = vunpack.c.h.bf16 %v1063_v10  ;;  %v786_v32 = vunpack.c.l.bf16 %v1033_v20  ;;  %v914_v33 = vunpack.c.l.bf16 %v1064_v21  ;;  %v1034_v42 = vld [vmem:[%s1663_s0 + $0x18] sm:$0xff]  }
   0x4   :  { %v1177_v4 = vld [vmem:[%s1667_s4] ss:$0 sm:$0xff]  ;;  %v906_v7 = vunpack.c.l.bf16 %v905_v3  ;;  %v907_v8 = vunpack.c.h.bf16 %v905_v3  ;;  %v159_v11 = vmul.f32 %v778_v2, %v1169_v1  ;;  %v160_v13 = vmul.f32 %v779_v5, %v1169_v1  ;;  %v1065_v43 = vld [vmem:[%s1664_s1 + $0x18] sm:$0xff]  }
   0x5   :  { %v1182_v6 = vld [vmem:[%s1666_s3] ss:$0 sm:$0xff]  ;;  %v161_v24 = vmul.f32 %v782_v14, %v1169_v1  ;;  %v431_v25 = vmul.f32 %v910_v15, %v1177_v4  ;;  %v162_v28 = vmul.f32 %v783_v18, %v1169_v1  ;;  %v432_v29 = vmul.f32 %v911_v19, %v1177_v4  ;;  %v1036_v14 = vld [vmem:[%s1663_s0 + $0x28] sm:$0xff]  }
   0x6   :  { %v1194_v12 = vld [vmem:[%s1668_s5] ss:$0 sm:$0xff]  ;;  %v429_v16 = vmul.f32 %v906_v7, %v1177_v4  ;;  %v430_v17 = vmul.f32 %v907_v8, %v1177_v4  ;;  %v230_v22 = vadd.f32 %v1182_v6, %v159_v11  ;;  %v231_v23 = vadd.f32 %v1182_v6, %v160_v13  ;;  %v1067_v19 = vld [vmem:[%s1664_s1 + $0x28] sm:$0xff]  }
   0x7   :  { %v232_v30 = vadd.f32 %v1182_v6, %v161_v24  ;;  %v502_v31 = vadd.f32 %v1194_v12, %v431_v25  ;;  %v233_v36 = vadd.f32 %v1182_v6, %v162_v28  ;;  %v503_v37 = vadd.f32 %v1194_v12, %v432_v29  ;;  %v1035_v52 = vld [vmem:[%s1663_s0 + $0x20] sm:$0xff]  }
   0x8   :  { %v500_v26 = vadd.f32 %v1194_v12, %v429_v16  ;;  %v501_v27 = vadd.f32 %v1194_v12, %v430_v17  ;;  %v163_v39 = vmul.f32 %v786_v32, %v1169_v1  ;;  %v433_v40 = vmul.f32 %v914_v33, %v1177_v4  ;;  %v1066_v57 = vld [vmem:[%s1664_s1 + $0x20] sm:$0xff]   ;;  %v1037_v32 = vld [vmem:[%s1663_s0 + $0x30] sm:$0xff]  }
   0x9   :  { %v566_v38 = vadd.f32 %v502_v31, %v232_v30  ;;  %v787_v41 = vunpack.c.h.bf16 %v1033_v20  ;;  %v567_v46 = vadd.f32 %v503_v37, %v233_v36  ;;  %v915_v47 = vunpack.c.h.bf16 %v1064_v21  ;;  %v1068_v33 = vld [vmem:[%s1664_s1 + $0x30] sm:$0xff]  }
   0xa   :  { %v564_v34 = vadd.f32 %v500_v26, %v230_v22  ;;  %v565_v35 = vadd.f32 %v501_v27, %v231_v23  ;;  %v234_v49 = vadd.f32 %v1182_v6, %v163_v39  ;;  %v504_v50 = vadd.f32 %v1194_v12, %v433_v40 }
   0xb   :  { %v630_v48 = vmax.f32 %v566_v38, 0.0  ;;  %v164_v51 = vmul.f32 %v787_v41, %v1169_v1  ;;  %v631_v53 = vmax.f32 %v567_v46, 0.0  ;;  %v434_v54 = vmul.f32 %v915_v47, %v1177_v4 }
   0xc   :  { %v628_v44 = vmax.f32 %v564_v34, 0.0  ;;  %v629_v45 = vmax.f32 %v565_v35, 0.0  ;;  %v790_v55 = vunpack.c.l.bf16 %v1034_v42  ;;  %v918_v56 = vunpack.c.l.bf16 %v1065_v43 }
   0xd   :  { %694 = vst [vmem:[#allocation2 + $0x10] sm:$0xff] %v630_v48  ;;  %v568_v58 = vadd.f32 %v504_v50, %v234_v49  ;;  %v235_v59 = vadd.f32 %v1182_v6, %v164_v51  ;;  %v791_v60 = vunpack.c.h.bf16 %v1034_v42  ;;  %v919_v61 = vunpack.c.h.bf16 %v1065_v43  ;;  %695 = vst [vmem:[#allocation2 + $0x18] sm:$0xff] %v631_v53 }
   0xe   :  { %692 = vst [vmem:[#allocation2] sm:$0xff] %v628_v44  ;;  %693 = vst [vmem:[#allocation2 + $0x8] sm:$0xff] %v629_v45  ;;  %v505_v62 = vadd.f32 %v1194_v12, %v434_v54  ;;  %v165_v63 = vmul.f32 %v790_v55, %v1169_v1  ;;  %v435_v0 = vmul.f32 %v918_v56, %v1177_v4  ;;  %v794_v2 = vunpack.c.l.bf16 %v1035_v52 }
   0xf   :  { %v632_v3 = vmax.f32 %v568_v58, 0.0  ;;  %v166_v5 = vmul.f32 %v791_v60, %v1169_v1  ;;  %v436_v7 = vmul.f32 %v919_v61, %v1177_v4  ;;  %v922_v8 = vunpack.c.l.bf16 %v1066_v57 }
  0x10   :  { %v569_v9 = vadd.f32 %v505_v62, %v235_v59  ;;  %v236_v10 = vadd.f32 %v1182_v6, %v165_v63  ;;  %v506_v11 = vadd.f32 %v1194_v12, %v435_v0  ;;  %v167_v13 = vmul.f32 %v794_v2, %v1169_v1 }
  0x11   :  { %696 = vst [vmem:[#allocation2 + $0x20] sm:$0xff] %v632_v3  ;;  %v237_v15 = vadd.f32 %v1182_v6, %v166_v5  ;;  %v507_v16 = vadd.f32 %v1194_v12, %v436_v7  ;;  %v437_v17 = vmul.f32 %v922_v8, %v1177_v4  ;;  %v795_v18 = vunpack.c.h.bf16 %v1035_v52 }
  0x12   :  { %v633_v20 = vmax.f32 %v569_v9, 0.0  ;;  %v570_v21 = vadd.f32 %v506_v11, %v236_v10  ;;  %v238_v22 = vadd.f32 %v1182_v6, %v167_v13  ;;  %v923_v23 = vunpack.c.h.bf16 %v1066_v57 }
  0x13   :  { %v571_v24 = vadd.f32 %v507_v16, %v237_v15  ;;  %v508_v25 = vadd.f32 %v1194_v12, %v437_v17  ;;  %v168_v26 = vmul.f32 %v795_v18, %v1169_v1  ;;  %v798_v27 = vunpack.c.l.bf16 %v1036_v14 }
  0x14   :  { %697 = vst [vmem:[#allocation2 + $0x28] sm:$0xff] %v633_v20  ;;  %v634_v28 = vmax.f32 %v570_v21, 0.0  ;;  %v438_v29 = vmul.f32 %v923_v23, %v1177_v4  ;;  %v926_v30 = vunpack.c.l.bf16 %v1067_v19  ;;  %v799_v31 = vunpack.c.h.bf16 %v1036_v14 }
  0x15   :  { %v635_v34 = vmax.f32 %v571_v24, 0.0  ;;  %v572_v35 = vadd.f32 %v508_v25, %v238_v22  ;;  %v239_v36 = vadd.f32 %v1182_v6, %v168_v26  ;;  %v169_v37 = vmul.f32 %v798_v27, %v1169_v1 }
  0x16   :  { %698 = vst [vmem:[#allocation2 + $0x30] sm:$0xff] %v634_v28  ;;  %v509_v38 = vadd.f32 %v1194_v12, %v438_v29  ;;  %v439_v39 = vmul.f32 %v926_v30, %v1177_v4  ;;  %v170_v40 = vmul.f32 %v799_v31, %v1169_v1  ;;  %v927_v41 = vunpack.c.h.bf16 %v1067_v19 }
  0x17   :  { %11 = vsyncpa [#allocation3], 0  ;;  %699 = vst [vmem:[#allocation2 + $0x38] sm:$0xff] %v635_v34  ;;  %v636_v42 = vmax.f32 %v572_v35, 0.0  ;;  %v240_v43 = vadd.f32 %v1182_v6, %v169_v37  ;;  %v802_v44 = vunpack.c.l.bf16 %v1037_v32  ;;  %v930_v45 = vunpack.c.l.bf16 %v1068_v33  ;;  %v1038_v46 = vld [vmem:[%s1663_s0 + $0x38] sm:$0xff]   ;;  %v1039_v7 = vld [vmem:[%s1663_s0 + $0x40] sm:$0xff]  }
  0x18   :  { %v573_v47 = vadd.f32 %v509_v38, %v239_v36  ;;  %v510_v48 = vadd.f32 %v1194_v12, %v439_v39  ;;  %v241_v49 = vadd.f32 %v1182_v6, %v170_v40  ;;  %v440_v50 = vmul.f32 %v927_v41, %v1177_v4  ;;  %v1069_v55 = vld [vmem:[%s1664_s1 + $0x38] sm:$0xff]   ;;  %v1070_v13 = vld [vmem:[%s1664_s1 + $0x40] sm:$0xff]   ;;  %v1040_v26 = vld [vmem:[%s1663_s0 + $0x48] sm:$0xff]  }
  0x19   :  { %700 = vst [vmem:[#allocation2 + $0x40] sm:$0xff] %v636_v42  ;;  %v171_v51 = vmul.f32 %v802_v44, %v1169_v1  ;;  %v441_v52 = vmul.f32 %v930_v45, %v1177_v4  ;;  %v803_v53 = vunpack.c.h.bf16 %v1037_v32  ;;  %v931_v54 = vunpack.c.h.bf16 %v1068_v33  ;;  %v1071_v27 = vld [vmem:[%s1664_s1 + $0x48] sm:$0xff]   ;;  %v1041_v40 = vld [vmem:[%s1663_s0 + $0x50] sm:$0xff]  }
  0x1a   :  { %v637_v56 = vmax.f32 %v573_v47, 0.0  ;;  %v574_v57 = vadd.f32 %v510_v48, %v240_v43  ;;  %v511_v58 = vadd.f32 %v1194_v12, %v440_v50  ;;  %v806_v59 = vunpack.c.l.bf16 %v1038_v46 }
  0x1b   :  { %v242_v60 = vadd.f32 %v1182_v6, %v171_v51  ;;  %v512_v61 = vadd.f32 %v1194_v12, %v441_v52  ;;  %v172_v62 = vmul.f32 %v803_v53, %v1169_v1  ;;  %v442_v63 = vmul.f32 %v931_v54, %v1177_v4 }
  0x1c   :  { %701 = vst [vmem:[#allocation2 + $0x48] sm:$0xff] %v637_v56  ;;  %v638_v0 = vmax.f32 %v574_v57, 0.0  ;;  %v575_v2 = vadd.f32 %v511_v58, %v241_v49  ;;  %v173_v3 = vmul.f32 %v806_v59, %v1169_v1  ;;  %v934_v5 = vunpack.c.l.bf16 %v1069_v55  ;;  %v1072_v49 = vld [vmem:[%s1664_s1 + $0x50] sm:$0xff]  }
  0x1d   :  { %v576_v8 = vadd.f32 %v512_v61, %v242_v60  ;;  %v243_v9 = vadd.f32 %v1182_v6, %v172_v62  ;;  %v513_v10 = vadd.f32 %v1194_v12, %v442_v63  ;;  %v807_v11 = vunpack.c.h.bf16 %v1038_v46  ;;  %v1042_v62 = vld [vmem:[%s1663_s0 + $0x58] sm:$0xff]  }
  0x1e   :  { %702 = vst [vmem:[#allocation2 + $0x50] sm:$0xff] %v638_v0  ;;  %v639_v14 = vmax.f32 %v575_v2, 0.0  ;;  %v244_v15 = vadd.f32 %v1182_v6, %v173_v3  ;;  %v443_v16 = vmul.f32 %v934_v5, %v1177_v4  ;;  %v935_v17 = vunpack.c.h.bf16 %v1069_v55  ;;  %v1073_v63 = vld [vmem:[%s1664_s1 + $0x58] sm:$0xff]  }
  0x1f   :  { %v640_v18 = vmax.f32 %v576_v8, 0.0  ;;  %v577_v19 = vadd.f32 %v513_v10, %v243_v9  ;;  %v174_v20 = vmul.f32 %v807_v11, %v1169_v1  ;;  %v810_v21 = vunpack.c.l.bf16 %v1039_v7 }
  0x20   :  { %703 = vst [vmem:[#allocation2 + $0x58] sm:$0xff] %v639_v14  ;;  %v514_v22 = vadd.f32 %v1194_v12, %v443_v16  ;;  %v444_v23 = vmul.f32 %v935_v17, %v1177_v4  ;;  %v938_v24 = vunpack.c.l.bf16 %v1070_v13  ;;  %v811_v25 = vunpack.c.h.bf16 %v1039_v7 }
  0x21   :  { %704 = vst [vmem:[#allocation2 + $0x60] sm:$0xff] %v640_v18  ;;  %v641_v28 = vmax.f32 %v577_v19, 0.0  ;;  %v245_v29 = vadd.f32 %v1182_v6, %v174_v20  ;;  %v175_v30 = vmul.f32 %v810_v21, %v1169_v1  ;;  %v939_v31 = vunpack.c.h.bf16 %v1070_v13  ;;  %v1043_v20 = vld [vmem:[%s1663_s0 + $0x60] sm:$0xff]  }
  0x22   :  { %v578_v32 = vadd.f32 %v514_v22, %v244_v15  ;;  %v515_v33 = vadd.f32 %v1194_v12, %v444_v23  ;;  %v445_v34 = vmul.f32 %v938_v24, %v1177_v4  ;;  %v176_v35 = vmul.f32 %v811_v25, %v1169_v1  ;;  %v1074_v25 = vld [vmem:[%s1664_s1 + $0x60] sm:$0xff]  }
  0x23   :  { %705 = vst [vmem:[#allocation2 + $0x68] sm:$0xff] %v641_v28  ;;  %v246_v36 = vadd.f32 %v1182_v6, %v175_v30  ;;  %v446_v37 = vmul.f32 %v939_v31, %v1177_v4  ;;  %v814_v38 = vunpack.c.l.bf16 %v1040_v26  ;;  %v942_v39 = vunpack.c.l.bf16 %v1071_v27 }
  0x24   :  { %v642_v41 = vmax.f32 %v578_v32, 0.0  ;;  %v579_v42 = vadd.f32 %v515_v33, %v245_v29  ;;  %v516_v43 = vadd.f32 %v1194_v12, %v445_v34  ;;  %v247_v44 = vadd.f32 %v1182_v6, %v176_v35  ;;  %v1044_v34 = vld [vmem:[%s1663_s0 + $0x68] sm:$0xff]  }
  0x25   :  { %v517_v45 = vadd.f32 %v1194_v12, %v446_v37  ;;  %v177_v46 = vmul.f32 %v814_v38, %v1169_v1  ;;  %v447_v47 = vmul.f32 %v942_v39, %v1177_v4  ;;  %v815_v48 = vunpack.c.h.bf16 %v1040_v26 }
  0x26   :  { %706 = vst [vmem:[#allocation2 + $0x70] sm:$0xff] %v642_v41  ;;  %v643_v50 = vmax.f32 %v579_v42, 0.0  ;;  %v580_v51 = vadd.f32 %v516_v43, %v246_v36  ;;  %v943_v52 = vunpack.c.h.bf16 %v1071_v27  ;;  %v818_v53 = vunpack.c.l.bf16 %v1041_v40  ;;  %v1075_v43 = vld [vmem:[%s1664_s1 + $0x68] sm:$0xff]  }
  0x27   :  { %v581_v54 = vadd.f32 %v517_v45, %v247_v44  ;;  %v248_v55 = vadd.f32 %v1182_v6, %v177_v46  ;;  %v518_v56 = vadd.f32 %v1194_v12, %v447_v47  ;;  %v178_v57 = vmul.f32 %v815_v48, %v1169_v1 }
  0x28   :  { %707 = vst [vmem:[#allocation2 + $0x78] sm:$0xff] %v643_v50  ;;  %v644_v58 = vmax.f32 %v580_v51, 0.0  ;;  %v448_v59 = vmul.f32 %v943_v52, %v1177_v4  ;;  %v179_v60 = vmul.f32 %v818_v53, %v1169_v1  ;;  %v946_v61 = vunpack.c.l.bf16 %v1072_v49 }
  0x29   :  { %v645_v0 = vmax.f32 %v581_v54, 0.0  ;;  %v582_v2 = vadd.f32 %v518_v56, %v248_v55  ;;  %v249_v3 = vadd.f32 %v1182_v6, %v178_v57  ;;  %v819_v5 = vunpack.c.h.bf16 %v1041_v40  ;;  %v1045_v56 = vld [vmem:[%s1663_s0 + $0x70] sm:$0xff]  }
  0x2a   :  { %708 = vst [vmem:[#allocation2 + $0x80] sm:$0xff] %v644_v58  ;;  %v519_v7 = vadd.f32 %v1194_v12, %v448_v59  ;;  %v250_v8 = vadd.f32 %v1182_v6, %v179_v60  ;;  %v449_v9 = vmul.f32 %v946_v61, %v1177_v4  ;;  %v947_v10 = vunpack.c.h.bf16 %v1072_v49  ;;  %v1076_v57 = vld [vmem:[%s1664_s1 + $0x70] sm:$0xff]  }
  0x2b   :  { %709 = vst [vmem:[#allocation2 + $0x88] sm:$0xff] %v645_v0  ;;  %v646_v11 = vmax.f32 %v582_v2, 0.0  ;;  %v180_v13 = vmul.f32 %v819_v5, %v1169_v1  ;;  %v822_v14 = vunpack.c.l.bf16 %v1042_v62  ;;  %v950_v15 = vunpack.c.l.bf16 %v1073_v63 }
  0x2c   :  { %v583_v16 = vadd.f32 %v519_v7, %v249_v3  ;;  %v520_v17 = vadd.f32 %v1194_v12, %v449_v9  ;;  %v450_v18 = vmul.f32 %v947_v10, %v1177_v4  ;;  %v823_v19 = vunpack.c.h.bf16 %v1042_v62 }
  0x2d   :  { %710 = vst [vmem:[#allocation2 + $0x90] sm:$0xff] %v646_v11  ;;  %v251_v21 = vadd.f32 %v1182_v6, %v180_v13  ;;  %v181_v22 = vmul.f32 %v822_v14, %v1169_v1  ;;  %v451_v23 = vmul.f32 %v950_v15, %v1177_v4  ;;  %v951_v24 = vunpack.c.h.bf16 %v1073_v63  ;;  %v1046_v14 = vld [vmem:[%s1663_s0 + $0x78] sm:$0xff]  }
  0x2e   :  { %v647_v26 = vmax.f32 %v583_v16, 0.0  ;;  %v584_v27 = vadd.f32 %v520_v17, %v250_v8  ;;  %v521_v28 = vadd.f32 %v1194_v12, %v450_v18  ;;  %v182_v29 = vmul.f32 %v823_v19, %v1169_v1  ;;  %v1077_v19 = vld [vmem:[%s1664_s1 + $0x78] sm:$0xff]  }
  0x2f   :  { %v252_v30 = vadd.f32 %v1182_v6, %v181_v22  ;;  %v522_v31 = vadd.f32 %v1194_v12, %v451_v23  ;;  %v452_v32 = vmul.f32 %v951_v24, %v1177_v4  ;;  %v826_v33 = vunpack.c.l.bf16 %v1043_v20 }
  0x30   :  { %711 = vst [vmem:[#allocation2 + $0x98] sm:$0xff] %v647_v26  ;;  %v648_v35 = vmax.f32 %v584_v27, 0.0  ;;  %v585_v36 = vadd.f32 %v521_v28, %v251_v21  ;;  %v253_v37 = vadd.f32 %v1182_v6, %v182_v29  ;;  %v954_v38 = vunpack.c.l.bf16 %v1074_v25  ;;  %v1047_v28 = vld [vmem:[%s1663_s0 + $0x80] sm:$0xff]  }
  0x31   :  { %v586_v39 = vadd.f32 %v522_v31, %v252_v30  ;;  %v523_v40 = vadd.f32 %v1194_v12, %v452_v32  ;;  %v183_v41 = vmul.f32 %v826_v33, %v1169_v1  ;;  %v827_v42 = vunpack.c.h.bf16 %v1043_v20  ;;  %v1078_v33 = vld [vmem:[%s1664_s1 + $0x80] sm:$0xff]  }
  0x32   :  { %712 = vst [vmem:[#allocation2 + $0xa0] sm:$0xff] %v648_v35  ;;  %v649_v44 = vmax.f32 %v585_v36, 0.0  ;;  %v453_v45 = vmul.f32 %v954_v38, %v1177_v4  ;;  %v955_v46 = vunpack.c.h.bf16 %v1074_v25  ;;  %v830_v47 = vunpack.c.l.bf16 %v1044_v34 }
  0x33   :  { %v650_v48 = vmax.f32 %v586_v39, 0.0  ;;  %v587_v49 = vadd.f32 %v523_v40, %v253_v37  ;;  %v254_v50 = vadd.f32 %v1182_v6, %v183_v41  ;;  %v184_v51 = vmul.f32 %v827_v42, %v1169_v1 }
  0x34   :  { %713 = vst [vmem:[#allocation2 + $0xa8] sm:$0xff] %v649_v44  ;;  %v524_v52 = vadd.f32 %v1194_v12, %v453_v45  ;;  %v454_v53 = vmul.f32 %v955_v46, %v1177_v4  ;;  %v185_v54 = vmul.f32 %v830_v47, %v1169_v1  ;;  %v958_v55 = vunpack.c.l.bf16 %v1075_v43 }
  0x35   :  { %714 = vst [vmem:[#allocation2 + $0xb0] sm:$0xff] %v650_v48  ;;  %v651_v58 = vmax.f32 %v587_v49, 0.0  ;;  %v255_v59 = vadd.f32 %v1182_v6, %v184_v51  ;;  %v831_v60 = vunpack.c.h.bf16 %v1044_v34  ;;  %v959_v61 = vunpack.c.h.bf16 %v1075_v43 }
  0x36   :  { %v588_v62 = vadd.f32 %v524_v52, %v254_v50  ;;  %v525_v63 = vadd.f32 %v1194_v12, %v454_v53  ;;  %v256_v0 = vadd.f32 %v1182_v6, %v185_v54  ;;  %v455_v2 = vmul.f32 %v958_v55, %v1177_v4  ;;  %v1048_v50 = vld [vmem:[%s1663_s0 + $0x88] sm:$0xff]  }
  0x37   :  { %715 = vst [vmem:[#allocation2 + $0xb8] sm:$0xff] %v651_v58  ;;  %v186_v3 = vmul.f32 %v831_v60, %v1169_v1  ;;  %v456_v5 = vmul.f32 %v959_v61, %v1177_v4  ;;  %v834_v7 = vunpack.c.l.bf16 %v1045_v56  ;;  %v962_v8 = vunpack.c.l.bf16 %v1076_v57  ;;  %v1079_v55 = vld [vmem:[%s1664_s1 + $0x88] sm:$0xff]  }
  0x38   :  { %v652_v9 = vmax.f32 %v588_v62, 0.0  ;;  %v589_v10 = vadd.f32 %v525_v63, %v255_v59  ;;  %v526_v11 = vadd.f32 %v1194_v12, %v455_v2  ;;  %v835_v13 = vunpack.c.h.bf16 %v1045_v56 }
  0x39   :  { %v257_v15 = vadd.f32 %v1182_v6, %v186_v3  ;;  %v527_v16 = vadd.f32 %v1194_v12, %v456_v5  ;;  %v187_v17 = vmul.f32 %v834_v7, %v1169_v1  ;;  %v457_v18 = vmul.f32 %v962_v8, %v1177_v4  ;;  %v1049_v7 = vld [vmem:[%s1663_s0 + $0x90] sm:$0xff]  }
  0x3a   :  { %716 = vst [vmem:[#allocation2 + $0xc0] sm:$0xff] %v652_v9  ;;  %v653_v20 = vmax.f32 %v589_v10, 0.0  ;;  %v590_v21 = vadd.f32 %v526_v11, %v256_v0  ;;  %v188_v22 = vmul.f32 %v835_v13, %v1169_v1  ;;  %v963_v23 = vunpack.c.h.bf16 %v1076_v57  ;;  %v1080_v13 = vld [vmem:[%s1664_s1 + $0x90] sm:$0xff]  }
  0x3b   :  { %v591_v24 = vadd.f32 %v527_v16, %v257_v15  ;;  %v258_v25 = vadd.f32 %v1182_v6, %v187_v17  ;;  %v528_v26 = vadd.f32 %v1194_v12, %v457_v18  ;;  %v838_v27 = vunpack.c.l.bf16 %v1046_v14 }
  0x3c   :  { %717 = vst [vmem:[#allocation2 + $0xc8] sm:$0xff] %v653_v20  ;;  %v654_v29 = vmax.f32 %v590_v21, 0.0  ;;  %v259_v30 = vadd.f32 %v1182_v6, %v188_v22  ;;  %v458_v31 = vmul.f32 %v963_v23, %v1177_v4  ;;  %v966_v32 = vunpack.c.l.bf16 %v1077_v19  ;;  %v1050_v22 = vld [vmem:[%s1663_s0 + $0x98] sm:$0xff]  }
  0x3d   :  { %v655_v34 = vmax.f32 %v591_v24, 0.0  ;;  %v592_v35 = vadd.f32 %v528_v26, %v258_v25  ;;  %v189_v36 = vmul.f32 %v838_v27, %v1169_v1  ;;  %v839_v37 = vunpack.c.h.bf16 %v1046_v14  ;;  %v1081_v27 = vld [vmem:[%s1664_s1 + $0x98] sm:$0xff]  }
  0x3e   :  { %718 = vst [vmem:[#allocation2 + $0xd0] sm:$0xff] %v654_v29  ;;  %v529_v38 = vadd.f32 %v1194_v12, %v458_v31  ;;  %v459_v39 = vmul.f32 %v966_v32, %v1177_v4  ;;  %v967_v40 = vunpack.c.h.bf16 %v1077_v19  ;;  %v842_v41 = vunpack.c.l.bf16 %v1047_v28 }
  0x3f   :  { %719 = vst [vmem:[#allocation2 + $0xd8] sm:$0xff] %v655_v34  ;;  %v656_v42 = vmax.f32 %v592_v35, 0.0  ;;  %v260_v43 = vadd.f32 %v1182_v6, %v189_v36  ;;  %v190_v44 = vmul.f32 %v839_v37, %v1169_v1  ;;  %v970_v45 = vunpack.c.l.bf16 %v1078_v33 }
  0x40   :  { %v593_v46 = vadd.f32 %v529_v38, %v259_v30  ;;  %v530_v47 = vadd.f32 %v1194_v12, %v459_v39  ;;  %v460_v48 = vmul.f32 %v967_v40, %v1177_v4  ;;  %v191_v49 = vmul.f32 %v842_v41, %v1169_v1 }
  0x41   :  { %720 = vst [vmem:[#allocation2 + $0xe0] sm:$0xff] %v656_v42  ;;  %v261_v51 = vadd.f32 %v1182_v6, %v190_v44  ;;  %v461_v52 = vmul.f32 %v970_v45, %v1177_v4  ;;  %v843_v53 = vunpack.c.h.bf16 %v1047_v28  ;;  %v971_v54 = vunpack.c.h.bf16 %v1078_v33  ;;  %v1051_v44 = vld [vmem:[%s1663_s0 + $0xa0] sm:$0xff]  }
  0x42   :  { %v657_v56 = vmax.f32 %v593_v46, 0.0  ;;  %v594_v57 = vadd.f32 %v530_v47, %v260_v43  ;;  %v531_v58 = vadd.f32 %v1194_v12, %v460_v48  ;;  %v262_v59 = vadd.f32 %v1182_v6, %v191_v49  ;;  %v1082_v49 = vld [vmem:[%s1664_s1 + $0xa0] sm:$0xff]  }
  0x43   :  { %v532_v60 = vadd.f32 %v1194_v12, %v461_v52  ;;  %v192_v61 = vmul.f32 %v843_v53, %v1169_v1  ;;  %v462_v62 = vmul.f32 %v971_v54, %v1177_v4  ;;  %v846_v63 = vunpack.c.l.bf16 %v1048_v50 }
  0x44   :  { %721 = vst [vmem:[#allocation2 + $0xe8] sm:$0xff] %v657_v56  ;;  %v658_v0 = vmax.f32 %v594_v57, 0.0  ;;  %v595_v2 = vadd.f32 %v531_v58, %v261_v51  ;;  %v974_v3 = vunpack.c.l.bf16 %v1079_v55  ;;  %v847_v5 = vunpack.c.h.bf16 %v1048_v50 }
  0x45   :  { %v596_v8 = vadd.f32 %v532_v60, %v262_v59  ;;  %v263_v9 = vadd.f32 %v1182_v6, %v192_v61  ;;  %v533_v10 = vadd.f32 %v1194_v12, %v462_v62  ;;  %v193_v11 = vmul.f32 %v846_v63, %v1169_v1  ;;  %v1052_v62 = vld [vmem:[%s1663_s0 + $0xa8] sm:$0xff]  }
  0x46   :  { %722 = vst [vmem:[#allocation2 + $0xf0] sm:$0xff] %v658_v0  ;;  %v659_v14 = vmax.f32 %v595_v2, 0.0  ;;  %v463_v15 = vmul.f32 %v974_v3, %v1177_v4  ;;  %v194_v16 = vmul.f32 %v847_v5, %v1169_v1  ;;  %v975_v17 = vunpack.c.h.bf16 %v1079_v55  ;;  %v1083_v63 = vld [vmem:[%s1664_s1 + $0xa8] sm:$0xff]  }
  0x47   :  { %v660_v18 = vmax.f32 %v596_v8, 0.0  ;;  %v597_v19 = vadd.f32 %v533_v10, %v263_v9  ;;  %v264_v20 = vadd.f32 %v1182_v6, %v193_v11  ;;  %v850_v21 = vunpack.c.l.bf16 %v1049_v7 }
  0x48   :  { %723 = vst [vmem:[#allocation2 + $0xf8] sm:$0xff] %v659_v14  ;;  %v534_v23 = vadd.f32 %v1194_v12, %v463_v15  ;;  %v265_v24 = vadd.f32 %v1182_v6, %v194_v16  ;;  %v464_v25 = vmul.f32 %v975_v17, %v1177_v4  ;;  %v978_v26 = vunpack.c.l.bf16 %v1080_v13  ;;  %v1053_v16 = vld [vmem:[%s1663_s0 + $0xb0] sm:$0xff]  }
  0x49   :  { %724 = vst [vmem:[#allocation2 + $0x100] sm:$0xff] %v660_v18  ;;  %v661_v28 = vmax.f32 %v597_v19, 0.0  ;;  %v195_v29 = vmul.f32 %v850_v21, %v1169_v1  ;;  %v851_v30 = vunpack.c.h.bf16 %v1049_v7  ;;  %v979_v31 = vunpack.c.h.bf16 %v1080_v13 }
  0x4a   :  { %v598_v32 = vadd.f32 %v534_v23, %v264_v20  ;;  %v535_v33 = vadd.f32 %v1194_v12, %v464_v25  ;;  %v465_v34 = vmul.f32 %v978_v26, %v1177_v4  ;;  %v854_v35 = vunpack.c.l.bf16 %v1050_v22  ;;  %v1084_v25 = vld [vmem:[%s1664_s1 + $0xb0] sm:$0xff]  }
  0x4b   :  { %725 = vst [vmem:[#allocation2 + $0x108] sm:$0xff] %v661_v28  ;;  %v266_v36 = vadd.f32 %v1182_v6, %v195_v29  ;;  %v196_v37 = vmul.f32 %v851_v30, %v1169_v1  ;;  %v466_v38 = vmul.f32 %v979_v31, %v1177_v4  ;;  %v982_v39 = vunpack.c.l.bf16 %v1081_v27 }
  0x4c   :  { %v662_v40 = vmax.f32 %v598_v32, 0.0  ;;  %v599_v41 = vadd.f32 %v535_v33, %v265_v24  ;;  %v536_v42 = vadd.f32 %v1194_v12, %v465_v34  ;;  %v197_v43 = vmul.f32 %v854_v35, %v1169_v1 }
  0x4d   :  { %v267_v45 = vadd.f32 %v1182_v6, %v196_v37  ;;  %v537_v46 = vadd.f32 %v1194_v12, %v466_v38  ;;  %v467_v47 = vmul.f32 %v982_v39, %v1177_v4  ;;  %v855_v48 = vunpack.c.h.bf16 %v1050_v22  ;;  %v1054_v38 = vld [vmem:[%s1663_s0 + $0xb8] sm:$0xff]  }
  0x4e   :  { %726 = vst [vmem:[#allocation2 + $0x110] sm:$0xff] %v662_v40  ;;  %v663_v50 = vmax.f32 %v599_v41, 0.0  ;;  %v600_v51 = vadd.f32 %v536_v42, %v266_v36  ;;  %v268_v52 = vadd.f32 %v1182_v6, %v197_v43  ;;  %v983_v53 = vunpack.c.h.bf16 %v1081_v27  ;;  %v1085_v43 = vld [vmem:[%s1664_s1 + $0xb8] sm:$0xff]  }
  0x4f   :  { %v601_v54 = vadd.f32 %v537_v46, %v267_v45  ;;  %v538_v55 = vadd.f32 %v1194_v12, %v467_v47  ;;  %v198_v56 = vmul.f32 %v855_v48, %v1169_v1  ;;  %v858_v57 = vunpack.c.l.bf16 %v1051_v44 }
  0x50   :  { %727 = vst [vmem:[#allocation2 + $0x118] sm:$0xff] %v663_v50  ;;  %v664_v58 = vmax.f32 %v600_v51, 0.0  ;;  %v468_v59 = vmul.f32 %v983_v53, %v1177_v4  ;;  %v986_v60 = vunpack.c.l.bf16 %v1082_v49  ;;  %v859_v61 = vunpack.c.h.bf16 %v1051_v44 }
  0x51   :  { %v665_v0 = vmax.f32 %v601_v54, 0.0  ;;  %v602_v2 = vadd.f32 %v538_v55, %v268_v52  ;;  %v269_v3 = vadd.f32 %v1182_v6, %v198_v56  ;;  %v199_v5 = vmul.f32 %v858_v57, %v1169_v1  ;;  %v1055_v56 = vld [vmem:[%s1663_s0 + $0xc0] sm:$0xff]  }
  0x52   :  { %728 = vst [vmem:[#allocation2 + $0x120] sm:$0xff] %v664_v58  ;;  %v539_v7 = vadd.f32 %v1194_v12, %v468_v59  ;;  %v469_v8 = vmul.f32 %v986_v60, %v1177_v4  ;;  %v200_v9 = vmul.f32 %v859_v61, %v1169_v1  ;;  %v987_v10 = vunpack.c.h.bf16 %v1082_v49  ;;  %v1086_v57 = vld [vmem:[%s1664_s1 + $0xc0] sm:$0xff]  }
  0x53   :  { %729 = vst [vmem:[#allocation2 + $0x128] sm:$0xff] %v665_v0  ;;  %v666_v11 = vmax.f32 %v602_v2, 0.0  ;;  %v270_v13 = vadd.f32 %v1182_v6, %v199_v5  ;;  %v862_v14 = vunpack.c.l.bf16 %v1052_v62  ;;  %v990_v15 = vunpack.c.l.bf16 %v1083_v63 }
  0x54   :  { %v603_v17 = vadd.f32 %v539_v7, %v269_v3  ;;  %v540_v18 = vadd.f32 %v1194_v12, %v469_v8  ;;  %v271_v19 = vadd.f32 %v1182_v6, %v200_v9  ;;  %v470_v20 = vmul.f32 %v987_v10, %v1177_v4  ;;  %v1056_v9 = vld [vmem:[%s1663_s0 + $0xc8] sm:$0xff]  }
  0x55   :  { %730 = vst [vmem:[#allocation2 + $0x130] sm:$0xff] %v666_v11  ;;  %v201_v21 = vmul.f32 %v862_v14, %v1169_v1  ;;  %v471_v22 = vmul.f32 %v990_v15, %v1177_v4  ;;  %v863_v23 = vunpack.c.h.bf16 %v1052_v62  ;;  %v991_v24 = vunpack.c.h.bf16 %v1083_v63 }
  0x56   :  { %v667_v26 = vmax.f32 %v603_v17, 0.0  ;;  %v604_v27 = vadd.f32 %v540_v18, %v270_v13  ;;  %v541_v28 = vadd.f32 %v1194_v12, %v470_v20  ;;  %v866_v29 = vunpack.c.l.bf16 %v1053_v16 }
  0x57   :  { %v272_v30 = vadd.f32 %v1182_v6, %v201_v21  ;;  %v542_v31 = vadd.f32 %v1194_v12, %v471_v22  ;;  %v202_v32 = vmul.f32 %v863_v23, %v1169_v1  ;;  %v472_v33 = vmul.f32 %v991_v24, %v1177_v4 }
  0x58   :  { %731 = vst [vmem:[#allocation2 + $0x138] sm:$0xff] %v667_v26  ;;  %v668_v34 = vmax.f32 %v604_v27, 0.0  ;;  %v605_v35 = vadd.f32 %v541_v28, %v271_v19  ;;  %v203_v36 = vmul.f32 %v866_v29, %v1169_v1  ;;  %v994_v37 = vunpack.c.l.bf16 %v1084_v25  ;;  %v1087_v19 = vld [vmem:[%s1664_s1 + $0xc8] sm:$0xff]  }
  0x59   :  { %v606_v39 = vadd.f32 %v542_v31, %v272_v30  ;;  %v273_v40 = vadd.f32 %v1182_v6, %v202_v32  ;;  %v543_v41 = vadd.f32 %v1194_v12, %v472_v33  ;;  %v867_v42 = vunpack.c.h.bf16 %v1053_v16  ;;  %v1057_v32 = vld [vmem:[%s1663_s0 + $0xd0] sm:$0xff]  }
  0x5a   :  { %732 = vst [vmem:[#allocation2 + $0x140] sm:$0xff] %v668_v34  ;;  %v669_v44 = vmax.f32 %v605_v35, 0.0  ;;  %v274_v45 = vadd.f32 %v1182_v6, %v203_v36  ;;  %v473_v46 = vmul.f32 %v994_v37, %v1177_v4  ;;  %v995_v47 = vunpack.c.h.bf16 %v1084_v25  ;;  %v1088_v33 = vld [vmem:[%s1664_s1 + $0xd0] sm:$0xff]  }
  0x5b   :  { %v670_v48 = vmax.f32 %v606_v39, 0.0  ;;  %v607_v49 = vadd.f32 %v543_v41, %v273_v40  ;;  %v204_v50 = vmul.f32 %v867_v42, %v1169_v1  ;;  %v870_v51 = vunpack.c.l.bf16 %v1054_v38 }
  0x5c   :  { %733 = vst [vmem:[#allocation2 + $0x148] sm:$0xff] %v669_v44  ;;  %v544_v52 = vadd.f32 %v1194_v12, %v473_v46  ;;  %v474_v53 = vmul.f32 %v995_v47, %v1177_v4  ;;  %v998_v54 = vunpack.c.l.bf16 %v1085_v43  ;;  %v871_v55 = vunpack.c.h.bf16 %v1054_v38 }
  0x5d   :  { %734 = vst [vmem:[#allocation2 + $0x150] sm:$0xff] %v670_v48  ;;  %v671_v58 = vmax.f32 %v607_v49, 0.0  ;;  %v275_v59 = vadd.f32 %v1182_v6, %v204_v50  ;;  %v205_v60 = vmul.f32 %v870_v51, %v1169_v1  ;;  %v999_v61 = vunpack.c.h.bf16 %v1085_v43  ;;  %v1553_v48 = vld [vmem:[%s1667_s4] ss:$0 sm:$0xff] }
  0x5e   :  { %v608_v62 = vadd.f32 %v544_v52, %v274_v45  ;;  %v545_v63 = vadd.f32 %v1194_v12, %v474_v53  ;;  %v475_v0 = vmul.f32 %v998_v54, %v1177_v4  ;;  %v206_v2 = vmul.f32 %v871_v55, %v1169_v1  ;;  %v1568_v50 = vld [vmem:[%s1665_s2] ss:$0 sm:$0xff]  ;;  %v1089_v54 = vld [vmem:[%s1664_s1 + $0xd8] sm:$0xff]  }
  0x5f   :  { %735 = vst [vmem:[#allocation2 + $0x158] sm:$0xff] %v671_v58  ;;  %v276_v3 = vadd.f32 %v1182_v6, %v205_v60  ;;  %v476_v5 = vmul.f32 %v999_v61, %v1177_v4  ;;  %v874_v7 = vunpack.c.l.bf16 %v1055_v56  ;;  %v1002_v8 = vunpack.c.l.bf16 %v1086_v57 }
  0x60   :  { %v672_v10 = vmax.f32 %v608_v62, 0.0  ;;  %v609_v11 = vadd.f32 %v545_v63, %v275_v59  ;;  %v546_v13 = vadd.f32 %v1194_v12, %v475_v0  ;;  %v277_v14 = vadd.f32 %v1182_v6, %v206_v2  ;;  %v1059_v0 = vld [vmem:[%s1663_s0 + $0xe0] sm:$0xff]  }
  0x61   :  { %v547_v15 = vadd.f32 %v1194_v12, %v476_v5  ;;  %v207_v16 = vmul.f32 %v874_v7, %v1169_v1  ;;  %v477_v17 = vmul.f32 %v1002_v8, %v1177_v4  ;;  %v875_v18 = vunpack.c.h.bf16 %v1055_v56 }
  0x62   :  { %736 = vst [vmem:[#allocation2 + $0x160] sm:$0xff] %v672_v10  ;;  %v673_v20 = vmax.f32 %v609_v11, 0.0  ;;  %v610_v21 = vadd.f32 %v546_v13, %v276_v3  ;;  %v1003_v22 = vunpack.c.h.bf16 %v1086_v57  ;;  %v878_v23 = vunpack.c.l.bf16 %v1056_v9  ;;  %v1578_v57 = vld [vmem:[%s1668_s5] ss:$0 sm:$0xff] }
  0x63   :  { %v611_v24 = vadd.f32 %v547_v15, %v277_v14  ;;  %v278_v25 = vadd.f32 %v1182_v6, %v207_v16  ;;  %v548_v26 = vadd.f32 %v1194_v12, %v477_v17  ;;  %v208_v27 = vmul.f32 %v875_v18, %v1169_v1  ;;  %v1090_v13 = vld [vmem:[%s1664_s1 + $0xe0] sm:$0xff]  }
  0x64   :  { %737 = vst [vmem:[#allocation2 + $0x168] sm:$0xff] %v673_v20  ;;  %v674_v28 = vmax.f32 %v610_v21, 0.0  ;;  %v478_v29 = vmul.f32 %v1003_v22, %v1177_v4  ;;  %v209_v30 = vmul.f32 %v878_v23, %v1169_v1  ;;  %v1006_v31 = vunpack.c.l.bf16 %v1087_v19 }
  0x65   :  { %v675_v34 = vmax.f32 %v611_v24, 0.0  ;;  %v612_v35 = vadd.f32 %v548_v26, %v278_v25  ;;  %v279_v36 = vadd.f32 %v1182_v6, %v208_v27  ;;  %v879_v37 = vunpack.c.h.bf16 %v1056_v9  ;;  %v1060_v26 = vld [vmem:[%s1663_s0 + $0xe8] sm:$0xff]  }
  0x66   :  { %738 = vst [vmem:[#allocation2 + $0x170] sm:$0xff] %v674_v28  ;;  %v549_v38 = vadd.f32 %v1194_v12, %v478_v29  ;;  %v280_v39 = vadd.f32 %v1182_v6, %v209_v30  ;;  %v479_v40 = vmul.f32 %v1006_v31, %v1177_v4  ;;  %v1007_v41 = vunpack.c.h.bf16 %v1087_v19  ;;  %v1058_v4 = vld [vmem:[%s1663_s0 + $0xd8] sm:$0xff]   ;;  %v1091_v27 = vld [vmem:[%s1664_s1 + $0xe8] sm:$0xff]  }
  0x67   :  { %739 = vst [vmem:[#allocation2 + $0x178] sm:$0xff] %v675_v34  ;;  %v676_v42 = vmax.f32 %v612_v35, 0.0  ;;  %v210_v43 = vmul.f32 %v879_v37, %v1169_v1  ;;  %v882_v44 = vunpack.c.l.bf16 %v1057_v32  ;;  %v1010_v45 = vunpack.c.l.bf16 %v1088_v33  ;;  %v1562_v1 = vld [vmem:[%s1666_s3] ss:$0 sm:$0xff] }
  0x68   :  { %v613_v46 = vadd.f32 %v549_v38, %v279_v36  ;;  %v550_v47 = vadd.f32 %v1194_v12, %v479_v40  ;;  %v480_v49 = vmul.f32 %v1553_v48, %v1007_v41  ;;  %v883_v6 = vunpack.c.h.bf16 %v1057_v32 }
  0x69   :  { %740 = vst [vmem:[#allocation2 + $0x180] sm:$0xff] %v676_v42  ;;  %v281_v12 = vadd.f32 %v1562_v1, %v210_v43  ;;  %v211_v51 = vmul.f32 %v1568_v50, %v882_v44  ;;  %v481_v52 = vmul.f32 %v1553_v48, %v1010_v45  ;;  %v1011_v53 = vunpack.c.h.bf16 %v1088_v33  ;;  %v1061_v44 = vld [vmem:[%s1663_s0 + $0xf0] sm:$0xff]  }
  0x6a   :  { %v677_v55 = vmax.f32 %v613_v46, 0.0  ;;  %v614_v56 = vadd.f32 %v550_v47, %v280_v39  ;;  %v551_v58 = vadd.f32 %v1578_v57, %v480_v49  ;;  %v212_v59 = vmul.f32 %v1568_v50, %v883_v6  ;;  %v1092_v6 = vld [vmem:[%s1664_s1 + $0xf0] sm:$0xff]  }
  0x6b   :  { %v282_v60 = vadd.f32 %v1562_v1, %v211_v51  ;;  %v552_v61 = vadd.f32 %v1578_v57, %v481_v52  ;;  %v482_v62 = vmul.f32 %v1553_v48, %v1011_v53  ;;  %v886_v63 = vunpack.c.l.bf16 %v1058_v4 }
  0x6c   :  { %741 = vst [vmem:[#allocation2 + $0x188] sm:$0xff] %v677_v55  ;;  %v678_v2 = vmax.f32 %v614_v56, 0.0  ;;  %v615_v3 = vadd.f32 %v551_v58, %v281_v12  ;;  %v283_v5 = vadd.f32 %v1562_v1, %v212_v59  ;;  %v1014_v7 = vunpack.c.l.bf16 %v1089_v54  ;;  %v1062_v58 = vld [vmem:[%s1663_s0 + $0xf8] sm:$0xff]   ;;  %s1125_s0 = smov [#allocation2]  }
  0x6d   :  { %v616_v8 = vadd.f32 %v552_v61, %v282_v60  ;;  %v553_v9 = vadd.f32 %v1578_v57, %v482_v62  ;;  %v213_v10 = vmul.f32 %v1568_v50, %v886_v63  ;;  %v887_v11 = vunpack.c.h.bf16 %v1058_v4  ;;  %v1093_v63 = vld [vmem:[%s1664_s1 + $0xf8] sm:$0xff]   ;;  %s761_s1 = sshll.u32 %s1125_s0, 4  ;;  %s762_s1 = int_to_ptr.vmem [resolvable:$true] %s761_s1 }
  0x6e   :  { %742 = vst [vmem:[#allocation2 + $0x190] sm:$0xff] %v678_v2  ;;  %v679_v14 = vmax.f32 %v615_v3, 0.0  ;;  %v483_v15 = vmul.f32 %v1553_v48, %v1014_v7  ;;  %v1015_v16 = vunpack.c.h.bf16 %v1089_v54  ;;  %v890_v17 = vunpack.c.l.bf16 %v1059_v0  ;;  %s1101_s17 = scalar_lea.vmem %s762_s1, 8192  ;;  %p1106_p1 = scmp.lt.s32.totalorder %s762_s1, %s762_s1 }
  0x6f   :  { %v680_v18 = vmax.f32 %v616_v8, 0.0  ;;  %v617_v19 = vadd.f32 %v553_v9, %v283_v5  ;;  %v284_v20 = vadd.f32 %v1562_v1, %v213_v10  ;;  %v214_v21 = vmul.f32 %v1568_v50, %v887_v11  ;;  %p1102_p0 = scmp.ne.s32.totalorder %s762_s1, %s1101_s17  ;;  %p1107_p2 = scmp.lt.s32.totalorder %s1101_s17, %s1101_s17 }
  0x70   :  { %743 = vst [vmem:[#allocation2 + $0x198] sm:$0xff] %v679_v14  ;;  %v554_v22 = vadd.f32 %v1578_v57, %v483_v15  ;;  %v484_v23 = vmul.f32 %v1553_v48, %v1015_v16  ;;  %v215_v24 = vmul.f32 %v1568_v50, %v890_v17  ;;  %v1018_v25 = vunpack.c.l.bf16 %v1090_v13 }
  0x71   :  { %744 = vst [vmem:[#allocation2 + $0x1a0] sm:$0xff] %v680_v18  ;;  %v681_v28 = vmax.f32 %v617_v19, 0.0  ;;  %v285_v29 = vadd.f32 %v1562_v1, %v214_v21  ;;  %v891_v30 = vunpack.c.h.bf16 %v1059_v0  ;;  %v1019_v31 = vunpack.c.h.bf16 %v1090_v13  ;;  %p1108_p3 = por %p1107_p2, %p1106_p1 }
  0x72   :  { %v618_v32 = vadd.f32 %v554_v22, %v284_v20  ;;  %v555_v33 = vadd.f32 %v1578_v57, %v484_v23  ;;  %v286_v34 = vadd.f32 %v1562_v1, %v215_v24  ;;  %v485_v35 = vmul.f32 %v1553_v48, %v1018_v25 }
  0x73   :  { %745 = vst [vmem:[#allocation2 + $0x1a8] sm:$0xff] %v681_v28  ;;  %v216_v36 = vmul.f32 %v1568_v50, %v891_v30  ;;  %v486_v37 = vmul.f32 %v1553_v48, %v1019_v31  ;;  %v894_v38 = vunpack.c.l.bf16 %v1060_v26  ;;  %v1022_v39 = vunpack.c.l.bf16 %v1091_v27  ;;  %p1109_p4 = pnand %p1108_p3, %p1102_p0 }
  0x74   :  { %v682_v40 = vmax.f32 %v618_v32, 0.0  ;;  %v619_v41 = vadd.f32 %v555_v33, %v285_v29  ;;  %v556_v42 = vadd.f32 %v1578_v57, %v485_v35  ;;  %v895_v43 = vunpack.c.h.bf16 %v1060_v26 }
  0x75   :  { %v287_v45 = vadd.f32 %v1562_v1, %v216_v36  ;;  %v557_v46 = vadd.f32 %v1578_v57, %v486_v37  ;;  %v217_v47 = vmul.f32 %v1568_v50, %v894_v38  ;;  %v487_v49 = vmul.f32 %v1553_v48, %v1022_v39 }
  0x76   :  { %746 = vst [vmem:[#allocation2 + $0x1b0] sm:$0xff] %v682_v40  ;;  %v683_v4 = vmax.f32 %v619_v41, 0.0  ;;  %v620_v12 = vadd.f32 %v556_v42, %v286_v34  ;;  %v218_v51 = vmul.f32 %v1568_v50, %v895_v43  ;;  %v1023_v52 = vunpack.c.h.bf16 %v1091_v27 }
  0x77   :  { %v621_v53 = vadd.f32 %v557_v46, %v287_v45  ;;  %v288_v54 = vadd.f32 %v1562_v1, %v217_v47  ;;  %v558_v55 = vadd.f32 %v1578_v57, %v487_v49  ;;  %v898_v56 = vunpack.c.l.bf16 %v1061_v44 }
  0x78   :  { %747 = vst [vmem:[#allocation2 + $0x1b8] sm:$0xff] %v683_v4  ;;  %v684_v59 = vmax.f32 %v620_v12, 0.0  ;;  %v289_v60 = vadd.f32 %v1562_v1, %v218_v51  ;;  %v488_v61 = vmul.f32 %v1553_v48, %v1023_v52  ;;  %v1026_v62 = vunpack.c.l.bf16 %v1092_v6 }
  0x79   :  { %v685_v0 = vmax.f32 %v621_v53, 0.0  ;;  %v622_v2 = vadd.f32 %v558_v55, %v288_v54  ;;  %v219_v3 = vmul.f32 %v1568_v50, %v898_v56  ;;  %v899_v5 = vunpack.c.h.bf16 %v1061_v44 }
  0x7a   :  { %748 = vst [vmem:[#allocation2 + $0x1c0] sm:$0xff] %v684_v59  ;;  %v559_v7 = vadd.f32 %v1578_v57, %v488_v61  ;;  %v489_v8 = vmul.f32 %v1553_v48, %v1026_v62  ;;  %v1027_v9 = vunpack.c.h.bf16 %v1092_v6  ;;  %v902_v10 = vunpack.c.l.bf16 %v1062_v58 }
  0x7b   :  { %749 = vst [vmem:[#allocation2 + $0x1c8] sm:$0xff] %v685_v0  ;;  %v686_v11 = vmax.f32 %v622_v2, 0.0  ;;  %v290_v13 = vadd.f32 %v1562_v1, %v219_v3  ;;  %v220_v14 = vmul.f32 %v1568_v50, %v899_v5  ;;  %v1030_v15 = vunpack.c.l.bf16 %v1093_v63 }
  0x7c   :  { %v623_v16 = vadd.f32 %v559_v7, %v289_v60  ;;  %v560_v17 = vadd.f32 %v1578_v57, %v489_v8  ;;  %v490_v18 = vmul.f32 %v1553_v48, %v1027_v9  ;;  %v221_v19 = vmul.f32 %v1568_v50, %v902_v10 }
  0x7d   :  { %750 = vst [vmem:[#allocation2 + $0x1d0] sm:$0xff] %v686_v11  ;;  %v291_v20 = vadd.f32 %v1562_v1, %v220_v14  ;;  %v491_v21 = vmul.f32 %v1553_v48, %v1030_v15  ;;  %v903_v22 = vunpack.c.h.bf16 %v1062_v58  ;;  %v1031_v23 = vunpack.c.h.bf16 %v1093_v63 }
  0x7e   :  { %v687_v24 = vmax.f32 %v623_v16, 0.0  ;;  %v624_v25 = vadd.f32 %v560_v17, %v290_v13  ;;  %v561_v26 = vadd.f32 %v1578_v57, %v490_v18  ;;  %v292_v27 = vadd.f32 %v1562_v1, %v221_v19 }
  0x7f   :  { %v562_v28 = vadd.f32 %v1578_v57, %v491_v21  ;;  %v222_v29 = vmul.f32 %v1568_v50, %v903_v22  ;;  %v492_v30 = vmul.f32 %v1553_v48, %v1031_v23 }
  0x80   :  { %751 = vst [vmem:[#allocation2 + $0x1d8] sm:$0xff] %v687_v24  ;;  %v688_v31 = vmax.f32 %v624_v25, 0.0  ;;  %v625_v32 = vadd.f32 %v561_v26, %v291_v20 }
  0x81   :  { %v626_v33 = vadd.f32 %v562_v28, %v292_v27  ;;  %v293_v34 = vadd.f32 %v1562_v1, %v222_v29  ;;  %v563_v35 = vadd.f32 %v1578_v57, %v492_v30 }
  0x82   :  { %752 = vst [vmem:[#allocation2 + $0x1e0] sm:$0xff] %v688_v31  ;;  %v689_v36 = vmax.f32 %v625_v32, 0.0 }
  0x83   :  { %v690_v37 = vmax.f32 %v626_v33, 0.0  ;;  %v627_v38 = vadd.f32 %v563_v35, %v293_v34 }
  0x84   :  { %753 = vst [vmem:[#allocation2 + $0x1e8] sm:$0xff] %v689_v36 }
  0x85   :  { %754 = vst [vmem:[#allocation2 + $0x1f0] sm:$0xff] %v690_v37  ;;  %v691_v50 = vmax.f32 %v627_v38, 0.0 }
  0x87   :  { %755 = vst [vmem:[#allocation2 + $0x1f8] sm:$0xff] %v691_v50 }
  0x88   :  { %1112 = shalt.err (!%p1109_p4)
}
  0x89   :  { %s1113_s20 = scalar_lea.hbm %s1669_s6, 8192 }
  0x8a   :  { %p1114_p5 = scmp.ne.s32.totalorder %s1669_s6, %s1113_s20  ;;  %p1117_p6 = scmp.lt.u32.totalorder %s1113_s20, %s1669_s6 }
  0x8c   :  { %p1119_p7 = pnand %p1117_p6, %p1114_p5 }
  0x8e   :  { %1122 = shalt.err (!%p1119_p7)
}
  0x8f   :  { %s1126_s4 = smov 128   ;;  %s1127_s25 = smov 8  }
  0x90   :  { %767 = dma.vmem_to_hbm [thread:$0]  %s762_s1, 8192, %s1669_s6, [#allocation3], %s1126_s4, %s1126_s4, %s1127_s25  }
  0x91   :  { %1123 = dma.done.wait [#allocation3], 8192  }
  0x92   :  { %1124 = vsyncadd [#allocation3], 4294959104 }
  0x93   :  { %771 = vsyncpa [#allocation3], 1 }

// kernel: residual_block_pallas.4
= control target key start
LH: loop header
LB: loop body
LE: loop exit
PB: predicated region body
PF: predicated region fallthrough
CT: control target
= control target key end

     0   :  { %vm215_vm0 = vcmask 1043456   ;;  %v2446_v1 = vmov 0   ;;  %vm118_vm1 = vcmask 64512   ;;  %vm1545_vm2 = vcmask 1040384   ;;  %s3094_s1 = inlined_call_operand.vmem [shape: bf16[8,256], index: 1, kind: input, shape index: {}]   ;;  %s3095_s0 = inlined_call_operand.vmem [shape: f32[512,8], index: 0, kind: input, shape index: {}]   ;;  %s3096_s2 = inlined_call_operand.vmem [shape: bf16[512,128], index: 2, kind: output, shape index: {0}]   ;;  %s3097_s3 = inlined_call_operand.vmem [shape: bf16[512,128], index: 3, kind: output, shape index: {1}]   ;;  %s3098_s4 = inlined_call_operand.vmem [shape: f32[1,2,128], index: 4, kind: output, shape index: {2}]   ;;  %s3099_s5 = inlined_call_operand.vmem [shape: f32[1,2,128], index: 5, kind: output, shape index: {3}]  }
   0x1   :  { %v112_v0 = vld [vmem:[%s3094_s1] sm:$0xff]  ;;  %254 = vmatprep.mubr.bf16.mxu0 %v2446_v1  ;;  %v17_v3 = vld [vmem:[%s3095_s0 + $0x8] sm:$0xff]  ;;  %414 = vmatprep.mubr.bf16.mxu1 %v2446_v1  ;;  %v18_v11 = vld [vmem:[%s3095_s0 + $0x10] sm:$0xff] }
   0x2   :  { %v16_v2 = vld [vmem:[%s3095_s0] sm:$0xff]  ;;  %v1769_v4 = vcombine.high %v112_v0, %v112_v0  ;;  %v1768_v5 = vcombine.low %v112_v0, %v112_v0  ;;  %v49_v9 = vld [vmem:[%s3095_s0 + $0x108] sm:$0xff]  ;;  %v19_v12 = vld [vmem:[%s3095_s0 + $0x18] sm:$0xff] }
   0x3   :  { %v80_v7 = vpack.c.bf16 %v17_v3, %v16_v2  ;;  %v48_v8 = vld [vmem:[%s3095_s0 + $0x100] sm:$0xff]  ;;  %v50_v13 = vld [vmem:[%s3095_s0 + $0x110] sm:$0xff]  ;;  %v51_v14 = vld [vmem:[%s3095_s0 + $0x118] sm:$0xff]  ;;  %v81_v15 = vpack.c.bf16 %v19_v12, %v18_v11 }
   0x4   :  { %1770 = vmatprep.subr.msk.bf16.mxu0 %vm215_vm0, %v1769_v4  ;;  %v217_v6 = vsel %vm215_vm0, %v1768_v5, 0  ;;  %2441 = vmatprep.subr.msk.bf16.mxu1 %vm215_vm0, %v1769_v4  ;;  %v96_v10 = vpack.c.bf16 %v49_v9, %v48_v8  ;;  %v97_v16 = vpack.c.bf16 %v51_v14, %v50_v13  ;;  %v20_v17 = vld [vmem:[%s3095_s0 + $0x20] sm:$0xff]  ;;  %v21_v18 = vld [vmem:[%s3095_s0 + $0x28] sm:$0xff]  ;;  %v22_v23 = vld [vmem:[%s3095_s0 + $0x30] sm:$0xff] }
   0x5   :  { %223 = vmatpush1.bf16.msra.mxu0 %v217_v6  ;;  %2442 = vmatpush1.bf16.msra.mxu1 %v217_v6  ;;  %v52_v19 = vld [vmem:[%s3095_s0 + $0x120] sm:$0xff]  ;;  %v53_v20 = vld [vmem:[%s3095_s0 + $0x128] sm:$0xff]  ;;  %v82_v21 = vpack.c.bf16 %v21_v18, %v20_v17  ;;  %v23_v24 = vld [vmem:[%s3095_s0 + $0x38] sm:$0xff] }
   0x6   :  { %v98_v22 = vpack.c.bf16 %v53_v20, %v52_v19  ;;  %v54_v25 = vld [vmem:[%s3095_s0 + $0x130] sm:$0xff]  ;;  %v55_v26 = vld [vmem:[%s3095_s0 + $0x138] sm:$0xff]  ;;  %v83_v27 = vpack.c.bf16 %v23_v24, %v22_v23  ;;  %v24_v29 = vld [vmem:[%s3095_s0 + $0x40] sm:$0xff] }
   0x7   :  { %v99_v28 = vpack.c.bf16 %v55_v26, %v54_v25  ;;  %v25_v30 = vld [vmem:[%s3095_s0 + $0x48] sm:$0xff]  ;;  %v56_v31 = vld [vmem:[%s3095_s0 + $0x140] sm:$0xff]  ;;  %v26_v35 = vld [vmem:[%s3095_s0 + $0x50] sm:$0xff] }
   0x8   :  { %1771 = vmatmul.mubr.msk.bf16.vlgmr.msra.gmra.mrb[0].mxu0 %vm118_vm1, %v80_v7  ;;  %1787 = vmatmul.mubr.msk.bf16.vlgmr.msra.gmra.mrb[0].mxu1 %vm118_vm1, %v96_v10  ;;  %v57_v32 = vld [vmem:[%s3095_s0 + $0x148] sm:$0xff]  ;;  %v84_v33 = vpack.c.bf16 %v25_v30, %v24_v29  ;;  %v27_v36 = vld [vmem:[%s3095_s0 + $0x58] sm:$0xff]  ;;  %v58_v37 = vld [vmem:[%s3095_s0 + $0x150] sm:$0xff] }
   0x9   :  { %264 = vmatprep.mubr.bf16.mxu0 %v2446_v1  ;;  %424 = vmatprep.mubr.bf16.mxu1 %v2446_v1  ;;  %v100_v34 = vpack.c.bf16 %v57_v32, %v56_v31  ;;  %v59_v38 = vld [vmem:[%s3095_s0 + $0x158] sm:$0xff]  ;;  %v85_v39 = vpack.c.bf16 %v27_v36, %v26_v35  ;;  %v28_v41 = vld [vmem:[%s3095_s0 + $0x60] sm:$0xff]  ;;  %v29_v42 = vld [vmem:[%s3095_s0 + $0x68] sm:$0xff] }
   0xa   :  { %v101_v40 = vpack.c.bf16 %v59_v38, %v58_v37  ;;  %v60_v43 = vld [vmem:[%s3095_s0 + $0x160] sm:$0xff]  ;;  %v61_v44 = vld [vmem:[%s3095_s0 + $0x168] sm:$0xff]  ;;  %v86_v45 = vpack.c.bf16 %v29_v42, %v28_v41  ;;  %v30_v47 = vld [vmem:[%s3095_s0 + $0x70] sm:$0xff] }
   0xb   :  { %v102_v46 = vpack.c.bf16 %v61_v44, %v60_v43  ;;  %v31_v48 = vld [vmem:[%s3095_s0 + $0x78] sm:$0xff]  ;;  %v62_v49 = vld [vmem:[%s3095_s0 + $0x170] sm:$0xff]  ;;  %v32_v53 = vld [vmem:[%s3095_s0 + $0x80] sm:$0xff] }
   0xc   :  { %v63_v50 = vld [vmem:[%s3095_s0 + $0x178] sm:$0xff]  ;;  %v87_v51 = vpack.c.bf16 %v31_v48, %v30_v47  ;;  %v33_v54 = vld [vmem:[%s3095_s0 + $0x88] sm:$0xff]  ;;  %v64_v55 = vld [vmem:[%s3095_s0 + $0x180] sm:$0xff] }
   0xd   :  { %v103_v52 = vpack.c.bf16 %v63_v50, %v62_v49  ;;  %v65_v56 = vld [vmem:[%s3095_s0 + $0x188] sm:$0xff]  ;;  %v88_v57 = vpack.c.bf16 %v33_v54, %v32_v53  ;;  %v34_v59 = vld [vmem:[%s3095_s0 + $0x90] sm:$0xff]  ;;  %v35_v60 = vld [vmem:[%s3095_s0 + $0x98] sm:$0xff] }
   0xe   :  { %v104_v58 = vpack.c.bf16 %v65_v56, %v64_v55  ;;  %v66_v61 = vld [vmem:[%s3095_s0 + $0x190] sm:$0xff]  ;;  %v67_v62 = vld [vmem:[%s3095_s0 + $0x198] sm:$0xff]  ;;  %v89_v63 = vpack.c.bf16 %v35_v60, %v34_v59  ;;  %v36_v2 = vld [vmem:[%s3095_s0 + $0xa0] sm:$0xff] }
   0xf   :  { %v105_v0 = vpack.c.bf16 %v67_v62, %v66_v61  ;;  %v37_v3 = vld [vmem:[%s3095_s0 + $0xa8] sm:$0xff]  ;;  %v68_v4 = vld [vmem:[%s3095_s0 + $0x1a0] sm:$0xff]  ;;  %v38_v8 = vld [vmem:[%s3095_s0 + $0xb0] sm:$0xff] }
  0x10   :  { %1772 = vmatmul.mubr.msk.bf16.gmra.mrb[4].mxu0 %vm118_vm1, %v81_v15  ;;  %1788 = vmatmul.mubr.msk.bf16.gmra.mrb[4].mxu1 %vm118_vm1, %v97_v16  ;;  %v69_v5 = vld [vmem:[%s3095_s0 + $0x1a8] sm:$0xff]  ;;  %v90_v6 = vpack.c.bf16 %v37_v3, %v36_v2  ;;  %v39_v9 = vld [vmem:[%s3095_s0 + $0xb8] sm:$0xff]  ;;  %v70_v10 = vld [vmem:[%s3095_s0 + $0x1b0] sm:$0xff] }
  0x11   :  { %274 = vmatprep.mubr.bf16.mxu0 %v2446_v1  ;;  %434 = vmatprep.mubr.bf16.mxu1 %v2446_v1  ;;  %v106_v7 = vpack.c.bf16 %v69_v5, %v68_v4  ;;  %v71_v11 = vld [vmem:[%s3095_s0 + $0x1b8] sm:$0xff]  ;;  %v91_v12 = vpack.c.bf16 %v39_v9, %v38_v8  ;;  %v40_v14 = vld [vmem:[%s3095_s0 + $0xc0] sm:$0xff]  ;;  %v41_v15 = vld [vmem:[%s3095_s0 + $0xc8] sm:$0xff] }
  0x12   :  { %v107_v13 = vpack.c.bf16 %v71_v11, %v70_v10  ;;  %v72_v16 = vld [vmem:[%s3095_s0 + $0x1c0] sm:$0xff]  ;;  %v73_v17 = vld [vmem:[%s3095_s0 + $0x1c8] sm:$0xff]  ;;  %v92_v18 = vpack.c.bf16 %v41_v15, %v40_v14  ;;  %v42_v20 = vld [vmem:[%s3095_s0 + $0xd0] sm:$0xff] }
  0x13   :  { %v108_v19 = vpack.c.bf16 %v73_v17, %v72_v16  ;;  %v75_v23 = vld [vmem:[%s3095_s0 + $0x1d8] sm:$0xff]  ;;  %v44_v26 = vld [vmem:[%s3095_s0 + $0xe0] sm:$0xff]  ;;  %v77_v29 = vld [vmem:[%s3095_s0 + $0x1e8] sm:$0xff] }
  0x14   :  { %v46_v32 = vld [vmem:[%s3095_s0 + $0xf0] sm:$0xff]  ;;  %v79_v35 = vld [vmem:[%s3095_s0 + $0x1f8] sm:$0xff] }
  0x18   :  { %1773 = vmatmul.mubr.msk.bf16.gmra.mrb[8].mxu0 %vm118_vm1, %v82_v21  ;;  %1789 = vmatmul.mubr.msk.bf16.gmra.mrb[8].mxu1 %vm118_vm1, %v98_v22  ;;  %v43_v21 = vld [vmem:[%s3095_s0 + $0xd8] sm:$0xff]  ;;  %v74_v22 = vld [vmem:[%s3095_s0 + $0x1d0] sm:$0xff] }
  0x19   :  { %284 = vmatprep.mubr.bf16.mxu0 %v2446_v1  ;;  %444 = vmatprep.mubr.bf16.mxu1 %v2446_v1  ;;  %v93_v24 = vpack.c.bf16 %v43_v21, %v42_v20  ;;  %v109_v25 = vpack.c.bf16 %v75_v23, %v74_v22 }
  0x20   :  { %1774 = vmatmul.mubr.msk.bf16.gmra.mrb[12].mxu0 %vm118_vm1, %v83_v27  ;;  %1790 = vmatmul.mubr.msk.bf16.gmra.mrb[12].mxu1 %vm118_vm1, %v99_v28  ;;  %v45_v27 = vld [vmem:[%s3095_s0 + $0xe8] sm:$0xff]  ;;  %v76_v28 = vld [vmem:[%s3095_s0 + $0x1e0] sm:$0xff] }
  0x21   :  { %294 = vmatprep.mubr.bf16.mxu0 %v2446_v1  ;;  %454 = vmatprep.mubr.bf16.mxu1 %v2446_v1  ;;  %v94_v30 = vpack.c.bf16 %v45_v27, %v44_v26  ;;  %v110_v31 = vpack.c.bf16 %v77_v29, %v76_v28 }
  0x28   :  { %1775 = vmatmul.mubr.msk.bf16.gmra.mrb[16].mxu0 %vm118_vm1, %v84_v33  ;;  %1791 = vmatmul.mubr.msk.bf16.gmra.mrb[16].mxu1 %vm118_vm1, %v100_v34  ;;  %v47_v33 = vld [vmem:[%s3095_s0 + $0xf8] sm:$0xff]  ;;  %v78_v34 = vld [vmem:[%s3095_s0 + $0x1f0] sm:$0xff] }
  0x29   :  { %304 = vmatprep.mubr.bf16.mxu0 %v2446_v1  ;;  %464 = vmatprep.mubr.bf16.mxu1 %v2446_v1  ;;  %v95_v36 = vpack.c.bf16 %v47_v33, %v46_v32  ;;  %v111_v37 = vpack.c.bf16 %v79_v35, %v78_v34 }
  0x30   :  { %1776 = vmatmul.mubr.msk.bf16.gmra.mrb[20].mxu0 %vm118_vm1, %v85_v39  ;;  %1792 = vmatmul.mubr.msk.bf16.gmra.mrb[20].mxu1 %vm118_vm1, %v101_v40 }
  0x31   :  { %314 = vmatprep.mubr.bf16.mxu0 %v2446_v1  ;;  %474 = vmatprep.mubr.bf16.mxu1 %v2446_v1 }
  0x38   :  { %1777 = vmatmul.mubr.msk.bf16.gmra.mrb[24].mxu0 %vm118_vm1, %v86_v45  ;;  %1793 = vmatmul.mubr.msk.bf16.gmra.mrb[24].mxu1 %vm118_vm1, %v102_v46 }
  0x39   :  { %324 = vmatprep.mubr.bf16.mxu0 %v2446_v1  ;;  %484 = vmatprep.mubr.bf16.mxu1 %v2446_v1 }
  0x40   :  { %1778 = vmatmul.mubr.msk.bf16.gmra.mrb[28].mxu0 %vm118_vm1, %v87_v51  ;;  %1794 = vmatmul.mubr.msk.bf16.gmra.mrb[28].mxu1 %vm118_vm1, %v103_v52 }
  0x41   :  { %334 = vmatprep.mubr.bf16.mxu0 %v2446_v1  ;;  %494 = vmatprep.mubr.bf16.mxu1 %v2446_v1 }
  0x48   :  { %1779 = vmatmul.mubr.msk.bf16.gmra.mrb[32].mxu0 %vm118_vm1, %v88_v57  ;;  %1795 = vmatmul.mubr.msk.bf16.gmra.mrb[32].mxu1 %vm118_vm1, %v104_v58 }
  0x49   :  { %344 = vmatprep.mubr.bf16.mxu0 %v2446_v1  ;;  %504 = vmatprep.mubr.bf16.mxu1 %v2446_v1 }
  0x50   :  { %1780 = vmatmul.mubr.msk.bf16.gmra.mrb[36].mxu0 %vm118_vm1, %v89_v63  ;;  %1796 = vmatmul.mubr.msk.bf16.gmra.mrb[36].mxu1 %vm118_vm1, %v105_v0 }
  0x51   :  { %354 = vmatprep.mubr.bf16.mxu0 %v2446_v1  ;;  %514 = vmatprep.mubr.bf16.mxu1 %v2446_v1 }
  0x58   :  { %1781 = vmatmul.mubr.msk.bf16.gmra.mrb[40].mxu0 %vm118_vm1, %v90_v6  ;;  %1797 = vmatmul.mubr.msk.bf16.gmra.mrb[40].mxu1 %vm118_vm1, %v106_v7 }
  0x59   :  { %364 = vmatprep.mubr.bf16.mxu0 %v2446_v1  ;;  %524 = vmatprep.mubr.bf16.mxu1 %v2446_v1 }
  0x60   :  { %1782 = vmatmul.mubr.msk.bf16.gmra.mrb[44].mxu0 %vm118_vm1, %v91_v12  ;;  %1798 = vmatmul.mubr.msk.bf16.gmra.mrb[44].mxu1 %vm118_vm1, %v107_v13 }
  0x61   :  { %374 = vmatprep.mubr.bf16.mxu0 %v2446_v1  ;;  %534 = vmatprep.mubr.bf16.mxu1 %v2446_v1 }
  0x68   :  { %1783 = vmatmul.mubr.msk.bf16.gmra.mrb[48].mxu0 %vm118_vm1, %v92_v18  ;;  %1799 = vmatmul.mubr.msk.bf16.gmra.mrb[48].mxu1 %vm118_vm1, %v108_v19 }
  0x69   :  { %384 = vmatprep.mubr.bf16.mxu0 %v2446_v1  ;;  %544 = vmatprep.mubr.bf16.mxu1 %v2446_v1 }
  0x70   :  { %1784 = vmatmul.mubr.msk.bf16.gmra.mrb[52].mxu0 %vm118_vm1, %v93_v24  ;;  %1800 = vmatmul.mubr.msk.bf16.gmra.mrb[52].mxu1 %vm118_vm1, %v109_v25 }
  0x71   :  { %394 = vmatprep.mubr.bf16.mxu0 %v2446_v1  ;;  %554 = vmatprep.mubr.bf16.mxu1 %v2446_v1 }
  0x78   :  { %1785 = vmatmul.mubr.msk.bf16.gmra.mrb[56].mxu0 %vm118_vm1, %v94_v30  ;;  %1801 = vmatmul.mubr.msk.bf16.gmra.mrb[56].mxu1 %vm118_vm1, %v110_v31 }
  0x79   :  { %404 = vmatprep.mubr.bf16.mxu0 %v2446_v1  ;;  %564 = vmatprep.mubr.bf16.mxu1 %v2446_v1 }
  0x80   :  { %1786 = vmatmul.mubr.msk.bf16.gmra.mrb[60].mxu0 %vm118_vm1, %v95_v36  ;;  %1802 = vmatmul.mubr.msk.bf16.gmra.mrb[60].mxu1 %vm118_vm1, %v111_v37 }
  0xdb   :  { %v256_v38 = vpop.f32.mrb[0].mxu0  ;;  %v416_v41 = vpop.f32.mrb[0].mxu1 }
  0xdc   :  { %v258_v39 = vpop.f32.mrb[1].mxu0  ;;  %v418_v43 = vpop.f32.mrb[1].mxu1 }
  0xdd   :  { %v260_v40 = vpop.f32.mrb[2].mxu0  ;;  %v420_v45 = vpop.f32.mrb[2].mxu1 }
  0xde   :  { %v575_v42 = vpack.c.bf16 %v260_v40, %v256_v38  ;;  %v262_v1 = vpop.f32.mrb[3].mxu0  ;;  %v2739_v46 = vpack.c.bf16 %v420_v45, %v416_v41  ;;  %v422_v47 = vpop.f32.mrb[3].mxu1 }
  0xdf   :  { %v607_v44 = vpack.c.bf16 %v262_v1, %v258_v39  ;;  %v2744_v48 = vpack.c.bf16 %v422_v47, %v418_v43 }
  0xe0   :  { %2063 = vst [vmem:[%s3096_s2] sm:$0xff] %v575_v42   ;;  %v1215_v49 = vunpack.c.l.bf16 %v575_v42  ;;  %v1216_v50 = vunpack.c.h.bf16 %v575_v42  ;;  %2394 = vst [vmem:[%s3096_s2 + $0x80] sm:$0xff] %v2739_v46  }
  0xe1   :  { %2223 = vst [vmem:[%s3097_s3] sm:$0xff] %v607_v44   ;;  %v1279_v51 = vunpack.c.l.bf16 %v607_v44  ;;  %v1280_v52 = vunpack.c.h.bf16 %v607_v44  ;;  %2425 = vst [vmem:[%s3097_s3 + $0x80] sm:$0xff] %v2744_v48  }
  0xe2   :  { %v1412_v57 = vmul.f32 %v1215_v49, %v1215_v49  ;;  %v1413_v58 = vmul.f32 %v1216_v50, %v1216_v50  ;;  %v1343_v3 = vadd.f32 %v1216_v50, %v1215_v49 }
  0xe3   :  { %v266_v53 = vpop.f32.mrb[4].mxu0  ;;  %v426_v56 = vpop.f32.mrb[4].mxu1  ;;  %v1617_v62 = vmul.f32 %v1279_v51, %v1279_v51  ;;  %v1618_v63 = vmul.f32 %v1280_v52, %v1280_v52  ;;  %v1548_v8 = vadd.f32 %v1280_v52, %v1279_v51 }
  0xe4   :  { %v268_v54 = vpop.f32.mrb[5].mxu0  ;;  %v428_v61 = vpop.f32.mrb[5].mxu1  ;;  %v1476_v12 = vadd.f32 %v1413_v58, %v1412_v57 }
  0xe5   :  { %v270_v55 = vpop.f32.mrb[6].mxu0  ;;  %v430_v2 = vpop.f32.mrb[6].mxu1  ;;  %v1681_v15 = vadd.f32 %v1618_v63, %v1617_v62 }
  0xe6   :  { %v576_v59 = vpack.c.bf16 %v270_v55, %v266_v53  ;;  %v272_v60 = vpop.f32.mrb[7].mxu0  ;;  %v2757_v6 = vpack.c.bf16 %v430_v2, %v426_v56  ;;  %v432_v7 = vpop.f32.mrb[7].mxu1 }
  0xe7   :  { %v608_v0 = vpack.c.bf16 %v272_v60, %v268_v54  ;;  %v2762_v11 = vpack.c.bf16 %v432_v7, %v428_v61 }
  0xe8   :  { %2379 = vst [vmem:[%s3096_s2 + $0x8] sm:$0xff] %v576_v59   ;;  %v1217_v4 = vunpack.c.l.bf16 %v576_v59  ;;  %v1218_v5 = vunpack.c.h.bf16 %v576_v59  ;;  %2395 = vst [vmem:[%s3096_s2 + $0x88] sm:$0xff] %v2757_v6  }
  0xe9   :  { %2410 = vst [vmem:[%s3097_s3 + $0x8] sm:$0xff] %v608_v0   ;;  %v1281_v9 = vunpack.c.l.bf16 %v608_v0  ;;  %v1282_v10 = vunpack.c.h.bf16 %v608_v0  ;;  %2426 = vst [vmem:[%s3097_s3 + $0x88] sm:$0xff] %v2762_v11  }
  0xea   :  { %v1344_v13 = vadd.f32 %v1343_v3, %v1217_v4  ;;  %v1414_v14 = vmul.f32 %v1217_v4, %v1217_v4  ;;  %v1415_v20 = vmul.f32 %v1218_v5, %v1218_v5 }
  0xeb   :  { %v1549_v16 = vadd.f32 %v1548_v8, %v1281_v9  ;;  %v1619_v17 = vmul.f32 %v1281_v9, %v1281_v9  ;;  %v276_v18 = vpop.f32.mrb[8].mxu0  ;;  %v1620_v24 = vmul.f32 %v1282_v10, %v1282_v10  ;;  %v436_v27 = vpop.f32.mrb[8].mxu1 }
  0xec   :  { %v1345_v19 = vadd.f32 %v1344_v13, %v1218_v5  ;;  %v1477_v21 = vadd.f32 %v1476_v12, %v1414_v14  ;;  %v278_v22 = vpop.f32.mrb[9].mxu0  ;;  %v438_v31 = vpop.f32.mrb[9].mxu1 }
  0xed   :  { %v1550_v23 = vadd.f32 %v1549_v16, %v1282_v10  ;;  %v1682_v25 = vadd.f32 %v1681_v15, %v1619_v17  ;;  %v280_v26 = vpop.f32.mrb[10].mxu0  ;;  %v440_v34 = vpop.f32.mrb[10].mxu1 }
  0xee   :  { %v1478_v28 = vadd.f32 %v1477_v21, %v1415_v20  ;;  %v577_v29 = vpack.c.bf16 %v280_v26, %v276_v18  ;;  %v282_v30 = vpop.f32.mrb[11].mxu0  ;;  %v2775_v37 = vpack.c.bf16 %v440_v34, %v436_v27  ;;  %v442_v38 = vpop.f32.mrb[11].mxu1 }
  0xef   :  { %v1683_v32 = vadd.f32 %v1682_v25, %v1620_v24  ;;  %v609_v33 = vpack.c.bf16 %v282_v30, %v278_v22  ;;  %v2780_v41 = vpack.c.bf16 %v442_v38, %v438_v31 }
  0xf0   :  { %2380 = vst [vmem:[%s3096_s2 + $0x10] sm:$0xff] %v577_v29   ;;  %v1219_v35 = vunpack.c.l.bf16 %v577_v29  ;;  %v1220_v36 = vunpack.c.h.bf16 %v577_v29  ;;  %2396 = vst [vmem:[%s3096_s2 + $0x90] sm:$0xff] %v2775_v37  }
  0xf1   :  { %2411 = vst [vmem:[%s3097_s3 + $0x10] sm:$0xff] %v609_v33   ;;  %v1283_v39 = vunpack.c.l.bf16 %v609_v33  ;;  %v1284_v40 = vunpack.c.h.bf16 %v609_v33  ;;  %2427 = vst [vmem:[%s3097_s3 + $0x90] sm:$0xff] %v2780_v41  }
  0xf2   :  { %v1346_v42 = vadd.f32 %v1345_v19, %v1219_v35  ;;  %v1416_v1 = vmul.f32 %v1219_v35, %v1219_v35  ;;  %v1417_v49 = vmul.f32 %v1220_v36, %v1220_v36 }
  0xf3   :  { %v1551_v43 = vadd.f32 %v1550_v23, %v1283_v39  ;;  %v1621_v44 = vmul.f32 %v1283_v39, %v1283_v39  ;;  %v286_v45 = vpop.f32.mrb[12].mxu0  ;;  %v1622_v53 = vmul.f32 %v1284_v40, %v1284_v40  ;;  %v446_v56 = vpop.f32.mrb[12].mxu1 }
  0xf4   :  { %v1347_v47 = vadd.f32 %v1346_v42, %v1220_v36  ;;  %v1479_v50 = vadd.f32 %v1478_v28, %v1416_v1  ;;  %v288_v51 = vpop.f32.mrb[13].mxu0  ;;  %v448_v60 = vpop.f32.mrb[13].mxu1 }
  0xf5   :  { %v1552_v52 = vadd.f32 %v1551_v43, %v1284_v40  ;;  %v1684_v54 = vadd.f32 %v1683_v32, %v1621_v44  ;;  %v290_v55 = vpop.f32.mrb[14].mxu0  ;;  %v450_v63 = vpop.f32.mrb[14].mxu1 }
  0xf6   :  { %v1480_v57 = vadd.f32 %v1479_v50, %v1417_v49  ;;  %v578_v58 = vpack.c.bf16 %v290_v55, %v286_v45  ;;  %v292_v59 = vpop.f32.mrb[15].mxu0  ;;  %v2793_v3 = vpack.c.bf16 %v450_v63, %v446_v56  ;;  %v452_v4 = vpop.f32.mrb[15].mxu1 }
  0xf7   :  { %v1685_v61 = vadd.f32 %v1684_v54, %v1622_v53  ;;  %v610_v62 = vpack.c.bf16 %v292_v59, %v288_v51  ;;  %v2798_v8 = vpack.c.bf16 %v452_v4, %v448_v60 }
  0xf8   :  { %2381 = vst [vmem:[%s3096_s2 + $0x18] sm:$0xff] %v578_v58   ;;  %v1221_v0 = vunpack.c.l.bf16 %v578_v58  ;;  %v1222_v2 = vunpack.c.h.bf16 %v578_v58  ;;  %2397 = vst [vmem:[%s3096_s2 + $0x98] sm:$0xff] %v2793_v3  }
  0xf9   :  { %2412 = vst [vmem:[%s3097_s3 + $0x18] sm:$0xff] %v610_v62   ;;  %v1285_v5 = vunpack.c.l.bf16 %v610_v62  ;;  %v1286_v7 = vunpack.c.h.bf16 %v610_v62  ;;  %2428 = vst [vmem:[%s3097_s3 + $0x98] sm:$0xff] %v2798_v8  }
  0xfa   :  { %v1348_v9 = vadd.f32 %v1347_v47, %v1221_v0  ;;  %v1418_v10 = vmul.f32 %v1221_v0, %v1221_v0  ;;  %v1419_v16 = vmul.f32 %v1222_v2, %v1222_v2 }
  0xfb   :  { %v1553_v12 = vadd.f32 %v1552_v52, %v1285_v5  ;;  %v1623_v13 = vmul.f32 %v1285_v5, %v1285_v5  ;;  %v296_v14 = vpop.f32.mrb[16].mxu0  ;;  %v1624_v20 = vmul.f32 %v1286_v7, %v1286_v7  ;;  %v456_v23 = vpop.f32.mrb[16].mxu1 }
  0xfc   :  { %v1349_v15 = vadd.f32 %v1348_v9, %v1222_v2  ;;  %v1481_v17 = vadd.f32 %v1480_v57, %v1418_v10  ;;  %v298_v18 = vpop.f32.mrb[17].mxu0  ;;  %v458_v27 = vpop.f32.mrb[17].mxu1 }
  0xfd   :  { %v1554_v19 = vadd.f32 %v1553_v12, %v1286_v7  ;;  %v1686_v21 = vadd.f32 %v1685_v61, %v1623_v13  ;;  %v300_v22 = vpop.f32.mrb[18].mxu0  ;;  %v460_v30 = vpop.f32.mrb[18].mxu1 }
  0xfe   :  { %v1482_v24 = vadd.f32 %v1481_v17, %v1419_v16  ;;  %v579_v25 = vpack.c.bf16 %v300_v22, %v296_v14  ;;  %v302_v26 = vpop.f32.mrb[19].mxu0  ;;  %v2811_v33 = vpack.c.bf16 %v460_v30, %v456_v23  ;;  %v462_v34 = vpop.f32.mrb[19].mxu1 }
  0xff   :  { %v1687_v28 = vadd.f32 %v1686_v21, %v1624_v20  ;;  %v611_v29 = vpack.c.bf16 %v302_v26, %v298_v18  ;;  %v2816_v38 = vpack.c.bf16 %v462_v34, %v458_v27 }
 0x100   :  { %2382 = vst [vmem:[%s3096_s2 + $0x20] sm:$0xff] %v579_v25   ;;  %v1223_v31 = vunpack.c.l.bf16 %v579_v25  ;;  %v1224_v32 = vunpack.c.h.bf16 %v579_v25  ;;  %2398 = vst [vmem:[%s3096_s2 + $0xa0] sm:$0xff] %v2811_v33  }
 0x101   :  { %2413 = vst [vmem:[%s3097_s3 + $0x20] sm:$0xff] %v611_v29   ;;  %v1287_v35 = vunpack.c.l.bf16 %v611_v29  ;;  %v1288_v36 = vunpack.c.h.bf16 %v611_v29  ;;  %2429 = vst [vmem:[%s3097_s3 + $0xa0] sm:$0xff] %v2816_v38  }
 0x102   :  { %v1350_v39 = vadd.f32 %v1349_v15, %v1223_v31  ;;  %v1420_v40 = vmul.f32 %v1223_v31, %v1223_v31  ;;  %v1421_v45 = vmul.f32 %v1224_v32, %v1224_v32 }
 0x103   :  { %v1555_v42 = vadd.f32 %v1554_v19, %v1287_v35  ;;  %v1625_v1 = vmul.f32 %v1287_v35, %v1287_v35  ;;  %v306_v43 = vpop.f32.mrb[20].mxu0  ;;  %v1626_v51 = vmul.f32 %v1288_v36, %v1288_v36  ;;  %v466_v54 = vpop.f32.mrb[20].mxu1 }
 0x104   :  { %v1351_v44 = vadd.f32 %v1350_v39, %v1224_v32  ;;  %v1483_v47 = vadd.f32 %v1482_v24, %v1420_v40  ;;  %v308_v49 = vpop.f32.mrb[21].mxu0  ;;  %v468_v58 = vpop.f32.mrb[21].mxu1 }
 0x105   :  { %v1556_v50 = vadd.f32 %v1555_v42, %v1288_v36  ;;  %v1688_v52 = vadd.f32 %v1687_v28, %v1625_v1  ;;  %v310_v53 = vpop.f32.mrb[22].mxu0  ;;  %v470_v61 = vpop.f32.mrb[22].mxu1 }
 0x106   :  { %v1484_v55 = vadd.f32 %v1483_v47, %v1421_v45  ;;  %v580_v56 = vpack.c.bf16 %v310_v53, %v306_v43  ;;  %v312_v57 = vpop.f32.mrb[23].mxu0  ;;  %v2829_v0 = vpack.c.bf16 %v470_v61, %v466_v54  ;;  %v472_v2 = vpop.f32.mrb[23].mxu1 }
 0x107   :  { %v1689_v59 = vadd.f32 %v1688_v52, %v1626_v51  ;;  %v612_v60 = vpack.c.bf16 %v312_v57, %v308_v49  ;;  %v2834_v7 = vpack.c.bf16 %v472_v2, %v468_v58 }
 0x108   :  { %2383 = vst [vmem:[%s3096_s2 + $0x28] sm:$0xff] %v580_v56   ;;  %v1225_v62 = vunpack.c.l.bf16 %v580_v56  ;;  %v1226_v63 = vunpack.c.h.bf16 %v580_v56  ;;  %2399 = vst [vmem:[%s3096_s2 + $0xa8] sm:$0xff] %v2829_v0  }
 0x109   :  { %2414 = vst [vmem:[%s3097_s3 + $0x28] sm:$0xff] %v612_v60   ;;  %v1289_v4 = vunpack.c.l.bf16 %v612_v60  ;;  %v1290_v5 = vunpack.c.h.bf16 %v612_v60  ;;  %2430 = vst [vmem:[%s3097_s3 + $0xa8] sm:$0xff] %v2834_v7  }
 0x10a   :  { %v1352_v9 = vadd.f32 %v1351_v44, %v1225_v62  ;;  %v1422_v10 = vmul.f32 %v1225_v62, %v1225_v62  ;;  %v1423_v16 = vmul.f32 %v1226_v63, %v1226_v63 }
 0x10b   :  { %v1557_v12 = vadd.f32 %v1556_v50, %v1289_v4  ;;  %v1627_v13 = vmul.f32 %v1289_v4, %v1289_v4  ;;  %v316_v14 = vpop.f32.mrb[24].mxu0  ;;  %v1628_v20 = vmul.f32 %v1290_v5, %v1290_v5  ;;  %v476_v23 = vpop.f32.mrb[24].mxu1 }
 0x10c   :  { %v1353_v15 = vadd.f32 %v1352_v9, %v1226_v63  ;;  %v1485_v17 = vadd.f32 %v1484_v55, %v1422_v10  ;;  %v318_v18 = vpop.f32.mrb[25].mxu0  ;;  %v478_v27 = vpop.f32.mrb[25].mxu1 }
 0x10d   :  { %v1558_v19 = vadd.f32 %v1557_v12, %v1290_v5  ;;  %v1690_v21 = vadd.f32 %v1689_v59, %v1627_v13  ;;  %v320_v22 = vpop.f32.mrb[26].mxu0  ;;  %v480_v30 = vpop.f32.mrb[26].mxu1 }
 0x10e   :  { %v1486_v24 = vadd.f32 %v1485_v17, %v1423_v16  ;;  %v581_v25 = vpack.c.bf16 %v320_v22, %v316_v14  ;;  %v322_v26 = vpop.f32.mrb[27].mxu0  ;;  %v2847_v34 = vpack.c.bf16 %v480_v30, %v476_v23  ;;  %v482_v35 = vpop.f32.mrb[27].mxu1 }
 0x10f   :  { %v1691_v28 = vadd.f32 %v1690_v21, %v1628_v20  ;;  %v613_v29 = vpack.c.bf16 %v322_v26, %v318_v18  ;;  %v2852_v40 = vpack.c.bf16 %v482_v35, %v478_v27 }
 0x110   :  { %2384 = vst [vmem:[%s3096_s2 + $0x30] sm:$0xff] %v581_v25   ;;  %v1227_v31 = vunpack.c.l.bf16 %v581_v25  ;;  %v1228_v32 = vunpack.c.h.bf16 %v581_v25  ;;  %2400 = vst [vmem:[%s3096_s2 + $0xb0] sm:$0xff] %v2847_v34  }
 0x111   :  { %2415 = vst [vmem:[%s3097_s3 + $0x30] sm:$0xff] %v613_v29   ;;  %v1291_v36 = vunpack.c.l.bf16 %v613_v29  ;;  %v1292_v39 = vunpack.c.h.bf16 %v613_v29  ;;  %2431 = vst [vmem:[%s3097_s3 + $0xb0] sm:$0xff] %v2852_v40  }
 0x112   :  { %v1354_v42 = vadd.f32 %v1353_v15, %v1227_v31  ;;  %v1424_v1 = vmul.f32 %v1227_v31, %v1227_v31  ;;  %v1425_v49 = vmul.f32 %v1228_v32, %v1228_v32 }
 0x113   :  { %v1559_v43 = vadd.f32 %v1558_v19, %v1291_v36  ;;  %v1629_v44 = vmul.f32 %v1291_v36, %v1291_v36  ;;  %v326_v45 = vpop.f32.mrb[28].mxu0  ;;  %v1630_v53 = vmul.f32 %v1292_v39, %v1292_v39  ;;  %v486_v56 = vpop.f32.mrb[28].mxu1 }
 0x114   :  { %v1355_v47 = vadd.f32 %v1354_v42, %v1228_v32  ;;  %v1487_v50 = vadd.f32 %v1486_v24, %v1424_v1  ;;  %v328_v51 = vpop.f32.mrb[29].mxu0  ;;  %v488_v60 = vpop.f32.mrb[29].mxu1 }
 0x115   :  { %v1560_v52 = vadd.f32 %v1559_v43, %v1292_v39  ;;  %v1692_v54 = vadd.f32 %v1691_v28, %v1629_v44  ;;  %v330_v55 = vpop.f32.mrb[30].mxu0  ;;  %v490_v63 = vpop.f32.mrb[30].mxu1 }
 0x116   :  { %v1488_v57 = vadd.f32 %v1487_v50, %v1425_v49  ;;  %v582_v58 = vpack.c.bf16 %v330_v55, %v326_v45  ;;  %v332_v59 = vpop.f32.mrb[31].mxu0  ;;  %v2865_v5 = vpack.c.bf16 %v490_v63, %v486_v56  ;;  %v492_v9 = vpop.f32.mrb[31].mxu1 }
 0x117   :  { %v1693_v61 = vadd.f32 %v1692_v54, %v1630_v53  ;;  %v614_v62 = vpack.c.bf16 %v332_v59, %v328_v51  ;;  %v2870_v13 = vpack.c.bf16 %v492_v9, %v488_v60 }
 0x118   :  { %2385 = vst [vmem:[%s3096_s2 + $0x38] sm:$0xff] %v582_v58   ;;  %v1229_v2 = vunpack.c.l.bf16 %v582_v58  ;;  %v1230_v4 = vunpack.c.h.bf16 %v582_v58  ;;  %2401 = vst [vmem:[%s3096_s2 + $0xb8] sm:$0xff] %v2865_v5  }
 0x119   :  { %2416 = vst [vmem:[%s3097_s3 + $0x38] sm:$0xff] %v614_v62   ;;  %v1293_v10 = vunpack.c.l.bf16 %v614_v62  ;;  %v1294_v12 = vunpack.c.h.bf16 %v614_v62  ;;  %2432 = vst [vmem:[%s3097_s3 + $0xb8] sm:$0xff] %v2870_v13  }
 0x11a   :  { %v1356_v14 = vadd.f32 %v1355_v47, %v1229_v2  ;;  %v1426_v15 = vmul.f32 %v1229_v2, %v1229_v2  ;;  %v1427_v20 = vmul.f32 %v1230_v4, %v1230_v4 }
 0x11b   :  { %v1561_v16 = vadd.f32 %v1560_v52, %v1293_v10  ;;  %v1631_v17 = vmul.f32 %v1293_v10, %v1293_v10  ;;  %v336_v18 = vpop.f32.mrb[32].mxu0  ;;  %v1632_v24 = vmul.f32 %v1294_v12, %v1294_v12  ;;  %v496_v27 = vpop.f32.mrb[32].mxu1 }
 0x11c   :  { %v1357_v19 = vadd.f32 %v1356_v14, %v1230_v4  ;;  %v1489_v21 = vadd.f32 %v1488_v57, %v1426_v15  ;;  %v338_v22 = vpop.f32.mrb[33].mxu0  ;;  %v498_v31 = vpop.f32.mrb[33].mxu1 }
 0x11d   :  { %v1562_v23 = vadd.f32 %v1561_v16, %v1294_v12  ;;  %v1694_v25 = vadd.f32 %v1693_v61, %v1631_v17  ;;  %v340_v26 = vpop.f32.mrb[34].mxu0  ;;  %v500_v36 = vpop.f32.mrb[34].mxu1 }
 0x11e   :  { %v1490_v28 = vadd.f32 %v1489_v21, %v1427_v20  ;;  %v583_v29 = vpack.c.bf16 %v340_v26, %v336_v18  ;;  %v342_v30 = vpop.f32.mrb[35].mxu0  ;;  %v2883_v1 = vpack.c.bf16 %v500_v36, %v496_v27  ;;  %v502_v43 = vpop.f32.mrb[35].mxu1 }
 0x11f   :  { %v1695_v32 = vadd.f32 %v1694_v25, %v1632_v24  ;;  %v615_v35 = vpack.c.bf16 %v342_v30, %v338_v22  ;;  %v2888_v47 = vpack.c.bf16 %v502_v43, %v498_v31 }
 0x120   :  { %2386 = vst [vmem:[%s3096_s2 + $0x40] sm:$0xff] %v583_v29   ;;  %v1231_v39 = vunpack.c.l.bf16 %v583_v29  ;;  %v1232_v42 = vunpack.c.h.bf16 %v583_v29  ;;  %2402 = vst [vmem:[%s3096_s2 + $0xc0] sm:$0xff] %v2883_v1  }
 0x121   :  { %2417 = vst [vmem:[%s3097_s3 + $0x40] sm:$0xff] %v615_v35   ;;  %v1295_v44 = vunpack.c.l.bf16 %v615_v35  ;;  %v1296_v45 = vunpack.c.h.bf16 %v615_v35  ;;  %2433 = vst [vmem:[%s3097_s3 + $0xc0] sm:$0xff] %v2888_v47  }
 0x122   :  { %v1358_v49 = vadd.f32 %v1357_v19, %v1231_v39  ;;  %v1428_v50 = vmul.f32 %v1231_v39, %v1231_v39  ;;  %v1429_v55 = vmul.f32 %v1232_v42, %v1232_v42 }
 0x123   :  { %v1563_v51 = vadd.f32 %v1562_v23, %v1295_v44  ;;  %v1633_v52 = vmul.f32 %v1295_v44, %v1295_v44  ;;  %v346_v53 = vpop.f32.mrb[36].mxu0  ;;  %v1634_v59 = vmul.f32 %v1296_v45, %v1296_v45  ;;  %v506_v62 = vpop.f32.mrb[36].mxu1 }
 0x124   :  { %v1359_v54 = vadd.f32 %v1358_v49, %v1232_v42  ;;  %v1491_v56 = vadd.f32 %v1490_v28, %v1428_v50  ;;  %v348_v57 = vpop.f32.mrb[37].mxu0  ;;  %v508_v9 = vpop.f32.mrb[37].mxu1 }
 0x125   :  { %v1564_v58 = vadd.f32 %v1563_v51, %v1296_v45  ;;  %v1696_v60 = vadd.f32 %v1695_v32, %v1633_v52  ;;  %v350_v61 = vpop.f32.mrb[38].mxu0  ;;  %v510_v14 = vpop.f32.mrb[38].mxu1 }
 0x126   :  { %v1492_v63 = vadd.f32 %v1491_v56, %v1429_v55  ;;  %v584_v2 = vpack.c.bf16 %v350_v61, %v346_v53  ;;  %v352_v4 = vpop.f32.mrb[39].mxu0  ;;  %v2901_v17 = vpack.c.bf16 %v510_v14, %v506_v62  ;;  %v512_v18 = vpop.f32.mrb[39].mxu1 }
 0x127   :  { %v1697_v10 = vadd.f32 %v1696_v60, %v1634_v59  ;;  %v616_v12 = vpack.c.bf16 %v352_v4, %v348_v57  ;;  %v2906_v21 = vpack.c.bf16 %v512_v18, %v508_v9 }
 0x128   :  { %2387 = vst [vmem:[%s3096_s2 + $0x48] sm:$0xff] %v584_v2   ;;  %v1233_v15 = vunpack.c.l.bf16 %v584_v2  ;;  %v1234_v16 = vunpack.c.h.bf16 %v584_v2  ;;  %2403 = vst [vmem:[%s3096_s2 + $0xc8] sm:$0xff] %v2901_v17  }
 0x129   :  { %2418 = vst [vmem:[%s3097_s3 + $0x48] sm:$0xff] %v616_v12   ;;  %v1297_v19 = vunpack.c.l.bf16 %v616_v12  ;;  %v1298_v20 = vunpack.c.h.bf16 %v616_v12  ;;  %2434 = vst [vmem:[%s3097_s3 + $0xc8] sm:$0xff] %v2906_v21  }
 0x12a   :  { %v1360_v22 = vadd.f32 %v1359_v54, %v1233_v15  ;;  %v1430_v23 = vmul.f32 %v1233_v15, %v1233_v15  ;;  %v1431_v28 = vmul.f32 %v1234_v16, %v1234_v16 }
 0x12b   :  { %v1565_v24 = vadd.f32 %v1564_v58, %v1297_v19  ;;  %v1635_v25 = vmul.f32 %v1297_v19, %v1297_v19  ;;  %v356_v26 = vpop.f32.mrb[40].mxu0  ;;  %v1636_v32 = vmul.f32 %v1298_v20, %v1298_v20  ;;  %v516_v39 = vpop.f32.mrb[40].mxu1 }
 0x12c   :  { %v1361_v27 = vadd.f32 %v1360_v22, %v1234_v16  ;;  %v1493_v29 = vadd.f32 %v1492_v63, %v1430_v23  ;;  %v358_v30 = vpop.f32.mrb[41].mxu0  ;;  %v518_v45 = vpop.f32.mrb[41].mxu1 }
 0x12d   :  { %v1566_v31 = vadd.f32 %v1565_v24, %v1298_v20  ;;  %v1698_v35 = vadd.f32 %v1697_v10, %v1635_v25  ;;  %v360_v36 = vpop.f32.mrb[42].mxu0  ;;  %v520_v51 = vpop.f32.mrb[42].mxu1 }
 0x12e   :  { %v1494_v42 = vadd.f32 %v1493_v29, %v1431_v28  ;;  %v585_v43 = vpack.c.bf16 %v360_v36, %v356_v26  ;;  %v362_v44 = vpop.f32.mrb[43].mxu0  ;;  %v2919_v54 = vpack.c.bf16 %v520_v51, %v516_v39  ;;  %v522_v55 = vpop.f32.mrb[43].mxu1 }
 0x12f   :  { %v1699_v49 = vadd.f32 %v1698_v35, %v1636_v32  ;;  %v617_v50 = vpack.c.bf16 %v362_v44, %v358_v30  ;;  %v2924_v58 = vpack.c.bf16 %v522_v55, %v518_v45 }
 0x130   :  { %2388 = vst [vmem:[%s3096_s2 + $0x50] sm:$0xff] %v585_v43   ;;  %v1235_v52 = vunpack.c.l.bf16 %v585_v43  ;;  %v1236_v53 = vunpack.c.h.bf16 %v585_v43  ;;  %2404 = vst [vmem:[%s3096_s2 + $0xd0] sm:$0xff] %v2919_v54  }
 0x131   :  { %2419 = vst [vmem:[%s3097_s3 + $0x50] sm:$0xff] %v617_v50   ;;  %v1299_v56 = vunpack.c.l.bf16 %v617_v50  ;;  %v1300_v57 = vunpack.c.h.bf16 %v617_v50  ;;  %2435 = vst [vmem:[%s3097_s3 + $0xd0] sm:$0xff] %v2924_v58  }
 0x132   :  { %v1362_v59 = vadd.f32 %v1361_v27, %v1235_v52  ;;  %v1432_v60 = vmul.f32 %v1235_v52, %v1235_v52  ;;  %v1433_v4 = vmul.f32 %v1236_v53, %v1236_v53 }
 0x133   :  { %v1567_v61 = vadd.f32 %v1566_v31, %v1299_v56  ;;  %v1637_v62 = vmul.f32 %v1299_v56, %v1299_v56  ;;  %v366_v63 = vpop.f32.mrb[44].mxu0  ;;  %v1638_v14 = vmul.f32 %v1300_v57, %v1300_v57  ;;  %v526_v18 = vpop.f32.mrb[44].mxu1 }
 0x134   :  { %v1363_v2 = vadd.f32 %v1362_v59, %v1236_v53  ;;  %v1495_v9 = vadd.f32 %v1494_v42, %v1432_v60  ;;  %v368_v10 = vpop.f32.mrb[45].mxu0  ;;  %v528_v23 = vpop.f32.mrb[45].mxu1 }
 0x135   :  { %v1568_v12 = vadd.f32 %v1567_v61, %v1300_v57  ;;  %v1700_v15 = vadd.f32 %v1699_v49, %v1637_v62  ;;  %v370_v16 = vpop.f32.mrb[46].mxu0  ;;  %v530_v26 = vpop.f32.mrb[46].mxu1 }
 0x136   :  { %v1496_v19 = vadd.f32 %v1495_v9, %v1433_v4  ;;  %v586_v20 = vpack.c.bf16 %v370_v16, %v366_v63  ;;  %v372_v22 = vpop.f32.mrb[47].mxu0  ;;  %v2937_v29 = vpack.c.bf16 %v530_v26, %v526_v18  ;;  %v532_v30 = vpop.f32.mrb[47].mxu1 }
 0x137   :  { %v1701_v24 = vadd.f32 %v1700_v15, %v1638_v14  ;;  %v618_v25 = vpack.c.bf16 %v372_v22, %v368_v10  ;;  %v2942_v35 = vpack.c.bf16 %v532_v30, %v528_v23 }
 0x138   :  { %2389 = vst [vmem:[%s3096_s2 + $0x58] sm:$0xff] %v586_v20   ;;  %v1237_v27 = vunpack.c.l.bf16 %v586_v20  ;;  %v1238_v28 = vunpack.c.h.bf16 %v586_v20  ;;  %2405 = vst [vmem:[%s3096_s2 + $0xd8] sm:$0xff] %v2937_v29  }
 0x139   :  { %2420 = vst [vmem:[%s3097_s3 + $0x58] sm:$0xff] %v618_v25   ;;  %v1301_v31 = vunpack.c.l.bf16 %v618_v25  ;;  %v1302_v32 = vunpack.c.h.bf16 %v618_v25  ;;  %2436 = vst [vmem:[%s3097_s3 + $0xd8] sm:$0xff] %v2942_v35  }
 0x13a   :  { %v1364_v36 = vadd.f32 %v1363_v2, %v1237_v27  ;;  %v1434_v39 = vmul.f32 %v1237_v27, %v1237_v27  ;;  %v1435_v49 = vmul.f32 %v1238_v28, %v1238_v28 }
 0x13b   :  { %v1569_v42 = vadd.f32 %v1568_v12, %v1301_v31  ;;  %v1639_v43 = vmul.f32 %v1301_v31, %v1301_v31  ;;  %v376_v44 = vpop.f32.mrb[48].mxu0  ;;  %v1640_v53 = vmul.f32 %v1302_v32, %v1302_v32  ;;  %v536_v57 = vpop.f32.mrb[48].mxu1 }
 0x13c   :  { %v1365_v45 = vadd.f32 %v1364_v36, %v1238_v28  ;;  %v1497_v50 = vadd.f32 %v1496_v19, %v1434_v39  ;;  %v378_v51 = vpop.f32.mrb[49].mxu0  ;;  %v538_v62 = vpop.f32.mrb[49].mxu1 }
 0x13d   :  { %v1570_v52 = vadd.f32 %v1569_v42, %v1302_v32  ;;  %v1702_v55 = vadd.f32 %v1701_v24, %v1639_v43  ;;  %v380_v56 = vpop.f32.mrb[50].mxu0  ;;  %v540_v4 = vpop.f32.mrb[50].mxu1 }
 0x13e   :  { %v1498_v59 = vadd.f32 %v1497_v50, %v1435_v49  ;;  %v587_v60 = vpack.c.bf16 %v380_v56, %v376_v44  ;;  %v382_v61 = vpop.f32.mrb[51].mxu0  ;;  %v2955_v12 = vpack.c.bf16 %v540_v4, %v536_v57  ;;  %v542_v14 = vpop.f32.mrb[51].mxu1 }
 0x13f   :  { %v1703_v63 = vadd.f32 %v1702_v55, %v1640_v53  ;;  %v619_v2 = vpack.c.bf16 %v382_v61, %v378_v51  ;;  %v2960_v18 = vpack.c.bf16 %v542_v14, %v538_v62 }
 0x140   :  { %2390 = vst [vmem:[%s3096_s2 + $0x60] sm:$0xff] %v587_v60   ;;  %v1239_v9 = vunpack.c.l.bf16 %v587_v60  ;;  %v1240_v10 = vunpack.c.h.bf16 %v587_v60  ;;  %2406 = vst [vmem:[%s3096_s2 + $0xe0] sm:$0xff] %v2955_v12  }
 0x141   :  { %2421 = vst [vmem:[%s3097_s3 + $0x60] sm:$0xff] %v619_v2   ;;  %v1303_v15 = vunpack.c.l.bf16 %v619_v2  ;;  %v1304_v16 = vunpack.c.h.bf16 %v619_v2  ;;  %2437 = vst [vmem:[%s3097_s3 + $0xe0] sm:$0xff] %v2960_v18  }
 0x142   :  { %v1366_v19 = vadd.f32 %v1365_v45, %v1239_v9  ;;  %v1436_v20 = vmul.f32 %v1239_v9, %v1239_v9  ;;  %v1437_v26 = vmul.f32 %v1240_v10, %v1240_v10 }
 0x143   :  { %v1571_v22 = vadd.f32 %v1570_v52, %v1303_v15  ;;  %v1641_v23 = vmul.f32 %v1303_v15, %v1303_v15  ;;  %v386_v24 = vpop.f32.mrb[52].mxu0  ;;  %v1642_v31 = vmul.f32 %v1304_v16, %v1304_v16  ;;  %v546_v39 = vpop.f32.mrb[52].mxu1 }
 0x144   :  { %v1367_v25 = vadd.f32 %v1366_v19, %v1240_v10  ;;  %v1499_v27 = vadd.f32 %v1498_v59, %v1436_v20  ;;  %v388_v28 = vpop.f32.mrb[53].mxu0  ;;  %v548_v45 = vpop.f32.mrb[53].mxu1 }
 0x145   :  { %v1572_v30 = vadd.f32 %v1571_v22, %v1304_v16  ;;  %v1704_v32 = vadd.f32 %v1703_v63, %v1641_v23  ;;  %v390_v36 = vpop.f32.mrb[54].mxu0  ;;  %v550_v51 = vpop.f32.mrb[54].mxu1 }
 0x146   :  { %v1500_v42 = vadd.f32 %v1499_v27, %v1437_v26  ;;  %v588_v43 = vpack.c.bf16 %v390_v36, %v386_v24  ;;  %v392_v44 = vpop.f32.mrb[55].mxu0  ;;  %v2973_v55 = vpack.c.bf16 %v550_v51, %v546_v39  ;;  %v552_v56 = vpop.f32.mrb[55].mxu1 }
 0x147   :  { %v1705_v49 = vadd.f32 %v1704_v32, %v1642_v31  ;;  %v620_v50 = vpack.c.bf16 %v392_v44, %v388_v28  ;;  %v2978_v60 = vpack.c.bf16 %v552_v56, %v548_v45 }
 0x148   :  { %2391 = vst [vmem:[%s3096_s2 + $0x68] sm:$0xff] %v588_v43   ;;  %v1241_v52 = vunpack.c.l.bf16 %v588_v43  ;;  %v1242_v53 = vunpack.c.h.bf16 %v588_v43  ;;  %2407 = vst [vmem:[%s3096_s2 + $0xe8] sm:$0xff] %v2973_v55  }
 0x149   :  { %2422 = vst [vmem:[%s3097_s3 + $0x68] sm:$0xff] %v620_v50   ;;  %v1305_v57 = vunpack.c.l.bf16 %v620_v50  ;;  %v1306_v59 = vunpack.c.h.bf16 %v620_v50  ;;  %2438 = vst [vmem:[%s3097_s3 + $0xe8] sm:$0xff] %v2978_v60  }
 0x14a   :  { %v1368_v61 = vadd.f32 %v1367_v25, %v1241_v52  ;;  %v1438_v62 = vmul.f32 %v1241_v52, %v1241_v52  ;;  %v1439_v10 = vmul.f32 %v1242_v53, %v1242_v53 }
 0x14b   :  { %v1573_v63 = vadd.f32 %v1572_v30, %v1305_v57  ;;  %v1643_v2 = vmul.f32 %v1305_v57, %v1305_v57  ;;  %v396_v4 = vpop.f32.mrb[56].mxu0  ;;  %v1644_v19 = vmul.f32 %v1306_v59, %v1306_v59  ;;  %v556_v23 = vpop.f32.mrb[56].mxu1 }
 0x14c   :  { %v1369_v9 = vadd.f32 %v1368_v61, %v1242_v53  ;;  %v1501_v14 = vadd.f32 %v1500_v42, %v1438_v62  ;;  %v398_v15 = vpop.f32.mrb[57].mxu0  ;;  %v558_v27 = vpop.f32.mrb[57].mxu1 }
 0x14d   :  { %v1574_v16 = vadd.f32 %v1573_v63, %v1306_v59  ;;  %v1706_v20 = vadd.f32 %v1705_v49, %v1643_v2  ;;  %v400_v22 = vpop.f32.mrb[58].mxu0  ;;  %v560_v31 = vpop.f32.mrb[58].mxu1 }
 0x14e   :  { %v1502_v24 = vadd.f32 %v1501_v14, %v1439_v10  ;;  %v589_v25 = vpack.c.bf16 %v400_v22, %v396_v4  ;;  %v402_v26 = vpop.f32.mrb[59].mxu0  ;;  %v2991_v39 = vpack.c.bf16 %v560_v31, %v556_v23  ;;  %v562_v42 = vpop.f32.mrb[59].mxu1  ;;  %v1247_v31 = vunpack.c.l.bf16 %v2739_v46 }
 0x14f   :  { %v1707_v28 = vadd.f32 %v1706_v20, %v1644_v19  ;;  %v621_v30 = vpack.c.bf16 %v402_v26, %v398_v15  ;;  %v2996_v45 = vpack.c.bf16 %v562_v42, %v558_v27  ;;  %v1311_v42 = vunpack.c.l.bf16 %v2744_v48 }
 0x150   :  { %2392 = vst [vmem:[%s3096_s2 + $0x70] sm:$0xff] %v589_v25   ;;  %v1243_v32 = vunpack.c.l.bf16 %v589_v25  ;;  %v1244_v36 = vunpack.c.h.bf16 %v589_v25  ;;  %2408 = vst [vmem:[%s3096_s2 + $0xf0] sm:$0xff] %v2991_v39  }
 0x151   :  { %2423 = vst [vmem:[%s3097_s3 + $0x70] sm:$0xff] %v621_v30   ;;  %v1307_v43 = vunpack.c.l.bf16 %v621_v30  ;;  %v1308_v44 = vunpack.c.h.bf16 %v621_v30  ;;  %2439 = vst [vmem:[%s3097_s3 + $0xf0] sm:$0xff] %v2996_v45  }
 0x152   :  { %v1370_v49 = vadd.f32 %v1369_v9, %v1243_v32  ;;  %v1440_v50 = vmul.f32 %v1243_v32, %v1243_v32  ;;  %v1441_v57 = vmul.f32 %v1244_v36, %v1244_v36 }
 0x153   :  { %v1575_v51 = vadd.f32 %v1574_v16, %v1307_v43  ;;  %v1645_v52 = vmul.f32 %v1307_v43, %v1307_v43  ;;  %v406_v53 = vpop.f32.mrb[60].mxu0  ;;  %v1646_v63 = vmul.f32 %v1308_v44, %v1308_v44  ;;  %v566_v9 = vpop.f32.mrb[60].mxu1 }
 0x154   :  { %v1371_v56 = vadd.f32 %v1370_v49, %v1244_v36  ;;  %v1503_v59 = vadd.f32 %v1502_v24, %v1440_v50  ;;  %v408_v61 = vpop.f32.mrb[61].mxu0  ;;  %v568_v16 = vpop.f32.mrb[61].mxu1  ;;  %v1248_v49 = vunpack.c.h.bf16 %v2739_v46  ;;  %v1250_v46 = vunpack.c.h.bf16 %v2757_v6 }
 0x155   :  { %v1576_v62 = vadd.f32 %v1575_v51, %v1308_v44  ;;  %v1708_v2 = vadd.f32 %v1707_v28, %v1645_v52  ;;  %v410_v4 = vpop.f32.mrb[62].mxu0  ;;  %v570_v22 = vpop.f32.mrb[62].mxu1 }
 0x156   :  { %v1504_v10 = vadd.f32 %v1503_v59, %v1441_v57  ;;  %v590_v14 = vpack.c.bf16 %v410_v4, %v406_v53  ;;  %v412_v15 = vpop.f32.mrb[63].mxu0  ;;  %v3009_v24 = vpack.c.bf16 %v570_v22, %v566_v9  ;;  %v572_v26 = vpop.f32.mrb[63].mxu1  ;;  %v1312_v53 = vunpack.c.h.bf16 %v2744_v48 }
 0x157   :  { %v1709_v19 = vadd.f32 %v1708_v2, %v1646_v63  ;;  %v622_v20 = vpack.c.bf16 %v412_v15, %v408_v61  ;;  %v3014_v30 = vpack.c.bf16 %v572_v26, %v568_v16  ;;  %v1444_v61 = vmul.f32 %v1247_v31, %v1247_v31 }
 0x158   :  { %2393 = vst [vmem:[%s3096_s2 + $0x78] sm:$0xff] %v590_v14   ;;  %v1245_v23 = vunpack.c.l.bf16 %v590_v14  ;;  %v1246_v25 = vunpack.c.h.bf16 %v590_v14  ;;  %2409 = vst [vmem:[%s3096_s2 + $0xf8] sm:$0xff] %v3009_v24   ;;  %v1249_v63 = vunpack.c.l.bf16 %v2757_v6  ;;  %v1649_v4 = vmul.f32 %v1311_v42, %v1311_v42 }
 0x159   :  { %2424 = vst [vmem:[%s3097_s3 + $0x78] sm:$0xff] %v622_v20   ;;  %v1309_v27 = vunpack.c.l.bf16 %v622_v20  ;;  %v1310_v28 = vunpack.c.h.bf16 %v622_v20  ;;  %2440 = vst [vmem:[%s3097_s3 + $0xf8] sm:$0xff] %v3014_v30   ;;  %v1313_v9 = vunpack.c.l.bf16 %v2762_v11  ;;  %v1445_v16 = vmul.f32 %v1248_v49, %v1248_v49 }
 0x15a   :  { %v1372_v32 = vadd.f32 %v1371_v56, %v1245_v23  ;;  %v1442_v36 = vmul.f32 %v1245_v23, %v1245_v23  ;;  %v1443_v51 = vmul.f32 %v1246_v25, %v1246_v25  ;;  %v1650_v22 = vmul.f32 %v1312_v53, %v1312_v53 }
 0x15b   :  { %v1577_v43 = vadd.f32 %v1576_v62, %v1309_v27  ;;  %v1647_v44 = vmul.f32 %v1309_v27, %v1309_v27  ;;  %v1648_v57 = vmul.f32 %v1310_v28, %v1310_v28  ;;  %v1314_v48 = vunpack.c.h.bf16 %v2762_v11 }
 0x15c   :  { %v1373_v50 = vadd.f32 %v1372_v32, %v1246_v25  ;;  %v1505_v52 = vadd.f32 %v1504_v10, %v1442_v36  ;;  %v1446_v25 = vmul.f32 %v1249_v63, %v1249_v63  ;;  %v1251_v26 = vunpack.c.l.bf16 %v2775_v37 }
 0x15d   :  { %v1578_v56 = vadd.f32 %v1577_v43, %v1310_v28  ;;  %v1710_v59 = vadd.f32 %v1709_v19, %v1647_v44  ;;  %v1315_v32 = vunpack.c.l.bf16 %v2780_v41  ;;  %v1447_v43 = vmul.f32 %v1250_v46, %v1250_v46 }
 0x15e   :  { %v1374_v62 = vadd.f32 %v1373_v50, %v1247_v31  ;;  %v1506_v2 = vadd.f32 %v1505_v52, %v1443_v51  ;;  %v1651_v31 = vmul.f32 %v1313_v9, %v1313_v9  ;;  %v1252_v6 = vunpack.c.h.bf16 %v2775_v37 }
 0x15f   :  { %v1579_v14 = vadd.f32 %v1578_v56, %v1311_v42  ;;  %v1711_v15 = vadd.f32 %v1710_v59, %v1648_v57  ;;  %v1652_v50 = vmul.f32 %v1314_v48, %v1314_v48  ;;  %v1316_v11 = vunpack.c.h.bf16 %v2780_v41 }
 0x160   :  { %v1375_v20 = vadd.f32 %v1374_v62, %v1248_v49  ;;  %v1507_v10 = vadd.f32 %v1506_v2, %v1444_v61  ;;  %v1253_v56 = vunpack.c.l.bf16 %v2793_v3  ;;  %v1653_v61 = vmul.f32 %v1315_v32, %v1315_v32 }
 0x161   :  { %v1580_v23 = vadd.f32 %v1579_v14, %v1312_v53  ;;  %v1712_v19 = vadd.f32 %v1711_v15, %v1649_v4  ;;  %v1448_v53 = vmul.f32 %v1251_v26, %v1251_v26  ;;  %v1449_v4 = vmul.f32 %v1252_v6, %v1252_v6 }
 0x162   :  { %v1376_v27 = vadd.f32 %v1375_v20, %v1249_v63  ;;  %v1508_v28 = vadd.f32 %v1507_v10, %v1445_v16  ;;  %v1317_v63 = vunpack.c.l.bf16 %v2798_v8  ;;  %v1254_v37 = vunpack.c.h.bf16 %v2793_v3 }
 0x163   :  { %v1581_v36 = vadd.f32 %v1580_v23, %v1313_v9  ;;  %v1713_v42 = vadd.f32 %v1712_v19, %v1650_v22  ;;  %v1654_v15 = vmul.f32 %v1316_v11, %v1316_v11  ;;  %v1318_v41 = vunpack.c.h.bf16 %v2798_v8 }
 0x164   :  { %v1377_v44 = vadd.f32 %v1376_v27, %v1250_v46  ;;  %v1509_v49 = vadd.f32 %v1508_v28, %v1446_v25  ;;  %v1450_v20 = vmul.f32 %v1253_v56, %v1253_v56  ;;  %v1255_v10 = vunpack.c.l.bf16 %v2811_v33 }
 0x165   :  { %v1582_v51 = vadd.f32 %v1581_v36, %v1314_v48  ;;  %v1714_v52 = vadd.f32 %v1713_v42, %v1651_v31  ;;  %v1655_v23 = vmul.f32 %v1317_v63, %v1317_v63  ;;  %v1319_v19 = vunpack.c.l.bf16 %v2816_v38 }
 0x166   :  { %v1378_v57 = vadd.f32 %v1377_v44, %v1251_v26  ;;  %v1510_v59 = vadd.f32 %v1509_v49, %v1447_v43  ;;  %v1451_v27 = vmul.f32 %v1254_v37, %v1254_v37  ;;  %v1256_v3 = vunpack.c.h.bf16 %v2811_v33 }
 0x167   :  { %v1583_v62 = vadd.f32 %v1582_v51, %v1315_v32  ;;  %v1715_v2 = vadd.f32 %v1714_v52, %v1652_v50  ;;  %v1656_v32 = vmul.f32 %v1318_v41, %v1318_v41  ;;  %v1320_v8 = vunpack.c.h.bf16 %v2816_v38 }
 0x168   :  { %v1379_v9 = vadd.f32 %v1378_v57, %v1252_v6  ;;  %v1511_v14 = vadd.f32 %v1510_v59, %v1448_v53  ;;  %v1452_v43 = vmul.f32 %v1255_v10, %v1255_v10  ;;  %v1257_v6 = vunpack.c.l.bf16 %v2829_v0 }
 0x169   :  { %v1584_v16 = vadd.f32 %v1583_v62, %v1316_v11  ;;  %v1716_v46 = vadd.f32 %v1715_v2, %v1653_v61  ;;  %v1657_v50 = vmul.f32 %v1319_v19, %v1319_v19  ;;  %v1321_v11 = vunpack.c.l.bf16 %v2834_v7 }
 0x16a   :  { %v1380_v22 = vadd.f32 %v1379_v9, %v1253_v56  ;;  %v1512_v48 = vadd.f32 %v1511_v14, %v1449_v4  ;;  %v1453_v53 = vmul.f32 %v1256_v3, %v1256_v3  ;;  %v1258_v33 = vunpack.c.h.bf16 %v2829_v0 }
 0x16b   :  { %v1585_v25 = vadd.f32 %v1584_v16, %v1317_v63  ;;  %v1717_v26 = vadd.f32 %v1716_v46, %v1654_v15  ;;  %v1658_v59 = vmul.f32 %v1320_v8, %v1320_v8  ;;  %v1322_v38 = vunpack.c.h.bf16 %v2834_v7 }
 0x16c   :  { %v1381_v28 = vadd.f32 %v1380_v22, %v1254_v37  ;;  %v1513_v31 = vadd.f32 %v1512_v48, %v1450_v20  ;;  %v1454_v62 = vmul.f32 %v1257_v6, %v1257_v6  ;;  %v1259_v2 = vunpack.c.l.bf16 %v2847_v34 }
 0x16d   :  { %v1586_v36 = vadd.f32 %v1585_v25, %v1318_v41  ;;  %v1718_v42 = vadd.f32 %v1717_v26, %v1655_v23  ;;  %v1659_v9 = vmul.f32 %v1321_v11, %v1321_v11  ;;  %v1323_v14 = vunpack.c.l.bf16 %v2852_v40 }
 0x16e   :  { %v1514_v44 = vadd.f32 %v1513_v31, %v1451_v27  ;;  %v1382_v49 = vadd.f32 %v1381_v28, %v1255_v10  ;;  %v1455_v16 = vmul.f32 %v1258_v33, %v1258_v33  ;;  %v1260_v0 = vunpack.c.h.bf16 %v2847_v34 }
 0x16f   :  { %v1719_v51 = vadd.f32 %v1718_v42, %v1656_v32  ;;  %v1587_v52 = vadd.f32 %v1586_v36, %v1319_v19  ;;  %v1660_v10 = vmul.f32 %v1322_v38, %v1322_v38  ;;  %v1324_v7 = vunpack.c.h.bf16 %v2852_v40 }
 0x170   :  { %v1383_v56 = vadd.f32 %v1382_v49, %v1256_v3  ;;  %v1515_v57 = vadd.f32 %v1514_v44, %v1452_v43  ;;  %v1456_v23 = vmul.f32 %v1259_v2, %v1259_v2  ;;  %v1261_v19 = vunpack.c.l.bf16 %v2865_v5 }
 0x171   :  { %v1588_v61 = vadd.f32 %v1587_v52, %v1320_v8  ;;  %v1720_v63 = vadd.f32 %v1719_v51, %v1657_v50  ;;  %v1661_v27 = vmul.f32 %v1323_v14, %v1323_v14  ;;  %v1325_v3 = vunpack.c.l.bf16 %v2870_v13 }
 0x172   :  { %v1384_v4 = vadd.f32 %v1383_v56, %v1257_v6  ;;  %v1516_v37 = vadd.f32 %v1515_v57, %v1453_v53  ;;  %v1457_v32 = vmul.f32 %v1260_v0, %v1260_v0  ;;  %v1262_v34 = vunpack.c.h.bf16 %v2865_v5 }
 0x173   :  { %v1589_v15 = vadd.f32 %v1588_v61, %v1321_v11  ;;  %v1721_v41 = vadd.f32 %v1720_v63, %v1658_v59  ;;  %v1662_v42 = vmul.f32 %v1324_v7, %v1324_v7  ;;  %v1326_v40 = vunpack.c.h.bf16 %v2870_v13 }
 0x174   :  { %v1385_v46 = vadd.f32 %v1384_v4, %v1258_v33  ;;  %v1517_v20 = vadd.f32 %v1516_v37, %v1454_v62  ;;  %v1458_v44 = vmul.f32 %v1261_v19, %v1261_v19  ;;  %v1263_v49 = vunpack.c.l.bf16 %v2883_v1 }
 0x175   :  { %v1590_v22 = vadd.f32 %v1589_v15, %v1322_v38  ;;  %v1722_v48 = vadd.f32 %v1721_v41, %v1659_v9  ;;  %v1663_v51 = vmul.f32 %v1325_v3, %v1325_v3  ;;  %v1327_v52 = vunpack.c.l.bf16 %v2888_v47 }
 0x176   :  { %v1386_v25 = vadd.f32 %v1385_v46, %v1259_v2  ;;  %v1518_v26 = vadd.f32 %v1517_v20, %v1455_v16  ;;  %v1459_v56 = vmul.f32 %v1262_v34, %v1262_v34  ;;  %v1264_v5 = vunpack.c.h.bf16 %v2883_v1 }
 0x177   :  { %v1591_v28 = vadd.f32 %v1590_v22, %v1323_v14  ;;  %v1723_v31 = vadd.f32 %v1722_v48, %v1660_v10  ;;  %v1664_v38 = vmul.f32 %v1326_v40, %v1326_v40  ;;  %v1328_v13 = vunpack.c.h.bf16 %v2888_v47 }
 0x178   :  { %v1387_v8 = vadd.f32 %v1386_v25, %v1260_v0  ;;  %v1519_v36 = vadd.f32 %v1518_v26, %v1456_v23  ;;  %v1460_v2 = vmul.f32 %v1263_v49, %v1263_v49  ;;  %v1265_v37 = vunpack.c.l.bf16 %v2901_v17 }
 0x179   :  { %v1592_v43 = vadd.f32 %v1591_v28, %v1324_v7  ;;  %v1724_v6 = vadd.f32 %v1723_v31, %v1661_v27  ;;  %v1665_v14 = vmul.f32 %v1327_v52, %v1327_v52  ;;  %v1329_v41 = vunpack.c.l.bf16 %v2906_v21 }
 0x17a   :  { %v1388_v50 = vadd.f32 %v1387_v8, %v1261_v19  ;;  %v1520_v11 = vadd.f32 %v1519_v36, %v1457_v32  ;;  %v1461_v0 = vmul.f32 %v1264_v5, %v1264_v5  ;;  %v1266_v46 = vunpack.c.h.bf16 %v2901_v17 }
 0x17b   :  { %v1593_v53 = vadd.f32 %v1592_v43, %v1325_v3  ;;  %v1725_v33 = vadd.f32 %v1724_v6, %v1662_v42  ;;  %v1666_v10 = vmul.f32 %v1328_v13, %v1328_v13  ;;  %v1330_v7 = vunpack.c.h.bf16 %v2906_v21 }
 0x17c   :  { %v1389_v57 = vadd.f32 %v1388_v50, %v1262_v34  ;;  %v1521_v59 = vadd.f32 %v1520_v11, %v1458_v44  ;;  %v1462_v23 = vmul.f32 %v1265_v37, %v1265_v37  ;;  %v1267_v19 = vunpack.c.l.bf16 %v2919_v54 }
 0x17d   :  { %v1594_v61 = vadd.f32 %v1593_v53, %v1326_v40  ;;  %v1726_v63 = vadd.f32 %v1725_v33, %v1663_v51  ;;  %v1667_v27 = vmul.f32 %v1329_v41, %v1329_v41  ;;  %v1331_v3 = vunpack.c.l.bf16 %v2924_v58 }
 0x17e   :  { %v1390_v62 = vadd.f32 %v1389_v57, %v1263_v49  ;;  %v1522_v4 = vadd.f32 %v1521_v59, %v1459_v56  ;;  %v1463_v31 = vmul.f32 %v1266_v46, %v1266_v46  ;;  %v1268_v17 = vunpack.c.h.bf16 %v2919_v54 }
 0x17f   :  { %v1595_v9 = vadd.f32 %v1594_v61, %v1327_v52  ;;  %v1727_v15 = vadd.f32 %v1726_v63, %v1664_v38  ;;  %v1668_v8 = vmul.f32 %v1330_v7, %v1330_v7  ;;  %v1332_v21 = vunpack.c.h.bf16 %v2924_v58 }
 0x180   :  { %v1391_v16 = vadd.f32 %v1390_v62, %v1264_v5  ;;  %v1523_v1 = vadd.f32 %v1522_v4, %v1460_v2  ;;  %v1464_v43 = vmul.f32 %v1267_v19, %v1267_v19  ;;  %v1269_v6 = vunpack.c.l.bf16 %v2937_v29 }
 0x181   :  { %v1596_v20 = vadd.f32 %v1595_v9, %v1328_v13  ;;  %v1728_v47 = vadd.f32 %v1727_v15, %v1665_v14  ;;  %v1669_v50 = vmul.f32 %v1331_v3, %v1331_v3  ;;  %v1333_v11 = vunpack.c.l.bf16 %v2942_v35 }
 0x182   :  { %v1524_v22 = vadd.f32 %v1523_v1, %v1461_v0  ;;  %v1392_v48 = vadd.f32 %v1391_v16, %v1265_v37  ;;  %v1465_v52 = vmul.f32 %v1268_v17, %v1268_v17  ;;  %v1270_v54 = vunpack.c.h.bf16 %v2937_v29 }
 0x183   :  { %v1729_v25 = vadd.f32 %v1728_v47, %v1666_v10  ;;  %v1597_v26 = vadd.f32 %v1596_v20, %v1329_v41  ;;  %v1670_v56 = vmul.f32 %v1332_v21, %v1332_v21  ;;  %v1334_v58 = vunpack.c.h.bf16 %v2942_v35 }
 0x184   :  { %v1393_v28 = vadd.f32 %v1392_v48, %v1266_v46  ;;  %v1525_v32 = vadd.f32 %v1524_v22, %v1462_v23  ;;  %v1466_v38 = vmul.f32 %v1269_v6, %v1269_v6  ;;  %v1271_v13 = vunpack.c.l.bf16 %v2955_v12 }
 0x185   :  { %v1598_v34 = vadd.f32 %v1597_v26, %v1330_v7  ;;  %v1730_v36 = vadd.f32 %v1729_v25, %v1667_v27  ;;  %v1671_v62 = vmul.f32 %v1333_v11, %v1333_v11  ;;  %v1335_v2 = vunpack.c.l.bf16 %v2960_v18 }
 0x186   :  { %v1526_v42 = vadd.f32 %v1525_v32, %v1463_v31  ;;  %v1394_v40 = vadd.f32 %v1393_v28, %v1267_v19  ;;  %v1467_v37 = vmul.f32 %v1270_v54, %v1270_v54  ;;  %v1272_v29 = vunpack.c.h.bf16 %v2955_v12 }
 0x187   :  { %v1731_v44 = vadd.f32 %v1730_v36, %v1668_v8  ;;  %v1599_v49 = vadd.f32 %v1598_v34, %v1331_v3  ;;  %v1672_v15 = vmul.f32 %v1334_v58, %v1334_v58  ;;  %v1336_v35 = vunpack.c.h.bf16 %v2960_v18 }
 0x188   :  { %v1395_v51 = vadd.f32 %v1394_v40, %v1268_v17  ;;  %v1527_v53 = vadd.f32 %v1526_v42, %v1464_v43  ;;  %v1468_v1 = vmul.f32 %v1271_v13, %v1271_v13  ;;  %v1273_v46 = vunpack.c.l.bf16 %v2973_v55 }
 0x189   :  { %v1600_v33 = vadd.f32 %v1599_v49, %v1332_v21  ;;  %v1732_v5 = vadd.f32 %v1731_v44, %v1669_v50  ;;  %v1673_v47 = vmul.f32 %v1335_v2, %v1335_v2  ;;  %v1337_v7 = vunpack.c.l.bf16 %v2978_v60 }
 0x18a   :  { %v1528_v57 = vadd.f32 %v1527_v53, %v1465_v52  ;;  %v1396_v59 = vadd.f32 %v1395_v51, %v1269_v6  ;;  %v1469_v48 = vmul.f32 %v1272_v29, %v1272_v29  ;;  %v1274_v12 = vunpack.c.h.bf16 %v2973_v55 }
 0x18b   :  { %v1733_v61 = vadd.f32 %v1732_v5, %v1670_v56  ;;  %v1601_v63 = vadd.f32 %v1600_v33, %v1333_v11  ;;  %v1674_v25 = vmul.f32 %v1336_v35, %v1336_v35  ;;  %v1338_v18 = vunpack.c.h.bf16 %v2978_v60 }
 0x18c   :  { %v1397_v4 = vadd.f32 %v1396_v59, %v1270_v54  ;;  %v1529_v9 = vadd.f32 %v1528_v57, %v1466_v38  ;;  %v1470_v28 = vmul.f32 %v1273_v46, %v1273_v46  ;;  %v1275_v31 = vunpack.c.l.bf16 %v2991_v39 }
 0x18d   :  { %v1602_v14 = vadd.f32 %v1601_v63, %v1334_v58  ;;  %v1734_v41 = vadd.f32 %v1733_v61, %v1671_v62  ;;  %v1675_v34 = vmul.f32 %v1337_v7, %v1337_v7  ;;  %v1339_v8 = vunpack.c.l.bf16 %v2996_v45 }
 0x18e   :  { %v1530_v16 = vadd.f32 %v1529_v9, %v1467_v37  ;;  %v1398_v0 = vadd.f32 %v1397_v4, %v1271_v13  ;;  %v1471_v21 = vmul.f32 %v1274_v12, %v1274_v12  ;;  %v1276_v55 = vunpack.c.h.bf16 %v2991_v39 }
 0x18f   :  { %v1735_v20 = vadd.f32 %v1734_v41, %v1672_v15  ;;  %v1603_v10 = vadd.f32 %v1602_v14, %v1335_v2  ;;  %v1676_v43 = vmul.f32 %v1338_v18, %v1338_v18  ;;  %v1340_v60 = vunpack.c.h.bf16 %v2996_v45 }
 0x190   :  { %v1399_v22 = vadd.f32 %v1398_v0, %v1272_v29  ;;  %v1531_v23 = vadd.f32 %v1530_v16, %v1468_v1  ;;  %v1472_v50 = vmul.f32 %v1275_v31, %v1275_v31  ;;  %v1277_v11 = vunpack.c.l.bf16 %v3009_v24 }
 0x191   :  { %v1604_v19 = vadd.f32 %v1603_v10, %v1336_v35  ;;  %v1736_v26 = vadd.f32 %v1735_v20, %v1673_v47  ;;  %v1677_v53 = vmul.f32 %v1339_v8, %v1339_v8  ;;  %v1341_v54 = vunpack.c.l.bf16 %v3014_v30 }
 0x192   :  { %v1532_v27 = vadd.f32 %v1531_v23, %v1469_v48  ;;  %v1400_v3 = vadd.f32 %v1399_v22, %v1273_v46  ;;  %v1473_v56 = vmul.f32 %v1276_v55, %v1276_v55  ;;  %v1278_v39 = vunpack.c.h.bf16 %v3009_v24 }
 0x193   :  { %v1737_v32 = vadd.f32 %v1736_v26, %v1674_v25  ;;  %v1605_v17 = vadd.f32 %v1604_v19, %v1337_v7  ;;  %v1678_v57 = vmul.f32 %v1340_v60, %v1340_v60  ;;  %v1342_v45 = vunpack.c.h.bf16 %v3014_v30 }
 0x194   :  { %v1401_v36 = vadd.f32 %v1400_v3, %v1274_v12  ;;  %v1533_v42 = vadd.f32 %v1532_v27, %v1470_v28  ;;  %v1474_v61 = vmul.f32 %v1277_v11, %v1277_v11  ;;  %v1679_v2 = vmul.f32 %v1341_v54, %v1341_v54 }
 0x195   :  { %v1606_v40 = vadd.f32 %v1605_v17, %v1338_v18  ;;  %v1738_v6 = vadd.f32 %v1737_v32, %v1675_v34  ;;  %v1475_v37 = vmul.f32 %v1278_v39, %v1278_v39  ;;  %v1680_v14 = vmul.f32 %v1342_v45, %v1342_v45 }
 0x196   :  { %v1534_v44 = vadd.f32 %v1533_v42, %v1471_v21  ;;  %v1402_v49 = vadd.f32 %v1401_v36, %v1275_v31 }
 0x197   :  { %v1739_v51 = vadd.f32 %v1738_v6, %v1676_v43  ;;  %v1607_v52 = vadd.f32 %v1606_v40, %v1339_v8 }
 0x198   :  { %v1403_v33 = vadd.f32 %v1402_v49, %v1276_v55  ;;  %v1535_v5 = vadd.f32 %v1534_v44, %v1472_v50 }
 0x199   :  { %v1608_v58 = vadd.f32 %v1607_v52, %v1340_v60  ;;  %v1740_v59 = vadd.f32 %v1739_v51, %v1677_v53 }
 0x19a   :  { %v1536_v38 = vadd.f32 %v1535_v5, %v1473_v56  ;;  %v1404_v13 = vadd.f32 %v1403_v33, %v1277_v11 }
 0x19b   :  { %v1741_v63 = vadd.f32 %v1740_v59, %v1678_v57  ;;  %v1609_v62 = vadd.f32 %v1608_v58, %v1341_v54 }
 0x19c   :  { %v1405_v4 = vadd.f32 %v1404_v13, %v1278_v39  ;;  %v1537_v9 = vadd.f32 %v1536_v38, %v1474_v61 }
 0x19d   :  { %v1610_v29 = vadd.f32 %v1609_v62, %v1342_v45  ;;  %v1742_v15 = vadd.f32 %v1741_v63, %v1679_v2 }
 0x19e   :  { %v1406_v41 = vrot.slane %v1405_v4, 4  ;;  %v1538_v35 = vadd.f32 %v1537_v9, %v1475_v37 }
 0x19f   :  { %v1611_v24 = vrot.slane %v1610_v29, 4  ;;  %v1743_v16 = vadd.f32 %v1742_v15, %v1680_v14 }
 0x1a0   :  { %v1407_v0 = vadd.f32 %v1406_v41, %v1405_v4  ;;  %v1539_v1 = vrot.slane %v1538_v35, 4 }
 0x1a1   :  { %v1612_v46 = vadd.f32 %v1611_v24, %v1610_v29  ;;  %v1744_v30 = vrot.slane %v1743_v16, 4 }
 0x1a2   :  { %v1408_v20 = vrot.slane %v1407_v0, 2  ;;  %v1540_v10 = vadd.f32 %v1539_v1, %v1538_v35 }
 0x1a3   :  { %v1613_v47 = vrot.slane %v1612_v46, 2  ;;  %v1745_v7 = vadd.f32 %v1744_v30, %v1743_v16 }
 0x1a4   :  { %v1409_v22 = vadd.f32 %v1408_v20, %v1407_v0  ;;  %v1541_v48 = vrot.slane %v1540_v10, 2 }
 0x1a5   :  { %v1614_v23 = vadd.f32 %v1613_v47, %v1612_v46  ;;  %v1746_v12 = vrot.slane %v1745_v7, 2 }
 0x1a6   :  { %v1410_v19 = vrot.slane %v1409_v22, 1  ;;  %v1542_v25 = vadd.f32 %v1541_v48, %v1540_v10 }
 0x1a7   :  { %v1615_v26 = vrot.slane %v1614_v23, 1  ;;  %v1747_v18 = vadd.f32 %v1746_v12, %v1745_v7 }
 0x1a8   :  { %v1543_v27 = vrot.slane %v1542_v25, 1  ;;  %v1411_v28 = vadd.f32 %v1410_v19, %v1409_v22 }
 0x1a9   :  { %v1748_v3 = vrot.slane %v1747_v18, 1  ;;  %v1616_v32 = vadd.f32 %v1615_v26, %v1614_v23 }
 0x1aa   :  { %v1544_v31 = vadd.f32 %v1543_v27, %v1542_v25 }
 0x1ab   :  { %v1749_v17 = vadd.f32 %v1748_v3, %v1747_v18 }
 0x1ac   :  { %v1546_v34 = vsel %vm1545_vm2, %v1411_v28, %v1544_v31 }
 0x1ad   :  { %1547 = vst [vmem:[%s3098_s4] sm:$0x3] %v1546_v34  ;;  %v1750_v8 = vsel %vm1545_vm2, %v1616_v32, %v1749_v17 }
 0x1ae   :  { %1751 = vst [vmem:[%s3099_s5] sm:$0x3] %v1750_v8 }

// kernel: residual_block_pallas.6
= control target key start
LH: loop header
LB: loop body
LE: loop exit
PB: predicated region body
PF: predicated region fallthrough
CT: control target
= control target key end

     0   :  { %vm1261_vm0 = vcmask 1040384   ;;  %s2517_s3 = inlined_call_operand.vmem [shape: bf16[128,128], index: 3, kind: input, shape index: {}]   ;;  %s2518_s0 = inlined_call_operand.vmem [shape: bf16[512,128], index: 0, kind: input, shape index: {}]   ;;  %s2519_s1 = inlined_call_operand.vmem [shape: f32[1,128], index: 1, kind: input, shape index: {}]   ;;  %s2520_s2 = inlined_call_operand.vmem [shape: f32[1,128], index: 2, kind: input, shape index: {}]   ;;  %s2521_s4 = inlined_call_operand.vmem [shape: bf16[512,128], index: 4, kind: output, shape index: {0}]   ;;  %s2522_s5 = inlined_call_operand.vmem [shape: f32[1,2,128], index: 5, kind: output, shape index: {1}]  }
   0x1   :  { %v1896_v0 = vld [vmem:[%s2517_s3] sm:$0xff]   ;;  %v1897_v1 = vld [vmem:[%s2517_s3 + $0x8] sm:$0xff]   ;;  %v1898_v2 = vld [vmem:[%s2517_s3 + $0x10] sm:$0xff]  }
   0x2   :  { %1800 = vmatprep.subr.bf16.mxu0 %v1896_v0  ;;  %1880 = vmatprep.subr.bf16.mxu1 %v1896_v0  ;;  %v1899_v3 = vld [vmem:[%s2517_s3 + $0x18] sm:$0xff]   ;;  %v1411_v4 = vld [vmem:[%s2518_s0] sm:$0xff]   ;;  %v1698_v8 = vld [vmem:[%s2518_s0 + $0x8] sm:$0xff]  }
   0x3   :  { %1801 = vmatpush3.bf16.msra.mxu0 %v1896_v0  ;;  %1888 = vmatpush3.bf16.msra.mxu1 %v1896_v0  ;;  %v1952_v5 = vld [vmem:[%s2519_s1] ss:$0 sm:$0xff]  ;;  %v1412_v6 = vunpack.c.l.bf16 %v1411_v4  ;;  %v1413_v7 = vunpack.c.h.bf16 %v1411_v4  ;;  %v1699_v12 = vld [vmem:[%s2518_s0 + $0x10] sm:$0xff]   ;;  %v1416_v14 = vunpack.c.l.bf16 %v1698_v8  ;;  %v1700_v15 = vld [vmem:[%s2518_s0 + $0x18] sm:$0xff]   ;;  %v1417_v18 = vunpack.c.h.bf16 %v1698_v8 }
   0x4   :  { %1802 = vmatprep.subr.bf16.mxu0 %v1897_v1  ;;  %1881 = vmatprep.subr.bf16.mxu1 %v1897_v1  ;;  %v1960_v9 = vld [vmem:[%s2520_s2] ss:$0 sm:$0xff]  ;;  %v1702_v20 = vld [vmem:[%s2518_s0 + $0x28] sm:$0xff]   ;;  %v1420_v21 = vunpack.c.l.bf16 %v1699_v12  ;;  %v1703_v22 = vld [vmem:[%s2518_s0 + $0x30] sm:$0xff]   ;;  %v1421_v24 = vunpack.c.h.bf16 %v1699_v12  ;;  %v1424_v25 = vunpack.c.l.bf16 %v1700_v15  ;;  %v1425_v26 = vunpack.c.h.bf16 %v1700_v15 }
   0x5   :  { %v155_v10 = vmul.f32 %v1412_v6, %v1952_v5  ;;  %v156_v11 = vmul.f32 %v1413_v7, %v1952_v5  ;;  %v1900_v13 = vld [vmem:[%s2517_s3 + $0x20] sm:$0xff]   ;;  %v1704_v27 = vld [vmem:[%s2518_s0 + $0x38] sm:$0xff]   ;;  %v1901_v28 = vld [vmem:[%s2517_s3 + $0x28] sm:$0xff]   ;;  %v157_v29 = vmul.f32 %v1416_v14, %v1952_v5  ;;  %v1432_v32 = vunpack.c.l.bf16 %v1702_v20 }
   0x6   :  { %v1701_v19 = vld [vmem:[%s2518_s0 + $0x20] sm:$0xff]   ;;  %v158_v33 = vmul.f32 %v1417_v18, %v1952_v5  ;;  %v1433_v34 = vunpack.c.h.bf16 %v1702_v20  ;;  %v1436_v35 = vunpack.c.l.bf16 %v1703_v22  ;;  %v159_v36 = vmul.f32 %v1420_v21, %v1952_v5  ;;  %v1902_v44 = vld [vmem:[%s2517_s3 + $0x30] sm:$0xff]   ;;  %v1706_v57 = vld [vmem:[%s2518_s0 + $0x48] sm:$0xff]  }
   0x7   :  { %1803 = vmatpush3.bf16.msra.mxu0 %v1897_v1  ;;  %1889 = vmatpush3.bf16.msra.mxu1 %v1897_v1  ;;  %v226_v16 = vadd.f32 %v1960_v9, %v155_v10  ;;  %v227_v17 = vadd.f32 %v1960_v9, %v156_v11  ;;  %v1428_v30 = vunpack.c.l.bf16 %v1701_v19  ;;  %v1429_v31 = vunpack.c.h.bf16 %v1701_v19  ;;  %v1705_v43 = vld [vmem:[%s2518_s0 + $0x40] sm:$0xff]   ;;  %v1903_v62 = vld [vmem:[%s2517_s3 + $0x38] sm:$0xff]   ;;  %v1710_v15 = vld [vmem:[%s2518_s0 + $0x68] sm:$0xff]  }
   0x8   :  { %1804 = vmatprep.subr.bf16.mxu0 %v1898_v2  ;;  %1882 = vmatprep.subr.bf16.mxu1 %v1898_v2  ;;  %v1437_v37 = vunpack.c.h.bf16 %v1703_v22  ;;  %v1440_v38 = vunpack.c.l.bf16 %v1704_v27  ;;  %v160_v39 = vmul.f32 %v1421_v24, %v1952_v5  ;;  %v161_v40 = vmul.f32 %v1424_v25, %v1952_v5  ;;  %v2077_v20 = vld [vmem:[%s2518_s0 + $0x58] sm:$0xff]   ;;  %v1711_v25 = vld [vmem:[%s2518_s0 + $0x70] sm:$0xff]  }
   0x9   :  { %v290_v23 = vpack.c.bf16 %v227_v17, %v226_v16  ;;  %v162_v41 = vmul.f32 %v1425_v26, %v1952_v5  ;;  %v1441_v42 = vunpack.c.h.bf16 %v1704_v27  ;;  %v2003_v45 = vadd.f32 %v1960_v9, %v157_v29 }
   0xa   :  { %v163_v46 = vmul.f32 %v1428_v30, %v1952_v5  ;;  %v164_v47 = vmul.f32 %v1429_v31, %v1952_v5  ;;  %v165_v48 = vmul.f32 %v1432_v32, %v1952_v5  ;;  %v2009_v49 = vadd.f32 %v1960_v9, %v158_v33  ;;  %v1712_v30 = vld [vmem:[%s2518_s0 + $0x78] sm:$0xff]  }
   0xb   :  { %1805 = vmatpush3.bf16.msra.mxu0 %v1898_v2  ;;  %1890 = vmatpush3.bf16.msra.mxu1 %v1898_v2  ;;  %v166_v50 = vmul.f32 %v1433_v34, %v1952_v5  ;;  %v167_v51 = vmul.f32 %v1436_v35, %v1952_v5  ;;  %v168_v52 = vmul.f32 %v1437_v37, %v1952_v5  ;;  %v1444_v56 = vunpack.c.l.bf16 %v1705_v43  ;;  %v1707_v2 = vld [vmem:[%s2518_s0 + $0x50] sm:$0xff]  }
   0xc   :  { %1806 = vmatprep.subr.bf16.mxu0 %v1899_v3  ;;  %1883 = vmatprep.subr.bf16.mxu1 %v1899_v3  ;;  %v2015_v53 = vadd.f32 %v1960_v9, %v159_v36  ;;  %v169_v54 = vmul.f32 %v1440_v38, %v1952_v5  ;;  %v170_v55 = vmul.f32 %v1441_v42, %v1952_v5  ;;  %v1445_v61 = vunpack.c.h.bf16 %v1705_v43 }
   0xd   :  { %1816 = vmatprep.mubr.bf16.mxu0 %v290_v23  ;;  %v2023_v58 = vadd.f32 %v1960_v9, %v160_v39  ;;  %v2026_v59 = vadd.f32 %v1960_v9, %v161_v40  ;;  %v2029_v60 = vadd.f32 %v1960_v9, %v162_v41  ;;  %v2035_v63 = vadd.f32 %v1960_v9, %v163_v46  ;;  %v1713_v39 = vld [vmem:[%s2518_s0 + $0x80] sm:$0xff]  }
   0xe   :  { %v2038_v0 = vadd.f32 %v1960_v9, %v164_v47  ;;  %v2041_v1 = vadd.f32 %v1960_v9, %v165_v48  ;;  %v2050_v4 = vadd.f32 %v1960_v9, %v167_v51  ;;  %v2053_v6 = vadd.f32 %v1960_v9, %v168_v52  ;;  %v1714_v48 = vld [vmem:[%s2518_s0 + $0x88] sm:$0xff]  }
   0xf   :  { %1807 = vmatpush3.bf16.msra.mxu0 %v1899_v3  ;;  %1891 = vmatpush3.bf16.msra.mxu1 %v1899_v3  ;;  %v2047_v3 = vadd.f32 %v1960_v9, %v166_v50  ;;  %v1448_v7 = vunpack.c.l.bf16 %v1706_v57  ;;  %v2056_v8 = vadd.f32 %v1960_v9, %v169_v54  ;;  %v2059_v10 = vadd.f32 %v1960_v9, %v170_v55 }
  0x10   :  { %1808 = vmatprep.subr.bf16.mxu0 %v1900_v13  ;;  %1884 = vmatprep.subr.bf16.mxu1 %v1900_v13  ;;  %v171_v11 = vmul.f32 %v1444_v56, %v1952_v5  ;;  %v172_v12 = vmul.f32 %v1445_v61, %v1952_v5  ;;  %v1452_v14 = vunpack.c.l.bf16 %v1707_v2  ;;  %v291_v16 = vpack.c.bf16 %v2009_v49, %v2003_v45 }
  0x11   :  { %v292_v17 = vpack.c.bf16 %v2023_v58, %v2015_v53  ;;  %v293_v18 = vpack.c.bf16 %v2029_v60, %v2026_v59  ;;  %v294_v19 = vpack.c.bf16 %v2038_v0, %v2035_v63  ;;  %v295_v21 = vpack.c.bf16 %v2047_v3, %v2041_v1  ;;  %v1715_v53 = vld [vmem:[%s2518_s0 + $0x90] sm:$0xff]   ;;  %v1720_v63 = vld [vmem:[%s2518_s0 + $0xb8] sm:$0xff]  }
  0x12   :  { %v296_v22 = vpack.c.bf16 %v2053_v6, %v2050_v4  ;;  %v173_v23 = vmul.f32 %v1448_v7, %v1952_v5  ;;  %v1453_v24 = vunpack.c.h.bf16 %v1707_v2  ;;  %v297_v26 = vpack.c.bf16 %v2059_v10, %v2056_v8  ;;  %v1716_v7 = vld [vmem:[%s2518_s0 + $0x98] sm:$0xff]   ;;  %v1719_v59 = vld [vmem:[%s2518_s0 + $0xb0] sm:$0xff]  }
  0x13   :  { %1809 = vmatpush3.bf16.msra.mxu0 %v1900_v13  ;;  %1892 = vmatpush3.bf16.msra.mxu1 %v1900_v13  ;;  %v1449_v13 = vunpack.c.h.bf16 %v1706_v57  ;;  %v2090_v27 = vadd.f32 %v1960_v9, %v171_v11  ;;  %v1465_v29 = vunpack.c.h.bf16 %v1710_v15  ;;  %v2096_v31 = vadd.f32 %v1960_v9, %v172_v12 }
  0x14   :  { %1810 = vmatprep.subr.bf16.mxu0 %v1901_v28  ;;  %1885 = vmatprep.subr.bf16.mxu1 %v1901_v28  ;;  %v2102_v33 = vmul.f32 %v1452_v14, %v1952_v5  ;;  %v1456_v34 = vunpack.c.l.bf16 %v2077_v20  ;;  %v1468_v37 = vunpack.c.l.bf16 %v1711_v25  ;;  %v1469_v38 = vunpack.c.h.bf16 %v1711_v25 }
  0x15   :  { %v2099_v32 = vmul.f32 %v1449_v13, %v1952_v5  ;;  %v182_v36 = vmul.f32 %v1465_v29, %v1952_v5  ;;  %v2111_v40 = vadd.f32 %v1960_v9, %v173_v23  ;;  %v2114_v41 = vmul.f32 %v1453_v24, %v1952_v5 }
  0x16   :  { %v1472_v42 = vunpack.c.l.bf16 %v1712_v30  ;;  %v1473_v43 = vunpack.c.h.bf16 %v1712_v30  ;;  %v183_v46 = vmul.f32 %v1468_v37, %v1952_v5  ;;  %v184_v47 = vmul.f32 %v1469_v38, %v1952_v5 }
  0x17   :  { %1811 = vmatpush3.bf16.msra.mxu0 %v1901_v28  ;;  %1893 = vmatpush3.bf16.msra.mxu1 %v1901_v28  ;;  %v1464_v28 = vunpack.c.l.bf16 %v1710_v15  ;;  %v2120_v45 = vadd.f32 %v1960_v9, %v182_v36  ;;  %v1457_v49 = vunpack.c.h.bf16 %v2077_v20  ;;  %v1476_v52 = vunpack.c.l.bf16 %v1713_v39  ;;  %v1717_v15 = vld [vmem:[%s2518_s0 + $0xa0] sm:$0xff]   ;;  %v2249_v20 = vld [vmem:[%s2518_s0 + $0xc8] sm:$0xff]  }
  0x18   :  { %1812 = vmatprep.subr.bf16.mxu0 %v1902_v44  ;;  %1886 = vmatprep.subr.bf16.mxu1 %v1902_v44  ;;  %v185_v50 = vmul.f32 %v1472_v42, %v1952_v5  ;;  %v186_v51 = vmul.f32 %v1473_v43, %v1952_v5  ;;  %v2136_v55 = vadd.f32 %v1960_v9, %v183_v46  ;;  %v1477_v57 = vunpack.c.h.bf16 %v1713_v39  ;;  %v1718_v42 = vld [vmem:[%s2518_s0 + $0xa8] sm:$0xff]  }
  0x19   :  { %v181_v35 = vmul.f32 %v1464_v28, %v1952_v5  ;;  %v2139_v56 = vadd.f32 %v1960_v9, %v184_v47  ;;  %v1480_v2 = vunpack.c.l.bf16 %v1714_v48  ;;  %v1481_v13 = vunpack.c.h.bf16 %v1714_v48 }
  0x1a   :  { %v2142_v58 = vadd.f32 %v1960_v9, %v185_v50  ;;  %v2145_v61 = vadd.f32 %v1960_v9, %v186_v51  ;;  %v188_v12 = vmul.f32 %v1477_v57, %v1952_v5  ;;  %v1484_v14 = vunpack.c.l.bf16 %v1715_v53 }
  0x1b   :  { %1813 = vmatpush3.bf16.msra.mxu0 %v1902_v44  ;;  %1894 = vmatpush3.bf16.msra.mxu1 %v1902_v44  ;;  %v2117_v44 = vadd.f32 %v1960_v9, %v181_v35  ;;  %v304_v11 = vpack.c.bf16 %v2139_v56, %v2136_v55  ;;  %v189_v23 = vmul.f32 %v1480_v2, %v1952_v5  ;;  %v1485_v24 = vunpack.c.h.bf16 %v1715_v53  ;;  %v2167_v35 = vld [vmem:[%s2518_s0 + $0x60] sm:$0xff]  }
  0x1c   :  { %1814 = vmatprep.subr.bf16.mxu0 %v1903_v62  ;;  %1887 = vmatprep.subr.bf16.mxu1 %v1903_v62  ;;  %v259_v25 = vadd.f32 %v1960_v9, %v188_v12  ;;  %v190_v28 = vmul.f32 %v1481_v13, %v1952_v5  ;;  %v191_v29 = vmul.f32 %v1484_v14, %v1952_v5  ;;  %v1488_v30 = vunpack.c.l.bf16 %v1716_v7 }
  0x1d   :  { %v303_v54 = vpack.c.bf16 %v2120_v45, %v2117_v44  ;;  %v260_v36 = vadd.f32 %v1960_v9, %v189_v23  ;;  %v192_v37 = vmul.f32 %v1485_v24, %v1952_v5  ;;  %v1489_v38 = vunpack.c.h.bf16 %v1716_v7 }
  0x1e   :  { %v1492_v39 = vunpack.c.l.bf16 %v1717_v15  ;;  %v261_v46 = vadd.f32 %v1960_v9, %v190_v28  ;;  %v262_v47 = vadd.f32 %v1960_v9, %v191_v29  ;;  %v193_v48 = vmul.f32 %v1488_v30, %v1952_v5  ;;  %v1721_v28 = vld [vmem:[%s2518_s0 + $0xc0] sm:$0xff]  }
  0x1f   :  { %1815 = vmatpush3.bf16.msra.mxu0 %v1903_v62  ;;  %1895 = vmatpush3.bf16.msra.mxu1 %v1903_v62  ;;  %v187_v62 = vmul.f32 %v1476_v52, %v1952_v5  ;;  %v263_v50 = vadd.f32 %v1960_v9, %v192_v37  ;;  %v194_v51 = vmul.f32 %v1489_v38, %v1952_v5  ;;  %v1493_v52 = vunpack.c.h.bf16 %v1717_v15 }
  0x20   :  { %v195_v53 = vmul.f32 %v1492_v39, %v1952_v5  ;;  %v1460_v60 = vunpack.c.l.bf16 %v2167_v35  ;;  %v1496_v57 = vunpack.c.l.bf16 %v1718_v42  ;;  %v1500_v14 = vunpack.c.l.bf16 %v1719_v59 }
  0x21   :  { %v308_v0 = vpack.c.bf16 %v263_v50, %v262_v47  ;;  %v265_v2 = vadd.f32 %v1960_v9, %v194_v51  ;;  %v196_v7 = vmul.f32 %v1493_v52, %v1952_v5  ;;  %v1501_v15 = vunpack.c.h.bf16 %v1719_v59  ;;  %v2269_v59 = vld [vmem:[%s2518_s0 + $0xd0] sm:$0xff]  }
  0x22   :  { %1817 = vmatmul.mubr.bf16.vlgmr.msra.gmra.mrb[0].mxu0 %v291_v16  ;;  %v305_v16 = vpack.c.bf16 %v2145_v61, %v2142_v58  ;;  %v197_v12 = vmul.f32 %v1496_v57, %v1952_v5  ;;  %v1504_v24 = vunpack.c.l.bf16 %v1720_v63  ;;  %v2205_v29 = vadd.f32 %v1960_v9, %v2099_v32 }
  0x23   :  { %1820 = vmatprep.mubr.bf16.mxu0 %v292_v17  ;;  %v258_v17 = vadd.f32 %v1960_v9, %v187_v62  ;;  %v1497_v62 = vunpack.c.h.bf16 %v1718_v42  ;;  %v267_v23 = vadd.f32 %v1960_v9, %v196_v7  ;;  %v2209_v30 = vadd.f32 %v1960_v9, %v2102_v33 }
  0x24   :  { %v200_v37 = vmul.f32 %v1501_v15, %v1952_v5  ;;  %v2215_v38 = vadd.f32 %v1960_v9, %v2114_v41  ;;  %v177_v39 = vmul.f32 %v1456_v34, %v1952_v5  ;;  %v1461_v42 = vunpack.c.h.bf16 %v2167_v35 }
  0x25   :  { %v306_v43 = vpack.c.bf16 %v259_v25, %v258_v17  ;;  %v198_v13 = vmul.f32 %v1497_v62, %v1952_v5  ;;  %v266_v17 = vadd.f32 %v1960_v9, %v195_v53  ;;  %v1505_v25 = vunpack.c.h.bf16 %v1720_v63  ;;  %v1726_v63 = vld [vmem:[%s2518_s0 + $0xe8] sm:$0xff]  }
  0x26   :  { %v268_v33 = vadd.f32 %v1960_v9, %v197_v12  ;;  %v1508_v47 = vunpack.c.l.bf16 %v1721_v28  ;;  %v298_v34 = vpack.c.bf16 %v2096_v31, %v2090_v27  ;;  %v2235_v41 = vmul.f32 %v1457_v49, %v1952_v5  ;;  %v1725_v27 = vld [vmem:[%s2518_s0 + $0xe0] sm:$0xff]  }
  0x27   :  { %1848 = vmatprep.mubr.bf16.mxu1 %v306_v43  ;;  %v269_v43 = vadd.f32 %v1960_v9, %v198_v13  ;;  %v310_v1 = vpack.c.bf16 %v267_v23, %v266_v17  ;;  %v202_v3 = vmul.f32 %v1505_v25, %v1952_v5  ;;  %v2242_v35 = vmul.f32 %v1460_v60, %v1952_v5  ;;  %v1727_v17 = vld [vmem:[%s2518_s0 + $0xf0] sm:$0xff]  }
  0x28   :  { %v271_v6 = vadd.f32 %v1960_v9, %v200_v37  ;;  %v299_v31 = vpack.c.bf16 %v2205_v29, %v2111_v40  ;;  %v300_v49 = vpack.c.bf16 %v2215_v38, %v2209_v30  ;;  %v180_v50 = vmul.f32 %v1461_v42, %v1952_v5  ;;  %v1728_v29 = vld [vmem:[%s2518_s0 + $0xf8] sm:$0xff]  }
  0x29   :  { %v311_v51 = vpack.c.bf16 %v269_v43, %v268_v33  ;;  %v203_v53 = vmul.f32 %v1508_v47, %v1952_v5  ;;  %v273_v60 = vadd.f32 %v1960_v9, %v202_v3  ;;  %v1524_v62 = vunpack.c.l.bf16 %v1725_v27 }
  0x2a   :  { %1821 = vmatmul.mubr.bf16.gmra.mrb[4].mxu0 %v293_v18  ;;  %v307_v18 = vpack.c.bf16 %v261_v46, %v260_v36  ;;  %v199_v36 = vmul.f32 %v1500_v14, %v1952_v5  ;;  %v201_v46 = vmul.f32 %v1504_v24, %v1952_v5  ;;  %v1516_v12 = vunpack.c.l.bf16 %v2269_v59 }
  0x2b   :  { %1824 = vmatprep.mubr.bf16.mxu0 %v294_v19  ;;  %v264_v19 = vadd.f32 %v1960_v9, %v193_v48  ;;  %v2259_v48 = vadd.f32 %v1960_v9, %v177_v39  ;;  %v1525_v14 = vunpack.c.h.bf16 %v1725_v27  ;;  %v211_v15 = vmul.f32 %v1524_v62, %v1952_v5 }
  0x2c   :  { %1849 = vmatmul.mubr.bf16.vlgmr.msra.gmra.mrb[0].mxu1 %v307_v18  ;;  %v270_v4 = vadd.f32 %v1960_v9, %v199_v36  ;;  %v2263_v52 = vadd.f32 %v1960_v9, %v201_v46  ;;  %v1512_v18 = vunpack.c.l.bf16 %v2249_v20  ;;  %v274_v23 = vadd.f32 %v1960_v9, %v203_v53 }
  0x2d   :  { %1852 = vmatprep.mubr.bf16.mxu1 %v308_v0  ;;  %v309_v32 = vpack.c.bf16 %v265_v2, %v264_v19  ;;  %v1513_v2 = vunpack.c.h.bf16 %v2249_v20  ;;  %v1528_v25 = vunpack.c.l.bf16 %v1726_v63  ;;  %v1517_v36 = vunpack.c.h.bf16 %v2269_v59 }
  0x2e   :  { %v312_v0 = vpack.c.bf16 %v271_v6, %v270_v4  ;;  %v212_v39 = vmul.f32 %v1525_v14, %v1952_v5  ;;  %v282_v8 = vadd.f32 %v1960_v9, %v211_v15  ;;  %v1532_v42 = vunpack.c.l.bf16 %v1727_v17 }
  0x2f   :  { %v213_v10 = vmul.f32 %v1528_v25, %v1952_v5  ;;  %v1536_v46 = vunpack.c.l.bf16 %v1728_v29  ;;  %v1537_v47 = vunpack.c.h.bf16 %v1728_v29  ;;  %v249_v27 = vadd.f32 %v1960_v9, %v2235_v41 }
  0x30   :  { %v283_v43 = vadd.f32 %v1960_v9, %v212_v39  ;;  %v215_v3 = vmul.f32 %v1532_v42, %v1952_v5  ;;  %v206_v41 = vmul.f32 %v1513_v2, %v1952_v5 }
  0x31   :  { %v218_v20 = vmul.f32 %v1537_v47, %v1952_v5  ;;  %v301_v15 = vpack.c.bf16 %v249_v27, %v2259_v48 }
  0x32   :  { %1825 = vmatmul.mubr.bf16.gmra.mrb[8].mxu0 %v295_v21  ;;  %v1724_v21 = vld [vmem:[%s2518_s0 + $0xd8] sm:$0xff]   ;;  %v318_v6 = vpack.c.bf16 %v283_v43, %v282_v8  ;;  %v286_v53 = vadd.f32 %v1960_v9, %v215_v3 }
  0x33   :  { %1828 = vmatprep.mubr.bf16.mxu0 %v296_v22  ;;  %v1509_v22 = vunpack.c.h.bf16 %v1721_v28  ;;  %v1520_v40 = vunpack.c.l.bf16 %v1724_v21  ;;  %v1521_v57 = vunpack.c.h.bf16 %v1724_v21  ;;  %v1529_v28 = vunpack.c.h.bf16 %v1726_v63 }
  0x34   :  { %1853 = vmatmul.mubr.bf16.gmra.mrb[4].mxu1 %v309_v32  ;;  %v1533_v32 = vunpack.c.h.bf16 %v1727_v17  ;;  %v289_v63 = vadd.f32 %v1960_v9, %v218_v20 }
  0x35   :  { %1856 = vmatprep.mubr.bf16.mxu1 %v310_v1  ;;  %v204_v19 = vmul.f32 %v1509_v22, %v1952_v5  ;;  %v209_v7 = vmul.f32 %v1520_v40, %v1952_v5  ;;  %v210_v13 = vmul.f32 %v1521_v57, %v1952_v5  ;;  %v217_v22 = vmul.f32 %v1536_v46, %v1952_v5 }
  0x36   :  { %v216_v21 = vmul.f32 %v1533_v32, %v1952_v5  ;;  %v250_v40 = vadd.f32 %v1960_v9, %v2242_v35  ;;  %v251_v57 = vadd.f32 %v1960_v9, %v180_v50  ;;  %v207_v35 = vmul.f32 %v1516_v12, %v1952_v5 }
  0x37   :  { %v280_v24 = vadd.f32 %v1960_v9, %v209_v7  ;;  %v281_v37 = vadd.f32 %v1960_v9, %v210_v13  ;;  %v275_v4 = vadd.f32 %v1960_v9, %v204_v19  ;;  %v288_v62 = vadd.f32 %v1960_v9, %v217_v22 }
  0x38   :  { %v287_v59 = vadd.f32 %v1960_v9, %v216_v21  ;;  %v205_v19 = vmul.f32 %v1512_v18, %v1952_v5  ;;  %v208_v50 = vmul.f32 %v1517_v36, %v1952_v5  ;;  %v278_v18 = vadd.f32 %v1960_v9, %v207_v35 }
  0x39   :  { %v317_v33 = vpack.c.bf16 %v281_v37, %v280_v24  ;;  %v314_v13 = vpack.c.bf16 %v275_v4, %v274_v23  ;;  %v321_v14 = vpack.c.bf16 %v289_v63, %v288_v62 }
  0x3a   :  { %1829 = vmatmul.mubr.bf16.gmra.mrb[12].mxu0 %v297_v26  ;;  %v214_v26 = vmul.f32 %v1529_v28, %v1952_v5  ;;  %v320_v7 = vpack.c.bf16 %v287_v59, %v286_v53  ;;  %v279_v30 = vadd.f32 %v1960_v9, %v208_v50 }
  0x3b   :  { %1832 = vmatprep.mubr.bf16.mxu0 %v298_v34  ;;  %v284_v34 = vadd.f32 %v1960_v9, %v213_v10 }
  0x3c   :  { %1857 = vmatmul.mubr.bf16.gmra.mrb[8].mxu1 %v311_v51  ;;  %v285_v1 = vadd.f32 %v1960_v9, %v214_v26 }
  0x3d   :  { %1860 = vmatprep.mubr.bf16.mxu1 %v312_v0  ;;  %v313_v0 = vpack.c.bf16 %v273_v60, %v2263_v52  ;;  %v277_v52 = vadd.f32 %v1960_v9, %v206_v41  ;;  %v302_v60 = vpack.c.bf16 %v251_v57, %v250_v40 }
  0x3e   :  { %v319_v51 = vpack.c.bf16 %v285_v1, %v284_v34 }
  0x42   :  { %1833 = vmatmul.mubr.bf16.gmra.mrb[16].mxu0 %v299_v31  ;;  %v276_v31 = vadd.f32 %v1960_v9, %v205_v19 }
  0x43   :  { %1836 = vmatprep.mubr.bf16.mxu0 %v300_v49  ;;  %v316_v49 = vpack.c.bf16 %v279_v30, %v278_v18 }
  0x44   :  { %1861 = vmatmul.mubr.bf16.gmra.mrb[12].mxu1 %v313_v0  ;;  %v315_v38 = vpack.c.bf16 %v277_v52, %v276_v31 }
  0x45   :  { %1864 = vmatprep.mubr.bf16.mxu1 %v314_v13 }
  0x4a   :  { %1837 = vmatmul.mubr.bf16.gmra.mrb[20].mxu0 %v301_v15 }
  0x4b   :  { %1840 = vmatprep.mubr.bf16.mxu0 %v302_v60 }
  0x4c   :  { %1865 = vmatmul.mubr.bf16.gmra.mrb[16].mxu1 %v315_v38 }
  0x4d   :  { %1868 = vmatprep.mubr.bf16.mxu1 %v316_v49 }
  0x52   :  { %1841 = vmatmul.mubr.bf16.gmra.mrb[24].mxu0 %v303_v54 }
  0x53   :  { %1844 = vmatprep.mubr.bf16.mxu0 %v304_v11 }
  0x54   :  { %1869 = vmatmul.mubr.bf16.gmra.mrb[20].mxu1 %v317_v33 }
  0x55   :  { %1872 = vmatprep.mubr.bf16.mxu1 %v318_v6 }
  0x5a   :  { %1845 = vmatmul.mubr.bf16.gmra.mrb[28].mxu0 %v305_v16 }
  0x5c   :  { %1873 = vmatmul.mubr.bf16.gmra.mrb[24].mxu1 %v319_v51 }
  0x5d   :  { %1876 = vmatprep.mubr.bf16.mxu1 %v320_v7 }
  0x64   :  { %1877 = vmatmul.mubr.bf16.gmra.mrb[28].mxu1 %v321_v14 }
  0xf5   :  { %v1818_v5 = vpop.f32.mrb[0].mxu0 }
  0xf6   :  { %v420_v9 = vpop.f32.mrb[1].mxu0 }
  0xf7   :  { %v1819_v48 = vpop.f32.mrb[2].mxu0 }
  0xf8   :  { %v676_v2 = vpack.c.bf16 %v1819_v48, %v1818_v5  ;;  %v423_v12 = vpop.f32.mrb[3].mxu0 }
  0xf9   :  { %v675_v44 = vpack.c.bf16 %v423_v12, %v420_v9 }
  0xfa   :  { %1729 = vst [vmem:[%s2521_s4 + $0x8] sm:$0xff] %v676_v2   ;;  %v997_v45 = vunpack.c.l.bf16 %v676_v2  ;;  %v998_v56 = vunpack.c.h.bf16 %v676_v2 }
  0xfb   :  { %1542 = vst [vmem:[%s2521_s4] sm:$0xff] %v675_v44   ;;  %v995_v54 = vunpack.c.l.bf16 %v675_v44  ;;  %v996_v55 = vunpack.c.h.bf16 %v675_v44 }
  0xfc   :  { %v1130_v23 = vmul.f32 %v997_v45, %v997_v45  ;;  %v1131_v37 = vmul.f32 %v998_v56, %v998_v56 }
  0xfd   :  { %v1059_v58 = vadd.f32 %v996_v55, %v995_v54  ;;  %v1128_v61 = vmul.f32 %v995_v54, %v995_v54  ;;  %v1129_v11 = vmul.f32 %v996_v55, %v996_v55  ;;  %v1822_v16 = vpop.f32.mrb[4].mxu0 }
  0xfe   :  { %v436_v17 = vpop.f32.mrb[5].mxu0 }
  0xff   :  { %v1060_v24 = vadd.f32 %v1059_v58, %v997_v45  ;;  %v1192_v25 = vadd.f32 %v1129_v11, %v1128_v61  ;;  %v1823_v28 = vpop.f32.mrb[6].mxu0  ;;  %v1850_v26 = vpop.f32.mrb[0].mxu1 }
 0x100   :  { %v678_v29 = vpack.c.bf16 %v1823_v28, %v1822_v16  ;;  %v439_v36 = vpop.f32.mrb[7].mxu0  ;;  %v548_v42 = vpop.f32.mrb[1].mxu1 }
 0x101   :  { %v1193_v39 = vadd.f32 %v1192_v25, %v1130_v23  ;;  %v677_v8 = vpack.c.bf16 %v439_v36, %v436_v17  ;;  %v1061_v10 = vadd.f32 %v1060_v24, %v998_v56  ;;  %v1851_v46 = vpop.f32.mrb[2].mxu1 }
 0x102   :  { %1731 = vst [vmem:[%s2521_s4 + $0x18] sm:$0xff] %v678_v29   ;;  %v2350_v47 = vpack.c.bf16 %v1851_v46, %v1850_v26  ;;  %v551_v34 = vpop.f32.mrb[3].mxu1  ;;  %v1001_v1 = vunpack.c.l.bf16 %v678_v29  ;;  %v1002_v22 = vunpack.c.h.bf16 %v678_v29 }
 0x103   :  { %1730 = vst [vmem:[%s2521_s4 + $0x10] sm:$0xff] %v677_v8   ;;  %v999_v32 = vunpack.c.l.bf16 %v677_v8  ;;  %v1000_v33 = vunpack.c.h.bf16 %v677_v8  ;;  %v1194_v43 = vadd.f32 %v1193_v39, %v1131_v37  ;;  %v2352_v6 = vpack.c.bf16 %v551_v34, %v548_v42 }
 0x104   :  { %1745 = vst [vmem:[%s2521_s4 + $0x88] sm:$0xff] %v2350_v47   ;;  %v1134_v62 = vmul.f32 %v1001_v1, %v1001_v1  ;;  %v1135_v7 = vmul.f32 %v1002_v22, %v1002_v22 }
 0x105   :  { %v1062_v3 = vadd.f32 %v1061_v10, %v999_v32  ;;  %v1132_v21 = vmul.f32 %v999_v32, %v999_v32  ;;  %v1826_v4 = vpop.f32.mrb[8].mxu0  ;;  %v1133_v51 = vmul.f32 %v1000_v33, %v1000_v33  ;;  %1744 = vst [vmem:[%s2521_s4 + $0x80] sm:$0xff] %v2352_v6  }
 0x106   :  { %v452_v20 = vpop.f32.mrb[9].mxu0 }
 0x107   :  { %v1063_v27 = vadd.f32 %v1062_v3, %v1000_v33  ;;  %v1195_v53 = vadd.f32 %v1194_v43, %v1132_v21  ;;  %v1827_v59 = vpop.f32.mrb[10].mxu0  ;;  %v1854_v41 = vpop.f32.mrb[4].mxu1 }
 0x108   :  { %v680_v40 = vpack.c.bf16 %v1827_v59, %v1826_v4  ;;  %v455_v57 = vpop.f32.mrb[11].mxu0  ;;  %v564_v13 = vpop.f32.mrb[5].mxu1 }
 0x109   :  { %v1064_v63 = vadd.f32 %v1063_v27, %v1001_v1  ;;  %v1196_v0 = vadd.f32 %v1195_v53, %v1133_v51  ;;  %v679_v19 = vpack.c.bf16 %v455_v57, %v452_v20  ;;  %v1855_v31 = vpop.f32.mrb[6].mxu1 }
 0x10a   :  { %1733 = vst [vmem:[%s2521_s4 + $0x28] sm:$0xff] %v680_v40   ;;  %v2368_v52 = vpack.c.bf16 %v1855_v31, %v1854_v41  ;;  %v567_v60 = vpop.f32.mrb[7].mxu1  ;;  %v1005_v18 = vunpack.c.l.bf16 %v680_v40  ;;  %v1006_v9 = vunpack.c.h.bf16 %v680_v40 }
 0x10b   :  { %v1197_v35 = vadd.f32 %v1196_v0, %v1134_v62  ;;  %1732 = vst [vmem:[%s2521_s4 + $0x20] sm:$0xff] %v679_v19   ;;  %v1003_v50 = vunpack.c.l.bf16 %v679_v19  ;;  %v1004_v14 = vunpack.c.h.bf16 %v679_v19  ;;  %v1065_v15 = vadd.f32 %v1064_v63, %v1002_v22 }
 0x10c   :  { %1747 = vst [vmem:[%s2521_s4 + $0x98] sm:$0xff] %v2368_v52   ;;  %v2374_v2 = vpack.c.bf16 %v567_v60, %v564_v13  ;;  %v1138_v58 = vmul.f32 %v1005_v18, %v1005_v18  ;;  %v1139_v23 = vmul.f32 %v1006_v9, %v1006_v9 }
 0x10d   :  { %v1066_v30 = vadd.f32 %v1065_v15, %v1003_v50  ;;  %v1136_v38 = vmul.f32 %v1003_v50, %v1003_v50  ;;  %v1198_v49 = vadd.f32 %v1197_v35, %v1135_v7  ;;  %v1830_v5 = vpop.f32.mrb[12].mxu0  ;;  %v1137_v44 = vmul.f32 %v1004_v14, %v1004_v14 }
 0x10e   :  { %v468_v48 = vpop.f32.mrb[13].mxu0  ;;  %1746 = vst [vmem:[%s2521_s4 + $0x90] sm:$0xff] %v2374_v2  }
 0x10f   :  { %v1067_v12 = vadd.f32 %v1066_v30, %v1004_v14  ;;  %v1199_v45 = vadd.f32 %v1198_v49, %v1136_v38  ;;  %v1831_v54 = vpop.f32.mrb[14].mxu0  ;;  %v1858_v17 = vpop.f32.mrb[8].mxu1 }
 0x110   :  { %v682_v55 = vpack.c.bf16 %v1831_v54, %v1830_v5  ;;  %v471_v56 = vpop.f32.mrb[15].mxu0  ;;  %v580_v24 = vpop.f32.mrb[9].mxu1 }
 0x111   :  { %v1068_v61 = vadd.f32 %v1067_v12, %v1005_v18  ;;  %v1200_v11 = vadd.f32 %v1199_v45, %v1137_v44  ;;  %v681_v16 = vpack.c.bf16 %v471_v56, %v468_v48  ;;  %v1859_v37 = vpop.f32.mrb[10].mxu1 }
 0x112   :  { %1735 = vst [vmem:[%s2521_s4 + $0x38] sm:$0xff] %v682_v55   ;;  %v2386_v39 = vpack.c.bf16 %v1859_v37, %v1858_v17  ;;  %v583_v8 = vpop.f32.mrb[11].mxu1  ;;  %v1009_v10 = vunpack.c.l.bf16 %v682_v55  ;;  %v1010_v43 = vunpack.c.h.bf16 %v682_v55 }
 0x113   :  { %v1201_v25 = vadd.f32 %v1200_v11, %v1138_v58  ;;  %1734 = vst [vmem:[%s2521_s4 + $0x30] sm:$0xff] %v681_v16   ;;  %v1007_v28 = vunpack.c.l.bf16 %v681_v16  ;;  %v1008_v29 = vunpack.c.h.bf16 %v681_v16  ;;  %v1069_v36 = vadd.f32 %v1068_v61, %v1006_v9 }
 0x114   :  { %1749 = vst [vmem:[%s2521_s4 + $0xa8] sm:$0xff] %v2386_v39   ;;  %v2392_v34 = vpack.c.bf16 %v583_v8, %v580_v24  ;;  %v1142_v27 = vmul.f32 %v1009_v10, %v1009_v10  ;;  %v1143_v57 = vmul.f32 %v1010_v43, %v1010_v43 }
 0x115   :  { %v1070_v26 = vadd.f32 %v1069_v36, %v1007_v28  ;;  %v1140_v42 = vmul.f32 %v1007_v28, %v1007_v28  ;;  %v1202_v32 = vadd.f32 %v1201_v25, %v1139_v23  ;;  %v1834_v33 = vpop.f32.mrb[16].mxu0  ;;  %v1141_v3 = vmul.f32 %v1008_v29, %v1008_v29 }
 0x116   :  { %v484_v46 = vpop.f32.mrb[17].mxu0  ;;  %1748 = vst [vmem:[%s2521_s4 + $0xa0] sm:$0xff] %v2392_v34  }
 0x117   :  { %v1071_v1 = vadd.f32 %v1070_v26, %v1008_v29  ;;  %v1203_v21 = vadd.f32 %v1202_v32, %v1140_v42  ;;  %v1835_v4 = vpop.f32.mrb[18].mxu0  ;;  %v1862_v40 = vpop.f32.mrb[12].mxu1 }
 0x118   :  { %v684_v22 = vpack.c.bf16 %v1835_v4, %v1834_v33  ;;  %v487_v20 = vpop.f32.mrb[19].mxu0  ;;  %v596_v62 = vpop.f32.mrb[13].mxu1 }
 0x119   :  { %v1072_v51 = vadd.f32 %v1071_v1, %v1009_v10  ;;  %v1204_v53 = vadd.f32 %v1203_v21, %v1141_v3  ;;  %v683_v59 = vpack.c.bf16 %v487_v20, %v484_v46  ;;  %v1863_v7 = vpop.f32.mrb[14].mxu1 }
 0x11a   :  { %1737 = vst [vmem:[%s2521_s4 + $0x48] sm:$0xff] %v684_v22   ;;  %v2404_v13 = vpack.c.bf16 %v1863_v7, %v1862_v40  ;;  %v599_v35 = vpop.f32.mrb[15].mxu1  ;;  %v1013_v50 = vunpack.c.l.bf16 %v684_v22  ;;  %v1014_v18 = vunpack.c.h.bf16 %v684_v22 }
 0x11b   :  { %v1205_v63 = vadd.f32 %v1204_v53, %v1142_v27  ;;  %1736 = vst [vmem:[%s2521_s4 + $0x40] sm:$0xff] %v683_v59   ;;  %v1011_v0 = vunpack.c.l.bf16 %v683_v59  ;;  %v1012_v19 = vunpack.c.h.bf16 %v683_v59  ;;  %v1073_v41 = vadd.f32 %v1072_v51, %v1010_v43 }
 0x11c   :  { %1751 = vst [vmem:[%s2521_s4 + $0xb8] sm:$0xff] %v2404_v13   ;;  %v2410_v38 = vpack.c.bf16 %v599_v35, %v596_v62  ;;  %v1146_v45 = vmul.f32 %v1013_v50, %v1013_v50  ;;  %v1147_v61 = vmul.f32 %v1014_v18, %v1014_v18 }
 0x11d   :  { %v1074_v14 = vadd.f32 %v1073_v41, %v1011_v0  ;;  %v1144_v15 = vmul.f32 %v1011_v0, %v1011_v0  ;;  %v1206_v31 = vadd.f32 %v1205_v63, %v1143_v57  ;;  %v1838_v60 = vpop.f32.mrb[20].mxu0  ;;  %v1145_v5 = vmul.f32 %v1012_v19, %v1012_v19 }
 0x11e   :  { %v500_v30 = vpop.f32.mrb[21].mxu0  ;;  %1750 = vst [vmem:[%s2521_s4 + $0xb0] sm:$0xff] %v2410_v38  }
 0x11f   :  { %v1075_v49 = vadd.f32 %v1074_v14, %v1012_v19  ;;  %v1207_v9 = vadd.f32 %v1206_v31, %v1144_v15  ;;  %v1839_v48 = vpop.f32.mrb[22].mxu0  ;;  %v1866_v58 = vpop.f32.mrb[16].mxu1 }
 0x120   :  { %v686_v12 = vpack.c.bf16 %v1839_v48, %v1838_v60  ;;  %v503_v44 = vpop.f32.mrb[23].mxu0  ;;  %v612_v11 = vpop.f32.mrb[17].mxu1 }
 0x121   :  { %v1076_v54 = vadd.f32 %v1075_v49, %v1013_v50  ;;  %v1208_v55 = vadd.f32 %v1207_v9, %v1145_v5  ;;  %v685_v56 = vpack.c.bf16 %v503_v44, %v500_v30  ;;  %v1867_v25 = vpop.f32.mrb[18].mxu1 }
 0x122   :  { %1739 = vst [vmem:[%s2521_s4 + $0x58] sm:$0xff] %v686_v12   ;;  %v2422_v28 = vpack.c.bf16 %v1867_v25, %v1866_v58  ;;  %v615_v29 = vpop.f32.mrb[19].mxu1  ;;  %v1017_v36 = vunpack.c.l.bf16 %v686_v12  ;;  %v1018_v42 = vunpack.c.h.bf16 %v686_v12 }
 0x123   :  { %v1209_v16 = vadd.f32 %v1208_v55, %v1146_v45  ;;  %1738 = vst [vmem:[%s2521_s4 + $0x50] sm:$0xff] %v685_v56   ;;  %v1015_v17 = vunpack.c.l.bf16 %v685_v56  ;;  %v1016_v23 = vunpack.c.h.bf16 %v685_v56  ;;  %v1077_v24 = vadd.f32 %v1076_v54, %v1014_v18 }
 0x124   :  { %1753 = vst [vmem:[%s2521_s4 + $0xc8] sm:$0xff] %v2422_v28   ;;  %v2428_v33 = vpack.c.bf16 %v615_v29, %v612_v11  ;;  %v1150_v22 = vmul.f32 %v1017_v36, %v1017_v36  ;;  %v1151_v59 = vmul.f32 %v1018_v42, %v1018_v42 }
 0x125   :  { %v1078_v37 = vadd.f32 %v1077_v24, %v1015_v17  ;;  %v1148_v8 = vmul.f32 %v1015_v17, %v1015_v17  ;;  %v1210_v10 = vadd.f32 %v1209_v16, %v1147_v61  ;;  %v1842_v26 = vpop.f32.mrb[24].mxu0  ;;  %v1149_v46 = vmul.f32 %v1016_v23, %v1016_v23 }
 0x126   :  { %v516_v32 = vpop.f32.mrb[25].mxu0  ;;  %1752 = vst [vmem:[%s2521_s4 + $0xc0] sm:$0xff] %v2428_v33  }
 0x127   :  { %v1079_v43 = vadd.f32 %v1078_v37, %v1016_v23  ;;  %v1211_v1 = vadd.f32 %v1210_v10, %v1148_v8  ;;  %v1843_v3 = vpop.f32.mrb[26].mxu0  ;;  %v1870_v53 = vpop.f32.mrb[20].mxu1 }
 0x128   :  { %v688_v21 = vpack.c.bf16 %v1843_v3, %v1842_v26  ;;  %v519_v4 = vpop.f32.mrb[27].mxu0  ;;  %v628_v40 = vpop.f32.mrb[21].mxu1 }
 0x129   :  { %v1080_v20 = vadd.f32 %v1079_v43, %v1017_v36  ;;  %v1212_v27 = vadd.f32 %v1211_v1, %v1149_v46  ;;  %v687_v51 = vpack.c.bf16 %v519_v4, %v516_v32  ;;  %v1871_v19 = vpop.f32.mrb[22].mxu1 }
 0x12a   :  { %1741 = vst [vmem:[%s2521_s4 + $0x68] sm:$0xff] %v688_v21   ;;  %v2440_v41 = vpack.c.bf16 %v1871_v19, %v1870_v53  ;;  %v631_v7 = vpop.f32.mrb[23].mxu1  ;;  %v1021_v35 = vunpack.c.l.bf16 %v688_v21  ;;  %v1022_v60 = vunpack.c.h.bf16 %v688_v21 }
 0x12b   :  { %v1213_v57 = vadd.f32 %v1212_v27, %v1150_v22  ;;  %1740 = vst [vmem:[%s2521_s4 + $0x60] sm:$0xff] %v687_v51   ;;  %v1019_v62 = vunpack.c.l.bf16 %v687_v51  ;;  %v1020_v63 = vunpack.c.h.bf16 %v687_v51  ;;  %v1081_v0 = vadd.f32 %v1080_v20, %v1018_v42 }
 0x12c   :  { %1755 = vst [vmem:[%s2521_s4 + $0xd8] sm:$0xff] %v2440_v41   ;;  %v2446_v30 = vpack.c.bf16 %v631_v7, %v628_v40  ;;  %v1154_v45 = vmul.f32 %v1021_v35, %v1021_v35  ;;  %v1155_v61 = vmul.f32 %v1022_v60, %v1022_v60  ;;  %v1027_v22 = vunpack.c.l.bf16 %v2352_v6 }
 0x12d   :  { %v1082_v50 = vadd.f32 %v1081_v0, %v1019_v62  ;;  %v1152_v14 = vmul.f32 %v1019_v62, %v1019_v62  ;;  %v1214_v15 = vadd.f32 %v1213_v57, %v1151_v59  ;;  %v1846_v31 = vpop.f32.mrb[28].mxu0  ;;  %v1153_v5 = vmul.f32 %v1020_v63, %v1020_v63 }
 0x12e   :  { %v532_v18 = vpop.f32.mrb[29].mxu0  ;;  %1754 = vst [vmem:[%s2521_s4 + $0xd0] sm:$0xff] %v2446_v30   ;;  %v1028_v59 = vunpack.c.h.bf16 %v2352_v6  ;;  %v1029_v62 = vunpack.c.l.bf16 %v2350_v47  ;;  %v1160_v7 = vmul.f32 %v1027_v22, %v1027_v22 }
 0x12f   :  { %v1083_v49 = vadd.f32 %v1082_v50, %v1020_v63  ;;  %v1215_v9 = vadd.f32 %v1214_v15, %v1152_v14  ;;  %v1847_v48 = vpop.f32.mrb[30].mxu0  ;;  %v1874_v58 = vpop.f32.mrb[24].mxu1  ;;  %v1030_v14 = vunpack.c.h.bf16 %v2350_v47  ;;  %v1033_v47 = vunpack.c.l.bf16 %v2368_v52 }
 0x130   :  { %v690_v12 = vpack.c.bf16 %v1847_v48, %v1846_v31  ;;  %v535_v44 = vpop.f32.mrb[31].mxu0  ;;  %v644_v11 = vpop.f32.mrb[25].mxu1  ;;  %v1161_v15 = vmul.f32 %v1028_v59, %v1028_v59 }
 0x131   :  { %v1084_v54 = vadd.f32 %v1083_v49, %v1021_v35  ;;  %v1216_v55 = vadd.f32 %v1215_v9, %v1153_v5  ;;  %v689_v56 = vpack.c.bf16 %v535_v44, %v532_v18  ;;  %v1875_v25 = vpop.f32.mrb[26].mxu1  ;;  %v1031_v5 = vunpack.c.l.bf16 %v2374_v2 }
 0x132   :  { %1743 = vst [vmem:[%s2521_s4 + $0x78] sm:$0xff] %v690_v12   ;;  %v2458_v29 = vpack.c.bf16 %v1875_v25, %v1874_v58  ;;  %v647_v36 = vpop.f32.mrb[27].mxu1  ;;  %v1025_v37 = vunpack.c.l.bf16 %v690_v12  ;;  %v1026_v32 = vunpack.c.h.bf16 %v690_v12  ;;  %v1163_v9 = vmul.f32 %v1030_v14, %v1030_v14 }
 0x133   :  { %v1217_v16 = vadd.f32 %v1216_v55, %v1154_v45  ;;  %1742 = vst [vmem:[%s2521_s4 + $0x70] sm:$0xff] %v689_v56   ;;  %v1023_v17 = vunpack.c.l.bf16 %v689_v56  ;;  %v1024_v23 = vunpack.c.h.bf16 %v689_v56  ;;  %v1085_v24 = vadd.f32 %v1084_v54, %v1022_v60 }
 0x134   :  { %1757 = vst [vmem:[%s2521_s4 + $0xe8] sm:$0xff] %v2458_v29   ;;  %v2464_v42 = vpack.c.bf16 %v647_v36, %v644_v11  ;;  %v1158_v3 = vmul.f32 %v1025_v37, %v1025_v37  ;;  %v1159_v51 = vmul.f32 %v1026_v32, %v1026_v32  ;;  %v1162_v60 = vmul.f32 %v1029_v62, %v1029_v62 }
 0x135   :  { %v1086_v8 = vadd.f32 %v1085_v24, %v1023_v17  ;;  %v1156_v10 = vmul.f32 %v1023_v17, %v1023_v17  ;;  %v1218_v26 = vadd.f32 %v1217_v16, %v1155_v61  ;;  %v1157_v46 = vmul.f32 %v1024_v23, %v1024_v23 }
 0x136   :  { %1756 = vst [vmem:[%s2521_s4 + $0xe0] sm:$0xff] %v2464_v42   ;;  %v1032_v12 = vunpack.c.h.bf16 %v2374_v2  ;;  %v1164_v54 = vmul.f32 %v1031_v5, %v1031_v5  ;;  %v1034_v56 = vunpack.c.h.bf16 %v2368_v52  ;;  %v1166_v16 = vmul.f32 %v1033_v47, %v1033_v47 }
 0x137   :  { %v1087_v43 = vadd.f32 %v1086_v8, %v1024_v23  ;;  %v1219_v1 = vadd.f32 %v1218_v26, %v1156_v10  ;;  %v1878_v20 = vpop.f32.mrb[28].mxu1  ;;  %v1035_v24 = vunpack.c.l.bf16 %v2392_v34  ;;  %v1036_v2 = vunpack.c.h.bf16 %v2392_v34 }
 0x138   :  { %v660_v27 = vpop.f32.mrb[29].mxu1  ;;  %v1165_v61 = vmul.f32 %v1032_v12, %v1032_v12  ;;  %v1167_v25 = vmul.f32 %v1034_v56, %v1034_v56  ;;  %v1037_v8 = vunpack.c.l.bf16 %v2386_v39  ;;  %v1038_v52 = vunpack.c.h.bf16 %v2386_v39 }
 0x139   :  { %v1088_v21 = vadd.f32 %v1087_v43, %v1025_v37  ;;  %v1220_v4 = vadd.f32 %v1219_v1, %v1157_v46  ;;  %v1879_v57 = vpop.f32.mrb[30].mxu1  ;;  %v1168_v26 = vmul.f32 %v1035_v24, %v1035_v24  ;;  %v1169_v46 = vmul.f32 %v1036_v2, %v1036_v2 }
 0x13a   :  { %v2473_v63 = vpack.c.bf16 %v1879_v57, %v1878_v20  ;;  %v663_v0 = vpop.f32.mrb[31].mxu1  ;;  %v1171_v20 = vmul.f32 %v1038_v52, %v1038_v52  ;;  %v1040_v34 = vunpack.c.h.bf16 %v2410_v38  ;;  %v1042_v39 = vunpack.c.h.bf16 %v2404_v13 }
 0x13b   :  { %v1221_v53 = vadd.f32 %v1220_v4, %v1158_v3  ;;  %v1089_v40 = vadd.f32 %v1088_v21, %v1026_v32  ;;  %v2475_v50 = vpack.c.bf16 %v663_v0, %v660_v27  ;;  %v1170_v3 = vmul.f32 %v1037_v8, %v1037_v8 }
 0x13c   :  { %1759 = vst [vmem:[%s2521_s4 + $0xf8] sm:$0xff] %v2473_v63   ;;  %v1173_v0 = vmul.f32 %v1040_v34, %v1040_v34 }
 0x13d   :  { %v1090_v19 = vadd.f32 %v1089_v40, %v1027_v22  ;;  %v1222_v35 = vadd.f32 %v1221_v53, %v1159_v51  ;;  %1758 = vst [vmem:[%s2521_s4 + $0xf0] sm:$0xff] %v2475_v50   ;;  %v1039_v22 = vunpack.c.l.bf16 %v2410_v38  ;;  %v1041_v53 = vunpack.c.l.bf16 %v2404_v13 }
 0x13e   :  { %v1044_v38 = vunpack.c.h.bf16 %v2428_v33  ;;  %v1046_v13 = vunpack.c.h.bf16 %v2422_v28 }
 0x13f   :  { %v1091_v6 = vadd.f32 %v1090_v19, %v1028_v59  ;;  %v1223_v31 = vadd.f32 %v1222_v35, %v1160_v7  ;;  %v1172_v40 = vmul.f32 %v1039_v22, %v1039_v22  ;;  %v1174_v7 = vmul.f32 %v1041_v53, %v1041_v53 }
 0x141   :  { %v1092_v18 = vadd.f32 %v1091_v6, %v1029_v62  ;;  %v1224_v49 = vadd.f32 %v1223_v31, %v1161_v15  ;;  %v1043_v6 = vunpack.c.l.bf16 %v2428_v33  ;;  %v1175_v15 = vmul.f32 %v1042_v39, %v1042_v39 }
 0x142   :  { %v1048_v33 = vunpack.c.h.bf16 %v2446_v30 }
 0x143   :  { %v1225_v48 = vadd.f32 %v1224_v49, %v1162_v60  ;;  %v1093_v44 = vadd.f32 %v1092_v18, %v1030_v14  ;;  %v1045_v18 = vunpack.c.l.bf16 %v2422_v28  ;;  %v1050_v28 = vunpack.c.h.bf16 %v2440_v41 }
 0x145   :  { %v1094_v45 = vadd.f32 %v1093_v44, %v1031_v5  ;;  %v1226_v55 = vadd.f32 %v1225_v48, %v1163_v9  ;;  %v1176_v5 = vmul.f32 %v1043_v6, %v1043_v6 }
 0x147   :  { %v1095_v58 = vadd.f32 %v1094_v45, %v1032_v12  ;;  %v1227_v11 = vadd.f32 %v1226_v55, %v1164_v54  ;;  %v1177_v12 = vmul.f32 %v1044_v38, %v1044_v38  ;;  %v1047_v55 = vunpack.c.l.bf16 %v2446_v30 }
 0x148   :  { %v1052_v30 = vunpack.c.h.bf16 %v2464_v42 }
 0x149   :  { %v1096_v17 = vadd.f32 %v1095_v58, %v1033_v47  ;;  %v1228_v23 = vadd.f32 %v1227_v11, %v1165_v61  ;;  %v1178_v47 = vmul.f32 %v1045_v18, %v1045_v18  ;;  %v1049_v11 = vunpack.c.l.bf16 %v2440_v41 }
 0x14a   :  { %v1054_v41 = vunpack.c.h.bf16 %v2458_v29 }
 0x14b   :  { %v1229_v36 = vadd.f32 %v1228_v23, %v1166_v16  ;;  %v1097_v37 = vadd.f32 %v1096_v17, %v1034_v56  ;;  %v1179_v56 = vmul.f32 %v1046_v13, %v1046_v13  ;;  %v1180_v17 = vmul.f32 %v1047_v55, %v1047_v55 }
 0x14d   :  { %v1098_v10 = vadd.f32 %v1097_v37, %v1035_v24  ;;  %v1230_v32 = vadd.f32 %v1229_v36, %v1167_v25  ;;  %v1181_v25 = vmul.f32 %v1048_v33, %v1048_v33 }
 0x14f   :  { %v1099_v43 = vadd.f32 %v1098_v10, %v1036_v2  ;;  %v1231_v1 = vadd.f32 %v1230_v32, %v1168_v26  ;;  %v1182_v2 = vmul.f32 %v1049_v11, %v1049_v11  ;;  %v1051_v10 = vunpack.c.l.bf16 %v2464_v42 }
 0x150   :  { %v1183_v26 = vmul.f32 %v1050_v28, %v1050_v28  ;;  %v1056_v42 = vunpack.c.h.bf16 %v2475_v50 }
 0x151   :  { %v1100_v21 = vadd.f32 %v1099_v43, %v1037_v8  ;;  %v1232_v4 = vadd.f32 %v1231_v1, %v1169_v46  ;;  %v1053_v43 = vunpack.c.l.bf16 %v2458_v29  ;;  %v1184_v1 = vmul.f32 %v1051_v10, %v1051_v10 }
 0x152   :  { %v1058_v29 = vunpack.c.h.bf16 %v2473_v63 }
 0x153   :  { %v1233_v27 = vadd.f32 %v1232_v4, %v1170_v3  ;;  %v1101_v51 = vadd.f32 %v1100_v21, %v1038_v52  ;;  %v1185_v4 = vmul.f32 %v1052_v30, %v1052_v30 }
 0x155   :  { %v1102_v59 = vadd.f32 %v1101_v51, %v1039_v22  ;;  %v1234_v57 = vadd.f32 %v1233_v27, %v1171_v20  ;;  %v1186_v20 = vmul.f32 %v1053_v43, %v1053_v43  ;;  %v1055_v51 = vunpack.c.l.bf16 %v2475_v50 }
 0x157   :  { %v1103_v62 = vadd.f32 %v1102_v59, %v1040_v34  ;;  %v1235_v19 = vadd.f32 %v1234_v57, %v1172_v40  ;;  %v1057_v57 = vunpack.c.l.bf16 %v2473_v63 }
 0x159   :  { %v1104_v35 = vadd.f32 %v1103_v62, %v1041_v53  ;;  %v1236_v14 = vadd.f32 %v1235_v19, %v1173_v0  ;;  %v1187_v53 = vmul.f32 %v1054_v41, %v1054_v41  ;;  %v1188_v62 = vmul.f32 %v1055_v51, %v1055_v51 }
 0x15b   :  { %v1237_v31 = vadd.f32 %v1236_v14, %v1174_v7  ;;  %v1105_v60 = vadd.f32 %v1104_v35, %v1042_v39  ;;  %v1189_v7 = vmul.f32 %v1056_v42, %v1056_v42  ;;  %v1190_v14 = vmul.f32 %v1057_v57, %v1057_v57 }
 0x15d   :  { %v1106_v49 = vadd.f32 %v1105_v60, %v1043_v6  ;;  %v1238_v9 = vadd.f32 %v1237_v31, %v1175_v15  ;;  %v1191_v31 = vmul.f32 %v1058_v29, %v1058_v29 }
 0x15f   :  { %v1107_v48 = vadd.f32 %v1106_v49, %v1044_v38  ;;  %v1239_v44 = vadd.f32 %v1238_v9, %v1176_v5 }
 0x161   :  { %v1108_v45 = vadd.f32 %v1107_v48, %v1045_v18  ;;  %v1240_v54 = vadd.f32 %v1239_v44, %v1177_v12 }
 0x163   :  { %v1241_v58 = vadd.f32 %v1240_v54, %v1178_v47  ;;  %v1109_v61 = vadd.f32 %v1108_v45, %v1046_v13 }
 0x165   :  { %v1110_v16 = vadd.f32 %v1109_v61, %v1047_v55  ;;  %v1242_v23 = vadd.f32 %v1241_v58, %v1179_v56 }
 0x167   :  { %v1111_v24 = vadd.f32 %v1110_v16, %v1048_v33  ;;  %v1243_v36 = vadd.f32 %v1242_v23, %v1180_v17 }
 0x169   :  { %v1112_v37 = vadd.f32 %v1111_v24, %v1049_v11  ;;  %v1244_v8 = vadd.f32 %v1243_v36, %v1181_v25 }
 0x16b   :  { %v1245_v32 = vadd.f32 %v1244_v8, %v1182_v2  ;;  %v1113_v52 = vadd.f32 %v1112_v37, %v1050_v28 }
 0x16d   :  { %v1114_v46 = vadd.f32 %v1113_v52, %v1051_v10  ;;  %v1246_v3 = vadd.f32 %v1245_v32, %v1183_v26 }
 0x16f   :  { %v1115_v21 = vadd.f32 %v1114_v46, %v1052_v30  ;;  %v1247_v22 = vadd.f32 %v1246_v3, %v1184_v1 }
 0x171   :  { %v1116_v27 = vadd.f32 %v1115_v21, %v1053_v43  ;;  %v1248_v34 = vadd.f32 %v1247_v22, %v1185_v4 }
 0x173   :  { %v1249_v59 = vadd.f32 %v1248_v34, %v1186_v20  ;;  %v1117_v40 = vadd.f32 %v1116_v27, %v1054_v41 }
 0x175   :  { %v1118_v39 = vadd.f32 %v1117_v40, %v1055_v51  ;;  %v1250_v0 = vadd.f32 %v1249_v59, %v1187_v53 }
 0x177   :  { %v1119_v19 = vadd.f32 %v1118_v39, %v1056_v42  ;;  %v1251_v35 = vadd.f32 %v1250_v0, %v1188_v62 }
 0x179   :  { %v1120_v6 = vadd.f32 %v1119_v19, %v1057_v57  ;;  %v1252_v15 = vadd.f32 %v1251_v35, %v1189_v7 }
 0x17b   :  { %v1121_v38 = vadd.f32 %v1120_v6, %v1058_v29  ;;  %v1253_v60 = vadd.f32 %v1252_v15, %v1190_v14 }
 0x17d   :  { %v1122_v18 = vrot.slane %v1121_v38, 4  ;;  %v1254_v49 = vadd.f32 %v1253_v60, %v1191_v31 }
 0x17f   :  { %v1123_v50 = vadd.f32 %v1122_v18, %v1121_v38  ;;  %v1255_v5 = vrot.slane %v1254_v49, 4 }
 0x181   :  { %v1124_v9 = vrot.slane %v1123_v50, 2  ;;  %v1256_v13 = vadd.f32 %v1255_v5, %v1254_v49 }
 0x183   :  { %v1125_v48 = vadd.f32 %v1124_v9, %v1123_v50  ;;  %v1257_v12 = vrot.slane %v1256_v13, 2 }
 0x185   :  { %v1126_v44 = vrot.slane %v1125_v48, 1  ;;  %v1258_v47 = vadd.f32 %v1257_v12, %v1256_v13 }
 0x187   :  { %v1259_v63 = vrot.slane %v1258_v47, 1  ;;  %v1127_v45 = vadd.f32 %v1126_v44, %v1125_v48 }
 0x189   :  { %v1260_v54 = vadd.f32 %v1259_v63, %v1258_v47 }
 0x18b   :  { %v1262_v55 = vsel %vm1261_vm0, %v1127_v45, %v1260_v54 }
 0x18c   :  { %1263 = vst [vmem:[%s2522_s5] sm:$0x3] %v1262_v55 }

// kernel: residual_block_pallas.5
= control target key start
LH: loop header
LB: loop body
LE: loop exit
PB: predicated region body
PF: predicated region fallthrough
CT: control target
= control target key end

     0   :  { %s5009_s18 = smov 0   ;;  %s6537_s0 = inlined_call_operand.vmem [shape: bf16[2,256,128], index: 0, kind: input, shape index: {}]   ;;  %s6538_s1 = inlined_call_operand.vmem [shape: f32[1,128], index: 1, kind: input, shape index: {}]   ;;  %s6539_s2 = inlined_call_operand.vmem [shape: f32[1,128], index: 2, kind: input, shape index: {}]   ;;  %s6540_s3 = inlined_call_operand.vmem [shape: bf16[3,384,128], index: 3, kind: input, shape index: {}]   ;;  %s6541_s4 = inlined_call_operand.vmem [shape: bf16[2,256,128], index: 4, kind: output, shape index: {0}]   ;;  %s6542_s5 = inlined_call_operand.vmem [shape: f32[2,2,128], index: 5, kind: output, shape index: {1}]  }
   0x1 LB: > { %s3659_s19 = sadd.s32 4294967295, %s4975_s18   ;;  %p3663_p0 = scmp.ge.s32.totalorder %s4975_s18, 1  ;;  %s4975_s18 = sphi %s5009_s18, %s16_s18  }
   0x2   : > { %p190_p1 = scmp.lt.s32.totalorder %s4975_s18, 3 }
   0x4   : > { %p191_p2 = pnand %p3663_p0, %p190_p1 }
   0x6   : > { %194 = sbr.rel (%p191_p2) target bundleno = 604 (0x25c), region = 36 }
   0xd   : > { %v4897_v0 = vld [vmem:[%s6540_s3 + $0x100] sm:$0xff]   ;;  %v4900_v3 = vld [vmem:[%s6540_s3 + $0x108] sm:$0xff]   ;;  %v4903_v6 = vld [vmem:[%s6540_s3 + $0x110] sm:$0xff]   ;;  %v397_v8 = vlaneseq  ;;  %p222_p3 = scmp.lt.s32.totalorder %s3659_s19, 1  ;;  %vm6555_vm3 = vcmask 1040384   ;;  %vm4977_vm4 = vmmov 1  }
   0xe   : > { %v5023_v1 = vld [vmem:[%s6540_s3 + $0x140] sm:$0xff]   ;;  %4159 = vmatprep.subr.bf16.mxu0 %v4897_v0  ;;  %v5036_v4 = vld [vmem:[%s6540_s3 + $0x148] sm:$0xff]   ;;  %v5048_v7 = vld [vmem:[%s6540_s3 + $0x150] sm:$0xff]   ;;  %v6544_v56 = vmov 0   ;;  %vm814_vm11 = vsmask.f32 256 }
   0xf   : > { %v4899_v2 = vld [vmem:[%s6540_s3 + $0xc0] sm:$0xff]   ;;  %4711 = vmatprep.subr.bf16.mxu1 %v5023_v1  ;;  %v4902_v5 = vld [vmem:[%s6540_s3 + $0xc8] sm:$0xff]   ;;  %v4905_v9 = vld [vmem:[%s6540_s3 + $0xd0] sm:$0xff]   ;;  %v5068_v13 = vshrl.u32 %v397_v8, 7  ;;  %s6683_s19 = smov (!%p222_p3, %s3659_s19), 1  ;;  %vm6554_vm15 = vcmask 1046528  }
  0x10   : > { %4160 = vmatpush3.bf16.msra.mxu0 %v4899_v2  ;;  %4719 = vmatpush3.bf16.msra.mxu1 %v5023_v1  ;;  %v4906_v10 = vld [vmem:[%s6540_s3 + $0x118] sm:$0xff]   ;;  %v4909_v14 = vld [vmem:[%s6540_s3 + $0x120] sm:$0xff]   ;;  %v4912_v18 = vld [vmem:[%s6540_s3 + $0x128] sm:$0xff]   ;;  %s3905_s6 = sshll.u32 %s6683_s19, 7 }
  0x11   : > { %4161 = vmatprep.subr.bf16.mxu0 %v4900_v3  ;;  %4712 = vmatprep.subr.bf16.mxu1 %v5036_v4  ;;  %v5061_v11 = vld [vmem:[%s6540_s3 + $0x158] sm:$0xff]   ;;  %v5078_v15 = vld [vmem:[%s6540_s3 + $0x160] sm:$0xff]   ;;  %v413_v17 = vadd.s32 120, %v5068_v13  ;;  %v415_v19 = vadd.s32 136, %v5068_v13  ;;  %v5097_v20 = vld [vmem:[%s6540_s3 + $0x168] sm:$0xff]   ;;  %v417_v21 = vadd.s32 152, %v5068_v13  ;;  %s5122_s17 = scalar_lea.vmem %s6537_s0, %s3905_s6  ;;  %s6458_s20 = scalar_lea.vmem %s6541_s4, %s3905_s6 }
  0x12   : > { %v4908_v12 = vld [vmem:[%s6540_s3 + $0xd8] sm:$0xff]   ;;  %v4911_v16 = vld [vmem:[%s6540_s3 + $0xe0] sm:$0xff]   ;;  %v4914_v22 = vld [vmem:[%s6540_s3 + $0xe8] sm:$0xff]   ;;  %v434_v29 = vand.u32 15, %v5068_v13  ;;  %s3668_s6 = sshll.u32 %s6683_s19, 1 }
  0x13   : > { %v539_v23 = vand.u32 15, %v413_v17  ;;  %v4915_v24 = vld [vmem:[%s6540_s3 + $0x130] sm:$0xff]   ;;  %v553_v25 = vand.u32 15, %v415_v19  ;;  %v567_v27 = vand.u32 15, %v417_v21  ;;  %v4918_v30 = vld [vmem:[%s6540_s3 + $0x138] sm:$0xff]   ;;  %v3940_v32 = vld [vmem:[%s5122_s17] sm:$0xff]   ;;  %s235_s23 = scalar_lea.vmem %s6542_s5, %s3668_s6 }
  0x14   : > { %4162 = vmatpush3.bf16.msra.mxu0 %v4902_v5  ;;  %4720 = vmatpush3.bf16.msra.mxu1 %v5036_v4  ;;  %v5112_v26 = vld [vmem:[%s6540_s3 + $0x170] sm:$0xff]   ;;  %v5132_v31 = vld [vmem:[%s6540_s3 + $0x178] sm:$0xff]   ;;  %v5138_v33 = vld [vmem:[%s6538_s1] ss:$0 sm:$0xff]  ;;  %v3941_v35 = vunpack.c.l.bf16 %v3940_v32  ;;  %v3942_v36 = vunpack.c.h.bf16 %v3940_v32  ;;  %vm5159_vm6 = vcmp.gt.s32.totalorder %v434_v29, 0 }
  0x15   : > { %4163 = vmatprep.subr.bf16.mxu0 %v4903_v6  ;;  %4713 = vmatprep.subr.bf16.mxu1 %v5048_v7  ;;  %v4917_v28 = vld [vmem:[%s6540_s3 + $0xf0] sm:$0xff]   ;;  %vm5140_vm0 = vcmp.lt.s32.totalorder %v539_v23, 15  ;;  %v4089_v37 = vld [vmem:[%s5122_s17 + $0x38] sm:$0xff]   ;;  %v4090_v38 = vld [vmem:[%s5122_s17 + $0x40] sm:$0xff]   ;;  %vm5148_vm1 = vcmp.lt.s32.totalorder %v553_v25, 15  ;;  %vm5152_vm2 = vcmp.lt.s32.totalorder %v567_v27, 15 }
  0x16   : > { %v4091_v39 = vld [vmem:[%s5122_s17 + $0x48] sm:$0xff]   ;;  %v4920_v42 = vld [vmem:[%s6540_s3 + $0xf8] sm:$0xff]   ;;  %v3969_v43 = vunpack.c.l.bf16 %v4089_v37  ;;  %v3970_v44 = vunpack.c.h.bf16 %v4089_v37  ;;  %v3973_v45 = vunpack.c.l.bf16 %v4090_v38  ;;  %v3974_v46 = vunpack.c.h.bf16 %v4090_v38  ;;  %vm1060_vm5 = vmpackc.low %vm4977_vm4, %vm4977_vm4 }
  0x17   : > { %v310_v48 = vmul.f32 %v3941_v35, %v5138_v33  ;;  %v311_v49 = vmul.f32 %v3942_v36, %v5138_v33  ;;  %v3977_v50 = vunpack.c.l.bf16 %v4091_v39  ;;  %v3978_v51 = vunpack.c.h.bf16 %v4091_v39  ;;  %vm1314_vm7 = vmpackc.low %vm5140_vm0, %vm5140_vm0  ;;  %v5172_v52 = vld [vmem:[%s6539_s2] ss:$0 sm:$0xff]  ;;  %v4097_v35 = vld [vmem:[%s5122_s17 + $0x78] sm:$0xff]  }
  0x18   : > { %4164 = vmatpush3.bf16.msra.mxu0 %v4905_v9  ;;  %4721 = vmatpush3.bf16.msra.mxu1 %v5048_v7  ;;  %v324_v53 = vmul.f32 %v3969_v43, %v5138_v33  ;;  %v325_v54 = vmul.f32 %v3970_v44, %v5138_v33  ;;  %v326_v55 = vmul.f32 %v3973_v45, %v5138_v33  ;;  %v5178_v57 = vsel %vm1060_vm5, 65537, %v6544_v56  ;;  %vm1316_vm8 = vmpackc.low %vm5148_vm1, %vm5148_vm1  ;;  %v4921_v3 = vld [vmem:[%s6540_s3 + $0x40] sm:$0xff]  }
  0x19   : > { %4165 = vmatprep.subr.bf16.mxu0 %v4906_v10  ;;  %4714 = vmatprep.subr.bf16.mxu1 %v5061_v11  ;;  %v349_v58 = vadd.f32 %v5172_v52, %v310_v48  ;;  %v350_v59 = vadd.f32 %v5172_v52, %v311_v49  ;;  %v327_v60 = vmul.f32 %v3974_v46, %v5138_v33  ;;  %vm1318_vm9 = vmpackc.low %vm5152_vm2, %vm5152_vm2  ;;  %v1346_v61 = vsel %vm1314_vm7, 65537, %v6544_v56  ;;  %v4935_v49 = vld [vmem:[%s6540_s3 + $0x78] sm:$0xff]  }
  0x1a   : > { %v328_v62 = vmul.f32 %v3977_v50, %v5138_v33  ;;  %v329_v63 = vmul.f32 %v3978_v51, %v5138_v33  ;;  %v363_v0 = vadd.f32 %v5172_v52, %v324_v53  ;;  %v364_v2 = vadd.f32 %v5172_v52, %v325_v54  ;;  %vm1059_vm10 = vmpackc.low %vm5159_vm6, %vm5159_vm6 }
  0x1b   : > { %v5203_v5 = vpack.c.bf16 %v350_v59, %v349_v58  ;;  %v365_v6 = vadd.f32 %v5172_v52, %v326_v55  ;;  %v366_v8 = vadd.f32 %v5172_v52, %v327_v60  ;;  %v1348_v9 = vsel %vm1316_vm8, 65537, %v6544_v56  ;;  %vm5267_vm14 = vmand %vm6555_vm3, %vm814_vm11  ;;  %v4092_v59 = vld [vmem:[%s5122_s17 + $0x50] sm:$0xff]  }
  0x1c   : > { %4166 = vmatpush3.bf16.msra.mxu0 %v4908_v12  ;;  %4722 = vmatpush3.bf16.msra.mxu1 %v5061_v11  ;;  %v367_v10 = vadd.f32 %v5172_v52, %v328_v62  ;;  %v368_v12 = vadd.f32 %v5172_v52, %v329_v63  ;;  %v3695_v19 = vcombine.low %v5178_v57, %v1348_v9  ;;  %v4001_v43 = vunpack.c.l.bf16 %v4097_v35  ;;  %v4083_v63 = vld [vmem:[%s5122_s17 + $0x8] sm:$0xff]  }
  0x1d   : > { %4167 = vmatprep.subr.bf16.mxu0 %v4909_v14  ;;  %4715 = vmatprep.subr.bf16.mxu1 %v5078_v15  ;;  %v5216_v14 = vpack.c.bf16 %v364_v2, %v363_v0  ;;  %v5225_v17 = vpack.c.bf16 %v366_v8, %v365_v6  ;;  %v816_v41 = vshrl.u32 %v5203_v5, 16  ;;  %v819_v46 = vshll.u32 %v5203_v5, 16  ;;  %v4941_v6 = vld [vmem:[%s6540_s3 + $0xa0] sm:$0xff]  }
  0x1e   : > { %1921 = vmatprep.mubr.bf16.mxu0 %v5203_v5  ;;  %v1426_v29 = vrot.slane %v3695_v19, 7  ;;  %v1091_v47 = vsel %vm1059_vm10, 65537, %v6544_v56  ;;  %v421_v53 = vadd.s32 184, %v5068_v13  ;;  %v4002_v62 = vunpack.c.h.bf16 %v4097_v35 }
  0x1f   : > { %6578 = vst [vmem:[#allocation3_spill] sm:$0xff] %v5216_v14  ;;  %v871_v23 = vshrl.u32 %v5216_v14, 16  ;;  %v879_v25 = vshrl.u32 %v5225_v17, 16  ;;  %v882_v27 = vshll.u32 %v5225_v17, 16  ;;  %v5257_v45 = vrot.slane %v816_v41, 7 }
  0x20   : > { %4168 = vmatpush3.bf16.msra.mxu0 %v4911_v16  ;;  %4723 = vmatpush3.bf16.msra.mxu1 %v5078_v15  ;;  %v1350_v16 = vsel %vm1318_vm9, 65537, %v6544_v56  ;;  %v3671_v50 = vcombine.low %v1091_v47, %v5178_v57  ;;  %v340_v2 = vmul.f32 %v4001_v43, %v5138_v33  ;;  %v3981_v8 = vunpack.c.l.bf16 %v4092_v59 }
  0x21   : > { %4169 = vmatprep.subr.bf16.mxu0 %v4912_v18  ;;  %4716 = vmatprep.subr.bf16.mxu1 %v5097_v20  ;;  %v3694_v18 = vcombine.low %v5178_v57, %v1346_v61  ;;  %v3696_v21 = vcombine.low %v5178_v57, %v1350_v16  ;;  %v5244_v36 = vrot.slane %v871_v23, 7  ;;  %v881_v37 = vrot.slane %v879_v25, 7 }
  0x22   : > { %v821_v58 = vor.u32 %v819_v46, %v5257_v45  ;;  %vm5292_vm0 = vcmp.ne.s16.totalorder %v3671_v50, 0  ;;  %v3982_v9 = vunpack.c.h.bf16 %v4092_v59  ;;  %v3946_v16 = vunpack.c.h.bf16 %v4083_v63 }
  0x23   : > { %v5241_v34 = vrot.slane %v3696_v21, 7  ;;  %v595_v19 = vand.u32 15, %v421_v53  ;;  %v5310_v21 = vmul.f32 %v4002_v62, %v5138_v33  ;;  %v330_v23 = vmul.f32 %v3981_v8, %v5138_v33 }
  0x24   : > { %4170 = vmatpush3.bf16.msra.mxu0 %v4914_v22  ;;  %4724 = vmatpush3.bf16.msra.mxu1 %v5097_v20  ;;  %v5230_v22 = vpack.c.bf16 %v368_v12, %v367_v10  ;;  %v3945_v12 = vunpack.c.l.bf16 %v4083_v63  ;;  %v331_v25 = vmul.f32 %v3982_v9, %v5138_v33  ;;  %v313_v35 = vmul.f32 %v3946_v16, %v5138_v33 }
  0x25   : > { %4171 = vmatprep.subr.bf16.mxu0 %v4915_v24  ;;  %4717 = vmatprep.subr.bf16.mxu1 %v5112_v26  ;;  %v419_v24 = vadd.s32 168, %v5068_v13  ;;  %v1429_v40 = vsel %vm6555_vm3, %v1426_v29, %v5241_v34  ;;  %vm1226_vm4 = vcmp.lt.s32.totalorder %v595_v19, 15  ;;  %v400_v46 = vadd.s32 16, %v5068_v13 }
  0x26   : > { %v890_v32 = vshll.u32 %v5230_v22, 16  ;;  %vm1451_vm13 = vcmp.ne.s16.totalorder %v1429_v40, 0  ;;  %v352_v43 = vadd.f32 %v5172_v52, %v313_v35  ;;  %vm1322_vm5 = vmpackc.low %vm1226_vm4, %vm1226_vm4 }
  0x27   : > { %v581_v51 = vand.u32 15, %v419_v24  ;;  %v5315_v24 = vadd.f32 %v5172_v52, %v340_v2 }
  0x28   : > { %4172 = vmatpush3.bf16.msra.mxu0 %v4917_v28  ;;  %4725 = vmatpush3.bf16.msra.mxu1 %v5112_v26  ;;  %v5237_v28 = vrot.slane %v3694_v18, 7  ;;  %v4093_v18 = vld [vmem:[%s5122_s17 + $0x58] sm:$0xff]  }
  0x29   : > { %4173 = vmatprep.subr.bf16.mxu0 %v4918_v30  ;;  %4718 = vmatprep.subr.bf16.mxu1 %v5132_v31  ;;  %v887_v30 = vshrl.u32 %v5230_v22, 16  ;;  %vm1224_vm1 = vcmp.lt.s32.totalorder %v581_v51, 15  ;;  %v3986_v41 = vunpack.c.h.bf16 %v4093_v18  ;;  %v1354_v51 = vsel %vm1322_vm5, 65537, %v6544_v56 }
  0x2a   : > { %v1427_v38 = vsel %vm6555_vm3, %v5237_v28, %v1426_v29  ;;  %vm1320_vm2 = vmpackc.low %vm1224_vm1, %vm1224_vm1  ;;  %v4094_v29 = vld [vmem:[%s5122_s17 + $0x60] sm:$0xff]   ;;  %v3698_v62 = vcombine.low %v5178_v57, %v1354_v51 }
  0x2b   : > { %v5251_v39 = vrot.slane %v887_v30, 7  ;;  %vm1450_vm12 = vcmp.ne.s16.totalorder %v1427_v38, 0  ;;  %v369_v30 = vadd.f32 %v5172_v52, %v330_v23  ;;  %v370_v38 = vadd.f32 %v5172_v52, %v331_v25  ;;  %v4922_v51 = vld [vmem:[%s6540_s3] sm:$0xff]  }
  0x2c   : > { %4174 = vmatpush3.bf16.msra.mxu0 %v4920_v42  ;;  %4726 = vmatpush3.bf16.msra.mxu1 %v5132_v31  ;;  %v884_v42 = vor.u32 %v882_v27, %v881_v37  ;;  %v312_v27 = vmul.f32 %v3945_v12, %v5138_v33  ;;  %v333_v50 = vmul.f32 %v3986_v41, %v5138_v33  ;;  %v3989_v53 = vunpack.c.l.bf16 %v4094_v29 }
  0x2d   : > { %4567 = vmatprep.subr.bf16.mxu0 %v5023_v1  ;;  %4295 = vmatprep.subr.bf16.mxu1 %v4921_v3  ;;  %v892_v44 = vor.u32 %v890_v32, %v5251_v39  ;;  %v5290_v3 = vsel %vm5267_vm14, 0, %v821_v58  ;;  %v5331_v47 = vpack.c.bf16 %v370_v38, %v369_v30  ;;  %v5346_v9 = vrot.slane %v3698_v62, 7 }
  0x2e   : > { %v5263_v48 = vsel %vm814_vm11, %v5244_v36, %v884_v42  ;;  %v351_v40 = vadd.f32 %v5172_v52, %v312_v27  ;;  %v372_v8 = vadd.f32 %v5172_v52, %v333_v50  ;;  %v3990_v23 = vunpack.c.h.bf16 %v4094_v29 }
  0x2f   : > { %v5274_v54 = vsel %vm814_vm11, %v881_v37, %v892_v44  ;;  %v5277_v55 = vsel %vm1450_vm12, %v5263_v48, 0  ;;  %4113 = vmatmul.mubr.msk.bf16.vlgmr.msra.gmra.mrb[0].mxu0 %vm5292_vm0, %v5290_v3  ;;  %v3985_v37 = vunpack.c.l.bf16 %v4093_v18  ;;  %v895_v63 = vshrl.u32 %v5331_v47, 16 }
  0x30   : > { %v5282_v60 = vsel %vm1451_vm13, %v5274_v54, 0  ;;  %v6543_v61 = vrot.slane %v5277_v55, 1  ;;  %4568 = vmatpush3.bf16.msra.mxu0 %v5023_v1  ;;  %v1352_v1 = vsel %vm1320_vm2, 65537, %v6544_v56  ;;  %v5337_v58 = vpack.c.bf16 %v352_v43, %v351_v40 }
  0x31   : > { %v1549_v0 = vrot.slane %v5282_v60, 1  ;;  %4569 = vmatprep.subr.bf16.mxu0 %v5036_v4  ;;  %v3697_v32 = vcombine.low %v5178_v57, %v1352_v1  ;;  %v332_v44 = vmul.f32 %v3985_v37, %v5138_v33  ;;  %v898_v2 = vshll.u32 %v5331_v47, 16  ;;  %v4084_v37 = vld [vmem:[%s5122_s17 + $0x10] sm:$0xff]  }
  0x32   : > { %1929 = vmatprep.mubr.bf16.mxu0 %v5337_v58  ;;  %v823_v12 = vshrl.u32 %v5337_v58, 16  ;;  %v826_v16 = vshll.u32 %v5337_v58, 16  ;;  %v897_v18 = vrot.slane %v895_v63, 7  ;;  %v334_v25 = vmul.f32 %v3989_v53, %v5138_v33  ;;  %v4923_v63 = vld [vmem:[%s6540_s3 + $0x48] sm:$0xff]  }
  0x33   : > { %v5304_v10 = vsel %vm6554_vm15, %v6543_v61, %v1549_v0  ;;  %v1430_v42 = vrot.slane %v3697_v32, 7  ;;  %v371_v59 = vadd.f32 %v5172_v52, %v332_v44  ;;  %v423_v27 = vadd.s32 200, %v5068_v13 }
  0x34   : > { %4599 = vmatprep.mubr.bf16.mxu1 %v5304_v10  ;;  %4570 = vmatpush3.bf16.msra.mxu0 %v5036_v4  ;;  %v5356_v1 = vrot.slane %v823_v12, 7  ;;  %v900_v30 = vor.u32 %v898_v2, %v897_v18  ;;  %v335_v40 = vmul.f32 %v3990_v23, %v5138_v33  ;;  %v373_v41 = vadd.f32 %v5172_v52, %v334_v25 }
  0x35   : > { %4571 = vmatprep.subr.bf16.mxu0 %v5048_v7  ;;  %v1431_v4 = vsel %vm6555_vm3, %v5241_v34, %v1430_v42  ;;  %v448_v34 = vand.u32 15, %v400_v46  ;;  %v5351_v19 = vpack.c.bf16 %v372_v8, %v371_v59  ;;  %v609_v50 = vand.u32 15, %v423_v27 }
  0x36   : > { %vm1452_vm6 = vcmp.ne.s16.totalorder %v1431_v4, 0  ;;  %v828_v29 = vor.u32 %v826_v16, %v5356_v1  ;;  %v5371_v43 = vsel %vm814_vm11, %v5251_v39, %v900_v30  ;;  %v374_v59 = vadd.f32 %v5172_v52, %v335_v40  ;;  %v4925_v40 = vld [vmem:[%s6540_s3 + $0x50] sm:$0xff]   ;;  %v4965_v4 = vld [vmem:[%s6540_s3 + $0x220] sm:$0xff]  }
  0x37   : > { %vm965_vm7 = vcmp.gt.s32.totalorder %v448_v34, 0  ;;  %v903_v32 = vshrl.u32 %v5351_v19, 16  ;;  %v906_v35 = vshll.u32 %v5351_v19, 16  ;;  %v3949_v62 = vunpack.c.l.bf16 %v4084_v37 }
  0x38   : > { %4572 = vmatpush3.bf16.msra.mxu0 %v5048_v7  ;;  %v1433_v7 = vsel %vm6555_vm3, %v1430_v42, %v5346_v9  ;;  %vm1061_vm9 = vmpackc.low %vm965_vm7, %vm965_vm7  ;;  %v4095_v42 = vld [vmem:[%s5122_s17 + $0x68] sm:$0xff]   ;;  %v5381_v53 = vsel %vm814_vm11, %v5257_v45, %v828_v29  ;;  %vm1228_vm12 = vcmp.lt.s32.totalorder %v609_v50, 15  ;;  %v5395_v45 = vpack.c.bf16 %v374_v59, %v373_v41 }
  0x39   : > { %4573 = vmatprep.subr.bf16.mxu0 %v5061_v11  ;;  %vm1453_vm8 = vcmp.ne.s16.totalorder %v1433_v7, 0  ;;  %v1093_v38 = vsel %vm1061_vm9, 65537, %v6544_v56  ;;  %v905_v44 = vrot.slane %v903_v32, 7  ;;  %vm1324_vm13 = vmpackc.low %vm1228_vm12, %vm1228_vm12  ;;  %v3950_v8 = vunpack.c.h.bf16 %v4084_v37 }
  0x3a   : > { %v3672_v46 = vcombine.low %v1093_v38, %v5178_v57  ;;  %v314_v34 = vmul.f32 %v3949_v62, %v5138_v33  ;;  %v3993_v12 = vunpack.c.l.bf16 %v4095_v42  ;;  %v1356_v23 = vsel %vm1324_vm13, 65537, %v6544_v56 }
  0x3b   : > { %v908_v2 = vor.u32 %v906_v35, %v905_v44  ;;  %v3994_v25 = vunpack.c.h.bf16 %v4095_v42  ;;  %v911_v30 = vshrl.u32 %v5395_v45, 16  ;;  %v914_v32 = vshll.u32 %v5395_v45, 16 }
  0x3c   : > { %4574 = vmatpush3.bf16.msra.mxu0 %v5061_v11  ;;  %v1469_v11 = vsel %vm1452_vm6, %v5371_v43, 0  ;;  %vm5387_vm10 = vcmp.ne.s16.totalorder %v3672_v46, 0  ;;  %v3699_v60 = vcombine.low %v5178_v57, %v1356_v23  ;;  %v315_v35 = vmul.f32 %v3950_v8, %v5138_v33 }
  0x3d   : > { %4575 = vmatprep.subr.bf16.mxu0 %v5078_v15  ;;  %v1551_v39 = vrot.slane %v1469_v11, 1  ;;  %4114 = vmatmul.mubr.msk.bf16.gmra.mrb[4].mxu0 %vm5387_vm10, %v5381_v53  ;;  %v353_v37 = vadd.f32 %v5172_v52, %v314_v34  ;;  %v336_v29 = vmul.f32 %v3993_v12, %v5138_v33  ;;  %v5421_v7 = vrot.slane %v911_v30, 7 }
  0x3e   : > { %v1434_v38 = vrot.slane %v3699_v60, 7  ;;  %v337_v41 = vmul.f32 %v3994_v25, %v5138_v33  ;;  %v425_v42 = vadd.s32 216, %v5068_v13  ;;  %v380_v46 = vadd.f32 %v5172_v52, %v5310_v21  ;;  %v4926_v21 = vld [vmem:[%s6540_s3 + $0x10] sm:$0xff]  }
  0x3f   : > { %v5402_v16 = vsel %vm6554_vm15, %v1549_v0, %v1551_v39  ;;  %v4924_v0 = vld [vmem:[%s6540_s3 + $0x8] sm:$0xff]   ;;  %v375_v11 = vadd.f32 %v5172_v52, %v336_v29  ;;  %v4096_v25 = vld [vmem:[%s5122_s17 + $0x70] sm:$0xff]  }
  0x40   : > { %4576 = vmatpush3.bf16.msra.mxu0 %v5078_v15  ;;  %6585 = vst [vmem:[#allocation4_spill] sm:$0xff] %v5402_v16  ;;  %v5405_v15 = vsel %vm814_vm11, %v897_v18, %v908_v2  ;;  %4600 = vmatmul.mubr.bf16.vlgmr.msra.gmra.mrb[0].mxu1 %v5402_v16  ;;  %v1435_v59 = vsel %vm6555_vm3, %v5346_v9, %v1434_v38  ;;  %v402_v2 = vadd.s32 32, %v5068_v13  ;;  %v4927_v9 = vld [vmem:[%s6540_s3 + $0x58] sm:$0xff]  }
  0x41   : > { %4577 = vmatprep.subr.bf16.mxu0 %v5097_v20  ;;  %v1470_v27 = vsel %vm1453_vm8, %v5405_v15, 0  ;;  %4296 = vmatpush3.bf16.msra.mxu1 %v4922_v51  ;;  %v916_v51 = vor.u32 %v914_v32, %v5421_v7  ;;  %v376_v62 = vadd.f32 %v5172_v52, %v337_v41  ;;  %vm1454_vm1 = vcmp.ne.s16.totalorder %v1435_v59, 0  ;;  %v4929_v41 = vld [vmem:[%s6540_s3 + $0x60] sm:$0xff]  }
  0x42   : > { %v1553_v18 = vrot.slane %v1470_v27, 1  ;;  %4297 = vmatprep.subr.bf16.mxu1 %v4923_v63  ;;  %v623_v63 = vand.u32 15, %v425_v42  ;;  %v5458_v12 = vpack.c.bf16 %v380_v46, %v5315_v24  ;;  %v4928_v24 = vld [vmem:[%s6540_s3 + $0x18] sm:$0xff]  }
  0x43   : > { %v5449_v8 = vsel %vm814_vm11, %v905_v44, %v916_v51  ;;  %v5454_v34 = vpack.c.bf16 %v376_v62, %v375_v11  ;;  %v3998_v62 = vunpack.c.h.bf16 %v4096_v25 }
  0x44   : > { %4578 = vmatpush3.bf16.msra.mxu0 %v5097_v20  ;;  %v5432_v50 = vsel %vm6554_vm15, %v1551_v39, %v1553_v18  ;;  %v354_v20 = vadd.f32 %v5172_v52, %v315_v35  ;;  %vm1230_vm2 = vcmp.lt.s32.totalorder %v623_v63, 15  ;;  %6587 = vst [vmem:[#allocation6_spill] sm:$0xff] %v5458_v12  ;;  %v1471_v23 = vsel %vm1454_vm1, %v5449_v8, 0  ;;  %v4931_v63 = vld [vmem:[%s6540_s3 + $0x68] sm:$0xff]  }
  0x45   : > { %4579 = vmatprep.subr.bf16.mxu0 %v5112_v26  ;;  %6586 = vst [vmem:[#allocation5_spill] sm:$0xff] %v5432_v50  ;;  %4603 = vmatprep.mubr.bf16.mxu1 %v5432_v50  ;;  %vm1326_vm4 = vmpackc.low %vm1230_vm2, %vm1230_vm2  ;;  %v1555_v27 = vrot.slane %v1471_v23, 1  ;;  %v919_v30 = vshrl.u32 %v5454_v34, 16  ;;  %v922_v32 = vshll.u32 %v5454_v34, 16  ;;  %v935_v11 = vshrl.u32 %v5458_v12, 16 }
  0x46   : > { %4298 = vmatpush3.bf16.msra.mxu1 %v4924_v0  ;;  %v5444_v39 = vpack.c.bf16 %v354_v20, %v353_v37  ;;  %v1358_v60 = vsel %vm1326_vm4, 65537, %v6544_v56  ;;  %v3997_v20 = vunpack.c.l.bf16 %v4096_v25 }
  0x47   : > { %4299 = vmatprep.subr.bf16.mxu1 %v4925_v40  ;;  %v3700_v0 = vcombine.low %v5178_v57, %v1358_v60  ;;  %v5476_v29 = vsel %vm6554_vm15, %v1553_v18, %v1555_v27  ;;  %v5478_v40 = vrot.slane %v919_v30, 7  ;;  %v4930_v18 = vld [vmem:[%s6540_s3 + $0x20] sm:$0xff]   ;;  %v5524_v30 = vrot.slane %v935_v11, 7 }
  0x48   : > { %4580 = vmatpush3.bf16.msra.mxu0 %v5112_v26  ;;  %1937 = vmatprep.mubr.bf16.mxu0 %v5444_v39  ;;  %v462_v26 = vand.u32 15, %v402_v2  ;;  %v831_v44 = vshrl.u32 %v5444_v39, 16  ;;  %v834_v37 = vshll.u32 %v5444_v39, 16  ;;  %6588 = vst [vmem:[#allocation7_spill] sm:$0xff] %v5476_v29  ;;  %v427_v60 = vadd.s32 232, %v5068_v13 }
  0x49   : > { %4581 = vmatprep.subr.bf16.mxu0 %v5132_v31  ;;  %4604 = vmatmul.mubr.bf16.gmra.mrb[4].mxu1 %v5476_v29  ;;  %v5484_v42 = vrot.slane %v3700_v0, 7  ;;  %v924_v51 = vor.u32 %v922_v32, %v5478_v40  ;;  %v410_v29 = vadd.s32 96, %v5068_v13 }
  0x4a   : > { %4300 = vmatpush3.bf16.msra.mxu1 %v4926_v21  ;;  %v5471_v35 = vrot.slane %v831_v44, 7  ;;  %vm967_vm5 = vcmp.gt.s32.totalorder %v462_v26, 0  ;;  %v6589_v26 = vmov 0  ;;  %v938_v44 = vshll.u32 %v5458_v12, 16 }
  0x4b   : > { %4301 = vmatprep.subr.bf16.mxu1 %v4927_v9  ;;  %vm1063_vm6 = vmpackc.low %vm967_vm5, %vm967_vm5  ;;  %v1437_v21 = vsel %vm6555_vm3, %v1434_v38, %v5484_v42  ;;  %v4085_v9 = vld [vmem:[%s5122_s17 + $0x18] sm:$0xff]   ;;  %v5506_v23 = vsel %vm814_vm11, %v5421_v7, %v924_v51  ;;  %v339_v7 = vmul.f32 %v3998_v62, %v5138_v33  ;;  %v4944_v38 = vld [vmem:[%s6540_s3 + $0x1c0] sm:$0xff]   ;;  %v637_v11 = vand.u32 15, %v427_v60 }
  0x4c   : > { %4582 = vmatpush3.bf16.msra.mxu0 %v5132_v31  ;;  %v836_v46 = vor.u32 %v834_v37, %v5471_v35  ;;  %v1095_v31 = vsel %vm1063_vm6, 65537, %v6544_v56  ;;  %vm1455_vm7 = vcmp.ne.s16.totalorder %v1437_v21, 0 }
  0x4d   : > { %v3673_v59 = vcombine.low %v1095_v31, %v5178_v57  ;;  %v5514_v25 = vsel %vm1455_vm7, %v5506_v23, 0  ;;  %v378_v37 = vadd.f32 %v5172_v52, %v339_v7  ;;  %v429_v31 = vadd.s32 248, %v5068_v13  ;;  %4431 = vmatprep.subr.bf16.mxu0 %v4944_v38 }
  0x4e   : > { %4302 = vmatpush3.bf16.msra.mxu1 %v4928_v24  ;;  %v5501_v2 = vsel %vm814_vm11, %v5356_v1, %v836_v46  ;;  %v338_v1 = vmul.f32 %v3997_v20, %v5138_v33  ;;  %v1557_v32 = vrot.slane %v5514_v25, 1  ;;  %v3953_v24 = vunpack.c.l.bf16 %v4085_v9 }
  0x4f   : > { %vm5508_vm8 = vcmp.ne.s16.totalorder %v3673_v59, 0  ;;  %4303 = vmatprep.subr.bf16.mxu1 %v4929_v41  ;;  %v4932_v41 = vld [vmem:[%s6540_s3 + $0x28] sm:$0xff]   ;;  %v3954_v46 = vunpack.c.h.bf16 %v4085_v9  ;;  %v651_v21 = vand.u32 15, %v429_v31  ;;  %v4086_v9 = vld [vmem:[%s5122_s17 + $0x20] sm:$0xff]   ;;  %vm1232_vm9 = vcmp.lt.s32.totalorder %v637_v11, 15 }
  0x50   : > { %v6590_v26 = vsel %vm5508_vm8, 4294967295, %v6589_v26  ;;  %4115 = vmatmul.mubr.msk.bf16.gmra.mrb[8].mxu0 %vm5508_vm8, %v5501_v2  ;;  %v377_v0 = vadd.f32 %v5172_v52, %v338_v1  ;;  %v5537_v20 = vsel %vm6554_vm15, %v1555_v27, %v1557_v32  ;;  %v316_v51 = vmul.f32 %v3953_v24, %v5138_v33  ;;  %vm1328_vm12 = vmpackc.low %vm1232_vm9, %vm1232_vm9 }
  0x51   : > { %6591 = vst [vmem:[#allocation8_spill] sm:$0xff] %v5537_v20  ;;  %4607 = vmatprep.mubr.bf16.mxu1 %v5537_v20  ;;  %v317_v62 = vmul.f32 %v3954_v46, %v5138_v33  ;;  %v940_v1 = vor.u32 %v938_v44, %v5524_v30  ;;  %v962_v7 = vsel %vm5267_vm14, %v5524_v30, 0  ;;  %v4934_v44 = vld [vmem:[%s6540_s3 + $0x30] sm:$0xff]   ;;  %vm1234_vm13 = vcmp.lt.s32.totalorder %v651_v21, 15 }
  0x52   : > { %4304 = vmatpush3.bf16.msra.mxu1 %v4930_v18  ;;  %v4933_v18 = vld [vmem:[%s6540_s3 + $0x70] sm:$0xff]   ;;  %v5544_v59 = vpack.c.bf16 %v378_v37, %v377_v0  ;;  %v355_v27 = vadd.f32 %v5172_v52, %v316_v51  ;;  %v1360_v0 = vsel %vm1328_vm12, 65537, %v6544_v56  ;;  %v3957_v30 = vunpack.c.l.bf16 %v4086_v9  ;;  %vm1330_vm14 = vmpackc.low %vm1234_vm13, %vm1234_vm13 }
  0x53   : > { %4305 = vmatprep.subr.bf16.mxu1 %v4931_v63  ;;  %v404_v63 = vadd.s32 48, %v5068_v13  ;;  %v356_v24 = vadd.f32 %v5172_v52, %v317_v62  ;;  %v3701_v31 = vcombine.low %v5178_v57, %v1360_v0  ;;  %v3958_v11 = vunpack.c.h.bf16 %v4086_v9  ;;  %v4936_v9 = vld [vmem:[%s6540_s3 + $0x38] sm:$0xff]  }
  0x54   : > { %v927_v38 = vshrl.u32 %v5544_v59, 16  ;;  %v930_v60 = vshll.u32 %v5544_v59, 16  ;;  %v1362_v51 = vsel %vm1330_vm14, 65537, %v6544_v56  ;;  %v318_v62 = vmul.f32 %v3957_v30, %v5138_v33 }
  0x55   : > { %v476_v37 = vand.u32 15, %v404_v63  ;;  %v406_v21 = vadd.s32 64, %v5068_v13  ;;  %v1438_v63 = vrot.slane %v3701_v31, 7  ;;  %v319_v0 = vmul.f32 %v3958_v11, %v5138_v33 }
  0x56   : > { %4306 = vmatpush3.bf16.msra.mxu1 %v4932_v41  ;;  %v929_v46 = vrot.slane %v927_v38, 7  ;;  %v5565_v41 = vpack.c.bf16 %v356_v24, %v355_v27  ;;  %v3702_v38 = vcombine.low %v5178_v57, %v1362_v51 }
  0x57   : > { %4307 = vmatprep.subr.bf16.mxu1 %v4933_v18  ;;  %vm969_vm1 = vcmp.gt.s32.totalorder %v476_v37, 0  ;;  %v1439_v37 = vsel %vm6555_vm3, %v5484_v42, %v1438_v63  ;;  %v358_v11 = vadd.f32 %v5172_v52, %v319_v0  ;;  %v490_v0 = vand.u32 15, %v406_v21 }
  0x58   : > { %v932_v18 = vor.u32 %v930_v60, %v929_v46  ;;  %1945 = vmatprep.mubr.bf16.mxu0 %v5565_v41  ;;  %v5572_v61 = vsel %vm814_vm11, %v929_v46, %v940_v1  ;;  %vm1065_vm2 = vmpackc.low %vm969_vm1, %vm969_vm1  ;;  %v839_v27 = vshrl.u32 %v5565_v41, 16  ;;  %v842_v24 = vshll.u32 %v5565_v41, 16  ;;  %v5585_v1 = vld [vmem:[%s6540_s3 + $0x80] sm:$0xff]  }
  0x59   : > { %v1097_v60 = vsel %vm1065_vm2, 65537, %v6544_v56  ;;  %v1440_v30 = vrot.slane %v3702_v38, 7  ;;  %vm1456_vm4 = vcmp.ne.s16.totalorder %v1439_v37, 0  ;;  %v6592_v38 = vmov 0  ;;  %v4088_v37 = vld [vmem:[%s5122_s17 + $0x30] sm:$0xff]  }
  0x5a   : > { %4308 = vmatpush3.bf16.msra.mxu1 %v4934_v44  ;;  %v5589_v44 = vsel %vm814_vm11, %v5478_v40, %v932_v18  ;;  %v3674_v46 = vcombine.low %v1097_v60, %v5178_v57  ;;  %v841_v31 = vrot.slane %v839_v27, 7  ;;  %v4087_v40 = vld [vmem:[%s5122_s17 + $0x28] sm:$0xff]   ;;  %vm971_vm9 = vcmp.gt.s32.totalorder %v490_v0, 0 }
  0x5b   : > { %4309 = vmatprep.subr.bf16.mxu1 %v4935_v49  ;;  %v357_v49 = vadd.f32 %v5172_v52, %v318_v62  ;;  %v1473_v51 = vsel %vm1456_vm4, %v5589_v44, 0  ;;  %v1441_v56 = vsel %vm6555_vm3, %v1438_v63, %v1440_v30  ;;  %vm1458_vm5 = vcmp.ne.s16.totalorder %v1440_v30, 0  ;;  %vm1067_vm12 = vmpackc.low %vm971_vm9, %vm971_vm9 }
  0x5c   : > { %v1559_v18 = vrot.slane %v1473_v51, 1  ;;  %vm1457_vm6 = vcmp.ne.s16.totalorder %v1441_v56, 0  ;;  %v844_v42 = vor.u32 %v842_v24, %v841_v31  ;;  %vm5599_vm7 = vcmp.ne.s16.totalorder %v3674_v46, 0 }
  0x5d   : > { %v6593_v38 = vsel %vm5599_vm7, 4294967295, %v6592_v38  ;;  %v1474_v62 = vsel %vm1457_vm6, %v5572_v61, 0  ;;  %v1475_v27 = vsel %vm1458_vm5, %v962_v7, 0  ;;  %v5605_v60 = vpack.c.bf16 %v358_v11, %v357_v49 }
  0x5e   : > { %4310 = vmatpush3.bf16.msra.mxu1 %v4936_v9  ;;  %v5610_v63 = vsel %vm6554_vm15, %v1557_v32, %v1559_v18  ;;  %v1561_v9 = vrot.slane %v1474_v62, 1  ;;  %v5614_v56 = vsel %vm814_vm11, %v5471_v35, %v844_v42  ;;  %v3961_v24 = vunpack.c.l.bf16 %v4087_v40 }
  0x5f   : > { %4615 = vmatprep.subr.bf16.mxu1 %v5585_v1  ;;  %6594 = vst [vmem:[#allocation9_spill] sm:$0xff] %v5610_v63  ;;  %4608 = vmatmul.mubr.bf16.gmra.mrb[8].mxu1 %v5610_v63  ;;  %v847_v7 = vshrl.u32 %v5605_v60, 16  ;;  %v850_v25 = vshll.u32 %v5605_v60, 16  ;;  %v3962_v32 = vunpack.c.h.bf16 %v4087_v40  ;;  %v1563_v30 = vrot.slane %v1475_v27, 1 }
  0x60   : > { %4116 = vmatmul.mubr.msk.bf16.gmra.mrb[12].mxu0 %vm5599_vm7, %v5614_v56  ;;  %v5624_v21 = vsel %vm6554_vm15, %v1559_v18, %v1561_v9  ;;  %v320_v35 = vmul.f32 %v3961_v24, %v5138_v33  ;;  %v408_v46 = vadd.s32 80, %v5068_v13  ;;  %v6596_v11 = vmov 0  }
  0x61   : > { %6595 = vst [vmem:[#allocation10_spill] sm:$0xff] %v5624_v21  ;;  %1953 = vmatprep.mubr.bf16.mxu0 %v5605_v60  ;;  %4611 = vmatprep.mubr.bf16.mxu1 %v5624_v21  ;;  %v849_v49 = vrot.slane %v847_v7, 7  ;;  %v1099_v51 = vsel %vm1067_vm12, 65537, %v6596_v11  ;;  %v321_v42 = vmul.f32 %v3962_v32, %v5138_v33  ;;  %v3965_v62 = vunpack.c.l.bf16 %v4088_v37 }
  0x62   : > { %v3675_v40 = vcombine.low %v1099_v51, %v5178_v57  ;;  %v359_v18 = vadd.f32 %v5172_v52, %v320_v35  ;;  %v504_v27 = vand.u32 15, %v408_v46  ;;  %v3966_v0 = vunpack.c.h.bf16 %v4088_v37 }
  0x63   : > { %v852_v63 = vor.u32 %v850_v25, %v849_v49  ;;  %v360_v20 = vadd.f32 %v5172_v52, %v321_v42  ;;  %v322_v24 = vmul.f32 %v3965_v62, %v5138_v33  ;;  %v5638_v7 = vsel %vm6554_vm15, %v1561_v9, %v1563_v30 }
  0x64   : > { %6597 = vst [vmem:[#allocation11_spill] sm:$0xff] %v5638_v7  ;;  %vm5640_vm13 = vcmp.ne.s16.totalorder %v3675_v40, 0  ;;  %v6598_v21 = vmov 0  ;;  %vm973_vm14 = vcmp.gt.s32.totalorder %v504_v27, 0  ;;  %v323_v32 = vmul.f32 %v3966_v0, %v5138_v33 }
  0x65   : > { %v6599_v21 = vsel %vm5640_vm13, 4294967295, %v6598_v21  ;;  %v5646_v35 = vsel %vm814_vm11, %v841_v31, %v852_v63  ;;  %v5648_v37 = vpack.c.bf16 %v360_v20, %v359_v18  ;;  %vm1069_vm1 = vmpackc.low %vm973_vm14, %vm973_vm14  ;;  %v361_v25 = vadd.f32 %v5172_v52, %v322_v24 }
  0x66   : > { %v518_v46 = vand.u32 15, %v410_v29  ;;  %v1101_v51 = vsel %vm1069_vm1, 65537, %v6596_v11  ;;  %v362_v9 = vadd.f32 %v5172_v52, %v323_v32  ;;  %v412_v29 = vadd.s32 112, %v5068_v13 }
  0x67   : > { %4612 = vmatmul.mubr.bf16.gmra.mrb[12].mxu1 %v5638_v7  ;;  %v855_v33 = vshrl.u32 %v5648_v37, 16  ;;  %v858_v31 = vshll.u32 %v5648_v37, 16  ;;  %v3676_v52 = vcombine.low %v1101_v51, %v5178_v57  ;;  %v6602_v18 = vmov 0 }
  0x68   : > { %4117 = vmatmul.mubr.msk.bf16.gmra.mrb[16].mxu0 %vm5640_vm13, %v5646_v35  ;;  %vm5659_vm2 = vcmp.gt.s32.totalorder %v518_v46, 0  ;;  %2387 = vmatprep.mubr.bf16.mxu1 %v6596_v11  ;;  %v5667_v63 = vpack.c.bf16 %v362_v9, %v361_v25  ;;  %v532_v40 = vand.u32 15, %v412_v29  ;;  %v4938_v25 = vld [vmem:[%s6540_s3 + $0x88] sm:$0xff]   ;;  %v414_v51 = vadd.s32 128, %v5068_v13 }
  0x69   : > { %1961 = vmatprep.mubr.bf16.mxu0 %v5648_v37  ;;  %v857_v30 = vrot.slane %v855_v33, 7  ;;  %vm1071_vm4 = vmpackc.low %vm5659_vm2, %vm5659_vm2  ;;  %vm5673_vm5 = vcmp.ne.s16.totalorder %v3676_v52, 0  ;;  %v4939_v33 = vld [vmem:[%s6540_s3 + $0x90] sm:$0xff]   ;;  %v4940_v52 = vld [vmem:[%s6540_s3 + $0x98] sm:$0xff]  }
  0x6a   : > { %v863_v42 = vshrl.u32 %v5667_v63, 16  ;;  %v6603_v18 = vsel %vm5673_vm5, 4294967295, %v6602_v18  ;;  %v866_v0 = vshll.u32 %v5667_v63, 16  ;;  %v1103_v32 = vsel %vm1071_vm4, 65537, %v6596_v11 }
  0x6b   : > { %v860_v62 = vor.u32 %v858_v31, %v857_v30  ;;  %vm5689_vm6 = vcmp.gt.s32.totalorder %v532_v40, 0  ;;  %v3677_v9 = vcombine.low %v1103_v32, %v5178_v57  ;;  %v546_v31 = vand.u32 15, %v414_v51  ;;  %v4943_v51 = vld [vmem:[%s6540_s3 + $0xb0] sm:$0xff]  }
  0x6c   : > { %v865_v27 = vrot.slane %v863_v42, 7  ;;  %vm1073_vm9 = vmpackc.low %vm5689_vm6, %vm5689_vm6  ;;  %v6609_v32 = vmov 0 }
  0x6d   : > { %v5679_v24 = vsel %vm814_vm11, %v849_v49, %v860_v62  ;;  %vm5707_vm12 = vcmp.ne.s16.totalorder %v3677_v9, 0  ;;  %v1105_v29 = vsel %vm1073_vm9, 65537, %v6596_v11  ;;  %vm979_vm14 = vcmp.gt.s32.totalorder %v546_v31, 0  ;;  %v4952_v31 = vld [vmem:[%s6540_s3 + $0xb8] sm:$0xff]  }
  0x6e   : > { %v868_v49 = vor.u32 %v866_v0, %v865_v27  ;;  %v3678_v62 = vcombine.low %v1105_v29, %v5178_v57  ;;  %vm1075_vm1 = vmpackc.low %vm979_vm14, %vm979_vm14 }
  0x6f   : > { %2388 = vmatmul.mubr.bf16.vlgmr.msra.gmra.mrb[16].mxu1 %v6596_v11 }
  0x70   : > { %4118 = vmatmul.mubr.msk.bf16.gmra.mrb[20].mxu0 %vm5673_vm5, %v5679_v24  ;;  %4616 = vmatpush3.bf16.msra.mxu1 %v5585_v1  ;;  %v5705_v20 = vsel %vm814_vm11, %v857_v30, %v868_v49  ;;  %v874_v1 = vshll.u32 %v5216_v14, 16  ;;  %v416_v30 = vadd.s32 144, %v5068_v13 }
  0x71   : > { %2395 = vmatprep.mubr.bf16.mxu1 %v5203_v5  ;;  %1969 = vmatprep.mubr.bf16.mxu0 %v5667_v63  ;;  %v6606_v5 = vmov 0 }
  0x72   : > { %4617 = vmatprep.subr.bf16.mxu1 %v4938_v25  ;;  %v6607_v5 = vsel %vm5707_vm12, 4294967295, %v6606_v5  ;;  %v876_v42 = vor.u32 %v874_v1, %v5244_v36  ;;  %v560_v40 = vand.u32 15, %v416_v30  ;;  %v4942_v36 = vld [vmem:[%s6540_s3 + $0xa8] sm:$0xff]   ;;  %v420_v1 = vadd.s32 176, %v5068_v13 }
  0x73   : > { %6608 = vst [vmem:[#allocation12_spill] sm:$0xff] %v6607_v5 }
  0x74   : > { %4618 = vmatpush3.bf16.msra.mxu1 %v4938_v25  ;;  %v5731_v0 = vsel %vm814_vm11, %v865_v27, %v876_v42  ;;  %v1107_v25 = vsel %vm1075_vm1, 65537, %v6596_v11  ;;  %vm981_vm11 = vcmp.gt.s32.totalorder %v560_v40, 0  ;;  %v418_v27 = vadd.s32 160, %v5068_v13 }
  0x75   : > { %4619 = vmatprep.subr.bf16.mxu1 %v4939_v33  ;;  %v3679_v46 = vcombine.low %v1107_v25, %v5178_v57  ;;  %vm1077_vm2 = vmpackc.low %vm981_vm11, %vm981_vm11  ;;  %v588_v30 = vand.u32 15, %v420_v1 }
  0x76   : > { %v574_v49 = vand.u32 15, %v418_v27  ;;  %v399_v27 = vadd.s32 8, %v5068_v13 }
  0x77   : > { %4129 = vmatmul.mubr.msk.bf16.gmra.mrb[20].mxu1 %vm5292_vm0, %v5290_v3  ;;  %vm5733_vm0 = vcmp.ne.s16.totalorder %v3678_v62, 0  ;;  %vm5754_vm4 = vcmp.ne.s16.totalorder %v3679_v46, 0  ;;  %vm985_vm1 = vcmp.gt.s32.totalorder %v588_v30, 0 }
  0x78   : > { %4119 = vmatmul.mubr.msk.bf16.gmra.mrb[24].mxu0 %vm5707_vm12, %v5705_v20  ;;  %2403 = vmatprep.mubr.bf16.mxu1 %v5337_v58  ;;  %v6610_v32 = vsel %vm5733_vm0, 4294967295, %v6609_v32  ;;  %vm983_vm6 = vcmp.gt.s32.totalorder %v574_v49, 0  ;;  %vm1081_vm11 = vmpackc.low %vm985_vm1, %vm985_vm1  ;;  %v424_v49 = vadd.s32 208, %v5068_v13 }
  0x79   : > { %1977 = vmatprep.mubr.bf16.mxu0 %v5216_v14  ;;  %4620 = vmatpush3.bf16.msra.mxu1 %v4939_v33  ;;  %v1109_v33 = vsel %vm1077_vm2, 65537, %v6596_v11  ;;  %vm1079_vm9 = vmpackc.low %vm983_vm6, %vm983_vm6  ;;  %v1113_v46 = vsel %vm1081_vm11, 65537, %v6596_v11 }
  0x7a   : > { %4621 = vmatprep.subr.bf16.mxu1 %v4940_v52  ;;  %v3680_v29 = vcombine.low %v1109_v33, %v5178_v57  ;;  %v1111_v62 = vsel %vm1079_vm9, 65537, %v6596_v11  ;;  %v3682_v33 = vcombine.low %v1113_v46, %v5178_v57  ;;  %v426_v46 = vadd.s32 224, %v5068_v13 }
  0x7b   : > { %v3681_v40 = vcombine.low %v1111_v62, %v5178_v57 }
  0x7c   : > { %vm5777_vm14 = vcmp.ne.s16.totalorder %v3680_v29, 0  ;;  %v616_v29 = vand.u32 15, %v424_v49  ;;  %vm5810_vm1 = vcmp.ne.s16.totalorder %v3682_v33, 0  ;;  %v405_v49 = vadd.s32 56, %v5068_v13 }
  0x7d   : > { %4622 = vmatpush3.bf16.msra.mxu1 %v4940_v52  ;;  %v5775_v52 = vld [vmem:[%s6540_s3 + $0x200] sm:$0xff]   ;;  %vm5793_vm2 = vcmp.ne.s16.totalorder %v3681_v40, 0  ;;  %v403_v40 = vadd.s32 40, %v5068_v13 }
  0x7e   : > { %4623 = vmatprep.subr.bf16.mxu1 %v4941_v6  ;;  %v483_v62 = vand.u32 15, %v405_v49 }
  0x7f   : > { %4130 = vmatmul.mubr.msk.bf16.gmra.mrb[24].mxu1 %vm5387_vm10, %v5381_v53  ;;  %v469_v33 = vand.u32 15, %v403_v40  ;;  %v407_v40 = vadd.s32 72, %v5068_v13 }
  0x80   : > { %4120 = vmatmul.mubr.msk.bf16.gmra.mrb[28].mxu0 %vm5733_vm0, %v5731_v0  ;;  %2411 = vmatprep.mubr.bf16.mxu1 %v5444_v39 }
  0x81   : > { %1985 = vmatprep.mubr.bf16.mxu0 %v5225_v17  ;;  %4624 = vmatpush3.bf16.msra.mxu1 %v4941_v6  ;;  %v422_v6 = vadd.s32 192, %v5068_v13 }
  0x82   : > { %4625 = vmatprep.subr.bf16.mxu1 %v4942_v36 }
  0x83   : > { %v602_v25 = vand.u32 15, %v422_v6 }
  0x85   : > { %4626 = vmatpush3.bf16.msra.mxu1 %v4942_v36  ;;  %vm987_vm6 = vcmp.gt.s32.totalorder %v602_v25, 0 }
  0x86   : > { %4627 = vmatprep.subr.bf16.mxu1 %v4943_v51  ;;  %vm1083_vm9 = vmpackc.low %vm987_vm6, %vm987_vm6  ;;  %vm5830_vm6 = vcmp.gt.s32.totalorder %v616_v29, 0 }
  0x87   : > { %4131 = vmatmul.mubr.msk.bf16.gmra.mrb[28].mxu1 %vm5508_vm8, %v5501_v2  ;;  %v1115_v6 = vsel %vm1083_vm9, 65537, %v6596_v11 }
  0x88   : > { %4121 = vmatmul.mubr.msk.bf16.gmra.mrb[32].mxu0 %vm5754_vm4, %v5263_v48  ;;  %2419 = vmatprep.mubr.bf16.mxu1 %v5565_v41 }
  0x89   : > { %1993 = vmatprep.mubr.bf16.mxu0 %v5230_v22  ;;  %4628 = vmatpush3.bf16.msra.mxu1 %v4943_v51  ;;  %v401_v51 = vadd.s32 24, %v5068_v13 }
  0x8a   : > { %4629 = vmatprep.subr.bf16.mxu1 %v4952_v31 }
  0x8b   : > { %v455_v1 = vand.u32 15, %v401_v51  ;;  %v3683_v51 = vcombine.low %v1115_v6, %v5178_v57 }
  0x8d   : > { %4630 = vmatpush3.bf16.msra.mxu1 %v4952_v31  ;;  %v441_v31 = vand.u32 15, %v399_v27  ;;  %vm5820_vm15 = vcmp.lt.s32.totalorder %v455_v1, 15 }
  0x8e   : > { %4663 = vmatprep.subr.bf16.mxu1 %v5775_v52  ;;  %vm1302_vm3 = vmpackc.low %vm5820_vm15, %vm5820_vm15 }
  0x8f   : > { %4132 = vmatmul.mubr.msk.bf16.gmra.mrb[32].mxu1 %vm5599_vm7, %v5614_v56  ;;  %vm5814_vm11 = vcmp.lt.s32.totalorder %v441_v31, 15  ;;  %v630_v31 = vand.u32 15, %v426_v46  ;;  %v1334_v6 = vsel %vm1302_vm3, 65537, %v6596_v11  ;;  %vm1210_vm3 = vcmp.lt.s32.totalorder %v483_v62, 15 }
  0x90   : > { %4122 = vmatmul.mubr.msk.bf16.gmra.mrb[36].mxu0 %vm5777_vm14, %v5274_v54  ;;  %2427 = vmatprep.mubr.bf16.mxu1 %v5605_v60  ;;  %vm1300_vm9 = vmpackc.low %vm5814_vm11, %vm5814_vm11  ;;  %vm5849_vm11 = vcmp.ne.s16.totalorder %v3683_v51, 0  ;;  %v428_v51 = vadd.s32 240, %v5068_v13  ;;  %v3688_v49 = vcombine.low %v5178_v57, %v1334_v6 }
  0x91   : > { %2001 = vmatprep.mubr.bf16.mxu0 %v5331_v47  ;;  %v1332_v1 = vsel %vm1300_vm9, 65537, %v6596_v11  ;;  %vm5867_vm15 = vcmp.gt.s32.totalorder %v630_v31, 0  ;;  %v497_v31 = vand.u32 15, %v407_v40  ;;  %vm1306_vm9 = vmpackc.low %vm1210_vm3, %vm1210_vm3  ;;  %v411_v40 = vadd.s32 104, %v5068_v13 }
  0x92   : > { %v3687_v27 = vcombine.low %v5178_v57, %v1332_v1  ;;  %v409_v1 = vadd.s32 88, %v5068_v13  ;;  %v644_v6 = vand.u32 15, %v428_v51  ;;  %v1412_v16 = vrot.slane %v3688_v49, 7 }
  0x93   : > { %v1338_v5 = vsel %vm1306_vm9, 65537, %v6596_v11  ;;  %vm6637_vm3 = vcmask 1040384  }
  0x94   : > { %v1411_v50 = vrot.slane %v3687_v27, 7  ;;  %v511_v62 = vand.u32 15, %v409_v1  ;;  %v525_v1 = vand.u32 15, %v411_v40 }
  0x97   : > { %4133 = vmatmul.mubr.msk.bf16.gmra.mrb[36].mxu1 %vm5640_vm13, %v5646_v35  ;;  %vm5855_vm13 = vcmp.lt.s32.totalorder %v469_v33, 15 }
  0x98   : > { %4123 = vmatmul.mubr.msk.bf16.gmra.mrb[40].mxu0 %vm5793_vm2, %v5371_v43  ;;  %2435 = vmatprep.mubr.bf16.mxu1 %v5648_v37 }
  0x99   : > { %2009 = vmatprep.mubr.bf16.mxu0 %v5351_v19 }
  0x9f   : > { %4134 = vmatmul.mubr.msk.bf16.gmra.mrb[40].mxu1 %vm5673_vm5, %v5679_v24  ;;  %vm1085_vm5 = vmpackc.low %vm5830_vm6, %vm5830_vm6 }
  0xa0   : > { %4124 = vmatmul.mubr.msk.bf16.gmra.mrb[44].mxu0 %vm5810_vm1, %v5405_v15  ;;  %2443 = vmatprep.mubr.bf16.mxu1 %v5667_v63  ;;  %v1117_v7 = vsel %vm1085_vm5, 65537, %v6596_v11  ;;  %vm1304_vm5 = vmpackc.low %vm5855_vm13, %vm5855_vm13  ;;  %vm5890_vm13 = vcmp.lt.s32.totalorder %v497_v31, 15 }
  0xa1   : > { %2017 = vmatprep.mubr.bf16.mxu0 %v5395_v45  ;;  %v3684_v33 = vcombine.low %v1117_v7, %v5178_v57  ;;  %vm1087_vm6 = vmpackc.low %vm5867_vm15, %vm5867_vm15  ;;  %vm5902_vm15 = vcmp.gt.s32.totalorder %v644_v6, 0 }
  0xa2   : > { %v1119_v25 = vsel %vm1087_vm6, 65537, %v6596_v11  ;;  %vm1308_vm6 = vmpackc.low %vm5890_vm13, %vm5890_vm13  ;;  %vm5933_vm13 = vcmp.lt.s32.totalorder %v525_v1, 15 }
  0xa3   : > { %v3685_v13 = vcombine.low %v1119_v25, %v5178_v57  ;;  %vm1089_vm9 = vmpackc.low %vm5902_vm15, %vm5902_vm15  ;;  %vm6644_vm15 = vcmask 1040384  }
  0xa5   : > { %vm5924_vm8 = vcmp.ne.s16.totalorder %v3685_v13, 0 }
  0xa7   : > { %4135 = vmatmul.mubr.msk.bf16.gmra.mrb[44].mxu1 %vm5707_vm12, %v5705_v20  ;;  %vm5884_vm12 = vcmp.ne.s16.totalorder %v3684_v33, 0  ;;  %v3690_v33 = vcombine.low %v5178_v57, %v1338_v5  ;;  %v1340_v5 = vsel %vm1308_vm6, 65537, %v6596_v11 }
  0xa8   : > { %4125 = vmatmul.mubr.msk.bf16.gmra.mrb[48].mxu0 %vm5849_vm11, %v5449_v8  ;;  %2451 = vmatprep.mubr.bf16.mxu1 %v5216_v14  ;;  %v1336_v14 = vsel %vm1304_vm5, 65537, %v6596_v11  ;;  %vm5910_vm5 = vcmp.lt.s32.totalorder %v511_v62, 15  ;;  %v1121_v62 = vsel %vm1089_vm9, 65537, %v6596_v11 }
  0xa9   : > { %2025 = vmatprep.mubr.bf16.mxu0 %v5454_v34  ;;  %v3689_v27 = vcombine.low %v5178_v57, %v1336_v14  ;;  %v1413_v14 = vsel %vm6637_vm3, %v1411_v50, %v1412_v16  ;;  %vm1310_vm3 = vmpackc.low %vm5910_vm5, %vm5910_vm5  ;;  %v1416_v25 = vrot.slane %v3690_v33, 7  ;;  %v3686_v13 = vcombine.low %v1121_v62, %v5178_v57 }
  0xaa   : > { %vm1443_vm7 = vcmp.ne.s16.totalorder %v1413_v14, 0 }
  0xab   : > { %v1414_v31 = vrot.slane %v3689_v27, 7  ;;  %v1460_v40 = vsel %vm1443_vm7, %v5381_v53, 0  ;;  %vm6645_vm7 = vmmov %vm6644_vm15  ;;  %vm5953_vm6 = vcmp.ne.s16.totalorder %v3686_v13, 0 }
  0xac   : > { %v1533_v49 = vrot.slane %v1460_v40, 1 }
  0xad   : > { %v1415_v51 = vsel %vm6644_vm15, %v1412_v16, %v1414_v31  ;;  %v1417_v16 = vsel %vm6645_vm7, %v1414_v31, %v1416_v25  ;;  %vm6650_vm15 = vmmov %vm6645_vm7 }
  0xae   : > { %vm1444_vm5 = vcmp.ne.s16.totalorder %v1415_v51, 0  ;;  %vm1445_vm9 = vcmp.ne.s16.totalorder %v1417_v16, 0 }
  0xaf   : > { %4136 = vmatmul.mubr.msk.bf16.gmra.mrb[48].mxu1 %vm5733_vm0, %v5731_v0  ;;  %vm1442_vm0 = vcmp.ne.s16.totalorder %v1411_v50, 0  ;;  %v1342_v50 = vsel %vm1310_vm3, 65537, %v6596_v11  ;;  %v1461_v62 = vsel %vm1444_vm5, %v5501_v2, 0  ;;  %vm6648_vm3 = vcmask 1046528  }
  0xb0   : > { %4126 = vmatmul.mubr.msk.bf16.gmra.mrb[52].mxu0 %vm5884_vm12, %v5506_v23  ;;  %2459 = vmatprep.mubr.bf16.mxu1 %v5225_v17  ;;  %v1459_v46 = vsel %vm1442_vm0, %v5290_v3, 0  ;;  %v3691_v3 = vcombine.low %v5178_v57, %v1340_v5  ;;  %v3692_v33 = vcombine.low %v5178_v57, %v1342_v50  ;;  %vm1312_vm0 = vmpackc.low %vm5933_vm13, %vm5933_vm13  ;;  %v1462_v40 = vsel %vm1445_vm9, %v5614_v56, 0 }
  0xb1   : > { %2033 = vmatprep.mubr.bf16.mxu0 %v5544_v59  ;;  %v1532_v14 = vrot.slane %v1459_v46, 1  ;;  %vm6649_vm13 = vmmov %vm6645_vm7  ;;  %v1535_v51 = vrot.slane %v1461_v62, 1  ;;  %v1537_v13 = vrot.slane %v1462_v40, 1  ;;  %v4947_v62 = vld [vmem:[%s6540_s3 + $0x188] sm:$0xff]  }
  0xb2   : > { %v1418_v1 = vrot.slane %v3691_v3, 7  ;;  %v1420_v31 = vrot.slane %v3692_v33, 7  ;;  %v4945_v33 = vld [vmem:[%s6540_s3 + $0x180] sm:$0xff]  }
  0xb3   : > { %v5960_v46 = vsel %vm6648_vm3, %v1532_v14, %v1533_v49 }
  0xb4   : > { %v1419_v50 = vsel %vm6649_vm13, %v1416_v25, %v1418_v1  ;;  %v1421_v3 = vsel %vm6650_vm15, %v1418_v1, %v1420_v31 }
  0xb5   : > { %vm1446_vm7 = vcmp.ne.s16.totalorder %v1419_v50, 0  ;;  %vm1447_vm5 = vcmp.ne.s16.totalorder %v1421_v3, 0  ;;  %v4948_v50 = vld [vmem:[%s6540_s3 + $0x1d0] sm:$0xff]  }
  0xb6   : > { %v4949_v3 = vld [vmem:[%s6540_s3 + $0x190] sm:$0xff]  }
  0xb7   : > { %4137 = vmatmul.mubr.msk.bf16.gmra.mrb[52].mxu1 %vm5754_vm4, %v5263_v48 }
  0xb8   : > { %4127 = vmatmul.mubr.msk.bf16.gmra.mrb[56].mxu0 %vm5924_vm8, %v5589_v44  ;;  %2467 = vmatprep.mubr.bf16.mxu1 %v5230_v22 }
  0xb9   : > { %2041 = vmatprep.mubr.bf16.mxu0 %v5458_v12  ;;  %v1344_v12 = vsel %vm1312_vm0, 65537, %v6596_v11  ;;  %vm6651_vm0 = vmmov %vm6648_vm3 }
  0xba   : > { %v3693_v27 = vcombine.low %v5178_v57, %v1344_v12  ;;  %v5975_v16 = vsel %vm6651_vm0, %v1533_v49, %v1535_v51  ;;  %v4946_v57 = vld [vmem:[%s6540_s3 + $0x1c8] sm:$0xff]   ;;  %v1463_v12 = vsel %vm1446_vm7, %v5646_v35, 0  ;;  %vm6652_vm9 = vmmov %vm6651_vm0  ;;  %v1464_v49 = vsel %vm1447_vm5, %v5679_v24, 0 }
  0xbb   : > { %v5985_v25 = vsel %vm6652_vm9, %v1535_v51, %v1537_v13  ;;  %vm6653_vm3 = vmmov %vm6649_vm13  ;;  %v1539_v40 = vrot.slane %v1463_v12, 1  ;;  %v1541_v51 = vrot.slane %v1464_v49, 1  ;;  %v4953_v49 = vld [vmem:[%s6540_s3 + $0x1e0] sm:$0xff]  }
  0xbc   : > { %v1422_v14 = vrot.slane %v3693_v27, 7  ;;  %vm6654_vm13 = vmmov %vm6653_vm3 }
  0xbd   : > { %vm6655_vm7 = vmmov %vm6651_vm0 }
  0xbe   : > { %v1423_v1 = vsel %vm6653_vm3, %v1420_v31, %v1422_v14  ;;  %v1425_v27 = vsel %vm6654_vm13, %v1422_v14, %v5237_v28  ;;  %v6004_v31 = vsel %vm6655_vm7, %v1537_v13, %v1539_v40  ;;  %vm6656_vm5 = vmmov %vm6655_vm7  ;;  %v4951_v14 = vld [vmem:[%s6540_s3 + $0x198] sm:$0xff]   ;;  %vm6663_vm7 = vnez %v6599_v21 }
  0xbf   : > { %4138 = vmatmul.mubr.msk.bf16.gmra.mrb[56].mxu1 %vm5777_vm14, %v5274_v54  ;;  %vm1448_vm15 = vcmp.ne.s16.totalorder %v1423_v1, 0  ;;  %vm1449_vm0 = vcmp.ne.s16.totalorder %v1425_v27, 0  ;;  %v6014_v28 = vsel %vm6656_vm5, %v1539_v40, %v1541_v51  ;;  %vm6657_vm9 = vmmov %vm6656_vm5  ;;  %v4954_v40 = vld [vmem:[%s6540_s3 + $0x1a0] sm:$0xff]   ;;  %v4968_v21 = vld [vmem:[%s6540_s3 + $0x238] sm:$0xff]  }
  0xc0   : > { %4128 = vmatmul.mubr.msk.bf16.gmra.mrb[60].mxu0 %vm5953_vm6, %v5572_v61  ;;  %2475 = vmatprep.mubr.bf16.mxu1 %v5331_v47  ;;  %v1466_v13 = vsel %vm1449_vm0, %v5731_v0, 0  ;;  %vm6658_vm3 = vmmov %vm6656_vm5  ;;  %vm6664_vm0 = vnez %v6603_v18 }
  0xc1   : > { %4583 = vmatprep.mubr.bf16.mxu0 %v5960_v46  ;;  %v1545_v1 = vrot.slane %v1466_v13, 1  ;;  %vm6660_vm13 = vmmov %vm6658_vm3  ;;  %v4958_v13 = vld [vmem:[%s6540_s3 + $0x1b0] sm:$0xff]  }
  0xc7   : > { %4139 = vmatmul.mubr.msk.bf16.gmra.mrb[60].mxu1 %vm5793_vm2, %v5371_v43 }
  0xc8   : > { %4584 = vmatmul.mubr.bf16.vlgmr.msra.gmra.mrb[64].mxu0 %v5975_v16  ;;  %2483 = vmatprep.mubr.bf16.mxu1 %v5351_v19 }
  0xc9   : > { %4432 = vmatpush3.bf16.msra.mxu0 %v4945_v33  ;;  %4587 = vmatprep.mubr.bf16.mxu0 %v5985_v25  ;;  %v4950_v33 = vld [vmem:[%s6540_s3 + $0x1d8] sm:$0xff]  }
  0xca   : > { %4433 = vmatprep.subr.bf16.mxu0 %v4946_v57  ;;  %v1465_v57 = vsel %vm1448_vm15, %v5705_v20, 0  ;;  %vm6661_vm15 = vnez %v6590_v26 }
  0xcb   : > { %v1543_v12 = vrot.slane %v1465_v57, 1 }
  0xcd   : > { %4434 = vmatpush3.bf16.msra.mxu0 %v4947_v62  ;;  %v6030_v62 = vsel %vm6657_vm9, %v1541_v51, %v1543_v12  ;;  %v6039_v27 = vsel %vm6658_vm3, %v1543_v12, %v1545_v1  ;;  %v4956_v51 = vld [vmem:[%s6540_s3 + $0x1a8] sm:$0xff]   ;;  %vm6670_vm9 = vnez %v6610_v32 }
  0xce   : > { %4435 = vmatprep.subr.bf16.mxu0 %v4948_v50  ;;  %v4955_v50 = vld [vmem:[%s6540_s3 + $0x1e8] sm:$0xff]  }
  0xcf   : > { %4140 = vmatmul.mubr.msk.bf16.gmra.mrb[64].mxu1 %vm5810_vm1, %v5405_v15  ;;  %v4962_v12 = vld [vmem:[%s6540_s3 + $0x208] sm:$0xff]  }
  0xd0   : > { %4588 = vmatmul.mubr.bf16.gmra.mrb[68].mxu0 %v6004_v31  ;;  %2491 = vmatprep.mubr.bf16.mxu1 %v5395_v45 }
  0xd1   : > { %4436 = vmatpush3.bf16.msra.mxu0 %v4949_v3  ;;  %4591 = vmatprep.mubr.bf16.mxu0 %v6014_v28  ;;  %v4957_v3 = vld [vmem:[%s6540_s3 + $0x1f0] sm:$0xff]  }
  0xd2   : > { %4437 = vmatprep.subr.bf16.mxu0 %v4950_v33  ;;  %v6659_v33 = vrot.slane %v5277_v55, 1  ;;  %v4960_v55 = vld [vmem:[%s6540_s3 + $0x1b8] sm:$0xff]  }
  0xd4   : > { %v6056_v57 = vsel %vm6660_vm13, %v1545_v1, %v6659_v33 }
  0xd5   : > { %4438 = vmatpush3.bf16.msra.mxu0 %v4951_v14  ;;  %v4959_v14 = vld [vmem:[%s6540_s3 + $0x1f8] sm:$0xff]  }
  0xd6   : > { %4439 = vmatprep.subr.bf16.mxu0 %v4953_v49  ;;  %v6668_v49 = vld [vmem:[#allocation3_spill] sm:$0xff] }
  0xd7   : > { %4141 = vmatmul.mubr.msk.bf16.gmra.mrb[68].mxu1 %vm5849_vm11, %v5449_v8 }
  0xd8   : > { %4592 = vmatmul.mubr.bf16.gmra.mrb[72].mxu0 %v6030_v62  ;;  %2499 = vmatprep.mubr.bf16.mxu1 %v5454_v34 }
  0xd9   : > { %4440 = vmatpush3.bf16.msra.mxu0 %v4954_v40  ;;  %4595 = vmatprep.mubr.bf16.mxu0 %v6039_v27 }
  0xda   : > { %4441 = vmatprep.subr.bf16.mxu0 %v4955_v50  ;;  %v6669_v50 = vld [vmem:[#allocation5_spill] sm:$0xff] }
  0xdd   : > { %4442 = vmatpush3.bf16.msra.mxu0 %v4956_v51  ;;  %v6671_v51 = vld [vmem:[#allocation7_spill] sm:$0xff] }
  0xde   : > { %4443 = vmatprep.subr.bf16.mxu0 %v4957_v3  ;;  %v6673_v3 = vld [vmem:[#allocation9_spill] sm:$0xff] }
  0xdf   : > { %4142 = vmatmul.mubr.msk.bf16.gmra.mrb[72].mxu1 %vm5884_vm12, %v5506_v23 }
  0xe0   : > { %4596 = vmatmul.mubr.bf16.gmra.mrb[76].mxu0 %v6056_v57  ;;  %2507 = vmatprep.mubr.bf16.mxu1 %v5544_v59 }
  0xe1   : > { %4444 = vmatpush3.bf16.msra.mxu0 %v4958_v13  ;;  %2950 = vmatprep.mubr.bf16.mxu0 %v5337_v58  ;;  %v4963_v58 = vld [vmem:[%s6540_s3 + $0x210] sm:$0xff]  }
  0xe2   : > { %4445 = vmatprep.subr.bf16.mxu0 %v4959_v14 }
  0xe5   : > { %4446 = vmatpush3.bf16.msra.mxu0 %v4960_v55 }
  0xe7   : > { %4143 = vmatmul.mubr.msk.bf16.gmra.mrb[76].mxu1 %vm5924_vm8, %v5589_v44 }
  0xe8   : > { %4144 = vmatmul.mubr.msk.bf16.vlgmr.msra.gmra.mrb[80].mxu0 %vm5387_vm10, %v5381_v53  ;;  %4631 = vmatprep.mubr.bf16.mxu1 %v6596_v11  ;;  %v4964_v53 = vld [vmem:[%s6540_s3 + $0x218] sm:$0xff]   ;;  %vm6662_vm10 = vnez %v6593_v38 }
  0xe9   : > { %2958 = vmatprep.mubr.bf16.mxu0 %v5444_v39 }
  0xef   : > { %4632 = vmatmul.mubr.bf16.vlgmr.msra.gmra.mrb[80].mxu1 %v5960_v46  ;;  %v6667_v46 = vld [vmem:[#allocation4_spill] sm:$0xff] }
  0xf0   : > { %4145 = vmatmul.mubr.msk.bf16.gmra.mrb[84].mxu0 %vm6661_vm15, %v5501_v2  ;;  %4664 = vmatpush3.bf16.msra.mxu1 %v5775_v52  ;;  %v4966_v2 = vld [vmem:[%s6540_s3 + $0x228] sm:$0xff]   ;;  %v4967_v52 = vld [vmem:[%s6540_s3 + $0x230] sm:$0xff]  }
  0xf1   : > { %4635 = vmatprep.mubr.bf16.mxu1 %v5975_v16  ;;  %4665 = vmatprep.subr.bf16.mxu1 %v4962_v12 }
  0xf2   : > { %2966 = vmatprep.mubr.bf16.mxu0 %v5565_v41 }
  0xf4   : > { %4666 = vmatpush3.bf16.msra.mxu1 %v4962_v12  ;;  %v6674_v12 = vld [vmem:[#allocation10_spill] sm:$0xff] }
  0xf5   : > { %4667 = vmatprep.subr.bf16.mxu1 %v4963_v58 }
  0xf7   : > { %4636 = vmatmul.mubr.bf16.gmra.mrb[84].mxu1 %v5985_v25 }
  0xf8   : > { %4146 = vmatmul.mubr.msk.bf16.gmra.mrb[88].mxu0 %vm6662_vm10, %v5614_v56  ;;  %4639 = vmatprep.mubr.bf16.mxu1 %v6004_v31 }
  0xf9   : > { %4668 = vmatpush3.bf16.msra.mxu1 %v4963_v58  ;;  %2974 = vmatprep.mubr.bf16.mxu0 %v5605_v60 }
  0xfa   : > { %4669 = vmatprep.subr.bf16.mxu1 %v4964_v53 }
  0xfd   : > { %4670 = vmatpush3.bf16.msra.mxu1 %v4964_v53 }
  0xfe   : > { %4671 = vmatprep.subr.bf16.mxu1 %v4965_v4 }
  0xff   : > { %4640 = vmatmul.mubr.bf16.gmra.mrb[88].mxu1 %v6014_v28 }
 0x100   : > { %4147 = vmatmul.mubr.msk.bf16.gmra.mrb[92].mxu0 %vm6663_vm7, %v5646_v35  ;;  %4643 = vmatprep.mubr.bf16.mxu1 %v6030_v62  ;;  %v6665_v35 = vld [vmem:[#allocation12_spill] sm:$0xff] }
 0x101   : > { %2982 = vmatprep.mubr.bf16.mxu0 %v5648_v37  ;;  %4672 = vmatpush3.bf16.msra.mxu1 %v4965_v4  ;;  %vm6666_vm5 = vnez %v6665_v35 }
 0x102   : > { %v4175_v39 = vpop.f32.mrb[0].mxu0  ;;  %4673 = vmatprep.subr.bf16.mxu1 %v4966_v2 }
 0x103   : > { %v4176_v26 = vpop.f32.mrb[1].mxu0 }
 0x104   : > { %v6113_v41 = vadd.f32 %v4176_v26, %v4175_v39  ;;  %v4178_v38 = vpop.f32.mrb[2].mxu0 }
 0x105   : > { %v4179_v60 = vpop.f32.mrb[3].mxu0  ;;  %4674 = vmatpush3.bf16.msra.mxu1 %v4966_v2 }
 0x106   : > { %v6117_v56 = vadd.f32 %v4179_v60, %v4178_v38  ;;  %4675 = vmatprep.subr.bf16.mxu1 %v4967_v52 }
 0x107   : > { %4644 = vmatmul.mubr.bf16.gmra.mrb[92].mxu1 %v6039_v27 }
 0x108   : > { %4148 = vmatmul.mubr.msk.bf16.gmra.mrb[96].mxu0 %vm6664_vm0, %v5679_v24  ;;  %4647 = vmatprep.mubr.bf16.mxu1 %v6056_v57 }
 0x109   : > { %2990 = vmatprep.mubr.bf16.mxu0 %v5667_v63  ;;  %4676 = vmatpush3.bf16.msra.mxu1 %v4967_v52 }
 0x10a   : > { %4677 = vmatprep.subr.bf16.mxu1 %v4968_v21 }
 0x10d   : > { %4678 = vmatpush3.bf16.msra.mxu1 %v4968_v21 }
 0x10f   : > { %4648 = vmatmul.mubr.bf16.gmra.mrb[0].mxu1 %v5304_v10 }
 0x110   : > { %4149 = vmatmul.mubr.msk.bf16.gmra.mrb[100].mxu0 %vm6666_vm5, %v5705_v20  ;;  %v4181_v37 = vpop.f32.mrb[4].mxu0  ;;  %4651 = vmatprep.mubr.bf16.mxu1 %v6667_v46  ;;  %v6672_v20 = vld [vmem:[#allocation8_spill] sm:$0xff] }
 0x111   : > { %2998 = vmatprep.mubr.bf16.mxu0 %v6668_v49  ;;  %v4182_v18 = vpop.f32.mrb[5].mxu0 }
 0x112   : > { %v6137_v24 = vadd.f32 %v4182_v18, %v4181_v37  ;;  %v4184_v1 = vpop.f32.mrb[6].mxu0 }
 0x113   : > { %v4185_v40 = vpop.f32.mrb[7].mxu0 }
 0x114   : > { %v6139_v63 = vadd.f32 %v4185_v40, %v4184_v1 }
 0x117   : > { %4652 = vmatmul.mubr.bf16.gmra.mrb[4].mxu1 %v6669_v50 }
 0x118   : > { %4150 = vmatmul.mubr.msk.bf16.gmra.mrb[104].mxu0 %vm6670_vm9, %v5731_v0  ;;  %4655 = vmatprep.mubr.bf16.mxu1 %v6671_v51 }
 0x119   : > { %3006 = vmatprep.mubr.bf16.mxu0 %v5225_v17 }
 0x11f   : > { %4656 = vmatmul.mubr.bf16.gmra.mrb[8].mxu1 %v6672_v20 }
 0x120   : > { %4151 = vmatmul.mubr.msk.bf16.gmra.mrb[108].mxu0 %vm5754_vm4, %v5263_v48  ;;  %4659 = vmatprep.mubr.bf16.mxu1 %v6673_v3 }
 0x121   : > { %3014 = vmatprep.mubr.bf16.mxu0 %v5230_v22 }
 0x123   : > { %v4187_v33 = vpop.f32.mrb[8].mxu0 }
 0x124   : > { %v4188_v13 = vpop.f32.mrb[9].mxu0 }
 0x125   : > { %v6153_v14 = vadd.f32 %v4188_v13, %v4187_v33  ;;  %v4190_v32 = vpop.f32.mrb[10].mxu0 }
 0x126   : > { %v4191_v0 = vpop.f32.mrb[11].mxu0 }
 0x127   : > { %v6155_v55 = vadd.f32 %v4191_v0, %v4190_v32  ;;  %4660 = vmatmul.mubr.bf16.gmra.mrb[12].mxu1 %v6674_v12 }
 0x128   : > { %4152 = vmatmul.mubr.msk.bf16.gmra.mrb[112].mxu0 %vm5777_vm14, %v5274_v54  ;;  %4679 = vmatprep.mubr.bf16.mxu1 %v5975_v16 }
 0x129   : > { %3022 = vmatprep.mubr.bf16.mxu0 %v5331_v47 }
 0x12f   : > { %4680 = vmatmul.mubr.bf16.vlgmr.msra.gmra.mrb[80].mxu1 %v5985_v25 }
 0x130   : > { %4153 = vmatmul.mubr.msk.bf16.gmra.mrb[116].mxu0 %vm5793_vm2, %v5371_v43  ;;  %4683 = vmatprep.mubr.bf16.mxu1 %v6004_v31 }
 0x131   : > { %3030 = vmatprep.mubr.bf16.mxu0 %v5351_v19 }
 0x133   : > { %v4193_v17 = vpop.f32.mrb[12].mxu0 }
 0x134   : > { %v4194_v22 = vpop.f32.mrb[13].mxu0 }
 0x135   : > { %v6169_v48 = vadd.f32 %v4194_v22, %v4193_v17  ;;  %v4196_v9 = vpop.f32.mrb[14].mxu0 }
 0x136   : > { %v4197_v54 = vpop.f32.mrb[15].mxu0 }
 0x137   : > { %v6171_v42 = vadd.f32 %v4197_v54, %v4196_v9  ;;  %4684 = vmatmul.mubr.bf16.gmra.mrb[84].mxu1 %v6014_v28 }
 0x138   : > { %4154 = vmatmul.mubr.msk.bf16.gmra.mrb[120].mxu0 %vm5810_vm1, %v5405_v15  ;;  %4687 = vmatprep.mubr.bf16.mxu1 %v6030_v62 }
 0x139   : > { %3038 = vmatprep.mubr.bf16.mxu0 %v5395_v45 }
 0x13b   : > { %v4199_v47 = vpop.f32.mrb[16].mxu0 }
 0x13c   : > { %v4200_v19 = vpop.f32.mrb[17].mxu0 }
 0x13d   : > { %v6179_v43 = vadd.f32 %v4200_v19, %v4199_v47  ;;  %v4202_v36 = vpop.f32.mrb[18].mxu0 }
 0x13e   : > { %v4203_v16 = vpop.f32.mrb[19].mxu0 }
 0x13f   : > { %v6181_v25 = vadd.f32 %v4203_v16, %v4202_v36  ;;  %4688 = vmatmul.mubr.bf16.gmra.mrb[88].mxu1 %v6039_v27 }
 0x140   : > { %4155 = vmatmul.mubr.msk.bf16.gmra.mrb[124].mxu0 %vm5849_vm11, %v5449_v8  ;;  %4691 = vmatprep.mubr.bf16.mxu1 %v6056_v57 }
 0x141   : > { %3046 = vmatprep.mubr.bf16.mxu0 %v5454_v34 }
 0x142   : > { %v4311_v15 = vpop.f32.mrb[16].mxu1 }
 0x143   : > { %v4205_v45 = vpop.f32.mrb[20].mxu0  ;;  %v4312_v30 = vpop.f32.mrb[17].mxu1 }
 0x144   : > { %v4206_v31 = vpop.f32.mrb[21].mxu0  ;;  %v6189_v28 = vadd.f32 %v4312_v30, %v4311_v15  ;;  %v4314_v62 = vpop.f32.mrb[18].mxu1 }
 0x145   : > { %v6191_v58 = vadd.f32 %v4206_v31, %v4205_v45  ;;  %v4208_v53 = vpop.f32.mrb[22].mxu0  ;;  %v4315_v4 = vpop.f32.mrb[19].mxu1 }
 0x146   : > { %v4209_v27 = vpop.f32.mrb[23].mxu0  ;;  %v6193_v39 = vadd.f32 %v4315_v4, %v4314_v62 }
 0x147   : > { %v6195_v29 = vadd.f32 %v4209_v27, %v4208_v53  ;;  %4692 = vmatmul.mubr.bf16.gmra.mrb[92].mxu1 %v5304_v10 }
 0x148   : > { %4156 = vmatmul.mubr.msk.bf16.gmra.mrb[128].mxu0 %vm5884_vm12, %v5506_v23  ;;  %4695 = vmatprep.mubr.bf16.mxu1 %v6667_v46  ;;  %v6675_v23 = vld [vmem:[#allocation6_spill] sm:$0xff] }
 0x149   : > { %3054 = vmatprep.mubr.bf16.mxu0 %v5544_v59 }
 0x14a   : > { %v4317_v8 = vpop.f32.mrb[20].mxu1 }
 0x14b   : > { %v4211_v34 = vpop.f32.mrb[24].mxu0  ;;  %v4318_v57 = vpop.f32.mrb[21].mxu1 }
 0x14c   : > { %v4212_v2 = vpop.f32.mrb[25].mxu0  ;;  %v6203_v26 = vadd.f32 %v4318_v57, %v4317_v8  ;;  %v4320_v38 = vpop.f32.mrb[22].mxu1 }
 0x14d   : > { %v6205_v60 = vadd.f32 %v4212_v2, %v4211_v34  ;;  %v4214_v52 = vpop.f32.mrb[26].mxu0  ;;  %v4321_v21 = vpop.f32.mrb[23].mxu1 }
 0x14e   : > { %v4215_v10 = vpop.f32.mrb[27].mxu0  ;;  %v6207_v35 = vadd.f32 %v4321_v21, %v4320_v38 }
 0x14f   : > { %v6209_v7 = vadd.f32 %v4215_v10, %v4214_v52  ;;  %4696 = vmatmul.mubr.bf16.gmra.mrb[0].mxu1 %v6669_v50 }
 0x150   : > { %4157 = vmatmul.mubr.msk.bf16.gmra.mrb[132].mxu0 %vm5924_vm8, %v5589_v44  ;;  %4699 = vmatprep.mubr.bf16.mxu1 %v6671_v51  ;;  %vm6681_vm8 = vcmask 1040384  }
 0x151   : > { %3062 = vmatprep.mubr.bf16.mxu0 %v6675_v23 }
 0x152   : > { %v4323_v59 = vpop.f32.mrb[24].mxu1 }
 0x153   : > { %v4217_v37 = vpop.f32.mrb[28].mxu0  ;;  %v4324_v46 = vpop.f32.mrb[25].mxu1 }
 0x154   : > { %v4218_v49 = vpop.f32.mrb[29].mxu0  ;;  %v6217_v18 = vadd.f32 %v4324_v46, %v4323_v59  ;;  %v4326_v1 = vpop.f32.mrb[26].mxu1 }
 0x155   : > { %v6219_v40 = vadd.f32 %v4218_v49, %v4217_v37  ;;  %v4220_v33 = vpop.f32.mrb[30].mxu0  ;;  %v4327_v13 = vpop.f32.mrb[27].mxu1 }
 0x156   : > { %v4221_v50 = vpop.f32.mrb[31].mxu0  ;;  %v6221_v32 = vadd.f32 %v4327_v13, %v4326_v1 }
 0x157   : > { %v6223_v6 = vadd.f32 %v4221_v50, %v4220_v33  ;;  %4700 = vmatmul.mubr.bf16.gmra.mrb[4].mxu1 %v6672_v20 }
 0x158   : > { %4158 = vmatmul.mubr.msk.bf16.gmra.mrb[136].mxu0 %vm5953_vm6, %v5572_v61  ;;  %4703 = vmatprep.mubr.bf16.mxu1 %v6673_v3  ;;  %v6676_v61 = vld [vmem:[#allocation11_spill] sm:$0xff] }
 0x159   : > { %3070 = vmatprep.mubr.bf16.mxu0 %v6596_v11 }
 0x15a   : > { %v4329_v44 = vpop.f32.mrb[28].mxu1 }
 0x15b   : > { %v4223_v51 = vpop.f32.mrb[32].mxu0  ;;  %v4330_v0 = vpop.f32.mrb[29].mxu1 }
 0x15c   : > { %v4224_v17 = vpop.f32.mrb[33].mxu0  ;;  %v6231_v22 = vadd.f32 %v4330_v0, %v4329_v44  ;;  %v4332_v9 = vpop.f32.mrb[30].mxu1 }
 0x15d   : > { %v6233_v54 = vadd.f32 %v4224_v17, %v4223_v51  ;;  %v4226_v47 = vpop.f32.mrb[34].mxu0  ;;  %v4333_v19 = vpop.f32.mrb[31].mxu1 }
 0x15e   : > { %v4227_v20 = vpop.f32.mrb[35].mxu0  ;;  %v6235_v36 = vadd.f32 %v4333_v19, %v4332_v9 }
 0x15f   : > { %v6237_v5 = vadd.f32 %v4227_v20, %v4226_v47  ;;  %4704 = vmatmul.mubr.bf16.gmra.mrb[8].mxu1 %v6674_v12 }
 0x160   : > { %3071 = vmatmul.mubr.bf16.gmra.mrb[140].mxu0 %v6596_v11  ;;  %4707 = vmatprep.mubr.bf16.mxu1 %v6676_v61 }
 0x162   : > { %v4335_v3 = vpop.f32.mrb[32].mxu1 }
 0x163   : > { %v4229_v16 = vpop.f32.mrb[36].mxu0  ;;  %v4336_v15 = vpop.f32.mrb[33].mxu1 }
 0x164   : > { %v4230_v45 = vpop.f32.mrb[37].mxu0  ;;  %v6242_v30 = vadd.f32 %v4336_v15, %v4335_v3  ;;  %v4338_v31 = vpop.f32.mrb[34].mxu1 }
 0x165   : > { %v6244_v62 = vadd.f32 %v4230_v45, %v4229_v16  ;;  %v4232_v53 = vpop.f32.mrb[38].mxu0  ;;  %v4339_v4 = vpop.f32.mrb[35].mxu1 }
 0x166   : > { %v4233_v27 = vpop.f32.mrb[39].mxu0  ;;  %v6246_v8 = vadd.f32 %v4339_v4, %v4338_v31 }
 0x167   : > { %v6248_v34 = vadd.f32 %v4233_v27, %v4232_v53  ;;  %4708 = vmatmul.mubr.bf16.gmra.mrb[12].mxu1 %v6596_v11 }
 0x16a   : > { %v4341_v12 = vpop.f32.mrb[36].mxu1 }
 0x16b   : > { %v4235_v57 = vpop.f32.mrb[40].mxu0  ;;  %v4342_v2 = vpop.f32.mrb[37].mxu1 }
 0x16c   : > { %v4236_v38 = vpop.f32.mrb[41].mxu0  ;;  %v6251_v52 = vadd.f32 %v4342_v2, %v4341_v12  ;;  %v4344_v21 = vpop.f32.mrb[38].mxu1 }
 0x16d   : > { %v6253_v10 = vadd.f32 %v4236_v38, %v4235_v57  ;;  %v4238_v23 = vpop.f32.mrb[42].mxu0  ;;  %v4345_v59 = vpop.f32.mrb[39].mxu1 }
 0x16e   : > { %v4239_v37 = vpop.f32.mrb[43].mxu0  ;;  %v6255_v46 = vadd.f32 %v4345_v59, %v4344_v21 }
 0x16f   : > { %v6257_v49 = vadd.f32 %v4239_v37, %v4238_v23 }
 0x172   : > { %v4347_v1 = vpop.f32.mrb[40].mxu1 }
 0x173   : > { %v4241_v33 = vpop.f32.mrb[44].mxu0  ;;  %v4348_v13 = vpop.f32.mrb[41].mxu1 }
 0x174   : > { %v4242_v11 = vpop.f32.mrb[45].mxu0  ;;  %v6259_v50 = vadd.f32 %v4348_v13, %v4347_v1  ;;  %v4350_v44 = vpop.f32.mrb[42].mxu1 }
 0x175   : > { %v6261_v51 = vadd.f32 %v4242_v11, %v4241_v33  ;;  %v4244_v0 = vpop.f32.mrb[46].mxu0  ;;  %v4351_v17 = vpop.f32.mrb[43].mxu1 }
 0x176   : > { %v4245_v9 = vpop.f32.mrb[47].mxu0  ;;  %v6263_v47 = vadd.f32 %v4351_v17, %v4350_v44 }
 0x177   : > { %v6265_v19 = vadd.f32 %v4245_v9, %v4244_v0 }
 0x17a   : > { %v4353_v20 = vpop.f32.mrb[44].mxu1 }
 0x17b   : > { %v4247_v61 = vpop.f32.mrb[48].mxu0  ;;  %v4354_v3 = vpop.f32.mrb[45].mxu1 }
 0x17c   : > { %v4248_v16 = vpop.f32.mrb[49].mxu0  ;;  %v6267_v15 = vadd.f32 %v4354_v3, %v4353_v20  ;;  %v4356_v45 = vpop.f32.mrb[46].mxu1 }
 0x17d   : > { %v6269_v31 = vadd.f32 %v4248_v16, %v4247_v61  ;;  %v4250_v53 = vpop.f32.mrb[50].mxu0  ;;  %v4357_v4 = vpop.f32.mrb[47].mxu1 }
 0x17e   : > { %v4251_v27 = vpop.f32.mrb[51].mxu0  ;;  %v6271_v12 = vadd.f32 %v4357_v4, %v4356_v45 }
 0x17f   : > { %v6273_v57 = vadd.f32 %v4251_v27, %v4250_v53 }
 0x182   : > { %v4359_v2 = vpop.f32.mrb[48].mxu1 }
 0x183   : > { %v4253_v38 = vpop.f32.mrb[52].mxu0  ;;  %v4360_v21 = vpop.f32.mrb[49].mxu1 }
 0x184   : > { %v4254_v23 = vpop.f32.mrb[53].mxu0  ;;  %v4361_v59 = vadd.f32 %v4360_v21, %v4359_v2  ;;  %v4362_v37 = vpop.f32.mrb[50].mxu1 }
 0x185   : > { %v6275_v1 = vadd.f32 %v4254_v23, %v4253_v38  ;;  %v4256_v33 = vpop.f32.mrb[54].mxu0  ;;  %v4363_v13 = vpop.f32.mrb[51].mxu1 }
 0x186   : > { %v4257_v11 = vpop.f32.mrb[55].mxu0  ;;  %v6278_v44 = vadd.f32 %v4361_v59, %v6233_v54  ;;  %v4364_v0 = vadd.f32 %v4363_v13, %v4362_v37 }
 0x187   : > { %v6280_v17 = vadd.f32 %v4257_v11, %v4256_v33 }
 0x188   : > { %v6283_v9 = vadd.f32 %v4364_v0, %v6237_v5 }
 0x18a   : > { %v4365_v20 = vpop.f32.mrb[52].mxu1 }
 0x18b   : > { %v4259_v61 = vpop.f32.mrb[56].mxu0  ;;  %v4366_v3 = vpop.f32.mrb[53].mxu1 }
 0x18c   : > { %v4260_v16 = vpop.f32.mrb[57].mxu0  ;;  %v4367_v45 = vadd.f32 %v4366_v3, %v4365_v20  ;;  %v4368_v53 = vpop.f32.mrb[54].mxu1 }
 0x18d   : > { %v6285_v4 = vadd.f32 %v4260_v16, %v4259_v61  ;;  %v4262_v27 = vpop.f32.mrb[58].mxu0  ;;  %v4369_v2 = vpop.f32.mrb[55].mxu1 }
 0x18e   : > { %v4263_v38 = vpop.f32.mrb[59].mxu0  ;;  %v6288_v54 = vadd.f32 %v4367_v45, %v6244_v62  ;;  %v4370_v21 = vadd.f32 %v4369_v2, %v4368_v53 }
 0x18f   : > { %v6290_v23 = vadd.f32 %v4263_v38, %v4262_v27 }
 0x190   : > { %6677 = vst [vmem:[#allocation12_spill] sm:$0xff] %v6288_v54  ;;  %v6293_v5 = vadd.f32 %v4370_v21, %v6248_v34 }
 0x192   : > { %6678 = vst [vmem:[#allocation4_spill] sm:$0xff] %v6293_v5  ;;  %v4371_v59 = vpop.f32.mrb[56].mxu1 }
 0x193   : > { %v4265_v37 = vpop.f32.mrb[60].mxu0  ;;  %v4372_v33 = vpop.f32.mrb[57].mxu1 }
 0x194   : > { %v4266_v13 = vpop.f32.mrb[61].mxu0  ;;  %v4373_v11 = vadd.f32 %v4372_v33, %v4371_v59  ;;  %v4374_v0 = vpop.f32.mrb[58].mxu1 }
 0x195   : > { %v6295_v20 = vadd.f32 %v4266_v13, %v4265_v37  ;;  %v4268_v61 = vpop.f32.mrb[62].mxu0  ;;  %v4375_v3 = vpop.f32.mrb[59].mxu1 }
 0x196   : > { %v4269_v16 = vpop.f32.mrb[63].mxu0  ;;  %v6298_v62 = vadd.f32 %v4373_v11, %v6253_v10  ;;  %v4376_v45 = vadd.f32 %v4375_v3, %v4374_v0 }
 0x197   : > { %v6300_v53 = vadd.f32 %v4269_v16, %v4268_v61 }
 0x198   : > { %v6303_v34 = vadd.f32 %v4376_v45, %v6257_v49 }
 0x19a   : > { %v4377_v27 = vpop.f32.mrb[60].mxu1 }
 0x19b   : > { %v4585_v2 = vpop.f32.mrb[64].mxu0  ;;  %v4378_v38 = vpop.f32.mrb[61].mxu1 }
 0x19c   : > { %v2093_v21 = vadd.f32 %v4585_v2, %v6137_v24  ;;  %v2084_v59 = vpop.f32.mrb[65].mxu0  ;;  %v4379_v37 = vadd.f32 %v4378_v38, %v4377_v27  ;;  %v4380_v33 = vpop.f32.mrb[62].mxu1 }
 0x19d   : > { %v2085_v13 = vadd.f32 %v6113_v41, %v2084_v59  ;;  %v4586_v5 = vpop.f32.mrb[66].mxu0  ;;  %v4381_v54 = vpop.f32.mrb[63].mxu1 }
 0x19e   : > { %v6308_v10 = vadd.f32 %v6203_v26, %v2093_v21  ;;  %v2096_v11 = vadd.f32 %v4586_v5, %v6139_v63  ;;  %v2087_v0 = vpop.f32.mrb[67].mxu0  ;;  %v6312_v49 = vadd.f32 %v4379_v37, %v6261_v51  ;;  %v4382_v61 = vadd.f32 %v4381_v54, %v4380_v33 }
 0x19f   : > { %v6315_v3 = vadd.f32 %v6189_v28, %v2085_v13  ;;  %v2088_v24 = vadd.f32 %v6117_v56, %v2087_v0 }
 0x1a0   : > { %v6319_v16 = vadd.f32 %v6207_v35, %v2096_v11  ;;  %v6322_v41 = vadd.f32 %v4382_v61, %v6265_v19 }
 0x1a1   : > { %v6325_v26 = vadd.f32 %v6193_v39, %v2088_v24 }
 0x1a2   : > { %v4383_v63 = vpop.f32.mrb[64].mxu1 }
 0x1a3   : > { %v4589_v5 = vpop.f32.mrb[68].mxu0  ;;  %v4384_v45 = vpop.f32.mrb[65].mxu1 }
 0x1a4   : > { %v2109_v51 = vadd.f32 %v4589_v5, %v6169_v48  ;;  %v2100_v54 = vpop.f32.mrb[69].mxu0  ;;  %v4385_v27 = vadd.f32 %v4384_v45, %v4383_v63  ;;  %v4386_v28 = vpop.f32.mrb[66].mxu1 }
 0x1a5   : > { %v2101_v2 = vadd.f32 %v6153_v14, %v2100_v54  ;;  %v4590_v56 = vpop.f32.mrb[70].mxu0  ;;  %v4387_v38 = vpop.f32.mrb[67].mxu1 }
 0x1a6   : > { %v6330_v35 = vadd.f32 %v6231_v22, %v2109_v51  ;;  %v2112_v19 = vadd.f32 %v4590_v56, %v6171_v42  ;;  %v2103_v21 = vpop.f32.mrb[71].mxu0  ;;  %v6334_v39 = vadd.f32 %v4385_v27, %v6269_v31  ;;  %v4388_v59 = vadd.f32 %v4387_v38, %v4386_v28 }
 0x1a7   : > { %v6337_v37 = vadd.f32 %v6217_v18, %v2101_v2  ;;  %v2104_v48 = vadd.f32 %v6155_v55, %v2103_v21 }
 0x1a8   : > { %v6341_v33 = vadd.f32 %v6235_v36, %v2112_v19  ;;  %v6344_v14 = vadd.f32 %v4388_v59, %v6273_v57 }
 0x1a9   : > { %v6347_v22 = vadd.f32 %v6221_v32, %v2104_v48 }
 0x1aa   : > { %v4389_v42 = vpop.f32.mrb[68].mxu1 }
 0x1ab   : > { %v4593_v13 = vpop.f32.mrb[72].mxu0  ;;  %v4390_v11 = vpop.f32.mrb[69].mxu1 }
 0x1ac   : > { %v2125_v31 = vadd.f32 %v4593_v13, %v6191_v58  ;;  %v2116_v0 = vpop.f32.mrb[73].mxu0  ;;  %v4391_v61 = vadd.f32 %v4390_v11, %v4389_v42  ;;  %v4392_v18 = vpop.f32.mrb[70].mxu1 }
 0x1ad   : > { %v2117_v24 = vadd.f32 %v6179_v43, %v2116_v0  ;;  %v4594_v55 = vpop.f32.mrb[74].mxu0  ;;  %v4393_v63 = vpop.f32.mrb[71].mxu1 }
 0x1ae   : > { %v6352_v36 = vadd.f32 %v6251_v52, %v2125_v31  ;;  %v2128_v57 = vadd.f32 %v4594_v55, %v6195_v29  ;;  %v2119_v5 = vpop.f32.mrb[75].mxu0  ;;  %v6356_v32 = vadd.f32 %v4391_v61, %v6275_v1  ;;  %v4394_v45 = vadd.f32 %v4393_v63, %v4392_v18 }
 0x1af   : > { %v6359_v51 = vadd.f32 %v6242_v30, %v2117_v24  ;;  %v2120_v58 = vadd.f32 %v6181_v25, %v2119_v5 }
 0x1b0   : > { %v6363_v54 = vadd.f32 %v6255_v46, %v2128_v57  ;;  %v6366_v43 = vadd.f32 %v4394_v45, %v6280_v17 }
 0x1b1   : > { %v6369_v52 = vadd.f32 %v6246_v8, %v2120_v58 }
 0x1b2   : > { %v4395_v29 = vpop.f32.mrb[72].mxu1 }
 0x1b3   : > { %v4597_v27 = vpop.f32.mrb[76].mxu0  ;;  %v4396_v28 = vpop.f32.mrb[73].mxu1 }
 0x1b4   : > { %v2141_v1 = vadd.f32 %v4597_v27, %v6219_v40  ;;  %v2132_v2 = vpop.f32.mrb[77].mxu0  ;;  %v4397_v56 = vadd.f32 %v4396_v28, %v4395_v29  ;;  %v4398_v30 = vpop.f32.mrb[74].mxu1 }
 0x1b5   : > { %v2133_v38 = vadd.f32 %v6205_v60, %v2132_v2  ;;  %v4598_v25 = vpop.f32.mrb[78].mxu0  ;;  %v4399_v19 = vpop.f32.mrb[75].mxu1 }
 0x1b6   : > { %v6374_v46 = vadd.f32 %v6267_v15, %v2141_v1  ;;  %v2144_v17 = vadd.f32 %v4598_v25, %v6223_v6  ;;  %v2135_v21 = vpop.f32.mrb[79].mxu0  ;;  %v6378_v8 = vadd.f32 %v4397_v56, %v6285_v4  ;;  %v4400_v59 = vadd.f32 %v4399_v19, %v4398_v30 }
 0x1b7   : > { %v6381_v48 = vadd.f32 %v6259_v50, %v2133_v38  ;;  %v2136_v40 = vadd.f32 %v6209_v7, %v2135_v21 }
 0x1b8   : > { %v6385_v42 = vadd.f32 %v6271_v12, %v2144_v17  ;;  %v6388_v60 = vadd.f32 %v4400_v59, %v6290_v23 }
 0x1b9   : > { %v6391_v15 = vadd.f32 %v6263_v47, %v2136_v40 }
 0x1ba   : > { %v4401_v6 = vpop.f32.mrb[76].mxu1 }
 0x1bb   : > { %v4447_v13 = vpop.f32.mrb[80].mxu0  ;;  %v4402_v11 = vpop.f32.mrb[77].mxu1 }
 0x1bc   : > { %v4448_v4 = vpop.f32.mrb[81].mxu0  ;;  %v4403_v31 = vadd.f32 %v4402_v11, %v4401_v6  ;;  %v4404_v0 = vpop.f32.mrb[78].mxu1 }
 0x1bd   : > { %v4449_v61 = vadd.f32 %v4448_v4, %v4447_v13  ;;  %v4450_v50 = vpop.f32.mrb[82].mxu0  ;;  %v4405_v18 = vpop.f32.mrb[79].mxu1 }
 0x1be   : > { %v4451_v24 = vpop.f32.mrb[83].mxu0  ;;  %v6394_v7 = vadd.f32 %v4403_v31, %v6295_v20  ;;  %v4406_v12 = vadd.f32 %v4405_v18, %v4404_v0 }
 0x1bf   : > { %v4452_v55 = vadd.f32 %v4451_v24, %v4450_v50  ;;  %v6397_v23 = vadd.f32 %v4449_v61, %v6315_v3 }
 0x1c0   : > { %v6400_v47 = vadd.f32 %v4406_v12, %v6300_v53 }
 0x1c1   : > { %v6403_v63 = vadd.f32 %v4452_v55, %v6325_v26 }
 0x1c3   : > { %v4453_v57 = vpop.f32.mrb[84].mxu0 }
 0x1c4   : > { %v4454_v5 = vpop.f32.mrb[85].mxu0 }
 0x1c5   : > { %v4455_v45 = vadd.f32 %v4454_v5, %v4453_v57  ;;  %v4456_v58 = vpop.f32.mrb[86].mxu0 }
 0x1c6   : > { %v4457_v29 = vpop.f32.mrb[87].mxu0 }
 0x1c7   : > { %v4458_v27 = vadd.f32 %v4457_v29, %v4456_v58  ;;  %v4729_v20 = vadd.f32 %v4455_v45, %v6308_v10 }
 0x1c9   : > { %v6407_v28 = vadd.f32 %v4458_v27, %v6319_v16 }
 0x1cb   : > { %v4459_v1 = vpop.f32.mrb[88].mxu0 }
 0x1cc   : > { %v4460_v3 = vpop.f32.mrb[89].mxu0 }
 0x1cd   : > { %v4461_v2 = vadd.f32 %v4460_v3, %v4459_v1  ;;  %v4462_v56 = vpop.f32.mrb[90].mxu0 }
 0x1ce   : > { %v4463_v53 = vpop.f32.mrb[91].mxu0 }
 0x1cf   : > { %v4464_v30 = vadd.f32 %v4463_v53, %v4462_v56  ;;  %v6410_v26 = vadd.f32 %v4461_v2, %v6337_v37 }
 0x1d1   : > { %v6413_v38 = vadd.f32 %v4464_v30, %v6347_v22 }
 0x1d3   : > { %v4465_v25 = vpop.f32.mrb[92].mxu0 }
 0x1d4   : > { %v4466_v19 = vpop.f32.mrb[93].mxu0 }
 0x1d5   : > { %v4467_v17 = vadd.f32 %v4466_v19, %v4465_v25  ;;  %v4468_v21 = vpop.f32.mrb[94].mxu0 }
 0x1d6   : > { %v4469_v10 = vpop.f32.mrb[95].mxu0 }
 0x1d7   : > { %v4470_v59 = vadd.f32 %v4469_v10, %v4468_v21  ;;  %v6416_v16 = vadd.f32 %v4467_v17, %v6330_v35 }
 0x1d9   : > { %v6419_v40 = vadd.f32 %v4470_v59, %v6341_v33 }
 0x1db   : > { %v4471_v6 = vpop.f32.mrb[96].mxu0 }
 0x1dc   : > { %v4472_v13 = vpop.f32.mrb[97].mxu0 }
 0x1dd   : > { %v4473_v11 = vadd.f32 %v4472_v13, %v4471_v6  ;;  %v4474_v37 = vpop.f32.mrb[98].mxu0 }
 0x1de   : > { %v4475_v4 = vpop.f32.mrb[99].mxu0 }
 0x1df   : > { %v4476_v31 = vadd.f32 %v4475_v4, %v4474_v37  ;;  %v6422_v22 = vadd.f32 %v4473_v11, %v6359_v51 }
 0x1e1   : > { %v6425_v0 = vadd.f32 %v4476_v31, %v6369_v52 }
 0x1e3   : > { %v4477_v61 = vpop.f32.mrb[100].mxu0 }
 0x1e4   : > { %v4478_v50 = vpop.f32.mrb[101].mxu0 }
 0x1e5   : > { %v4479_v18 = vadd.f32 %v4478_v50, %v4477_v61  ;;  %v4480_v35 = vpop.f32.mrb[102].mxu0 }
 0x1e6   : > { %v4481_v24 = vpop.f32.mrb[103].mxu0 }
 0x1e7   : > { %v4482_v12 = vadd.f32 %v4481_v24, %v4480_v35  ;;  %v6428_v33 = vadd.f32 %v4479_v18, %v6352_v36 }
 0x1e9   : > { %v6431_v55 = vadd.f32 %v4482_v12, %v6363_v54 }
 0x1eb   : > { %v4483_v57 = vpop.f32.mrb[104].mxu0 }
 0x1ec   : > { %v4484_v5 = vpop.f32.mrb[105].mxu0 }
 0x1ed   : > { %v4485_v45 = vadd.f32 %v4484_v5, %v4483_v57  ;;  %v4486_v51 = vpop.f32.mrb[106].mxu0  ;;  %v6680_v57 = vld [vmem:[#allocation4_spill] sm:$0xff] }
 0x1ee   : > { %v4487_v58 = vpop.f32.mrb[107].mxu0 }
 0x1ef   : > { %v4488_v29 = vadd.f32 %v4487_v58, %v4486_v51  ;;  %v6434_v52 = vadd.f32 %v4485_v45, %v6381_v48 }
 0x1f1   : > { %v6437_v27 = vadd.f32 %v4488_v29, %v6391_v15 }
 0x1f3   : > { %v4489_v1 = vpop.f32.mrb[108].mxu0 }
 0x1f4   : > { %v4490_v3 = vpop.f32.mrb[109].mxu0 }
 0x1f5   : > { %v4491_v2 = vadd.f32 %v4490_v3, %v4489_v1  ;;  %v4492_v36 = vpop.f32.mrb[110].mxu0 }
 0x1f6   : > { %v4493_v56 = vpop.f32.mrb[111].mxu0 }
 0x1f7   : > { %v4494_v53 = vadd.f32 %v4493_v56, %v4492_v36  ;;  %v6440_v54 = vadd.f32 %v4491_v2, %v6374_v46 }
 0x1f9   : > { %v6443_v30 = vadd.f32 %v4494_v53, %v6385_v42 }
 0x1fb   : > { %v4495_v25 = vpop.f32.mrb[112].mxu0 }
 0x1fc   : > { %v4496_v19 = vpop.f32.mrb[113].mxu0 }
 0x1fd   : > { %v4497_v17 = vadd.f32 %v4496_v19, %v4495_v25  ;;  %v4498_v48 = vpop.f32.mrb[114].mxu0 }
 0x1fe   : > { %v4499_v21 = vpop.f32.mrb[115].mxu0 }
 0x1ff   : > { %v4500_v15 = vadd.f32 %v4499_v21, %v4498_v48  ;;  %v6446_v10 = vadd.f32 %v6278_v44, %v4497_v17 }
 0x201   : > { %v6449_v59 = vadd.f32 %v6283_v9, %v4500_v15 }
 0x202   : > { %v4681_v6 = vpop.f32.mrb[80].mxu1 }
 0x203   : > { %v4501_v13 = vpop.f32.mrb[116].mxu0  ;;  %v4730_v46 = vadd.f32 %v4729_v20, %v4681_v6  ;;  %v3113_v11 = vpop.f32.mrb[81].mxu1  ;;  %v6679_v20 = vld [vmem:[#allocation12_spill] sm:$0xff] }
 0x204   : > { %v4502_v37 = vpop.f32.mrb[117].mxu0  ;;  %v4734_v42 = vadd.f32 %v6397_v23, %v3113_v11  ;;  %v4682_v4 = vpop.f32.mrb[82].mxu1 }
 0x205   : > { %v4503_v31 = vadd.f32 %v4502_v37, %v4501_v13  ;;  %v4504_v61 = vpop.f32.mrb[118].mxu0  ;;  %v4738_v50 = vadd.f32 %v6407_v28, %v4682_v4  ;;  %v3116_v18 = vpop.f32.mrb[83].mxu1 }
 0x206   : > { %v4505_v35 = vpop.f32.mrb[119].mxu0  ;;  %v4742_v44 = vadd.f32 %v6403_v63, %v3116_v18 }
 0x207   : > { %v4506_v9 = vadd.f32 %v4505_v35, %v4504_v61  ;;  %v6462_v23 = vadd.f32 %v6679_v20, %v4503_v31  ;;  %v3273_v24 = vpack.c.bf16 %v4738_v50, %v4730_v46 }
 0x208   : > { %v3272_v12 = vpack.c.bf16 %v4742_v44, %v4734_v42 }
 0x209   : > { %v6465_v28 = vadd.f32 %v6680_v57, %v4506_v9  ;;  %4098 = vst [vmem:[%s6458_s20 + $0x8] sm:$0xff] %v3273_v24   ;;  %v3434_v5 = vunpack.c.l.bf16 %v3273_v24  ;;  %v3435_v1 = vunpack.c.h.bf16 %v3273_v24 }
 0x20a   : > { %4007 = vst [vmem:[%s6458_s20] sm:$0xff] %v3272_v12   ;;  %v3432_v45 = vunpack.c.l.bf16 %v3272_v12  ;;  %v3433_v51 = vunpack.c.h.bf16 %v3272_v12  ;;  %v4685_v58 = vpop.f32.mrb[84].mxu1 }
 0x20b   : > { %v4507_v29 = vpop.f32.mrb[120].mxu0  ;;  %v4746_v3 = vadd.f32 %v6416_v16, %v4685_v58  ;;  %v3129_v63 = vpop.f32.mrb[85].mxu1  ;;  %v3503_v48 = vmul.f32 %v3434_v5, %v3434_v5  ;;  %v3504_v42 = vmul.f32 %v3435_v1, %v3435_v1 }
 0x20c   : > { %v4508_v2 = vpop.f32.mrb[121].mxu0  ;;  %v3464_v36 = vadd.f32 %v3433_v51, %v3432_v45  ;;  %v3501_v56 = vmul.f32 %v3432_v45, %v3432_v45  ;;  %v3502_v53 = vmul.f32 %v3433_v51, %v3433_v51  ;;  %v4750_v25 = vadd.f32 %v6410_v26, %v3129_v63  ;;  %v4686_v19 = vpop.f32.mrb[86].mxu1 }
 0x20d   : > { %v4510_v17 = vpop.f32.mrb[122].mxu0  ;;  %v4754_v21 = vadd.f32 %v6419_v40, %v4686_v19  ;;  %v3132_v15 = vpop.f32.mrb[87].mxu1  ;;  %v4509_v6 = vadd.f32 %v4508_v2, %v4507_v29 }
 0x20e   : > { %v4511_v13 = vpop.f32.mrb[123].mxu0  ;;  %v3465_v46 = vadd.f32 %v3464_v36, %v3434_v5  ;;  %v3533_v11 = vadd.f32 %v3502_v53, %v3501_v56  ;;  %v4758_v16 = vadd.f32 %v6413_v38, %v3132_v15 }
 0x20f   : > { %v4512_v37 = vadd.f32 %v4511_v13, %v4510_v17  ;;  %v3275_v4 = vpack.c.bf16 %v4754_v21, %v4746_v3  ;;  %v6474_v31 = vadd.f32 %v6298_v62, %v4509_v6 }
 0x210   : > { %v3534_v26 = vadd.f32 %v3533_v11, %v3503_v48  ;;  %v3274_v61 = vpack.c.bf16 %v4758_v16, %v4750_v25  ;;  %v3466_v50 = vadd.f32 %v3465_v46, %v3435_v1 }
 0x211   : > { %v6477_v18 = vadd.f32 %v6303_v34, %v4512_v37  ;;  %4100 = vst [vmem:[%s6458_s20 + $0x18] sm:$0xff] %v3275_v4   ;;  %v3438_v38 = vunpack.c.l.bf16 %v3275_v4  ;;  %v3439_v34 = vunpack.c.h.bf16 %v3275_v4 }
 0x212   : > { %4099 = vst [vmem:[%s6458_s20 + $0x10] sm:$0xff] %v3274_v61   ;;  %v3436_v40 = vunpack.c.l.bf16 %v3274_v61  ;;  %v3437_v35 = vunpack.c.h.bf16 %v3274_v61  ;;  %v3535_v44 = vadd.f32 %v3534_v26, %v3504_v42  ;;  %v4689_v9 = vpop.f32.mrb[88].mxu1 }
 0x213   : > { %v4513_v20 = vpop.f32.mrb[124].mxu0  ;;  %v4762_v24 = vadd.f32 %v6428_v33, %v4689_v9  ;;  %v3145_v12 = vpop.f32.mrb[89].mxu1  ;;  %v3507_v25 = vmul.f32 %v3438_v38, %v3438_v38  ;;  %v3508_v15 = vmul.f32 %v3439_v34, %v3439_v34 }
 0x214   : > { %v4514_v57 = vpop.f32.mrb[125].mxu0  ;;  %v3467_v62 = vadd.f32 %v3466_v50, %v3436_v40  ;;  %v3505_v5 = vmul.f32 %v3436_v40, %v3436_v40  ;;  %v4766_v45 = vadd.f32 %v6422_v22, %v3145_v12  ;;  %v4690_v51 = vpop.f32.mrb[90].mxu1  ;;  %v3506_v29 = vmul.f32 %v3437_v35, %v3437_v35 }
 0x215   : > { %v4516_v58 = vpop.f32.mrb[126].mxu0  ;;  %v4770_v1 = vadd.f32 %v6431_v55, %v4690_v51  ;;  %v3148_v3 = vpop.f32.mrb[91].mxu1  ;;  %v4515_v63 = vadd.f32 %v4514_v57, %v4513_v20 }
 0x216   : > { %v4517_v2 = vpop.f32.mrb[127].mxu0  ;;  %v3468_v36 = vadd.f32 %v3467_v62, %v3437_v35  ;;  %v3536_v56 = vadd.f32 %v3535_v44, %v3505_v5  ;;  %v4774_v33 = vadd.f32 %v6425_v0, %v3148_v3 }
 0x217   : > { %v4518_v53 = vadd.f32 %v4517_v2, %v4516_v58  ;;  %v3277_v19 = vpack.c.bf16 %v4770_v1, %v4762_v24  ;;  %v6486_v22 = vadd.f32 %v6312_v49, %v4515_v63 }
 0x218   : > { %v3469_v17 = vadd.f32 %v3468_v36, %v3438_v38  ;;  %v3537_v48 = vadd.f32 %v3536_v56, %v3506_v29  ;;  %v3276_v21 = vpack.c.bf16 %v4774_v33, %v4766_v45 }
 0x219   : > { %v6489_v55 = vadd.f32 %v6322_v41, %v4518_v53  ;;  %4102 = vst [vmem:[%s6458_s20 + $0x28] sm:$0xff] %v3277_v19   ;;  %v3442_v37 = vunpack.c.l.bf16 %v3277_v19  ;;  %v3443_v26 = vunpack.c.h.bf16 %v3277_v19 }
 0x21a   : > { %v3538_v6 = vadd.f32 %v3537_v48, %v3507_v25  ;;  %4101 = vst [vmem:[%s6458_s20 + $0x20] sm:$0xff] %v3276_v21   ;;  %v3440_v13 = vunpack.c.l.bf16 %v3276_v21  ;;  %v3441_v46 = vunpack.c.h.bf16 %v3276_v21  ;;  %v3470_v11 = vadd.f32 %v3469_v17, %v3439_v34  ;;  %v4693_v0 = vpop.f32.mrb[92].mxu1 }
 0x21b   : > { %v4519_v16 = vpop.f32.mrb[128].mxu0  ;;  %v4778_v42 = vadd.f32 %v6440_v54, %v4693_v0  ;;  %v3161_v49 = vpop.f32.mrb[93].mxu1  ;;  %v3511_v45 = vmul.f32 %v3442_v37, %v3442_v37  ;;  %v3512_v1 = vmul.f32 %v3443_v26, %v3443_v26 }
 0x21c   : > { %v4520_v4 = vpop.f32.mrb[129].mxu0  ;;  %v3471_v61 = vadd.f32 %v3470_v11, %v3440_v13  ;;  %v3509_v50 = vmul.f32 %v3440_v13, %v3440_v13  ;;  %v3539_v40 = vadd.f32 %v3538_v6, %v3508_v15  ;;  %v4694_v41 = vpop.f32.mrb[94].mxu1  ;;  %v3510_v44 = vmul.f32 %v3441_v46, %v3441_v46 }
 0x21d   : > { %v4522_v35 = vpop.f32.mrb[130].mxu0  ;;  %v4782_v9 = vadd.f32 %v6434_v52, %v3161_v49  ;;  %v4786_v20 = vadd.f32 %v6443_v30, %v4694_v41  ;;  %v3164_v38 = vpop.f32.mrb[95].mxu1  ;;  %v4521_v24 = vadd.f32 %v4520_v4, %v4519_v16 }
 0x21e   : > { %v4523_v12 = vpop.f32.mrb[131].mxu0  ;;  %v3472_v57 = vadd.f32 %v3471_v61, %v3441_v46  ;;  %v3540_v54 = vadd.f32 %v3539_v40, %v3509_v50  ;;  %v4790_v62 = vadd.f32 %v6437_v27, %v3164_v38 }
 0x21f   : > { %v4524_v5 = vadd.f32 %v4523_v12, %v4522_v35  ;;  %v3279_v51 = vpack.c.bf16 %v4786_v20, %v4778_v42  ;;  %v6498_v58 = vadd.f32 %v6334_v39, %v4521_v24 }
 0x220   : > { %v3473_v34 = vadd.f32 %v3472_v57, %v3442_v37  ;;  %v3541_v29 = vadd.f32 %v3540_v54, %v3510_v44  ;;  %v3278_v52 = vpack.c.bf16 %v4790_v62, %v4782_v9 }
 0x221   : > { %v6501_v30 = vadd.f32 %v6344_v14, %v4524_v5  ;;  %4104 = vst [vmem:[%s6458_s20 + $0x38] sm:$0xff] %v3279_v51   ;;  %v3446_v33 = vunpack.c.l.bf16 %v3279_v51  ;;  %v3447_v19 = vunpack.c.h.bf16 %v3279_v51 }
 0x222   : > { %v3542_v3 = vadd.f32 %v3541_v29, %v3511_v45  ;;  %4103 = vst [vmem:[%s6458_s20 + $0x30] sm:$0xff] %v3278_v52   ;;  %v3444_v63 = vunpack.c.l.bf16 %v3278_v52  ;;  %v3445_v2 = vunpack.c.h.bf16 %v3278_v52  ;;  %v3474_v36 = vadd.f32 %v3473_v34, %v3443_v26  ;;  %v4697_v27 = vpop.f32.mrb[0].mxu1 }
 0x223   : > { %v4525_v56 = vpop.f32.mrb[132].mxu0  ;;  %v4793_v53 = vadd.f32 %v6462_v23, %v4697_v27  ;;  %v3177_v39 = vpop.f32.mrb[1].mxu1  ;;  %v3515_v4 = vmul.f32 %v3446_v33, %v3446_v33 }
 0x224   : > { %v4526_v25 = vpop.f32.mrb[133].mxu0  ;;  %v3475_v17 = vadd.f32 %v3474_v36, %v3444_v63  ;;  %v3513_v48 = vmul.f32 %v3444_v63, %v3444_v63  ;;  %v3543_v21 = vadd.f32 %v3542_v3, %v3512_v1  ;;  %v4698_v14 = vpop.f32.mrb[2].mxu1  ;;  %v3514_v6 = vmul.f32 %v3445_v2, %v3445_v2 }
 0x225   : > { %v4528_v15 = vpop.f32.mrb[134].mxu0  ;;  %v4796_v13 = vadd.f32 %v6446_v10, %v3177_v39  ;;  %v4799_v46 = vadd.f32 %v6465_v28, %v4698_v14  ;;  %v3180_v11 = vpop.f32.mrb[3].mxu1  ;;  %v4527_v0 = vadd.f32 %v4526_v25, %v4525_v56  ;;  %v3516_v28 = vmul.f32 %v3447_v19, %v3447_v19 }
 0x226   : > { %v4529_v16 = vpop.f32.mrb[135].mxu0  ;;  %v3476_v37 = vadd.f32 %v3475_v17, %v3445_v2  ;;  %v3544_v23 = vadd.f32 %v3543_v21, %v3513_v48  ;;  %v4802_v42 = vadd.f32 %v6449_v59, %v3180_v11 }
 0x227   : > { %v4530_v49 = vadd.f32 %v4529_v16, %v4528_v15  ;;  %v3281_v26 = vpack.c.bf16 %v4799_v46, %v4793_v53  ;;  %v4816_v61 = vadd.f32 %v6356_v32, %v4527_v0 }
 0x228   : > { %v3477_v50 = vadd.f32 %v3476_v37, %v3446_v33  ;;  %v3545_v40 = vadd.f32 %v3544_v23, %v3514_v6  ;;  %v3280_v41 = vpack.c.bf16 %v4802_v42, %v4796_v13 }
 0x229   : > { %v4822_v10 = vadd.f32 %v6366_v43, %v4530_v49  ;;  %4106 = vst [vmem:[%s6458_s20 + $0x48] sm:$0xff] %v3281_v26   ;;  %v3450_v59 = vunpack.c.l.bf16 %v3281_v26  ;;  %v3451_v32 = vunpack.c.h.bf16 %v3281_v26 }
 0x22a   : > { %v3546_v35 = vadd.f32 %v3545_v40, %v3515_v4  ;;  %4105 = vst [vmem:[%s6458_s20 + $0x40] sm:$0xff] %v3280_v41   ;;  %v3448_v44 = vunpack.c.l.bf16 %v3280_v41  ;;  %v3449_v9 = vunpack.c.h.bf16 %v3280_v41  ;;  %v3478_v20 = vadd.f32 %v3477_v50, %v3447_v19  ;;  %v4701_v38 = vpop.f32.mrb[4].mxu1 }
 0x22b   : > { %v4531_v24 = vpop.f32.mrb[136].mxu0  ;;  %v4805_v12 = vadd.f32 %v6486_v22, %v4701_v38  ;;  %v3193_v57 = vpop.f32.mrb[5].mxu1  ;;  %v3519_v56 = vmul.f32 %v3450_v59, %v3450_v59 }
 0x22c   : > { %v4532_v54 = vpop.f32.mrb[137].mxu0  ;;  %v3479_v62 = vadd.f32 %v3478_v20, %v3448_v44  ;;  %v3517_v5 = vmul.f32 %v3448_v44, %v3448_v44  ;;  %v3547_v45 = vadd.f32 %v3546_v35, %v3516_v28  ;;  %v4702_v51 = vpop.f32.mrb[6].mxu1  ;;  %v3518_v34 = vmul.f32 %v3449_v9, %v3449_v9 }
 0x22d   : > { %v4534_v43 = vpop.f32.mrb[138].mxu0  ;;  %v4808_v29 = vadd.f32 %v6474_v31, %v3193_v57  ;;  %v4811_v52 = vadd.f32 %v6489_v55, %v4702_v51  ;;  %v3196_v1 = vpop.f32.mrb[7].mxu1  ;;  %v4533_v3 = vadd.f32 %v4532_v54, %v4531_v24  ;;  %v3520_v55 = vmul.f32 %v3451_v32, %v3451_v32 }
 0x22e   : > { %v4535_v63 = vpop.f32.mrb[139].mxu0  ;;  %v3480_v2 = vadd.f32 %v3479_v62, %v3449_v9  ;;  %v3548_v22 = vadd.f32 %v3547_v45, %v3517_v5  ;;  %v4814_v36 = vadd.f32 %v6477_v18, %v3196_v1 }
 0x22f   : > { %v4536_v27 = vadd.f32 %v4535_v63, %v4534_v43  ;;  %v3283_v33 = vpack.c.bf16 %v4811_v52, %v4805_v12  ;;  %v4831_v53 = vadd.f32 %v6378_v8, %v4533_v3 }
 0x230   : > { %v3481_v39 = vadd.f32 %v3480_v2, %v3450_v59  ;;  %v3549_v25 = vadd.f32 %v3548_v22, %v3518_v34  ;;  %v3282_v19 = vpack.c.bf16 %v4814_v36, %v4808_v29 }
 0x231   : > { %v4837_v31 = vadd.f32 %v6388_v60, %v4536_v27  ;;  %4108 = vst [vmem:[%s6458_s20 + $0x58] sm:$0xff] %v3283_v33   ;;  %v3454_v18 = vunpack.c.l.bf16 %v3283_v33  ;;  %v3455_v0 = vunpack.c.h.bf16 %v3283_v33 }
 0x232   : > { %v3550_v17 = vadd.f32 %v3549_v25, %v3519_v56  ;;  %4107 = vst [vmem:[%s6458_s20 + $0x50] sm:$0xff] %v3282_v19   ;;  %v3452_v48 = vunpack.c.l.bf16 %v3282_v19  ;;  %v3453_v21 = vunpack.c.h.bf16 %v3282_v19  ;;  %v3482_v14 = vadd.f32 %v3481_v39, %v3451_v32  ;;  %v4705_v15 = vpop.f32.mrb[8].mxu1 }
 0x233   : > { %v4537_v6 = vpop.f32.mrb[140].mxu0  ;;  %v4817_v13 = vadd.f32 %v4816_v61, %v4705_v15  ;;  %v3209_v46 = vpop.f32.mrb[9].mxu1  ;;  %v3523_v44 = vmul.f32 %v3454_v18, %v3454_v18 }
 0x234   : > { %v4538_v11 = vpop.f32.mrb[141].mxu0  ;;  %v3483_v8 = vadd.f32 %v3482_v14, %v3452_v48  ;;  %v3521_v16 = vmul.f32 %v3452_v48, %v3452_v48  ;;  %v3551_v37 = vadd.f32 %v3550_v17, %v3520_v55  ;;  %v4706_v23 = vpop.f32.mrb[10].mxu1  ;;  %v3522_v60 = vmul.f32 %v3453_v21, %v3453_v21 }
 0x235   : > { %v4540_v42 = vpop.f32.mrb[142].mxu0  ;;  %v4820_v49 = vadd.f32 %v6498_v58, %v3209_v46  ;;  %v4823_v4 = vadd.f32 %v4822_v10, %v4706_v23  ;;  %v3212_v26 = vpop.f32.mrb[11].mxu1  ;;  %v4539_v50 = vadd.f32 %v4538_v11, %v4537_v6  ;;  %v3524_v10 = vmul.f32 %v3455_v0, %v3455_v0 }
 0x236   : > { %v4541_v40 = vpop.f32.mrb[143].mxu0  ;;  %v3484_v41 = vadd.f32 %v3483_v8, %v3453_v21  ;;  %v3552_v28 = vadd.f32 %v3551_v37, %v3521_v16  ;;  %v4826_v61 = vadd.f32 %v6501_v30, %v3212_v26 }
 0x237   : > { %v4542_v35 = vadd.f32 %v4541_v40, %v4540_v42  ;;  %v3285_v9 = vpack.c.bf16 %v4823_v4, %v4817_v13  ;;  %v4828_v20 = vadd.f32 %v6394_v7, %v4539_v50 }
 0x238   : > { %v3485_v38 = vadd.f32 %v3484_v41, %v3454_v18  ;;  %v3553_v24 = vadd.f32 %v3552_v28, %v3522_v60  ;;  %v3284_v59 = vpack.c.bf16 %v4826_v61, %v4820_v49 }
 0x239   : > { %v4834_v58 = vadd.f32 %v6400_v47, %v4542_v35  ;;  %4110 = vst [vmem:[%s6458_s20 + $0x68] sm:$0xff] %v3285_v9   ;;  %v3458_v45 = vunpack.c.l.bf16 %v3285_v9  ;;  %v3459_v29 = vunpack.c.h.bf16 %v3285_v9 }
 0x23a   : > { %v3554_v12 = vadd.f32 %v3553_v24, %v3523_v44  ;;  %4109 = vst [vmem:[%s6458_s20 + $0x60] sm:$0xff] %v3284_v59   ;;  %v3456_v57 = vunpack.c.l.bf16 %v3284_v59  ;;  %v3457_v54 = vunpack.c.h.bf16 %v3284_v59  ;;  %v3486_v32 = vadd.f32 %v3485_v38, %v3455_v0  ;;  %v4709_v62 = vpop.f32.mrb[12].mxu1 }
 0x23b   : > { %v4829_v5 = vadd.f32 %v4828_v20, %v4709_v62  ;;  %v3225_v30 = vpop.f32.mrb[13].mxu1  ;;  %v3527_v27 = vmul.f32 %v3458_v45, %v3458_v45  ;;  %v3528_v25 = vmul.f32 %v3459_v29, %v3459_v29 }
 0x23c   : > { %v3487_v51 = vadd.f32 %v3486_v32, %v3456_v57  ;;  %v3525_v43 = vmul.f32 %v3456_v57, %v3456_v57  ;;  %v3555_v34 = vadd.f32 %v3554_v12, %v3524_v10  ;;  %v4710_v7 = vpop.f32.mrb[14].mxu1  ;;  %v4832_v52 = vadd.f32 %v4831_v53, %v3225_v30 }
 0x23d   : > { %v4835_v47 = vadd.f32 %v4834_v58, %v4710_v7  ;;  %v3228_v1 = vpop.f32.mrb[15].mxu1  ;;  %v3526_v63 = vmul.f32 %v3457_v54, %v3457_v54 }
 0x23e   : > { %v3488_v3 = vadd.f32 %v3487_v51, %v3457_v54  ;;  %v3556_v2 = vadd.f32 %v3555_v34, %v3525_v43  ;;  %v4838_v22 = vadd.f32 %v4837_v31, %v3228_v1 }
 0x23f   : > { %v3287_v36 = vpack.c.bf16 %v4835_v47, %v4829_v5 }
 0x240   : > { %v3489_v56 = vadd.f32 %v3488_v3, %v3458_v45  ;;  %v3557_v33 = vadd.f32 %v3556_v2, %v3526_v63  ;;  %v3286_v39 = vpack.c.bf16 %v4838_v22, %v4832_v52 }
 0x241   : > { %4112 = vst [vmem:[%s6458_s20 + $0x78] sm:$0xff] %v3287_v36   ;;  %v3462_v19 = vunpack.c.l.bf16 %v3287_v36  ;;  %v3463_v6 = vunpack.c.h.bf16 %v3287_v36 }
 0x242   : > { %v3558_v55 = vadd.f32 %v3557_v33, %v3527_v27  ;;  %4111 = vst [vmem:[%s6458_s20 + $0x70] sm:$0xff] %v3286_v39   ;;  %v3460_v17 = vunpack.c.l.bf16 %v3286_v39  ;;  %v3461_v48 = vunpack.c.h.bf16 %v3286_v39  ;;  %v3490_v53 = vadd.f32 %v3489_v56, %v3459_v29 }
 0x243   : > { %v3531_v18 = vmul.f32 %v3462_v19, %v3462_v19  ;;  %v3532_v8 = vmul.f32 %v3463_v6, %v3463_v6 }
 0x244   : > { %v3491_v21 = vadd.f32 %v3490_v53, %v3460_v17  ;;  %v3529_v14 = vmul.f32 %v3460_v17, %v3460_v17  ;;  %v3559_v15 = vadd.f32 %v3558_v55, %v3528_v25  ;;  %v3530_v31 = vmul.f32 %v3461_v48, %v3461_v48 }
 0x246   : > { %v3492_v13 = vadd.f32 %v3491_v21, %v3461_v48  ;;  %v3560_v46 = vadd.f32 %v3559_v15, %v3529_v14 }
 0x248   : > { %v3493_v11 = vadd.f32 %v3492_v13, %v3462_v19  ;;  %v3561_v0 = vadd.f32 %v3560_v46, %v3530_v31 }
 0x24a   : > { %v3494_v16 = vadd.f32 %v3493_v11, %v3463_v6  ;;  %v3562_v37 = vadd.f32 %v3561_v0, %v3531_v18 }
 0x24c   : > { %v3495_v23 = vrot.slane %v3494_v16, 4  ;;  %v3563_v42 = vadd.f32 %v3562_v37, %v3532_v8 }
 0x24e   : > { %v3496_v60 = vadd.f32 %v3495_v23, %v3494_v16  ;;  %v3564_v49 = vrot.slane %v3563_v42, 4 }
 0x250   : > { %v3497_v4 = vrot.slane %v3496_v60, 2  ;;  %v3565_v26 = vadd.f32 %v3564_v49, %v3563_v42 }
 0x252   : > { %v3498_v50 = vadd.f32 %v3497_v4, %v3496_v60  ;;  %v3566_v40 = vrot.slane %v3565_v26, 2 }
 0x254   : > { %v3499_v41 = vrot.slane %v3498_v50, 1  ;;  %v3567_v28 = vadd.f32 %v3566_v40, %v3565_v26 }
 0x256   : > { %v3568_v61 = vrot.slane %v3567_v28, 1  ;;  %v3500_v35 = vadd.f32 %v3499_v41, %v3498_v50 }
 0x258   : > { %v3569_v44 = vadd.f32 %v3568_v61, %v3567_v28 }
 0x25a   : > { %v3571_v9 = vsel %vm6681_vm8, %v3500_v35, %v3569_v44 }
 0x25b   : > { %3572 = vst [vmem:[%s235_s23] sm:$0x3] %v3571_v9 }
 0x25c PF: > { %s16_s18 = sadd.s32 1, %s4975_s18  }
 0x25d   : > { %p13_p4 = scmp.ge.s32.totalorder %s16_s18, 4  }
 0x25f   :  { %15 = sbr.rel (!%p13_p4) target bundleno = 1 (0x1), region = 80 }

</bundles_post_ra>
